<compile_context>
chip_gen: v7x
topology: tpu7x:2x2x1
jax: 0.10.0
libtpu: 0.0.40
codegen_flags: <defaults>
</compile_context>

<pallas_src>
import functools

import jax
import jax.numpy as jnp
from jax import lax
from jax.experimental import pallas as pl
from jax.experimental.pallas import tpu as pltpu


def _ru8(n):
    return (n + 7) // 8 * 8


# ---------------------------------------------------------------------------
# Fused Pallas kernel (one batch element per grid step).
# ---------------------------------------------------------------------------
def _vol2slice_kernel(x_ref, w1_ref, b1_ref, w2_ref, b2_ref, w3_ref, b3_ref,
                      w4_ref, b4_ref, o_ref, col, buf1, buf2, buf3,
                      *, h, w, c):
    # x_ref : (1, (h+2)*wb, c) bf16, zero-padded input, row stride wb = w + 2
    # wK_ref: (9*C_in, C_out) bf16 tap-concatenated weights; w4_ref: (9, 16)
    # bK_ref: (1, C_out) f32;  b4_ref: (1, 1) f32
    # o_ref : (1, 1, h*wb) f32 flat output row (garbage cols dropped outside)
    # col   : (max_len, >=144) bf16 im2col scratch (shared by layers 1-3)
    # bufK  : bf16 row-flattened intermediates (row stride wb)
    wb = w + 2                      # common flat row stride
    off0 = 2 * wb + 2               # flat offset of spatial position (2, 2)
    len1 = (h - 2) * wb             # layer-1 output rows (flat)
    len2 = (h - 4) * wb             # layer-2 output rows (flat)
    len3 = (h - 2) * wb             # layer-3 output rows (flat)

    # ---- zero only the padding borders of buf2/buf3 that the data stores
    #      below never touch (they realise the transposed-conv zero padding).
    #      buf1 / col are intentionally NOT zeroed: their stale regions only
    #      ever feed rows whose columns are masked to zero before landing in
    #      a padding region.
    buf2[0:off0, :] = jnp.zeros((off0, 16), jnp.bfloat16)
    buf2[off0 + len2:buf2.shape[0], :] = jnp.zeros(
        (buf2.shape[0] - off0 - len2, 16), jnp.bfloat16)
    buf3[0:off0, :] = jnp.zeros((off0, 16), jnp.bfloat16)
    buf3[off0 + len3:buf3.shape[0], :] = jnp.zeros(
        (buf3.shape[0] - off0 - len3, 16), jnp.bfloat16)

    # Shared column-index base (integer % is a multi-op VPU sequence; compute
    # it once at the maximum length and slice for layer 2).
    colidx = lax.broadcasted_iota(jnp.int32, (len3, 1), 0) % wb

    def im2col(load, length, cin):
        # Nine sublane-shifted whole-image copies into 16-lane (or c-lane)
        # bands of `col` -> the layer becomes a single lane-dense-K matmul.
        for tap in range(9):
            dy, dx = divmod(tap, 3)
            col[0:length, tap * cin:(tap + 1) * cin] = load(dy * wb + dx, length)

    # ---- layer 1: conv1 (c -> 16), valid, no activation: h x w -> (h-2, w-2)
    im2col(lambda o, ln: x_ref[0, o:o + ln, :], len1, c)
    acc1 = jnp.dot(col[0:len1, 0:9 * c], w1_ref[...],
                   preferred_element_type=jnp.float32)
    buf1[0:len1, :] = (acc1 + b1_ref[...]).astype(jnp.bfloat16)

    # ---- layer 2: relu(conv2) (16 -> 16), valid: -> (h-4, w-4); stored at
    #      the (2, 2) interior of buf2 (== zero-padded input of convT3).
    #      Garbage columns MUST be masked to 0: they land in the padding ring.
    im2col(lambda o, ln: buf1[o:o + ln, :], len2, 16)
    acc2 = jnp.dot(col[0:len2, 0:144], w2_ref[...],
                   preferred_element_type=jnp.float32)
    y2 = jnp.maximum(acc2 + b2_ref[...], 0.0)
    y2 = jnp.where(colidx[0:len2] < (w - 4), y2, 0.0)
    buf2[off0:off0 + len2, :] = y2.astype(jnp.bfloat16)

    # ---- layer 3: relu(convT3) == relu(full conv with flipped/channel-
    #      swapped weights): -> (h-2, w-2); stored at the interior of buf3.
    im2col(lambda o, ln: buf2[o:o + ln, :], len3, 16)
    acc3 = jnp.dot(col[0:len3, 0:144], w3_ref[...],
                   preferred_element_type=jnp.float32)
    y3 = jnp.maximum(acc3 + b3_ref[...], 0.0)
    y3 = jnp.where(colidx < (w - 2), y3, 0.0)
    buf3[off0:off0 + len3, :] = y3.astype(jnp.bfloat16)

    # ---- layer 4: convT4 (16 -> 1).  One channel-contraction matmul (NT
    #      dimension numbers, no explicit transpose) produces all nine
    #      channel-contracted tap images at once; the 3x3 kernel is then nine
    #      lane-shifted adds on the VPU.  Output store stays lane-dense.
    z = lax.dot_general(w4_ref[...], buf3[...],
                        dimension_numbers=(((1,), (1,)), ((), ())),
                        preferred_element_type=jnp.float32)     # (9, rows3)
    out = None
    for tap in range(9):
        dy, dx = divmod(tap, 3)
        o = dy * wb + dx
        term = z[tap:tap + 1, o:o + h * wb]                     # (1, h*wb)
        out = term if out is None else out + term
    o_ref[0] = out + b4_ref[...]


# ---------------------------------------------------------------------------
# Weight-layout glue (plain JAX, runs once per call outside the kernel).
# ---------------------------------------------------------------------------
def _conv_weight_cat(w):
    # PyTorch Conv2d weight (C_out, C_in, 3, 3) -> (9*C_in, C_out),
    # taps ordered dy*3+dx, band layout [tap*C_in + ci].
    c_out, c_in = w.shape[0], w.shape[1]
    return jnp.transpose(w, (2, 3, 1, 0)).reshape(9 * c_in, c_out)


def _convT_weight_cat(w):
    # PyTorch ConvTranspose2d weight (C_in, C_out, 3, 3).
    # Equivalent full-conv weight: W'[co, ci, ky, kx] = W[ci, co, 2-ky, 2-kx].
    c_in, c_out = w.shape[0], w.shape[1]
    wf = jnp.flip(w, axis=(2, 3))
    return jnp.transpose(wf, (2, 3, 0, 1)).reshape(9 * c_in, c_out)


def vol2slice_forward(x_nchw, p):
    """Forward pass matching the PyTorch module.  x_nchw: (N, C, H, W)."""
    n, c, h, w = x_nchw.shape
    wb = w + 2

    # NCHW -> NHWC, cast to bf16 (MXU operand dtype), pad spatially by (0, 2)
    # so the flat buffer has row stride wb plus slack rows, then flatten
    # (H, W) -> rows.  One fused XLA pass over the (small) input.
    x = jnp.transpose(x_nchw, (0, 2, 3, 1)).astype(jnp.bfloat16)
    x = jnp.pad(x, ((0, 0), (0, 2), (0, 2), (0, 0)))            # (n, h+2, wb, c)
    x = x.reshape(n, (h + 2) * wb, c)

    w1 = _conv_weight_cat(p["w1"]).astype(jnp.bfloat16)          # (9c, 16)
    w2 = _conv_weight_cat(p["w2"]).astype(jnp.bfloat16)          # (144, 16)
    w3 = _convT_weight_cat(p["w3"]).astype(jnp.bfloat16)         # (144, 16)
    w4 = _convT_weight_cat(p["w4"]).reshape(9, 16).astype(jnp.bfloat16)
    b1 = p["b1"].reshape(1, -1)
    b2 = p["b2"].reshape(1, -1)
    b3 = p["b3"].reshape(1, -1)
    b4 = p["b4"].reshape(1, 1)

    rows1 = _ru8((h - 2) * wb + 2)   # layer-1 output (+2 read-slack rows)
    rows2 = _ru8(h * wb + 2)         # zero-padded layer-2 output frame
    rows3 = _ru8((h + 2) * wb + 2)   # zero-padded layer-3 output frame
    col_rows = _ru8((h - 2) * wb)    # shared im2col scratch (max length)
    col_w = 9 * max(c, 16)

    kernel = functools.partial(_vol2slice_kernel, h=h, w=w, c=c)
    out_flat = pl.pallas_call(
        kernel,
        out_shape=jax.ShapeDtypeStruct((n, 1, h * wb), jnp.float32),
        grid=(n,),
        in_specs=[
            pl.BlockSpec((1, (h + 2) * wb, c), lambda b: (b, 0, 0)),
            pl.BlockSpec((9 * c, 16), lambda b: (0, 0)),
            pl.BlockSpec((1, 16), lambda b: (0, 0)),
            pl.BlockSpec((144, 16), lambda b: (0, 0)),
            pl.BlockSpec((1, 16), lambda b: (0, 0)),
            pl.BlockSpec((144, 16), lambda b: (0, 0)),
            pl.BlockSpec((1, 16), lambda b: (0, 0)),
            pl.BlockSpec((9, 16), lambda b: (0, 0)),
            pl.BlockSpec((1, 1), lambda b: (0, 0)),
        ],
        out_specs=pl.BlockSpec((1, 1, h * wb), lambda b: (b, 0, 0)),
        scratch_shapes=[
            pltpu.VMEM((col_rows, col_w), jnp.bfloat16),   # shared im2col LHS
            pltpu.VMEM((rows1, 16), jnp.bfloat16),         # buf1
            pltpu.VMEM((rows2, 16), jnp.bfloat16),         # buf2 (padded)
            pltpu.VMEM((rows3, 16), jnp.bfloat16),         # buf3 (padded)
        ],
        compiler_params=pltpu.CompilerParams(
            dimension_semantics=("parallel",),
            vmem_limit_bytes=48 * 1024 * 1024),
    )(x, w1, b1, w2, b2, w3, b3, w4, b4)

    out = out_flat.reshape(n, h, wb)[:, :, :w]                   # drop garbage
    return out[:, None, :, :]                                    # (n,1,h,w)


# ---------------------------------------------------------------------------
# Pure-JAX references (XLA convolutions) for correctness checks.
#   emulate_bf16=True mirrors the kernel's numerics (bf16 MXU operands,
#   f32 accumulation); emulate_bf16=False is the true f32 module output.
# ---------------------------------------------------------------------------
def vol2slice_reference(x, p, *, emulate_bf16=False):
    dn = ("NCHW", "OIHW", "NCHW")
    mm_dtype = jnp.bfloat16 if emulate_bf16 else jnp.float32
    prec = None if emulate_bf16 else lax.Precision.HIGHEST

    def conv(y, w, b, pad):
        y = lax.conv_general_dilated(
            y.astype(mm_dtype), w.astype(mm_dtype), (1, 1), pad,
            dimension_numbers=dn, precision=prec,
            preferred_element_type=jnp.float32)
        return y + b[None, :, None, None]

    y = conv(x, p["w1"], p["b1"], "VALID")
    y = jax.nn.relu(conv(y, p["w2"], p["b2"], "VALID"))
    w3 = jnp.flip(jnp.transpose(p["w3"], (1, 0, 2, 3)), axis=(2, 3))
    y = jax.nn.relu(conv(y, w3, p["b3"], [(2, 2), (2, 2)]))
    w4 = jnp.flip(jnp.transpose(p["w4"], (1, 0, 2, 3)), axis=(2, 3))
    y = conv(y, w4, p["b4"], [(2, 2), (2, 2)])
    return y


# ---------------------------------------------------------------------------
# Deterministic parameter init (shapes from the module's __init__).
# ---------------------------------------------------------------------------
def init_params(key, n_channels):
    def uni(k, shape, fan_in):
        bound = 1.0 / jnp.sqrt(jnp.float32(fan_in))
        return jax.random.uniform(k, shape, jnp.float32, -bound, bound)

    ks = jax.random.split(key, 8)
    return {
        # Conv2d(nChannels, 16, 3)
        "w1": uni(ks[0], (16, n_channels, 3, 3), n_channels * 9),
        "b1": uni(ks[1], (16,), n_channels * 9),
        # Conv2d(16, 16, 3)
        "w2": uni(ks[2], (16, 16, 3, 3), 16 * 9),
        "b2": uni(ks[3], (16,), 16 * 9),
        # ConvTranspose2d(16, 16, 3) -> weight shape (C_in, C_out, 3, 3)
        "w3": uni(ks[4], (16, 16, 3, 3), 16 * 9),
        "b3": uni(ks[5], (16,), 16 * 9),
        # ConvTranspose2d(16, 1, 3)
        "w4": uni(ks[6], (16, 1, 3, 3), 16 * 9),
        "b4": uni(ks[7], (1,), 16 * 9),
    }


if __name__ == "__main__":
    key = jax.random.PRNGKey(0)
    k_x, k_p = jax.random.split(key)

    N, C, H, W = 2, 4, 16, 16
    x = jax.random.normal(k_x, (N, C, H, W), jnp.float32)
    params = init_params(k_p, C)

    out = jax.block_until_ready(jax.jit(vol2slice_forward)(x, params))
    assert out.shape == (N, 1, H, W), out.shape

    # Semantics check against a reference that uses the same numerics as the
    # kernel (bf16 MXU operands, f32 accumulation, f32 bias/ReLU).
    ref_bf16 = jax.block_until_ready(
        vol2slice_reference(x, params, emulate_bf16=True))
    err_bf16 = float(jnp.max(jnp.abs(out - ref_bf16)))
    assert jnp.allclose(out, ref_bf16, rtol=1e-2, atol=1e-2), err_bf16

    # Sanity check against the exact-f32 module output (looser tolerance
    # because the kernel deliberately feeds bf16 operands to the MXU).
    ref_f32 = jax.block_until_ready(
        vol2slice_reference(x, params, emulate_bf16=False))
    err_f32 = float(jnp.max(jnp.abs(out - ref_f32)))
    assert jnp.allclose(out, ref_f32, rtol=5e-2, atol=5e-2), err_f32

    print("KERNEL_OK")
</pallas_src>

<mosaic_0001>
module attributes {stable_mosaic.version = 11 : i64} {
  func.func @_vol2slice_kernel(%arg0: i32, %arg1: memref<1x324x4xbf16, #tpu.memory_space<vmem>>, %arg2: memref<36x16xbf16, #tpu.memory_space<vmem>>, %arg3: memref<1x16xf32, #tpu.memory_space<vmem>>, %arg4: memref<144x16xbf16, #tpu.memory_space<vmem>>, %arg5: memref<1x16xf32, #tpu.memory_space<vmem>>, %arg6: memref<144x16xbf16, #tpu.memory_space<vmem>>, %arg7: memref<1x16xf32, #tpu.memory_space<vmem>>, %arg8: memref<9x16xbf16, #tpu.memory_space<vmem>>, %arg9: memref<1x1xf32, #tpu.memory_space<vmem>>, %arg10: memref<1x1x288xf32, #tpu.memory_space<vmem>>, %arg11: memref<256x144xbf16, #tpu.memory_space<vmem>>, %arg12: memref<256x16xbf16, #tpu.memory_space<vmem>>, %arg13: memref<296x16xbf16, #tpu.memory_space<vmem>>, %arg14: memref<328x16xbf16, #tpu.memory_space<vmem>>) attributes {dimension_semantics = [#tpu.dimension_semantics<parallel>], iteration_bounds = array<i64: 2>, scalar_prefetch = 0 : i64, scratch_operands = 4 : i64, tpu.core_type = #tpu.core_type<tc>, window_params = [{transform_indices = @transform_0, window_bounds = array<i64: 1, 324, 4>}, {pipeline_mode = #tpu.pipeline_mode<synchronous>, transform_indices = @transform_1, window_bounds = array<i64: 36, 16>}, {pipeline_mode = #tpu.pipeline_mode<synchronous>, transform_indices = @transform_2, window_bounds = array<i64: 1, 16>}, {pipeline_mode = #tpu.pipeline_mode<synchronous>, transform_indices = @transform_3, window_bounds = array<i64: 144, 16>}, {pipeline_mode = #tpu.pipeline_mode<synchronous>, transform_indices = @transform_4, window_bounds = array<i64: 1, 16>}, {pipeline_mode = #tpu.pipeline_mode<synchronous>, transform_indices = @transform_5, window_bounds = array<i64: 144, 16>}, {pipeline_mode = #tpu.pipeline_mode<synchronous>, transform_indices = @transform_6, window_bounds = array<i64: 1, 16>}, {pipeline_mode = #tpu.pipeline_mode<synchronous>, transform_indices = @transform_7, window_bounds = array<i64: 9, 16>}, {pipeline_mode = #tpu.pipeline_mode<synchronous>, transform_indices = @transform_8, window_bounds = array<i64: 1, 1>}, {transform_indices = @transform_9, window_bounds = array<i64: 1, 1, 288>}]} {
    %cst = arith.constant 0.000000e+00 : bf16
    %0 = vector.broadcast %cst : bf16 to vector<38x16xbf16>
    %c0 = arith.constant 0 : index
    %c0_0 = arith.constant 0 : index
    %1 = vector.load %arg13[%c0, %c0_0] : memref<296x16xbf16, #tpu.memory_space<vmem>>, vector<38x16xbf16>
    tpu.vector_store %arg13[%c0, %c0_0], %0 {strides = array<i32>} : memref<296x16xbf16, #tpu.memory_space<vmem>>, vector<38x16xbf16>,
    %cst_1 = arith.constant 0.000000e+00 : bf16
    %2 = vector.broadcast %cst_1 : bf16 to vector<42x16xbf16>
    %c254 = arith.constant 254 : index
    %c0_2 = arith.constant 0 : index
    %3 = vector.load %arg13[%c254, %c0_2] : memref<296x16xbf16, #tpu.memory_space<vmem>>, vector<42x16xbf16>
    tpu.vector_store %arg13[%c254, %c0_2], %2 {strides = array<i32>} : memref<296x16xbf16, #tpu.memory_space<vmem>>, vector<42x16xbf16>,
    %cst_3 = arith.constant 0.000000e+00 : bf16
    %4 = vector.broadcast %cst_3 : bf16 to vector<38x16xbf16>
    %c0_4 = arith.constant 0 : index
    %c0_5 = arith.constant 0 : index
    %5 = vector.load %arg14[%c0_4, %c0_5] : memref<328x16xbf16, #tpu.memory_space<vmem>>, vector<38x16xbf16>
    tpu.vector_store %arg14[%c0_4, %c0_5], %4 {strides = array<i32>} : memref<328x16xbf16, #tpu.memory_space<vmem>>, vector<38x16xbf16>,
    %cst_6 = arith.constant 0.000000e+00 : bf16
    %6 = vector.broadcast %cst_6 : bf16 to vector<38x16xbf16>
    %c290 = arith.constant 290 : index
    %c0_7 = arith.constant 0 : index
    %7 = vector.load %arg14[%c290, %c0_7] : memref<328x16xbf16, #tpu.memory_space<vmem>>, vector<38x16xbf16>
    tpu.vector_store %arg14[%c290, %c0_7], %6 {strides = array<i32>} : memref<328x16xbf16, #tpu.memory_space<vmem>>, vector<38x16xbf16>,
    %8 = tpu.iota {dimensions = array<i32: 0>} : vector<252x1xi32>
    %c18_i32 = arith.constant 18 : i32
    %c0_i32 = arith.constant 0 : i32
    %9 = arith.cmpi eq, %c18_i32, %c0_i32 : i32
    %c1_i32 = arith.constant 1 : i32
    %10 = arith.select %9, %c1_i32, %c18_i32 : i32
    %11 = vector.broadcast %10 : i32 to vector<252x1xi32>
    %12 = arith.remsi %8, %11 : vector<252x1xi32>
    %c0_i32_8 = arith.constant 0 : i32
    %13 = vector.broadcast %c0_i32_8 : i32 to vector<252x1xi32>
    %14 = arith.cmpi ne, %12, %13 : vector<252x1xi32>
    %c0_i32_9 = arith.constant 0 : i32
    %15 = vector.broadcast %c0_i32_9 : i32 to vector<252x1xi32>
    %16 = arith.cmpi slt, %12, %15 : vector<252x1xi32>
    %c0_i32_10 = arith.constant 0 : i32
    %17 = arith.cmpi slt, %10, %c0_i32_10 : i32
    %18 = vector.broadcast %17 : i1 to vector<252x1xi1>
    %19 = vector.broadcast %18 : vector<252x1xi1> to vector<252x1xi1>
    %20 = arith.xori %16, %19 : vector<252x1xi1>
    %21 = arith.andi %20, %14 : vector<252x1xi1>
    %22 = vector.broadcast %10 : i32 to vector<252x1xi32>
    %23 = arith.addi %12, %22 : vector<252x1xi32>
    %24 = arith.select %21, %23, %12 : vector<252x1xi1>, vector<252x1xi32>
    %c0_11 = arith.constant 0 : index
    %c0_12 = arith.constant 0 : index
    %c0_13 = arith.constant 0 : index
    %25 = vector.load %arg1[%c0_11, %c0_12, %c0_13] : memref<1x324x4xbf16, #tpu.memory_space<vmem>>, vector<1x252x4xbf16>
    %26 = vector.shape_cast %25 : vector<1x252x4xbf16> to vector<252x4xbf16>
    %c0_14 = arith.constant 0 : index
    %c0_15 = arith.constant 0 : index
    %27 = vector.load %arg11[%c0_14, %c0_15] : memref<256x144xbf16, #tpu.memory_space<vmem>>, vector<252x4xbf16>
    tpu.vector_store %arg11[%c0_14, %c0_15], %26 {strides = array<i32>} : memref<256x144xbf16, #tpu.memory_space<vmem>>, vector<252x4xbf16>,
    %c0_16 = arith.constant 0 : index
    %c1 = arith.constant 1 : index
    %c0_17 = arith.constant 0 : index
    %28 = vector.load %arg1[%c0_16, %c1, %c0_17] : memref<1x324x4xbf16, #tpu.memory_space<vmem>>, vector<1x252x4xbf16>
    %29 = vector.shape_cast %28 : vector<1x252x4xbf16> to vector<252x4xbf16>
    %c0_18 = arith.constant 0 : index
    %c4 = arith.constant 4 : index
    %30 = vector.load %arg11[%c0_18, %c4] : memref<256x144xbf16, #tpu.memory_space<vmem>>, vector<252x4xbf16>
    tpu.vector_store %arg11[%c0_18, %c4], %29 {strides = array<i32>} : memref<256x144xbf16, #tpu.memory_space<vmem>>, vector<252x4xbf16>,
    %c0_19 = arith.constant 0 : index
    %c2 = arith.constant 2 : index
    %c0_20 = arith.constant 0 : index
    %31 = vector.load %arg1[%c0_19, %c2, %c0_20] : memref<1x324x4xbf16, #tpu.memory_space<vmem>>, vector<1x252x4xbf16>
    %32 = vector.shape_cast %31 : vector<1x252x4xbf16> to vector<252x4xbf16>
    %c0_21 = arith.constant 0 : index
    %c8 = arith.constant 8 : index
    %33 = vector.load %arg11[%c0_21, %c8] : memref<256x144xbf16, #tpu.memory_space<vmem>>, vector<252x4xbf16>
    tpu.vector_store %arg11[%c0_21, %c8], %32 {strides = array<i32>} : memref<256x144xbf16, #tpu.memory_space<vmem>>, vector<252x4xbf16>,
    %c0_22 = arith.constant 0 : index
    %c18 = arith.constant 18 : index
    %c0_23 = arith.constant 0 : index
    %34 = vector.load %arg1[%c0_22, %c18, %c0_23] : memref<1x324x4xbf16, #tpu.memory_space<vmem>>, vector<1x252x4xbf16>
    %35 = vector.shape_cast %34 : vector<1x252x4xbf16> to vector<252x4xbf16>
    %c0_24 = arith.constant 0 : index
    %c12 = arith.constant 12 : index
    %36 = vector.load %arg11[%c0_24, %c12] : memref<256x144xbf16, #tpu.memory_space<vmem>>, vector<252x4xbf16>
    tpu.vector_store %arg11[%c0_24, %c12], %35 {strides = array<i32>} : memref<256x144xbf16, #tpu.memory_space<vmem>>, vector<252x4xbf16>,
    %c0_25 = arith.constant 0 : index
    %c19 = arith.constant 19 : index
    %c0_26 = arith.constant 0 : index
    %37 = vector.load %arg1[%c0_25, %c19, %c0_26] : memref<1x324x4xbf16, #tpu.memory_space<vmem>>, vector<1x252x4xbf16>
    %38 = vector.shape_cast %37 : vector<1x252x4xbf16> to vector<252x4xbf16>
    %c0_27 = arith.constant 0 : index
    %c16 = arith.constant 16 : index
    %39 = vector.load %arg11[%c0_27, %c16] : memref<256x144xbf16, #tpu.memory_space<vmem>>, vector<252x4xbf16>
    tpu.vector_store %arg11[%c0_27, %c16], %38 {strides = array<i32>} : memref<256x144xbf16, #tpu.memory_space<vmem>>, vector<252x4xbf16>,
    %c0_28 = arith.constant 0 : index
    %c20 = arith.constant 20 : index
    %c0_29 = arith.constant 0 : index
    %40 = vector.load %arg1[%c0_28, %c20, %c0_29] : memref<1x324x4xbf16, #tpu.memory_space<vmem>>, vector<1x252x4xbf16>
    %41 = vector.shape_cast %40 : vector<1x252x4xbf16> to vector<252x4xbf16>
    %c0_30 = arith.constant 0 : index
    %c20_31 = arith.constant 20 : index
    %42 = vector.load %arg11[%c0_30, %c20_31] : memref<256x144xbf16, #tpu.memory_space<vmem>>, vector<252x4xbf16>
    tpu.vector_store %arg11[%c0_30, %c20_31], %41 {strides = array<i32>} : memref<256x144xbf16, #tpu.memory_space<vmem>>, vector<252x4xbf16>,
    %c0_32 = arith.constant 0 : index
    %c36 = arith.constant 36 : index
    %c0_33 = arith.constant 0 : index
    %43 = vector.load %arg1[%c0_32, %c36, %c0_33] : memref<1x324x4xbf16, #tpu.memory_space<vmem>>, vector<1x252x4xbf16>
    %44 = vector.shape_cast %43 : vector<1x252x4xbf16> to vector<252x4xbf16>
    %c0_34 = arith.constant 0 : index
    %c24 = arith.constant 24 : index
    %45 = vector.load %arg11[%c0_34, %c24] : memref<256x144xbf16, #tpu.memory_space<vmem>>, vector<252x4xbf16>
    tpu.vector_store %arg11[%c0_34, %c24], %44 {strides = array<i32>} : memref<256x144xbf16, #tpu.memory_space<vmem>>, vector<252x4xbf16>,
    %c0_35 = arith.constant 0 : index
    %c37 = arith.constant 37 : index
    %c0_36 = arith.constant 0 : index
    %46 = vector.load %arg1[%c0_35, %c37, %c0_36] : memref<1x324x4xbf16, #tpu.memory_space<vmem>>, vector<1x252x4xbf16>
    %47 = vector.shape_cast %46 : vector<1x252x4xbf16> to vector<252x4xbf16>
    %c0_37 = arith.constant 0 : index
    %c28 = arith.constant 28 : index
    %48 = vector.load %arg11[%c0_37, %c28] : memref<256x144xbf16, #tpu.memory_space<vmem>>, vector<252x4xbf16>
    tpu.vector_store %arg11[%c0_37, %c28], %47 {strides = array<i32>} : memref<256x144xbf16, #tpu.memory_space<vmem>>, vector<252x4xbf16>,
    %c0_38 = arith.constant 0 : index
    %c38 = arith.constant 38 : index
    %c0_39 = arith.constant 0 : index
    %49 = vector.load %arg1[%c0_38, %c38, %c0_39] : memref<1x324x4xbf16, #tpu.memory_space<vmem>>, vector<1x252x4xbf16>
    %50 = vector.shape_cast %49 : vector<1x252x4xbf16> to vector<252x4xbf16>
    %c0_40 = arith.constant 0 : index
    %c32 = arith.constant 32 : index
    %51 = vector.load %arg11[%c0_40, %c32] : memref<256x144xbf16, #tpu.memory_space<vmem>>, vector<252x4xbf16>
    tpu.vector_store %arg11[%c0_40, %c32], %50 {strides = array<i32>} : memref<256x144xbf16, #tpu.memory_space<vmem>>, vector<252x4xbf16>,
    %c0_41 = arith.constant 0 : index
    %c0_42 = arith.constant 0 : index
    %52 = vector.load %arg11[%c0_41, %c0_42] : memref<256x144xbf16, #tpu.memory_space<vmem>>, vector<252x36xbf16>
    %c0_43 = arith.constant 0 : index
    %c0_44 = arith.constant 0 : index
    %53 = vector.load %arg2[%c0_43, %c0_44] : memref<36x16xbf16, #tpu.memory_space<vmem>>, vector<36x16xbf16>
    %cst_45 = arith.constant dense<0.000000e+00> : vector<252x16xf32>
    %54 = tpu.matmul %52, %53, %cst_45 {dimension_numbers = #tpu.dot_dimension_numbers<[1], [0], [0], [1], [0, 0, 1, 1], [], []>} : vector<252x36xbf16>, vector<36x16xbf16>, vector<252x16xf32> -> vector<252x16xf32>
    %c0_46 = arith.constant 0 : index
    %c0_47 = arith.constant 0 : index
    %55 = vector.load %arg3[%c0_46, %c0_47] : memref<1x16xf32, #tpu.memory_space<vmem>>, vector<1x16xf32>
    %56 = vector.broadcast %55 : vector<1x16xf32> to vector<252x16xf32>
    %57 = arith.addf %54, %56 : vector<252x16xf32>
    %58 = arith.truncf %57 : vector<252x16xf32> to vector<252x16xbf16>
    %c0_48 = arith.constant 0 : index
    %c0_49 = arith.constant 0 : index
    %59 = vector.load %arg12[%c0_48, %c0_49] : memref<256x16xbf16, #tpu.memory_space<vmem>>, vector<252x16xbf16>
    tpu.vector_store %arg12[%c0_48, %c0_49], %58 {strides = array<i32>} : memref<256x16xbf16, #tpu.memory_space<vmem>>, vector<252x16xbf16>,
    %c0_50 = arith.constant 0 : index
    %c0_51 = arith.constant 0 : index
    %60 = vector.load %arg12[%c0_50, %c0_51] : memref<256x16xbf16, #tpu.memory_space<vmem>>, vector<216x16xbf16>
    %c0_52 = arith.constant 0 : index
    %c0_53 = arith.constant 0 : index
    %61 = vector.load %arg11[%c0_52, %c0_53] : memref<256x144xbf16, #tpu.memory_space<vmem>>, vector<216x16xbf16>
    tpu.vector_store %arg11[%c0_52, %c0_53], %60 {strides = array<i32>} : memref<256x144xbf16, #tpu.memory_space<vmem>>, vector<216x16xbf16>,
    %c1_54 = arith.constant 1 : index
    %c0_55 = arith.constant 0 : index
    %62 = vector.load %arg12[%c1_54, %c0_55] : memref<256x16xbf16, #tpu.memory_space<vmem>>, vector<216x16xbf16>
    %c0_56 = arith.constant 0 : index
    %c16_57 = arith.constant 16 : index
    %63 = vector.load %arg11[%c0_56, %c16_57] : memref<256x144xbf16, #tpu.memory_space<vmem>>, vector<216x16xbf16>
    tpu.vector_store %arg11[%c0_56, %c16_57], %62 {strides = array<i32>} : memref<256x144xbf16, #tpu.memory_space<vmem>>, vector<216x16xbf16>,
    %c2_58 = arith.constant 2 : index
    %c0_59 = arith.constant 0 : index
    %64 = vector.load %arg12[%c2_58, %c0_59] : memref<256x16xbf16, #tpu.memory_space<vmem>>, vector<216x16xbf16>
    %c0_60 = arith.constant 0 : index
    %c32_61 = arith.constant 32 : index
    %65 = vector.load %arg11[%c0_60, %c32_61] : memref<256x144xbf16, #tpu.memory_space<vmem>>, vector<216x16xbf16>
    tpu.vector_store %arg11[%c0_60, %c32_61], %64 {strides = array<i32>} : memref<256x144xbf16, #tpu.memory_space<vmem>>, vector<216x16xbf16>,
    %c18_62 = arith.constant 18 : index
    %c0_63 = arith.constant 0 : index
    %66 = vector.load %arg12[%c18_62, %c0_63] : memref<256x16xbf16, #tpu.memory_space<vmem>>, vector<216x16xbf16>
    %c0_64 = arith.constant 0 : index
    %c48 = arith.constant 48 : index
    %67 = vector.load %arg11[%c0_64, %c48] : memref<256x144xbf16, #tpu.memory_space<vmem>>, vector<216x16xbf16>
    tpu.vector_store %arg11[%c0_64, %c48], %66 {strides = array<i32>} : memref<256x144xbf16, #tpu.memory_space<vmem>>, vector<216x16xbf16>,
    %c19_65 = arith.constant 19 : index
    %c0_66 = arith.constant 0 : index
    %68 = vector.load %arg12[%c19_65, %c0_66] : memref<256x16xbf16, #tpu.memory_space<vmem>>, vector<216x16xbf16>
    %c0_67 = arith.constant 0 : index
    %c64 = arith.constant 64 : index
    %69 = vector.load %arg11[%c0_67, %c64] : memref<256x144xbf16, #tpu.memory_space<vmem>>, vector<216x16xbf16>
    tpu.vector_store %arg11[%c0_67, %c64], %68 {strides = array<i32>} : memref<256x144xbf16, #tpu.memory_space<vmem>>, vector<216x16xbf16>,
    %c20_68 = arith.constant 20 : index
    %c0_69 = arith.constant 0 : index
    %70 = vector.load %arg12[%c20_68, %c0_69] : memref<256x16xbf16, #tpu.memory_space<vmem>>, vector<216x16xbf16>
    %c0_70 = arith.constant 0 : index
    %c80 = arith.constant 80 : index
    %71 = vector.load %arg11[%c0_70, %c80] : memref<256x144xbf16, #tpu.memory_space<vmem>>, vector<216x16xbf16>
    tpu.vector_store %arg11[%c0_70, %c80], %70 {strides = array<i32>} : memref<256x144xbf16, #tpu.memory_space<vmem>>, vector<216x16xbf16>,
    %c36_71 = arith.constant 36 : index
    %c0_72 = arith.constant 0 : index
    %72 = vector.load %arg12[%c36_71, %c0_72] : memref<256x16xbf16, #tpu.memory_space<vmem>>, vector<216x16xbf16>
    %c0_73 = arith.constant 0 : index
    %c96 = arith.constant 96 : index
    %73 = vector.load %arg11[%c0_73, %c96] : memref<256x144xbf16, #tpu.memory_space<vmem>>, vector<216x16xbf16>
    tpu.vector_store %arg11[%c0_73, %c96], %72 {strides = array<i32>} : memref<256x144xbf16, #tpu.memory_space<vmem>>, vector<216x16xbf16>,
    %c37_74 = arith.constant 37 : index
    %c0_75 = arith.constant 0 : index
    %74 = vector.load %arg12[%c37_74, %c0_75] : memref<256x16xbf16, #tpu.memory_space<vmem>>, vector<216x16xbf16>
    %c0_76 = arith.constant 0 : index
    %c112 = arith.constant 112 : index
    %75 = vector.load %arg11[%c0_76, %c112] : memref<256x144xbf16, #tpu.memory_space<vmem>>, vector<216x16xbf16>
    tpu.vector_store %arg11[%c0_76, %c112], %74 {strides = array<i32>} : memref<256x144xbf16, #tpu.memory_space<vmem>>, vector<216x16xbf16>,
    %c38_77 = arith.constant 38 : index
    %c0_78 = arith.constant 0 : index
    %76 = vector.load %arg12[%c38_77, %c0_78] : memref<256x16xbf16, #tpu.memory_space<vmem>>, vector<216x16xbf16>
    %c0_79 = arith.constant 0 : index
    %c128 = arith.constant 128 : index
    %77 = vector.load %arg11[%c0_79, %c128] : memref<256x144xbf16, #tpu.memory_space<vmem>>, vector<216x16xbf16>
    tpu.vector_store %arg11[%c0_79, %c128], %76 {strides = array<i32>} : memref<256x144xbf16, #tpu.memory_space<vmem>>, vector<216x16xbf16>,
    %c0_80 = arith.constant 0 : index
    %c0_81 = arith.constant 0 : index
    %78 = vector.load %arg11[%c0_80, %c0_81] : memref<256x144xbf16, #tpu.memory_space<vmem>>, vector<216x144xbf16>
    %c0_82 = arith.constant 0 : index
    %c0_83 = arith.constant 0 : index
    %79 = vector.load %arg4[%c0_82, %c0_83] : memref<144x16xbf16, #tpu.memory_space<vmem>>, vector<144x16xbf16>
    %cst_84 = arith.constant dense<0.000000e+00> : vector<216x16xf32>
    %80 = tpu.matmul %78, %79, %cst_84 {dimension_numbers = #tpu.dot_dimension_numbers<[1], [0], [0], [1], [0, 0, 1, 1], [], []>} : vector<216x144xbf16>, vector<144x16xbf16>, vector<216x16xf32> -> vector<216x16xf32>
    %c0_85 = arith.constant 0 : index
    %c0_86 = arith.constant 0 : index
    %81 = vector.load %arg5[%c0_85, %c0_86] : memref<1x16xf32, #tpu.memory_space<vmem>>, vector<1x16xf32>
    %82 = vector.broadcast %81 : vector<1x16xf32> to vector<216x16xf32>
    %83 = arith.addf %80, %82 : vector<216x16xf32>
    %cst_87 = arith.constant 0.000000e+00 : f32
    %84 = vector.broadcast %cst_87 : f32 to vector<216x16xf32>
    %85 = arith.maximumf %83, %84 : vector<216x16xf32>
    %86 = vector.extract_strided_slice %24 {offsets = [0, 0], sizes = [216, 1], strides = [1, 1]} : vector<252x1xi32> to vector<216x1xi32>
    %c12_i32 = arith.constant 12 : i32
    %87 = vector.broadcast %c12_i32 : i32 to vector<216x1xi32>
    %88 = arith.cmpi slt, %86, %87 : vector<216x1xi32>
    %cst_88 = arith.constant 0.000000e+00 : f32
    %89 = vector.shape_cast %88 : vector<216x1xi1> to vector<216x1xi1>
    %90 = vector.broadcast %89 : vector<216x1xi1> to vector<216x16xi1>
    %91 = vector.broadcast %cst_88 : f32 to vector<216x16xf32>
    %92 = arith.select %90, %85, %91 : vector<216x16xi1>, vector<216x16xf32>
    %93 = arith.truncf %92 : vector<216x16xf32> to vector<216x16xbf16>
    %c38_89 = arith.constant 38 : index
    %c0_90 = arith.constant 0 : index
    %94 = vector.load %arg13[%c38_89, %c0_90] : memref<296x16xbf16, #tpu.memory_space<vmem>>, vector<216x16xbf16>
    tpu.vector_store %arg13[%c38_89, %c0_90], %93 {strides = array<i32>} : memref<296x16xbf16, #tpu.memory_space<vmem>>, vector<216x16xbf16>,
    %c0_91 = arith.constant 0 : index
    %c0_92 = arith.constant 0 : index
    %95 = vector.load %arg13[%c0_91, %c0_92] : memref<296x16xbf16, #tpu.memory_space<vmem>>, vector<252x16xbf16>
    %c0_93 = arith.constant 0 : index
    %c0_94 = arith.constant 0 : index
    %96 = vector.load %arg11[%c0_93, %c0_94] : memref<256x144xbf16, #tpu.memory_space<vmem>>, vector<252x16xbf16>
    tpu.vector_store %arg11[%c0_93, %c0_94], %95 {strides = array<i32>} : memref<256x144xbf16, #tpu.memory_space<vmem>>, vector<252x16xbf16>,
    %c1_95 = arith.constant 1 : index
    %c0_96 = arith.constant 0 : index
    %97 = vector.load %arg13[%c1_95, %c0_96] : memref<296x16xbf16, #tpu.memory_space<vmem>>, vector<252x16xbf16>
    %c0_97 = arith.constant 0 : index
    %c16_98 = arith.constant 16 : index
    %98 = vector.load %arg11[%c0_97, %c16_98] : memref<256x144xbf16, #tpu.memory_space<vmem>>, vector<252x16xbf16>
    tpu.vector_store %arg11[%c0_97, %c16_98], %97 {strides = array<i32>} : memref<256x144xbf16, #tpu.memory_space<vmem>>, vector<252x16xbf16>,
    %c2_99 = arith.constant 2 : index
    %c0_100 = arith.constant 0 : index
    %99 = vector.load %arg13[%c2_99, %c0_100] : memref<296x16xbf16, #tpu.memory_space<vmem>>, vector<252x16xbf16>
    %c0_101 = arith.constant 0 : index
    %c32_102 = arith.constant 32 : index
    %100 = vector.load %arg11[%c0_101, %c32_102] : memref<256x144xbf16, #tpu.memory_space<vmem>>, vector<252x16xbf16>
    tpu.vector_store %arg11[%c0_101, %c32_102], %99 {strides = array<i32>} : memref<256x144xbf16, #tpu.memory_space<vmem>>, vector<252x16xbf16>,
    %c18_103 = arith.constant 18 : index
    %c0_104 = arith.constant 0 : index
    %101 = vector.load %arg13[%c18_103, %c0_104] : memref<296x16xbf16, #tpu.memory_space<vmem>>, vector<252x16xbf16>
    %c0_105 = arith.constant 0 : index
    %c48_106 = arith.constant 48 : index
    %102 = vector.load %arg11[%c0_105, %c48_106] : memref<256x144xbf16, #tpu.memory_space<vmem>>, vector<252x16xbf16>
    tpu.vector_store %arg11[%c0_105, %c48_106], %101 {strides = array<i32>} : memref<256x144xbf16, #tpu.memory_space<vmem>>, vector<252x16xbf16>,
    %c19_107 = arith.constant 19 : index
    %c0_108 = arith.constant 0 : index
    %103 = vector.load %arg13[%c19_107, %c0_108] : memref<296x16xbf16, #tpu.memory_space<vmem>>, vector<252x16xbf16>
    %c0_109 = arith.constant 0 : index
    %c64_110 = arith.constant 64 : index
    %104 = vector.load %arg11[%c0_109, %c64_110] : memref<256x144xbf16, #tpu.memory_space<vmem>>, vector<252x16xbf16>
    tpu.vector_store %arg11[%c0_109, %c64_110], %103 {strides = array<i32>} : memref<256x144xbf16, #tpu.memory_space<vmem>>, vector<252x16xbf16>,
    %c20_111 = arith.constant 20 : index
    %c0_112 = arith.constant 0 : index
    %105 = vector.load %arg13[%c20_111, %c0_112] : memref<296x16xbf16, #tpu.memory_space<vmem>>, vector<252x16xbf16>
    %c0_113 = arith.constant 0 : index
    %c80_114 = arith.constant 80 : index
    %106 = vector.load %arg11[%c0_113, %c80_114] : memref<256x144xbf16, #tpu.memory_space<vmem>>, vector<252x16xbf16>
    tpu.vector_store %arg11[%c0_113, %c80_114], %105 {strides = array<i32>} : memref<256x144xbf16, #tpu.memory_space<vmem>>, vector<252x16xbf16>,
    %c36_115 = arith.constant 36 : index
    %c0_116 = arith.constant 0 : index
    %107 = vector.load %arg13[%c36_115, %c0_116] : memref<296x16xbf16, #tpu.memory_space<vmem>>, vector<252x16xbf16>
    %c0_117 = arith.constant 0 : index
    %c96_118 = arith.constant 96 : index
    %108 = vector.load %arg11[%c0_117, %c96_118] : memref<256x144xbf16, #tpu.memory_space<vmem>>, vector<252x16xbf16>
    tpu.vector_store %arg11[%c0_117, %c96_118], %107 {strides = array<i32>} : memref<256x144xbf16, #tpu.memory_space<vmem>>, vector<252x16xbf16>,
    %c37_119 = arith.constant 37 : index
    %c0_120 = arith.constant 0 : index
    %109 = vector.load %arg13[%c37_119, %c0_120] : memref<296x16xbf16, #tpu.memory_space<vmem>>, vector<252x16xbf16>
    %c0_121 = arith.constant 0 : index
    %c112_122 = arith.constant 112 : index
    %110 = vector.load %arg11[%c0_121, %c112_122] : memref<256x144xbf16, #tpu.memory_space<vmem>>, vector<252x16xbf16>
    tpu.vector_store %arg11[%c0_121, %c112_122], %109 {strides = array<i32>} : memref<256x144xbf16, #tpu.memory_space<vmem>>, vector<252x16xbf16>,
    %c38_123 = arith.constant 38 : index
    %c0_124 = arith.constant 0 : index
    %111 = vector.load %arg13[%c38_123, %c0_124] : memref<296x16xbf16, #tpu.memory_space<vmem>>, vector<252x16xbf16>
    %c0_125 = arith.constant 0 : index
    %c128_126 = arith.constant 128 : index
    %112 = vector.load %arg11[%c0_125, %c128_126] : memref<256x144xbf16, #tpu.memory_space<vmem>>, vector<252x16xbf16>
    tpu.vector_store %arg11[%c0_125, %c128_126], %111 {strides = array<i32>} : memref<256x144xbf16, #tpu.memory_space<vmem>>, vector<252x16xbf16>,
    %c0_127 = arith.constant 0 : index
    %c0_128 = arith.constant 0 : index
    %113 = vector.load %arg11[%c0_127, %c0_128] : memref<256x144xbf16, #tpu.memory_space<vmem>>, vector<252x144xbf16>
    %c0_129 = arith.constant 0 : index
    %c0_130 = arith.constant 0 : index
    %114 = vector.load %arg6[%c0_129, %c0_130] : memref<144x16xbf16, #tpu.memory_space<vmem>>, vector<144x16xbf16>
    %cst_131 = arith.constant dense<0.000000e+00> : vector<252x16xf32>
    %115 = tpu.matmul %113, %114, %cst_131 {dimension_numbers = #tpu.dot_dimension_numbers<[1], [0], [0], [1], [0, 0, 1, 1], [], []>} : vector<252x144xbf16>, vector<144x16xbf16>, vector<252x16xf32> -> vector<252x16xf32>
    %c0_132 = arith.constant 0 : index
    %c0_133 = arith.constant 0 : index
    %116 = vector.load %arg7[%c0_132, %c0_133] : memref<1x16xf32, #tpu.memory_space<vmem>>, vector<1x16xf32>
    %117 = vector.broadcast %116 : vector<1x16xf32> to vector<252x16xf32>
    %118 = arith.addf %115, %117 : vector<252x16xf32>
    %cst_134 = arith.constant 0.000000e+00 : f32
    %119 = vector.broadcast %cst_134 : f32 to vector<252x16xf32>
    %120 = arith.maximumf %118, %119 : vector<252x16xf32>
    %c14_i32 = arith.constant 14 : i32
    %121 = vector.broadcast %c14_i32 : i32 to vector<252x1xi32>
    %122 = arith.cmpi slt, %24, %121 : vector<252x1xi32>
    %cst_135 = arith.constant 0.000000e+00 : f32
    %123 = vector.shape_cast %122 : vector<252x1xi1> to vector<252x1xi1>
    %124 = vector.broadcast %123 : vector<252x1xi1> to vector<252x16xi1>
    %125 = vector.broadcast %cst_135 : f32 to vector<252x16xf32>
    %126 = arith.select %124, %120, %125 : vector<252x16xi1>, vector<252x16xf32>
    %127 = arith.truncf %126 : vector<252x16xf32> to vector<252x16xbf16>
    %c38_136 = arith.constant 38 : index
    %c0_137 = arith.constant 0 : index
    %128 = vector.load %arg14[%c38_136, %c0_137] : memref<328x16xbf16, #tpu.memory_space<vmem>>, vector<252x16xbf16>
    tpu.vector_store %arg14[%c38_136, %c0_137], %127 {strides = array<i32>} : memref<328x16xbf16, #tpu.memory_space<vmem>>, vector<252x16xbf16>,
    %c0_138 = arith.constant 0 : index
    %c0_139 = arith.constant 0 : index
    %129 = vector.load %arg8[%c0_138, %c0_139] : memref<9x16xbf16, #tpu.memory_space<vmem>>, vector<9x16xbf16>
    %c0_140 = arith.constant 0 : index
    %c0_141 = arith.constant 0 : index
    %130 = vector.load %arg14[%c0_140, %c0_141] : memref<328x16xbf16, #tpu.memory_space<vmem>>, vector<328x16xbf16>
    %cst_142 = arith.constant dense<0.000000e+00> : vector<9x328xf32>
    %131 = tpu.matmul %129, %130, %cst_142 {dimension_numbers = #tpu.dot_dimension_numbers<[1], [1], [0], [0], [0, 0, 1, 0], [], []>} : vector<9x16xbf16>, vector<328x16xbf16>, vector<9x328xf32> -> vector<9x328xf32>
    %132 = vector.extract_strided_slice %131 {offsets = [0, 0], sizes = [1, 288], strides = [1, 1]} : vector<9x328xf32> to vector<1x288xf32>
    %133 = vector.extract_strided_slice %131 {offsets = [1, 1], sizes = [1, 288], strides = [1, 1]} : vector<9x328xf32> to vector<1x288xf32>
    %134 = arith.addf %132, %133 : vector<1x288xf32>
    %135 = vector.extract_strided_slice %131 {offsets = [2, 2], sizes = [1, 288], strides = [1, 1]} : vector<9x328xf32> to vector<1x288xf32>
    %136 = arith.addf %134, %135 : vector<1x288xf32>
    %137 = vector.extract_strided_slice %131 {offsets = [3, 18], sizes = [1, 288], strides = [1, 1]} : vector<9x328xf32> to vector<1x288xf32>
    %138 = arith.addf %136, %137 : vector<1x288xf32>
    %139 = vector.extract_strided_slice %131 {offsets = [4, 19], sizes = [1, 288], strides = [1, 1]} : vector<9x328xf32> to vector<1x288xf32>
    %140 = arith.addf %138, %139 : vector<1x288xf32>
    %141 = vector.extract_strided_slice %131 {offsets = [5, 20], sizes = [1, 288], strides = [1, 1]} : vector<9x328xf32> to vector<1x288xf32>
    %142 = arith.addf %140, %141 : vector<1x288xf32>
    %143 = vector.extract_strided_slice %131 {offsets = [6, 36], sizes = [1, 288], strides = [1, 1]} : vector<9x328xf32> to vector<1x288xf32>
    %144 = arith.addf %142, %143 : vector<1x288xf32>
    %145 = vector.extract_strided_slice %131 {offsets = [7, 37], sizes = [1, 288], strides = [1, 1]} : vector<9x328xf32> to vector<1x288xf32>
    %146 = arith.addf %144, %145 : vector<1x288xf32>
    %147 = vector.extract_strided_slice %131 {offsets = [8, 38], sizes = [1, 288], strides = [1, 1]} : vector<9x328xf32> to vector<1x288xf32>
    %148 = arith.addf %146, %147 : vector<1x288xf32>
    %c0_143 = arith.constant 0 : index
    %c0_144 = arith.constant 0 : index
    %149 = vector.load %arg9[%c0_143, %c0_144] : memref<1x1xf32, #tpu.memory_space<vmem>>, vector<1x1xf32>
    %150 = vector.broadcast %149 : vector<1x1xf32> to vector<1x288xf32>
    %151 = arith.addf %148, %150 : vector<1x288xf32>
    %c0_145 = arith.constant 0 : index
    %c0_146 = arith.constant 0 : index
    %c0_147 = arith.constant 0 : index
    %152 = vector.load %arg10[%c0_145, %c0_146, %c0_147] : memref<1x1x288xf32, #tpu.memory_space<vmem>>, vector<1x1x288xf32>
    %153 = vector.shape_cast %152 : vector<1x1x288xf32> to vector<1x288xf32>
    %154 = vector.shape_cast %151 : vector<1x288xf32> to vector<1x1x288xf32>
    tpu.vector_store %arg10[%c0_145, %c0_146, %c0_147], %154 {strides = array<i32>} : memref<1x1x288xf32, #tpu.memory_space<vmem>>, vector<1x1x288xf32>,
    return
  }
  func.func @transform_0(%arg0: i32) -> (i32, i32, i32) {
    %c0_i32 = arith.constant 0 : i32
    %c0_i32_0 = arith.constant 0 : i32
    %c0_i32_1 = arith.constant 0 : i32
    return %arg0, %c0_i32, %c0_i32_0 : i32, i32, i32
  }
  func.func @transform_1(%arg0: i32) -> (i32, i32) {
    %c0_i32 = arith.constant 0 : i32
    %c0_i32_0 = arith.constant 0 : i32
    %c0_i32_1 = arith.constant 0 : i32
    return %c0_i32, %c0_i32_0 : i32, i32
  }
  func.func @transform_2(%arg0: i32) -> (i32, i32) {
    %c0_i32 = arith.constant 0 : i32
    %c0_i32_0 = arith.constant 0 : i32
    %c0_i32_1 = arith.constant 0 : i32
    return %c0_i32, %c0_i32_0 : i32, i32
  }
  func.func @transform_3(%arg0: i32) -> (i32, i32) {
    %c0_i32 = arith.constant 0 : i32
    %c0_i32_0 = arith.constant 0 : i32
    %c0_i32_1 = arith.constant 0 : i32
    return %c0_i32, %c0_i32_0 : i32, i32
  }
  func.func @transform_4(%arg0: i32) -> (i32, i32) {
    %c0_i32 = arith.constant 0 : i32
    %c0_i32_0 = arith.constant 0 : i32
    %c0_i32_1 = arith.constant 0 : i32
    return %c0_i32, %c0_i32_0 : i32, i32
  }
  func.func @transform_5(%arg0: i32) -> (i32, i32) {
    %c0_i32 = arith.constant 0 : i32
    %c0_i32_0 = arith.constant 0 : i32
    %c0_i32_1 = arith.constant 0 : i32
    return %c0_i32, %c0_i32_0 : i32, i32
  }
  func.func @transform_6(%arg0: i32) -> (i32, i32) {
    %c0_i32 = arith.constant 0 : i32
    %c0_i32_0 = arith.constant 0 : i32
    %c0_i32_1 = arith.constant 0 : i32
    return %c0_i32, %c0_i32_0 : i32, i32
  }
  func.func @transform_7(%arg0: i32) -> (i32, i32) {
    %c0_i32 = arith.constant 0 : i32
    %c0_i32_0 = arith.constant 0 : i32
    %c0_i32_1 = arith.constant 0 : i32
    return %c0_i32, %c0_i32_0 : i32, i32
  }
  func.func @transform_8(%arg0: i32) -> (i32, i32) {
    %c0_i32 = arith.constant 0 : i32
    %c0_i32_0 = arith.constant 0 : i32
    %c0_i32_1 = arith.constant 0 : i32
    return %c0_i32, %c0_i32_0 : i32, i32
  }
  func.func @transform_9(%arg0: i32) -> (i32, i32, i32) {
    %c0_i32 = arith.constant 0 : i32
    %c0_i32_0 = arith.constant 0 : i32
    %c0_i32_1 = arith.constant 0 : i32
    return %arg0, %c0_i32, %c0_i32_0 : i32, i32, i32
  }
}

</mosaic_0001>

<bundles_post_ra>
// kernel: vol2slice_forward.1
= control target key start
LH: loop header
LB: loop body
LE: loop exit
PB: predicated region body
PF: predicated region fallthrough
CT: control target
= control target key end

     0   :  { %s9665_s11 = smov 0   ;;  %s13806_s0 = inlined_call_operand.vmem [shape: bf16[2,324,4], index: 0, kind: input, shape index: {}]   ;;  %s13807_s1 = inlined_call_operand.vmem [shape: bf16[36,16], index: 1, kind: input, shape index: {}]   ;;  %s13808_s2 = inlined_call_operand.vmem [shape: f32[1,16], index: 2, kind: input, shape index: {}]   ;;  %s13809_s3 = inlined_call_operand.vmem [shape: bf16[144,16], index: 3, kind: input, shape index: {}]   ;;  %s13810_s4 = inlined_call_operand.vmem [shape: f32[1,16], index: 4, kind: input, shape index: {}]   ;;  %s13811_s5 = inlined_call_operand.vmem [shape: bf16[144,16], index: 5, kind: input, shape index: {}]   ;;  %s13812_s6 = inlined_call_operand.vmem [shape: f32[1,16], index: 6, kind: input, shape index: {}]   ;;  %s13813_s7 = inlined_call_operand.vmem [shape: bf16[9,16], index: 7, kind: input, shape index: {}]   ;;  %s13814_s8 = inlined_call_operand.<no memory space> [shape: f32[1,1], index: 8, kind: input, shape index: {}]   ;;  %s13815_s9 = inlined_call_operand.vmem [shape: f32[2,1,288], index: 9, kind: output, shape index: {}]  }
   0x1   :  { %v14_v0 = vstv %s13814_s8 }
   0x2   :  { %15 = vst [vmem:[#allocation6] sm:$0x1] %v14_v0 }
   0x3 LB: > { %s8537_s12 = sadd.s32 4294967295, %s9585_s11   ;;  %p8541_p0 = scmp.ge.s32.totalorder %s9585_s11, 1  ;;  %s9585_s11 = sphi %s9665_s11, %s21_s11  }
   0x4   : > { %p289_p1 = scmp.lt.s32.totalorder %s9585_s11, 3 }
   0x6   : > { %p290_p2 = pnand %p8541_p0, %p289_p1 }
   0x8   : > { %293 = sbr.rel (%p290_p2) target bundleno = 1834 (0x72a), region = 56 }
   0xf   : > { %p324_p3 = scmp.lt.s32.totalorder %s8537_s12, 1  ;;  %vm1468_vm0 = vcmask 1046528   ;;  %vm2209_vm1 = vcmask 1045504   ;;  %s9587_s16 = smov 12   ;;  %vm1162_vm2 = vsmask.f32 7424 }
  0x10   : > { %s9588_s17 = smov 8   ;;  %s9589_s18 = smov 20   ;;  %vm13817_vm3 = vsmask.f32 6400  ;;  %vm13818_vm4 = vsmask.f32 5376 }
  0x11   : > { %s14194_s12 = smov (!%p324_p3, %s8537_s12), 1  ;;  %s9590_s19 = smov 4   ;;  %vm13819_vm5 = vcmask 1044480   ;;  %vm1032_vm6 = vcmask 31744   ;;  %vm3155_vm7 = vcmask 1041408   ;;  %vm1338_vm8 = vcmask 64544  }
  0x12   : > { %s9153_s8 = smul.u32 164, %s14194_s12  ;;  %s9591_s20 = smov 16   ;;  %vm1548_vm9 = vcmask 97344   ;;  %vm1757_vm10 = vcmask 130144   ;;  %vm2079_vm11 = vcmask 162944   ;;  %vm2289_vm12 = vcmask 195744  }
  0x13   : > { %s9592_s21 = smov 24   ;;  %s9593_s22 = smov 28   ;;  %vm2498_vm13 = vcmask 228544   ;;  %vm2829_vm14 = vcmask 261344   ;;  %vm13816_vm15 = vcmask 294144  }
  0x14   : > { %s9679_s15 = scalar_lea.vmem %s13806_s0, %s9153_s8  ;;  %s9594_s23 = smov 32  }
  0x15   : > { %v9254_v1 = vld [vmem:[%s9679_s15 + $0x8] sm:$0xfe]   ;;  %v9255_v2 = vld [vmem:[%s9679_s15 + $0x10] sm:$0xff]   ;;  %v9256_v5 = vld [vmem:[%s9679_s15] sm:$0xfe]   ;;  %s9598_s26 = smov 80  }
  0x16   : > { %v1678_v3 = vrot.slane %v9254_v1, 1  ;;  %v1679_v4 = vrot.slane %v9255_v2, 1  ;;  %v9257_v6 = vld [vmem:[%s9679_s15 + $0x8] sm:$0xff]   ;;  %v1469_v8 = vrot.slane %v9256_v5, 1  ;;  %v9259_v9 = vld [vmem:[%s9679_s15 + $0x10] sm:$0xff]   ;;  %v9693_v14 = vld [vmem:[%s9679_s15 + $0x18] sm:$0xff]  }
  0x17   : > { %v1470_v10 = vrot.slane %v9257_v6, 1  ;;  %v9258_v11 = vld [vmem:[%s9679_s15 + $0x8] sm:$0xfc]   ;;  %v9690_v12 = vld [vmem:[%s9679_s15 + $0x10] sm:$0xff]   ;;  %v2211_v13 = vrot.slane %v9259_v9, 2  ;;  %v9262_v18 = vld [vmem:[%s9679_s15] sm:$0xff]  }
  0x18   : > { %v1680_v7 = vsel %vm1468_vm0, %v1678_v3, %v1679_v4  ;;  %v2210_v16 = vrot.slane %v9258_v11, 2  ;;  %v1472_v17 = vrot.slane %v9690_v12, 1  ;;  %v1681_v21 = vrot.slane %v9693_v14, 1  ;;  %v9263_v22 = vld [vmem:[%s9679_s15 + $0x8] sm:$0xff]   ;;  %v9707_v25 = vld [vmem:[%s9679_s15 + $0x18] sm:$0xff]   ;;  %v9710_v26 = vld [vmem:[%s9679_s15 + $0x10] sm:$0xff]  }
  0x19   : > { %1709 = vrot.lane.b32.xlu0 %v1680_v7, %s9587_s16  ;;  %v1471_v15 = vsel %vm1468_vm0, %v1469_v8, %v1470_v10  ;;  %v1164_v23 = vshrl.u32 %v9262_v18, 16  ;;  %v1166_v24 = vshll.u32 %v9262_v18, 16  ;;  %v1171_v27 = vshll.u32 %v9263_v22, 16  ;;  %v9266_v32 = vld [vmem:[%s9679_s15 + $0x10] sm:$0xff]   ;;  %v9267_v35 = vld [vmem:[%s9679_s15 + $0x18] sm:$0xff]   ;;  %v9727_v47 = vld [vmem:[%s9679_s15 + $0x20] sm:$0xff]  }
  0x1a   : > { %1500 = vrot.lane.b32.xlu1 %v1471_v15, %s9588_s17  ;;  %v2212_v19 = vsel %vm2209_vm1, %v2210_v16, %v2211_v13  ;;  %v1473_v20 = vsel %vm1468_vm0, %v1470_v10, %v1472_v17  ;;  %v1175_v28 = vshrl.u32 %v9263_v22, 16  ;;  %v2213_v30 = vrot.slane %v9707_v25, 2  ;;  %v9270_v43 = vld [vmem:[%s9679_s15 + $0x18] sm:$0xff]   ;;  %v9268_v46 = vld [vmem:[%s9679_s15 + $0x8] sm:$0xfe]   ;;  %v9274_v5 = vld [vmem:[%s9679_s15 + $0x20] sm:$0xff]  }
  0x1b   : > { %v1168_v29 = vrot.slane %v1166_v24, 1  ;;  %v1179_v31 = vshll.u32 %v9710_v26, 16  ;;  %v1682_v33 = vsel %vm1468_vm0, %v1679_v4, %v1681_v21  ;;  %v1173_v34 = vrot.slane %v1171_v27, 1  ;;  %v9273_v52 = vld [vmem:[%s9679_s15 + $0x18] sm:$0xff]   ;;  %v9269_v58 = vld [vmem:[%s9679_s15 + $0x10] sm:$0xfc]  }
  0x1c   : > { %v1897_v38 = vshrl.u32 %v9266_v32, 16  ;;  %v1900_v40 = vshll.u32 %v9266_v32, 16  ;;  %v1906_v41 = vshrl.u32 %v9267_v35, 16  ;;  %v1909_v42 = vshll.u32 %v9267_v35, 16  ;;  %v9272_v3 = vld [vmem:[%s9679_s15 + $0x10] sm:$0xfc]  }
  0x1d   : > { %2241 = vrot.lane.b32.xlu0 %v2212_v19, %s9589_s18  ;;  %v1169_v36 = vor.u32 %v1168_v29, %v1164_v23  ;;  %v9720_v37 = vrot.slane %v1179_v31, 1  ;;  %v1177_v39 = vor.u32 %v1175_v28, %v1173_v34  ;;  %v2214_v48 = vsel %vm2209_vm1, %v2211_v13, %v2213_v30  ;;  %v9747_v7 = vld [vmem:[%s9679_s15 + $0x18] sm:$0xff]   ;;  %v9275_v24 = vld [vmem:[%s9679_s15 + $0x10] sm:$0xf8]   ;;  %s9599_s10 = smov 112   ;;  %s9600_s14 = smov 64  }
  0x1e   : > { %1502 = vrot.lane.b32.xlu1 %v1473_v20, %s9588_s17  ;;  %v1899_v45 = vrot.slane %v1897_v38, 1  ;;  %v1902_v49 = vrot.slane %v1900_v40, 2  ;;  %v1908_v50 = vrot.slane %v1906_v41, 1  ;;  %v1911_v51 = vrot.slane %v1909_v42, 2  ;;  %v9277_v13 = vld [vmem:[%s9679_s15 + $0x18] sm:$0xff]   ;;  %v9766_v38 = vld [vmem:[%s9679_s15 + $0x20] sm:$0xff]  }
  0x1f   : > { %v1174_v44 = vsel %vm1162_vm2, %v1169_v36, %v1173_v34  ;;  %v1182_v53 = vsel %vm1162_vm2, %v1177_v39, %v9720_v37  ;;  %v1889_v54 = vshrl.u32 %v9268_v46, 16  ;;  %v1892_v55 = vshll.u32 %v9268_v46, 16  ;;  %v9770_v41 = vld [vmem:[%s9679_s15 + $0x20] sm:$0xff]   ;;  %v9858_v25 = vld [vmem:[%s9679_s15 + $0x30] sm:$0xff]   ;;  %s9609_s24 = smov 92   ;;  %s9610_s25 = smov 90  }
  0x20   : > { %v1903_v56 = vor.u32 %v1902_v49, %v1899_v45  ;;  %v9736_v57 = vor.u32 %v1911_v51, %v1908_v50  ;;  %v2420_v59 = vrot.slane %v9270_v43, 2  ;;  %v2422_v60 = vrot.slane %v9727_v47, 2  ;;  %v9280_v43 = vld [vmem:[%s9679_s15 + $0x18] sm:$0xff]   ;;  %s9154_s27 = smul.u32 3, %s14194_s12 }
  0x21   : > { %1290 = vrot.lane.b32.xlu0 %v1174_v44, %s9590_s19  ;;  %v1891_v61 = vrot.slane %v1889_v54, 1  ;;  %v1894_v62 = vrot.slane %v1892_v55, 2  ;;  %v2419_v0 = vrot.slane %v9269_v58, 2  ;;  %v2642_v1 = vshrl.u32 %v9273_v52, 16  ;;  %v9778_v44 = vld [vmem:[%s9679_s15 + $0x20] sm:$0xff]   ;;  %v9285_v55 = vld [vmem:[%s9679_s15 + $0x28] sm:$0xff]  }
  0x22   : > { %1711 = vrot.lane.b32.xlu1 %v1682_v33, %s9587_s16  ;;  %v1913_v63 = vsel %vm13817_vm3, %v1903_v56, %v9736_v57  ;;  %v2645_v4 = vshll.u32 %v9273_v52, 16  ;;  %v2634_v9 = vshrl.u32 %v9272_v3, 16  ;;  %v2637_v10 = vshll.u32 %v9272_v3, 16  ;;  %v9788_v52 = vld [vmem:[%s9679_s15 + $0x28] sm:$0xff]   ;;  %s332_s30 = scalar_lea.vmem %s13815_s9, %s9154_s27 }
  0x23   : > { %v1895_v2 = vor.u32 %v1894_v62, %v1891_v61  ;;  %v2644_v6 = vrot.slane %v2642_v1, 2  ;;  %v2423_v15 = vsel %vm2209_vm1, %v2420_v59, %v2422_v60  ;;  %v2651_v16 = vshrl.u32 %v9274_v5, 16 }
  0x24   : > { %v2647_v11 = vrot.slane %v2645_v4, 3  ;;  %v2654_v18 = vshll.u32 %v9274_v5, 16  ;;  %v2421_v19 = vsel %vm2209_vm1, %v2419_v0, %v2420_v59  ;;  %v2636_v20 = vrot.slane %v2634_v9, 2  ;;  %v9286_v9 = vld [vmem:[%s9679_s15 + $0x20] sm:$0xff]  }
  0x25   : > { %1292 = vrot.lane.b32.xlu0 %v1182_v53, %s9590_s19  ;;  %v1904_v8 = vsel %vm13817_vm3, %v1895_v2, %v1903_v56  ;;  %v2639_v22 = vrot.slane %v2637_v10, 3  ;;  %v2653_v27 = vrot.slane %v2651_v16, 2  ;;  %v2965_v29 = vrot.slane %v9747_v7, 3  ;;  %v9284_v53 = vld [vmem:[%s9679_s15 + $0x20] sm:$0xff]   ;;  %v9290_v10 = vld [vmem:[%s9679_s15 + $0x28] sm:$0xff]  }
  0x26   : > { %2243 = vrot.lane.b32.xlu1 %v2214_v48, %s9589_s18  ;;  %v2648_v23 = vor.u32 %v2647_v11, %v2644_v6  ;;  %v2656_v28 = vrot.slane %v2654_v18, 3  ;;  %v1183_v31 = vshrl.u32 %v9710_v26, 16  ;;  %v2964_v33 = vrot.slane %v9275_v24, 3  ;;  %v9282_v48 = vld [vmem:[%s9679_s15 + $0x20] sm:$0xff]   ;;  %v9291_v11 = vld [vmem:[%s9679_s15 + $0x30] sm:$0xff]   ;;  %v9820_v18 = vld [vmem:[%s9679_s15 + $0x28] sm:$0xff]  }
  0x27   : > { %v2640_v32 = vor.u32 %v2639_v22, %v2636_v20  ;;  %v1187_v34 = vshll.u32 %v9277_v13, 16  ;;  %v1191_v39 = vshrl.u32 %v9277_v13, 16  ;;  %v2967_v50 = vrot.slane %v9766_v38, 3  ;;  %v9827_v20 = vld [vmem:[%s9679_s15 + $0x30] sm:$0xff]  }
  0x28   : > { %v9762_v35 = vor.u32 %v2656_v28, %v2653_v27  ;;  %v1185_v36 = vor.u32 %v1183_v31, %v9720_v37  ;;  %v1195_v37 = vshll.u32 %v9770_v41, 16  ;;  %v2966_v49 = vsel %vm13819_vm5, %v2964_v33, %v2965_v29 }
  0x29   : > { %2031 = vrot.lane.b32.xlu0 %v1904_v8, %s9591_s20  ;;  %v2649_v26 = vsel %vm13818_vm4, %v2640_v32, %v2648_v23  ;;  %v1189_v40 = vrot.slane %v1187_v34, 1  ;;  %v1474_v54 = vrot.slane %v9280_v43, 1  ;;  %v1476_v56 = vrot.slane %v9778_v44, 1 }
  0x2a   : > { %2033 = vrot.lane.b32.xlu1 %v1913_v63, %s9591_s20  ;;  %v2658_v42 = vsel %vm13818_vm4, %v2648_v23, %v9762_v35  ;;  %v9785_v51 = vrot.slane %v1195_v37, 1  ;;  %v1915_v58 = vshrl.u32 %v9284_v53, 16  ;;  %v1918_v61 = vshll.u32 %v9284_v53, 16 }
  0x2b   : > { %v1190_v45 = vsel %vm1162_vm2, %v1185_v36, %v1189_v40  ;;  %v1193_v46 = vor.u32 %v1191_v39, %v1189_v40  ;;  %v1924_v62 = vshrl.u32 %v9285_v55, 16  ;;  %v1927_v63 = vshll.u32 %v9285_v55, 16  ;;  %v9292_v40 = vld [vmem:[%s9679_s15 + $0x28] sm:$0xff]  }
  0x2c   : > { %v2968_v0 = vsel %vm13819_vm5, %v2965_v29, %v2967_v50  ;;  %v1683_v1 = vrot.slane %v9282_v48, 1  ;;  %v1685_v2 = vrot.slane %v9788_v52, 1  ;;  %v1917_v3 = vrot.slane %v1915_v58, 1 }
  0x2d   : > { %2450 = vrot.lane.b32.xlu0 %v2421_v19, %s9592_s21  ;;  %v1198_v59 = vsel %vm1162_vm2, %v1193_v46, %v9785_v51  ;;  %v1920_v4 = vrot.slane %v1918_v61, 2  ;;  %v1477_v5 = vsel %vm1468_vm0, %v1474_v54, %v1476_v56  ;;  %v1926_v6 = vrot.slane %v1924_v62, 1  ;;  %v9288_v19 = vld [vmem:[%s9679_s15 + $0x28] sm:$0xff]   ;;  %v9300_v61 = vld [vmem:[%s9679_s15 + $0x30] sm:$0xff]  }
  0x2e   : > { %2452 = vrot.lane.b32.xlu1 %v2423_v15, %s9592_s21  ;;  %v1929_v7 = vrot.slane %v1927_v63, 2  ;;  %v1475_v8 = vsel %vm1468_vm0, %v1472_v17, %v1474_v54  ;;  %v1686_v13 = vsel %vm1468_vm0, %v1683_v1, %v1685_v2  ;;  %v1684_v12 = vsel %vm1468_vm0, %v1681_v21, %v1683_v1  ;;  %v9876_v62 = vld [vmem:[%s9679_s15 + $0x30] sm:$0xff]  }
  0x2f   : > { %v1921_v15 = vor.u32 %v1920_v4, %v1917_v3  ;;  %v2215_v17 = vrot.slane %v9286_v9, 2  ;;  %v2660_v22 = vshrl.u32 %v9290_v10, 16  ;;  %v2663_v23 = vshll.u32 %v9290_v10, 16  ;;  %v9301_v3 = vld [vmem:[%s9679_s15 + $0x38] sm:$0xff]   ;;  %v9298_v4 = vld [vmem:[%s9679_s15 + $0x30] sm:$0xff]  }
  0x30   : > { %v9817_v16 = vor.u32 %v1929_v7, %v1926_v6  ;;  %v2669_v24 = vshrl.u32 %v9291_v11, 16  ;;  %v2217_v14 = vrot.slane %v9820_v18, 2  ;;  %v2672_v21 = vshll.u32 %v9291_v11, 16  ;;  %v9891_v6 = vld [vmem:[%s9679_s15 + $0x38] sm:$0xff]  }
  0x31   : > { %2781 = vrot.lane.b32.xlu0 %v2649_v26, %s9593_s22  ;;  %v1922_v28 = vsel %vm13817_vm3, %v9736_v57, %v1921_v15  ;;  %v2424_v29 = vrot.slane %v9288_v19, 2  ;;  %v2426_v31 = vrot.slane %v9827_v20, 2  ;;  %v2662_v32 = vrot.slane %v2660_v22, 2  ;;  %v9294_v26 = vld [vmem:[%s9679_s15 + $0x28] sm:$0xff]  }
  0x32   : > { %2783 = vrot.lane.b32.xlu1 %v2658_v42, %s9593_s22  ;;  %v1931_v27 = vsel %vm13817_vm3, %v1921_v15, %v9817_v16  ;;  %v2665_v33 = vrot.slane %v2663_v23, 3  ;;  %v2671_v34 = vrot.slane %v2669_v24, 2  ;;  %v2218_v36 = vsel %vm2209_vm1, %v2215_v17, %v2217_v14  ;;  %v9849_v42 = vld [vmem:[%s9679_s15 + $0x30] sm:$0xff]  }
  0x33   : > { %v2674_v39 = vrot.slane %v2672_v21, 3  ;;  %v2216_v57 = vsel %vm2209_vm1, %v2213_v30, %v2215_v17  ;;  %v2427_v43 = vsel %vm2209_vm1, %v2424_v29, %v2426_v31  ;;  %v1203_v46 = vshll.u32 %v9294_v26, 16  ;;  %v9302_v24 = vld [vmem:[%s9679_s15 + $0x30] sm:$0xff]   ;;  %v9306_v21 = vld [vmem:[%s9679_s15 + $0x38] sm:$0xff]  }
  0x34   : > { %v2666_v37 = vor.u32 %v2665_v33, %v2662_v32  ;;  %v2425_v30 = vsel %vm2209_vm1, %v2422_v60, %v2424_v29  ;;  %v2969_v48 = vrot.slane %v9292_v40, 3  ;;  %v1207_v53 = vshrl.u32 %v9294_v26, 16  ;;  %v9307_v33 = vld [vmem:[%s9679_s15 + $0x40] sm:$0xff]  }
  0x35   : > { %2997 = vrot.lane.b32.xlu0 %v2966_v49, %s9594_s23  ;;  %v2971_v49 = vrot.slane %v9849_v42, 3  ;;  %v1205_v55 = vrot.slane %v1203_v46, 1  ;;  %v1211_v58 = vshll.u32 %v9858_v25, 16  ;;  %v1199_v60 = vshrl.u32 %v9770_v41, 16  ;;  %v9324_v46 = vld [vmem:[%s9679_s15] sm:$0xff]  }
  0x36   : > { %1294 = vrot.lane.b32.xlu1 %v1190_v45, %s9590_s19  ;;  %v9855_v45 = vor.u32 %v2674_v39, %v2671_v34  ;;  %v2667_v47 = vsel %vm13818_vm4, %v9762_v35, %v2666_v37  ;;  %v2970_v35 = vsel %vm13819_vm5, %v2967_v50, %v2969_v48  ;;  %v1933_v7 = vshrl.u32 %v9300_v61, 16  ;;  %v9304_v34 = vld [vmem:[%s9679_s15 + $0x38] sm:$0xff]   ;;  %v9927_v39 = vld [vmem:[%s9679_s15 + $0x40] sm:$0xff]   ;;  %1033 = vst.msk [vmem:[#allocation2] sm:$0xff] %vm1032_vm6, %v9324_v46 }
  0x37   : > { %v2972_v63 = vsel %vm13819_vm5, %v2969_v48, %v2971_v49  ;;  %v9882_v1 = vrot.slane %v1211_v58, 1  ;;  %v1201_v41 = vor.u32 %v1199_v60, %v9785_v51  ;;  %v1480_v38 = vrot.slane %v9876_v62, 1  ;;  %v9308_v58 = vld [vmem:[%s9679_s15 + $0x38] sm:$0xff]  }
  0x38   : > { %v2676_v54 = vsel %vm13818_vm4, %v2666_v37, %v9855_v45  ;;  %v1942_v50 = vshrl.u32 %v9301_v3, 16  ;;  %v1945_v51 = vshll.u32 %v9301_v3, 16  ;;  %v1687_v11 = vrot.slane %v9298_v4, 1 }
  0x39   : > { %2999 = vrot.lane.b32.xlu0 %v2968_v0, %s9594_s23  ;;  %v1209_v0 = vor.u32 %v1207_v53, %v1205_v55  ;;  %v1206_v10 = vsel %vm1162_vm2, %v1201_v41, %v1205_v55  ;;  %v1935_v15 = vrot.slane %v1933_v7, 1  ;;  %v2678_v26 = vshrl.u32 %v9306_v21, 16 }
  0x3a   : > { %1296 = vrot.lane.b32.xlu1 %v1198_v59, %s9590_s19  ;;  %v9296_v59 = vld [vmem:[%s9679_s15 + $0x28] sm:$0xff]   ;;  %v1944_v19 = vrot.slane %v1942_v50, 1  ;;  %v1947_v22 = vrot.slane %v1945_v51, 2  ;;  %v1688_v44 = vsel %vm1468_vm0, %v1685_v2, %v1687_v11  ;;  %v2687_v52 = vshrl.u32 %v9307_v33, 16  ;;  %v9974_v51 = vld [vmem:[%s9679_s15 + $0x40] sm:$0xff]  }
  0x3b   : > { %v1214_v9 = vsel %vm1162_vm2, %v1209_v0, %v9882_v1  ;;  %v2428_v37 = vrot.slane %v9304_v34, 2  ;;  %v2680_v48 = vrot.slane %v2678_v26, 2  ;;  %v2973_v41 = vrot.slane %v9308_v58, 3 }
  0x3c   : > { %v9918_v32 = vor.u32 %v1947_v22, %v1944_v19  ;;  %v2689_v55 = vrot.slane %v2687_v52, 2 }
  0x3d   : > { %1504 = vrot.lane.b32.xlu0 %v1475_v8, %s9588_s17  ;;  %v1936_v8 = vshll.u32 %v9300_v61, 16  ;;  %v9327_v61 = vld [vmem:[%s9679_s15 + $0x8] sm:$0xff]  }
  0x3e   : > { %1506 = vrot.lane.b32.xlu1 %v1477_v5, %s9588_s17  ;;  %v1478_v5 = vrot.slane %v9296_v59, 1  ;;  %v9949_v59 = vld [vmem:[%s9679_s15 + $0x40] sm:$0xff]   ;;  %1034 = vst.msk [vmem:[#allocation2 + $0x10] sm:$0xff] %vm1032_vm6, %v9327_v61  ;;  %v10035_v61 = vld [vmem:[%s9679_s15 + $0x48] sm:$0xff]  }
  0x3f   : > { %v2975_v4 = vrot.slane %v9949_v59, 3 }
  0x40   : > { %v1481_v17 = vsel %vm1468_vm0, %v1478_v5, %v1480_v38  ;;  %v1479_v23 = vsel %vm1468_vm0, %v1476_v56, %v1478_v5  ;;  %v2219_v56 = vrot.slane %v9302_v24, 2  ;;  %v1484_v24 = vrot.slane %v9974_v51, 1 }
  0x41   : > { %1713 = vrot.lane.b32.xlu0 %v1684_v12, %s9587_s16  ;;  %v1938_v12 = vrot.slane %v1936_v8, 2  ;;  %v9312_v8 = vld [vmem:[%s9679_s15 + $0x38] sm:$0xff]  }
  0x42   : > { %1715 = vrot.lane.b32.xlu1 %v1686_v13, %s9587_s16  ;;  %v1689_v13 = vrot.slane %v9891_v6, 1  ;;  %v2220_v60 = vsel %vm2209_vm1, %v2217_v14, %v2219_v56  ;;  %v2429_v14 = vsel %vm2209_vm1, %v2426_v31, %v2428_v37  ;;  %v1215_v31 = vshrl.u32 %v9858_v25, 16 }
  0x43   : > { %v1939_v29 = vor.u32 %v1938_v12, %v1935_v15  ;;  %v9336_v15 = vld [vmem:[%s13807_s1] sm:$0xff]   ;;  %v9337_v12 = vld [vmem:[%s9679_s15 + $0x10] sm:$0xff]   ;;  %v2974_v25 = vsel %vm13819_vm5, %v2971_v49, %v2973_v41  ;;  %v9340_v49 = vld [vmem:[%s13807_s1 + $0x8] sm:$0xff]   ;;  %v2225_v6 = vrot.slane %v10035_v61, 2 }
  0x44   : > { %v1217_v22 = vor.u32 %v1215_v31, %v9882_v1  ;;  %9092 = vmatprep.subr.bf16.mxu0 %v9336_v15  ;;  %1035 = vst.msk [vmem:[#allocation2 + $0x20] sm:$0xff] %vm1032_vm6, %v9337_v12  ;;  %v9341_v1 = vld [vmem:[%s9679_s15 + $0x18] sm:$0xff]  }
  0x45   : > { %2035 = vrot.lane.b32.xlu0 %v1922_v28, %s9591_s20  ;;  %v1690_v28 = vsel %vm1468_vm0, %v1687_v11, %v1689_v13  ;;  %v1949_v40 = vsel %vm13817_vm3, %v1939_v29, %v9918_v32  ;;  %v1940_v2 = vsel %vm13817_vm3, %v9817_v16, %v1939_v29  ;;  %v9317_v11 = vld [vmem:[%s9679_s15 + $0x48] sm:$0xff]   ;;  %9093 = vmatpush3.bf16.msra.mxu0 %v9336_v15 }
  0x46   : > { %2037 = vrot.lane.b32.xlu1 %v1931_v27, %s9591_s20  ;;  %v9910_v27 = vld [vmem:[%s9679_s15 + $0x38] sm:$0xff]   ;;  %v1960_v42 = vshrl.u32 %v9317_v11, 16  ;;  %9094 = vmatprep.subr.bf16.mxu0 %v9340_v49  ;;  %1036 = vst.msk [vmem:[#allocation2 + $0x30] sm:$0xff] %vm1032_vm6, %v9341_v1  ;;  %v9328_v15 = vld [vmem:[%s9679_s15 + $0x48] sm:$0xff]  }
  0x47   : > { %v1239_v1 = vshrl.u32 %v9328_v15, 16 }
  0x49   : > { %2245 = vrot.lane.b32.xlu0 %v2216_v57, %s9589_s18  ;;  %v2681_v57 = vshll.u32 %v9306_v21, 16  ;;  %v9314_v21 = vld [vmem:[%s9679_s15 + $0x40] sm:$0xff]   ;;  %9095 = vmatpush3.bf16.msra.mxu0 %v9340_v49 }
  0x4a   : > { %2247 = vrot.lane.b32.xlu1 %v2218_v36, %s9589_s18  ;;  %v2221_v36 = vrot.slane %v9910_v27, 2  ;;  %v1691_v26 = vrot.slane %v9314_v21, 1  ;;  %v1235_v21 = vshll.u32 %v9328_v15, 16  ;;  %v10073_v27 = vld [vmem:[%s9679_s15 + $0x50] sm:$0xff]  }
  0x4c   : > { %v2222_v53 = vsel %vm2209_vm1, %v2219_v56, %v2221_v36  ;;  %v1692_v62 = vsel %vm1468_vm0, %v1689_v13, %v1691_v26 }
  0x4d   : > { %2454 = vrot.lane.b32.xlu0 %v2425_v30, %s9592_s21  ;;  %v2430_v30 = vrot.slane %v9927_v39, 2 }
  0x4e   : > { %2456 = vrot.lane.b32.xlu1 %v2427_v43, %s9592_s21  ;;  %v2690_v43 = vshll.u32 %v9307_v33, 16 }
  0x4f   : > { %v2431_v0 = vsel %vm2209_vm1, %v2428_v37, %v2430_v30  ;;  %v1962_v37 = vrot.slane %v1960_v42, 1 }
  0x50   : > { %v2692_v16 = vrot.slane %v2690_v43, 3 }
  0x51   : > { %2785 = vrot.lane.b32.xlu0 %v2667_v47, %s9593_s22  ;;  %v9310_v47 = vld [vmem:[%s9679_s15 + $0x38] sm:$0xff]  }
  0x52   : > { %2787 = vrot.lane.b32.xlu1 %v2676_v54, %s9593_s22  ;;  %v2683_v54 = vrot.slane %v2681_v57, 3  ;;  %v1219_v18 = vshll.u32 %v9310_v47, 16  ;;  %v1223_v5 = vshrl.u32 %v9310_v47, 16  ;;  %v9344_v57 = vld [vmem:[%s13807_s1 + $0x10] ss:$0 sps:$4 sm:$0x33]  }
  0x53   : > { %9144 = vmatprep.subr.msk.bf16.mxu0 %vm3155_vm7, %v9344_v57 }
  0x54   : > { %v2684_v3 = vor.u32 %v2683_v54, %v2680_v48  ;;  %v1221_v50 = vrot.slane %v1219_v18, 1  ;;  %v3157_v48 = vsel %vm3155_vm7, %v9344_v57, 0  ;;  %v9318_v54 = vld [vmem:[%s9679_s15 + $0x40] sm:$0xff]   ;;  %vm3106_vm7 = vcmask 293888  }
  0x55   : > { %3001 = vrot.lane.b32.xlu0 %v2970_v35, %s9594_s23  ;;  %v9960_v35 = vor.u32 %v2692_v16, %v2689_v55  ;;  %v9322_v55 = vld [vmem:[%s9679_s15 + $0x48] sm:$0xff]   ;;  %9097 = vmatpush3.bf16.msra.mxu0 %v3157_v48  ;;  %v9323_v16 = vld [vmem:[%s9679_s15 + $0x50] sm:$0xff]   ;;  %v2223_v18 = vrot.slane %v9318_v54, 2 }
  0x56   : > { %3003 = vrot.lane.b32.xlu1 %v2972_v63, %s9594_s23  ;;  %v9954_v63 = vld [vmem:[%s9679_s15 + $0x40] sm:$0xff]   ;;  %v2685_v20 = vsel %vm13818_vm4, %v9855_v45, %v2684_v3  ;;  %v1225_v19 = vor.u32 %v1223_v5, %v1221_v50  ;;  %v1222_v34 = vsel %vm1162_vm2, %v1217_v22, %v1221_v50 }
  0x57   : > { %v1227_v7 = vshll.u32 %v9954_v63, 16 }
  0x59   : > { %1298 = vrot.lane.b32.xlu0 %v1206_v10, %s9590_s19  ;;  %v9316_v10 = vld [vmem:[%s9679_s15 + $0x40] sm:$0xff]   ;;  %v9990_v45 = vrot.slane %v1227_v7, 1  ;;  %v2708_v7 = vshll.u32 %v9323_v16, 16 }
  0x5a   : > { %1300 = vrot.lane.b32.xlu1 %v1214_v9, %s9590_s19  ;;  %v2694_v9 = vsel %vm13818_vm4, %v2684_v3, %v9960_v35  ;;  %v1951_v29 = vshrl.u32 %v9316_v10, 16  ;;  %v1954_v33 = vshll.u32 %v9316_v10, 16  ;;  %v2696_v3 = vshrl.u32 %v9322_v55, 16 }
  0x5b   : > { %v1230_v56 = vsel %vm1162_vm2, %v1225_v19, %v9990_v45  ;;  %v2226_v10 = vsel %vm2209_vm1, %v2223_v18, %v2225_v6  ;;  %v10064_v19 = vld [vmem:[%s9679_s15 + $0x50] sm:$0xff]  }
  0x5c   : > { %v1953_v43 = vrot.slane %v1951_v29, 1  ;;  %v2698_v50 = vrot.slane %v2696_v3, 2  ;;  %v2979_v49 = vrot.slane %v10064_v19, 3 }
  0x5d   : > { %1508 = vrot.lane.b32.xlu0 %v1479_v23, %s9588_s17  ;;  %v1482_v23 = vrot.slane %v9312_v8, 1 }
  0x5e   : > { %1510 = vrot.lane.b32.xlu1 %v1481_v17, %s9588_s17  ;;  %v2976_v17 = vsel %vm13819_vm5, %v2973_v41, %v2975_v4  ;;  %v2705_v41 = vshrl.u32 %v9323_v16, 16  ;;  %v9332_v16 = vld [vmem:[%s9679_s15 + $0x50] sm:$0xff]  }
  0x60   : > { %v2707_v31 = vrot.slane %v2705_v41, 2 }
  0x61   : > { %1717 = vrot.lane.b32.xlu0 %v1688_v44, %s9587_s16  ;;  %v1963_v44 = vshll.u32 %v9317_v11, 16  ;;  %v2710_v11 = vrot.slane %v2708_v7, 3  ;;  %v1695_v7 = vrot.slane %v9332_v16, 1 }
  0x62   : > { %1719 = vrot.lane.b32.xlu1 %v1690_v28, %s9587_s16  ;;  %v9999_v28 = vld [vmem:[%s9679_s15 + $0x48] sm:$0xff]  }
  0x63   : > { %v1693_v52 = vrot.slane %v9999_v28, 1  ;;  %v1965_v46 = vrot.slane %v1963_v44, 2  ;;  %v9360_v44 = vld [vmem:[%s9679_s15 + $0x28] sm:$0xff]   ;;  %v9378_v28 = vld [vmem:[%s9679_s15 + $0x38] sm:$0xff]  }
  0x64   : > { %1038 = vst.msk [vmem:[#allocation2 + $0x50] sm:$0xff] %vm1032_vm6, %v9360_v44  ;;  %v9342_v44 = vld [vmem:[%s9679_s15 + $0x58] sm:$0xff]   ;;  %1040 = vst.msk [vmem:[#allocation2 + $0x70] sm:$0xff] %vm1032_vm6, %v9378_v28  ;;  %v10241_v28 = vld [vmem:[%s9679_s15 + $0x60] sm:$0xff]  }
  0x65   : > { %2039 = vrot.lane.b32.xlu0 %v1940_v2, %s9591_s20  ;;  %v1956_v2 = vrot.slane %v1954_v33, 2  ;;  %v1694_v58 = vsel %vm1468_vm0, %v1691_v26, %v1693_v52  ;;  %v9359_v33 = vld [vmem:[%s9679_s15 + $0x20] sm:$0xff]  }
  0x66   : > { %2041 = vrot.lane.b32.xlu1 %v1949_v40, %s9591_s20  ;;  %v1485_v40 = vsel %vm1468_vm0, %v1482_v23, %v1484_v24  ;;  %1037 = vst.msk [vmem:[#allocation2 + $0x40] sm:$0xff] %vm1032_vm6, %v9359_v33 }
  0x67   : > { %v1957_v47 = vor.u32 %v1956_v2, %v1953_v43  ;;  %v9330_v43 = vld [vmem:[%s9679_s15 + $0x48] sm:$0xff]   ;;  %v9334_v2 = vld [vmem:[%s9679_s15 + $0x50] sm:$0xff]  }
  0x68   : > { %v1972_v3 = vshll.u32 %v9334_v2, 16 }
  0x69   : > { %2249 = vrot.lane.b32.xlu0 %v2220_v60, %s9589_s18  ;;  %v10032_v60 = vor.u32 %v1965_v46, %v1962_v37  ;;  %v1958_v13 = vsel %vm13817_vm3, %v9918_v32, %v1957_v47  ;;  %v2224_v32 = vsel %vm2209_vm1, %v2221_v36, %v2223_v18  ;;  %v10097_v37 = vld [vmem:[%s9679_s15 + $0x50] sm:$0xff]  }
  0x6a   : > { %2251 = vrot.lane.b32.xlu1 %v2222_v53, %s9589_s18  ;;  %v1483_v53 = vsel %vm1468_vm0, %v1480_v38, %v1482_v23  ;;  %v9320_v38 = vld [vmem:[%s9679_s15 + $0x48] sm:$0xff]   ;;  %v10070_v23 = vor.u32 %v2710_v11, %v2707_v31 }
  0x6b   : > { %v1967_v5 = vsel %vm13817_vm3, %v1957_v47, %v10032_v60  ;;  %v2432_v8 = vrot.slane %v9320_v38, 2  ;;  %v1486_v47 = vrot.slane %v9330_v43, 1  ;;  %v1969_v38 = vshrl.u32 %v9334_v2, 16 }
  0x6c   : > { %v2436_v2 = vrot.slane %v9342_v44, 2 }
  0x6d   : > { %2458 = vrot.lane.b32.xlu0 %v2429_v14, %s9592_s21  ;;  %v2699_v14 = vshll.u32 %v9322_v55, 16  ;;  %v2433_v36 = vsel %vm2209_vm1, %v2430_v30, %v2432_v8  ;;  %v1237_v30 = vrot.slane %v1235_v21, 1  ;;  %v9346_v21 = vld [vmem:[%s9679_s15 + $0x60] sm:$0xff]  }
  0x6e   : > { %2460 = vrot.lane.b32.xlu1 %v2431_v0, %s9592_s21  ;;  %v10042_v0 = vld [vmem:[%s9679_s15 + $0x50] sm:$0xff]  }
  0x6f   : > { %v1241_v48 = vor.u32 %v1239_v1, %v1237_v30  ;;  %v10162_v1 = vld [vmem:[%s9679_s15 + $0x60] sm:$0xff]  }
  0x71   : > { %2789 = vrot.lane.b32.xlu0 %v2685_v20, %s9593_s22  ;;  %v2701_v20 = vrot.slane %v2699_v14, 3 }
  0x72   : > { %2791 = vrot.lane.b32.xlu1 %v2694_v9, %s9593_s22  ;;  %v2434_v9 = vrot.slane %v10042_v0, 2 }
  0x73   : > { %v2702_v22 = vor.u32 %v2701_v20, %v2698_v50  ;;  %v1974_v50 = vrot.slane %v1972_v3, 2  ;;  %v10127_v20 = vld [vmem:[%s9679_s15 + $0x50] sm:$0xff]  }
  0x74   : > { %v2227_v33 = vrot.slane %v10127_v20, 2 }
  0x75   : > { %3005 = vrot.lane.b32.xlu0 %v2974_v25, %s9594_s23  ;;  %v2435_v25 = vsel %vm2209_vm1, %v2432_v8, %v2434_v9  ;;  %v2712_v39 = vsel %vm13818_vm4, %v2702_v22, %v10070_v23  ;;  %v2703_v57 = vsel %vm13818_vm4, %v9960_v35, %v2702_v22  ;;  %v9335_v35 = vld [vmem:[%s9679_s15 + $0x58] sm:$0xff]   ;;  %v1971_v8 = vrot.slane %v1969_v38, 1 }
  0x76   : > { %3007 = vrot.lane.b32.xlu1 %v2976_v17, %s9594_s23  ;;  %v9325_v17 = vld [vmem:[%s9679_s15 + $0x48] sm:$0xff]   ;;  %v1981_v18 = vshll.u32 %v9335_v35, 16  ;;  %v2228_v3 = vsel %vm2209_vm1, %v2225_v6, %v2227_v33 }
  0x77   : > { %v2977_v42 = vrot.slane %v9325_v17, 3 }
  0x78   : > { %v1983_v11 = vrot.slane %v1981_v18, 2 }
  0x79   : > { %1302 = vrot.lane.b32.xlu0 %v1222_v34, %s9590_s19  ;;  %v1243_v34 = vshll.u32 %v10073_v27, 16  ;;  %v2980_v46 = vsel %vm13819_vm5, %v2977_v42, %v2979_v49  ;;  %v2978_v54 = vsel %vm13819_vm5, %v2975_v4, %v2977_v42  ;;  %v1488_v4 = vrot.slane %v10097_v37, 1 }
  0x7a   : > { %1304 = vrot.lane.b32.xlu1 %v1230_v56, %s9590_s19 }
  0x7b   : > { %v1489_v31 = vsel %vm1468_vm0, %v1486_v47, %v1488_v4 }
  0x7d   : > { %1512 = vrot.lane.b32.xlu0 %v1483_v53, %s9588_s17  ;;  %v10103_v53 = vrot.slane %v1243_v34, 1 }
  0x7e   : > { %1514 = vrot.lane.b32.xlu1 %v1485_v40, %s9588_s17  ;;  %v1231_v40 = vshrl.u32 %v9954_v63, 16 }
  0x7f   : > { %v1246_v59 = vsel %vm1162_vm2, %v1241_v48, %v10103_v53  ;;  %v2438_v48 = vrot.slane %v10162_v1, 2 }
  0x80   : > { %v1233_v55 = vor.u32 %v1231_v40, %v9990_v45  ;;  %v1978_v45 = vshrl.u32 %v9335_v35, 16 }
  0x81   : > { %1721 = vrot.lane.b32.xlu0 %v1692_v62, %s9587_s16  ;;  %v10112_v62 = vld [vmem:[%s9679_s15 + $0x58] sm:$0xff]   ;;  %v2439_v61 = vsel %vm2209_vm1, %v2436_v2, %v2438_v48 }
  0x82   : > { %1723 = vrot.lane.b32.xlu1 %v1694_v58, %s9587_s16  ;;  %v1238_v41 = vsel %vm1162_vm2, %v1233_v55, %v1237_v30  ;;  %v9377_v30 = vld [vmem:[%s9679_s15 + $0x30] sm:$0xff]  }
  0x83   : > { %1039 = vst.msk [vmem:[#allocation2 + $0x60] sm:$0xff] %vm1032_vm6, %v9377_v30 }
  0x85   : > { %2043 = vrot.lane.b32.xlu0 %v1958_v13, %s9591_s20  ;;  %v1697_v13 = vrot.slane %v10112_v62, 1 }
  0x86   : > { %2045 = vrot.lane.b32.xlu1 %v1967_v5, %s9591_s20 }
  0x87   : > { %v1698_v51 = vsel %vm1468_vm0, %v1695_v7, %v1697_v13 }
  0x89   : > { %2253 = vrot.lane.b32.xlu0 %v2224_v32, %s9589_s18  ;;  %v1487_v32 = vsel %vm1468_vm0, %v1484_v24, %v1486_v47  ;;  %v1975_v24 = vor.u32 %v1974_v50, %v1971_v8  ;;  %v10189_v47 = vld [vmem:[%s9679_s15 + $0x60] sm:$0xff]   ;;  %v2437_v50 = vsel %vm2209_vm1, %v2434_v9, %v2436_v2  ;;  %v10260_v2 = vld [vmem:[%s9679_s15 + $0x70] sm:$0xff]  }
  0x8a   : > { %2255 = vrot.lane.b32.xlu1 %v2226_v10, %s9589_s18  ;;  %v1980_v10 = vrot.slane %v1978_v45, 1 }
  0x8b   : > { %v1710_v12 = vpop.permute.xlu0 %1709  ;;  %v1976_v43 = vsel %vm13817_vm3, %v10032_v60, %v1975_v24 }
  0x8c   : > { %v1501_v29 = vpop.permute.xlu1 %1500  ;;  %v10152_v22 = vor.u32 %v1983_v11, %v1980_v10  ;;  %v1247_v10 = vshrl.u32 %v10073_v27, 16 }
  0x8d   : > { %2462 = vrot.lane.b32.xlu0 %v2433_v36, %s9592_s21  ;;  %v1696_v36 = vsel %vm1468_vm0, %v1693_v52, %v1695_v7  ;;  %v9355_v7 = vld [vmem:[%s9679_s15 + $0x60] sm:$0xff]  }
  0x8e   : > { %2464 = vrot.lane.b32.xlu1 %v2435_v25, %s9592_s21  ;;  %v9345_v25 = vld [vmem:[%s9679_s15 + $0x58] sm:$0xff]   ;;  %v1985_v52 = vsel %vm13817_vm3, %v1975_v24, %v10152_v22  ;;  %v10234_v24 = vld [vmem:[%s9679_s15 + $0x68] sm:$0xff]  }
  0x8f   : > { %v10084_v56 = vpop.permute.xlu0 %2241  ;;  %v2717_v34 = vshll.u32 %v9345_v25, 16 }
  0x90   : > { %v1503_v26 = vpop.permute.xlu1 %1502 }
  0x91   : > { %2793 = vrot.lane.b32.xlu0 %v2703_v57, %s9593_s22  ;;  %v2726_v57 = vshll.u32 %v9346_v21, 16 }
  0x92   : > { %2795 = vrot.lane.b32.xlu1 %v2712_v39, %s9593_s22  ;;  %v2714_v39 = vshrl.u32 %v9345_v25, 16  ;;  %v10226_v25 = vld [vmem:[%s9679_s15 + $0x60] sm:$0xff]  }
  0x93   : > { %v1291_v58 = vpop.permute.xlu0 %1290  ;;  %v2728_v16 = vrot.slane %v2726_v57, 3  ;;  %v9391_v57 = vld [vmem:[%s9679_s15 + $0x48] sm:$0xff]  }
  0x94   : > { %v1712_v63 = vpop.permute.xlu1 %1711  ;;  %1339 = vst.msk [vmem:[#allocation2] sm:$0xff] %vm1338_vm8, %v1291_v58  ;;  %v2716_v35 = vrot.slane %v2714_v39, 2  ;;  %v10186_v58 = vld [vmem:[%s9679_s15 + $0x58] sm:$0xff]   ;;  %v1990_v39 = vshll.u32 %v9355_v7, 16 }
  0x95   : > { %1549 = vst.msk [vmem:[#allocation2] sm:$0xff] %vm1548_vm9, %v1501_v29  ;;  %3009 = vrot.lane.b32.xlu0 %v2978_v54, %s9594_s23  ;;  %v9349_v54 = vld [vmem:[%s9679_s15 + $0x58] sm:$0xff]   ;;  %v2981_v20 = vrot.slane %v10186_v58, 3 }
  0x96   : > { %3011 = vrot.lane.b32.xlu1 %v2980_v46, %s9594_s23  ;;  %1758 = vst.msk [vmem:[#allocation2] sm:$0xff] %vm1757_vm10, %v1710_v12  ;;  %v10139_v12 = vld [vmem:[%s9679_s15 + $0x58] sm:$0xff]   ;;  %v1251_v18 = vshll.u32 %v9349_v54, 16 }
  0x97   : > { %v1293_v5 = vpop.permute.xlu0 %1292  ;;  %v2229_v42 = vrot.slane %v10139_v12, 2  ;;  %1042 = vst.msk [vmem:[#allocation2 + $0x90] sm:$0xff] %vm1032_vm6, %v9391_v57  ;;  %v9367_v57 = vld [vmem:[%s9679_s15 + $0x68] sm:$0xff]  }
  0x98   : > { %v2244_v14 = vpop.permute.xlu1 %2243  ;;  %1340 = vst.msk [vmem:[#allocation2 + $0x10] sm:$0xff] %vm1338_vm8, %v1293_v5  ;;  %v1259_v5 = vshll.u32 %v10189_v47, 16  ;;  %v1253_v0 = vrot.slane %v1251_v18, 1  ;;  %v9397_v18 = vld [vmem:[%s9679_s15 + $0x50] sm:$0xff]  }
  0x99   : > { %1550 = vst.msk [vmem:[#allocation2 + $0x10] sm:$0xff] %vm1548_vm9, %v1503_v26  ;;  %1306 = vrot.lane.b32.xlu0 %v1238_v41, %s9590_s19  ;;  %v2723_v26 = vshrl.u32 %v9346_v21, 16  ;;  %v2230_v60 = vsel %vm2209_vm1, %v2227_v33, %v2229_v42  ;;  %v1987_v21 = vshrl.u32 %v9355_v7, 16  ;;  %v2442_v7 = vrot.slane %v10260_v2, 2 }
  0x9a   : > { %1308 = vrot.lane.b32.xlu1 %v1246_v59, %s9590_s19  ;;  %1759 = vst.msk [vmem:[#allocation2 + $0x10] sm:$0xff] %vm1757_vm10, %v1712_v63  ;;  %v2719_v63 = vrot.slane %v2717_v34, 3  ;;  %v10195_v59 = vld [vmem:[%s9679_s15 + $0x60] sm:$0xff]  }
  0x9b   : > { %v2032_v17 = vpop.permute.xlu0 %2031  ;;  %v2725_v55 = vrot.slane %v2723_v26, 2  ;;  %v10247_v26 = vld [vmem:[%s9679_s15 + $0x68] sm:$0xff]   ;;  %1043 = vst.msk [vmem:[#allocation2 + $0xa0] sm:$0xff] %vm1032_vm6, %v9397_v18 }
  0x9c   : > { %v2034_v15 = vpop.permute.xlu1 %2033  ;;  %2080 = vst.msk [vmem:[#allocation2] sm:$0xff] %vm2079_vm11, %v2032_v17  ;;  %v2720_v6 = vor.u32 %v2719_v63, %v2716_v35  ;;  %v9356_v17 = vld [vmem:[%s9679_s15 + $0x68] sm:$0xff]   ;;  %v2982_v35 = vsel %vm13819_vm5, %v2979_v49, %v2981_v20  ;;  %v1249_v63 = vor.u32 %v1247_v10, %v10103_v53 }
  0x9d   : > { %2081 = vst.msk [vmem:[#allocation2 + $0x10] sm:$0xff] %vm2079_vm11, %v2034_v15  ;;  %1516 = vrot.lane.b32.xlu0 %v1487_v32, %s9588_s17  ;;  %v10207_v41 = vor.u32 %v2728_v16, %v2725_v55  ;;  %v1255_v15 = vshrl.u32 %v9349_v54, 16  ;;  %v10219_v32 = vld [vmem:[%s9679_s15 + $0x60] sm:$0xff]   ;;  %v1996_v30 = vshrl.u32 %v9356_v17, 16  ;;  %v1999_v34 = vshll.u32 %v9356_v17, 16  ;;  %v9363_v55 = vld [vmem:[%s9679_s15 + $0x68] sm:$0xff]  }
  0x9e   : > { %1518 = vrot.lane.b32.xlu1 %v1489_v31, %s9588_s17  ;;  %2291 = vst.msk [vmem:[#allocation2 + $0x10] sm:$0xff] %vm2289_vm12, %v2244_v14  ;;  %2290 = vst.msk [vmem:[#allocation2] sm:$0xff] %vm2289_vm12, %v10084_v56  ;;  %v10201_v14 = vld [vmem:[%s9679_s15 + $0x58] sm:$0xff]   ;;  %v2983_v31 = vrot.slane %v10195_v59, 3  ;;  %v2721_v33 = vsel %vm13818_vm4, %v10070_v23, %v2720_v6  ;;  %v1699_v54 = vrot.slane %v10226_v25, 1  ;;  %v9364_v16 = vld [vmem:[%s9679_s15 + $0x70] sm:$0xff]  }
  0x9f   : > { %v2451_v56 = vpop.permute.xlu0 %2450  ;;  %v1490_v9 = vrot.slane %v10201_v14, 1  ;;  %v2730_v27 = vsel %vm13818_vm4, %v2720_v6, %v10207_v41  ;;  %v1257_v23 = vor.u32 %v1255_v15, %v1253_v0  ;;  %v1998_v49 = vrot.slane %v1996_v30, 1 }
  0xa0   : > { %v2453_v29 = vpop.permute.xlu1 %2452  ;;  %2499 = vst.msk [vmem:[#allocation2] sm:$0xff] %vm2498_vm13, %v2451_v56  ;;  %v2001_v53 = vrot.slane %v1999_v34, 2  ;;  %v2732_v10 = vshrl.u32 %v9363_v55, 16  ;;  %v2741_v17 = vshrl.u32 %v9364_v16, 16  ;;  %v2744_v25 = vshll.u32 %v9364_v16, 16  ;;  %v10348_v16 = vld [vmem:[%s9679_s15 + $0x70] sm:$0xff]  }
  0xa1   : > { %2500 = vst.msk [vmem:[#allocation2 + $0x10] sm:$0xff] %vm2498_vm13, %v2453_v29  ;;  %1725 = vrot.lane.b32.xlu0 %v1696_v36, %s9587_s16  ;;  %v9390_v29 = vld [vmem:[%s9679_s15 + $0x40] sm:$0xff]   ;;  %v1700_v37 = vsel %vm1468_vm0, %v1697_v13, %v1699_v54 }
  0xa2   : > { %1727 = vrot.lane.b32.xlu1 %v1698_v51, %s9587_s16  ;;  %v10231_v51 = vrot.slane %v1259_v5, 1  ;;  %1041 = vst.msk [vmem:[#allocation2 + $0x80] sm:$0xff] %vm1032_vm6, %v9390_v29  ;;  %v2440_v5 = vrot.slane %v10247_v26, 2  ;;  %v2734_v30 = vrot.slane %v2732_v10, 2  ;;  %v1271_v26 = vshrl.u32 %v9367_v57, 16 }
  0xa3   : > { %v2782_v46 = vpop.permute.xlu0 %2781 }
  0xa4   : > { %v2784_v40 = vpop.permute.xlu1 %2783  ;;  %2830 = vst.msk [vmem:[#allocation2] sm:$0xff] %vm2829_vm14, %v2782_v46  ;;  %v1262_v19 = vsel %vm1162_vm2, %v1257_v23, %v10231_v51  ;;  %v2443_v12 = vsel %vm2209_vm1, %v2440_v5, %v2442_v7 }
  0xa5   : > { %2831 = vst.msk [vmem:[#allocation2 + $0x10] sm:$0xff] %vm2829_vm14, %v2784_v40  ;;  %2047 = vrot.lane.b32.xlu0 %v1976_v43, %s9591_s20  ;;  %v2984_v40 = vsel %vm13819_vm5, %v2981_v20, %v2983_v31  ;;  %v1492_v43 = vrot.slane %v10219_v32, 1  ;;  %v1254_v20 = vsel %vm1162_vm2, %v1249_v63, %v1253_v0  ;;  %v10337_v63 = vld [vmem:[%s9679_s15 + $0x70] sm:$0xff]  }
  0xa6   : > { %2049 = vrot.lane.b32.xlu1 %v1985_v52, %s9591_s20  ;;  %v10244_v52 = vld [vmem:[%s9679_s15 + $0x68] sm:$0xff]  }
  0xa7   : > { %v2998_v45 = vpop.permute.xlu0 %2997  ;;  %v2233_v6 = vrot.slane %v10244_v52, 2  ;;  %v1493_v0 = vsel %vm1468_vm0, %v1490_v9, %v1492_v43 }
  0xa8   : > { %v1295_v38 = vpop.permute.xlu1 %1294  ;;  %3046 = vst.msk [vmem:[#allocation2] sm:$0xff] %vm13816_vm15, %v2998_v45  ;;  %v1992_v45 = vrot.slane %v1990_v39, 2 }
  0xa9   : > { %1341 = vst.msk [vmem:[#allocation2 + $0x20] sm:$0xff] %vm1338_vm8, %v1295_v38  ;;  %2257 = vrot.lane.b32.xlu0 %v2228_v3, %s9589_s18  ;;  %v1989_v3 = vrot.slane %v1987_v21, 1  ;;  %v1491_v21 = vsel %vm1468_vm0, %v1488_v4, %v1490_v9 }
  0xaa   : > { %2259 = vrot.lane.b32.xlu1 %v2230_v60, %s9589_s18  ;;  %v1701_v60 = vrot.slane %v10234_v24, 1 }
  0xab   : > { %v3000_v11 = vpop.permute.xlu0 %2999 }
  0xac   : > { %v1297_v8 = vpop.permute.xlu1 %1296  ;;  %3047 = vst.msk [vmem:[#allocation2 + $0x10] sm:$0xff] %vm13816_vm15, %v3000_v11  ;;  %v2735_v11 = vshll.u32 %v9363_v55, 16  ;;  %v1267_v55 = vshll.u32 %v9367_v57, 16 }
  0xad   : > { %1342 = vst.msk [vmem:[#allocation2 + $0x30] sm:$0xff] %vm1338_vm8, %v1297_v8  ;;  %2466 = vrot.lane.b32.xlu0 %v2437_v50, %s9592_s21  ;;  %v9398_v8 = vld [vmem:[%s9679_s15 + $0x58] sm:$0xff]  }
  0xae   : > { %2468 = vrot.lane.b32.xlu1 %v2439_v61, %s9592_s21  ;;  %v2231_v61 = vrot.slane %v10241_v28, 2  ;;  %1044 = vst.msk [vmem:[#allocation2 + $0xb0] sm:$0xff] %vm1032_vm6, %v9398_v8  ;;  %v2737_v34 = vrot.slane %v2735_v11, 3  ;;  %v2743_v28 = vrot.slane %v2741_v17, 2  ;;  %v9373_v11 = vld [vmem:[%s9679_s15 + $0x70] sm:$0xff]  }
  0xaf   : > { %v1505_v44 = vpop.permute.xlu0 %1504  ;;  %v3063_v56 = vld [vmem:[#allocation2] sm:$0xff] }
  0xb0   : > { %v1507_v36 = vpop.permute.xlu1 %1506  ;;  %1551 = vst.msk [vmem:[#allocation2 + $0x20] sm:$0xff] %vm1548_vm9, %v1505_v44  ;;  %9098 = vmatprep.mubr.msk.bf16.mxu0 %vm3106_vm7, %v3063_v56  ;;  %v10308_v44 = vor.u32 %v2001_v53, %v1998_v49  ;;  %v2234_v13 = vsel %vm2209_vm1, %v2231_v61, %v2233_v6  ;;  %v2987_v49 = vrot.slane %v10337_v63, 3  ;;  %v1275_v53 = vshll.u32 %v10348_v16, 16 }
  0xb1   : > { %1552 = vst.msk [vmem:[#allocation2 + $0x30] sm:$0xff] %vm1548_vm9, %v1507_v36  ;;  %2797 = vrot.lane.b32.xlu0 %v2721_v33, %s9593_s22  ;;  %v1702_v36 = vsel %vm1468_vm0, %v1699_v54, %v1701_v60  ;;  %v1993_v33 = vor.u32 %v1992_v45, %v1989_v3  ;;  %v2441_v3 = vsel %vm2209_vm1, %v2438_v48, %v2440_v5  ;;  %v9400_v45 = vld [vmem:[%s9679_s15 + $0x68] sm:$0xff]   ;;  %v1269_v48 = vrot.slane %v1267_v55, 1 }
  0xb2   : > { %2799 = vrot.lane.b32.xlu1 %v2730_v27, %s9593_s22  ;;  %1046 = vst.msk [vmem:[#allocation2 + $0xd0] sm:$0xff] %vm1032_vm6, %v9400_v45  ;;  %v10381_v17 = vrot.slane %v1275_v53, 1  ;;  %v9379_v53 = vld [vmem:[%s9679_s15 + $0x78] sm:$0xff]  }
  0xb3   : > { %v1714_v58 = vpop.permute.xlu0 %1713  ;;  %v3064_v38 = vld [vmem:[#allocation2 + $0x10] sm:$0xff]  ;;  %v2003_v9 = vsel %vm13817_vm3, %v1993_v33, %v10308_v44  ;;  %v1994_v39 = vsel %vm13817_vm3, %v10152_v22, %v1993_v33  ;;  %v2746_v22 = vrot.slane %v2744_v25, 3  ;;  %v9369_v25 = vld [vmem:[%s9679_s15 + $0x68] sm:$0xff]   ;;  %v2005_v33 = vshrl.u32 %v9373_v11, 16 }
  0xb4   : > { %v1716_v46 = vpop.permute.xlu1 %1715  ;;  %1760 = vst.msk [vmem:[#allocation2 + $0x20] sm:$0xff] %vm1757_vm10, %v1714_v58  ;;  %9099 = vmatmul.mubr.msk.bf16.vlgmr.msra.gmra.mrb[0].mxu0 %vm3106_vm7, %v3064_v38  ;;  %v9399_v58 = vld [vmem:[%s9679_s15 + $0x60] sm:$0xff]  }
  0xb5   : > { %1761 = vst.msk [vmem:[#allocation2 + $0x30] sm:$0xff] %vm1757_vm10, %v1716_v46  ;;  %3013 = vrot.lane.b32.xlu0 %v2982_v35, %s9594_s23  ;;  %v9365_v35 = vld [vmem:[%s9679_s15 + $0x68] sm:$0xff]   ;;  %v10345_v54 = vor.u32 %v2746_v22, %v2743_v28 }
  0xb6   : > { %3015 = vrot.lane.b32.xlu1 %v2984_v40, %s9594_s23  ;;  %v2232_v40 = vsel %vm2209_vm1, %v2229_v42, %v2231_v61  ;;  %v2738_v42 = vor.u32 %v2737_v34, %v2734_v30  ;;  %1045 = vst.msk [vmem:[#allocation2 + $0xc0] sm:$0xff] %vm1032_vm6, %v9399_v58  ;;  %v2007_v30 = vrot.slane %v2005_v33, 1  ;;  %v9375_v58 = vld [vmem:[%s9679_s15 + $0x70] sm:$0xff]   ;;  %v9385_v33 = vld [vmem:[%s9679_s15 + $0x78] sm:$0x7f]  }
  0xb7   : > { %v2036_v15 = vpop.permute.xlu0 %2035 }
  0xb8   : > { %v2038_v50 = vpop.permute.xlu1 %2037  ;;  %2082 = vst.msk [vmem:[#allocation2 + $0x20] sm:$0xff] %vm2079_vm11, %v2036_v15  ;;  %v2748_v1 = vsel %vm13818_vm4, %v2738_v42, %v10345_v54  ;;  %v2739_v5 = vsel %vm13818_vm4, %v10207_v41, %v2738_v42  ;;  %v9374_v15 = vld [vmem:[%s9679_s15 + $0x78] sm:$0xff]   ;;  %v1273_v41 = vor.u32 %v1271_v26, %v1269_v48 }
  0xb9   : > { %2083 = vst.msk [vmem:[#allocation2 + $0x30] sm:$0xff] %vm2079_vm11, %v2038_v50  ;;  %1310 = vrot.lane.b32.xlu0 %v1254_v20, %s9590_s19  ;;  %v1263_v50 = vshrl.u32 %v10189_v47, 16 }
  0xba   : > { %1312 = vrot.lane.b32.xlu1 %v1262_v19, %s9590_s19  ;;  %v2985_v19 = vrot.slane %v9365_v35, 3  ;;  %v1278_v59 = vsel %vm1162_vm2, %v1273_v41, %v10381_v17 }
  0xbb   : > { %v2246_v29 = vpop.permute.xlu0 %2245 }
  0xbc   : > { %v2248_v27 = vpop.permute.xlu1 %2247  ;;  %2292 = vst.msk [vmem:[#allocation2 + $0x20] sm:$0xff] %vm2289_vm12, %v2246_v29  ;;  %v2988_v47 = vsel %vm13819_vm5, %v2985_v19, %v2987_v49  ;;  %v1265_v29 = vor.u32 %v1263_v50, %v10231_v51  ;;  %v9371_v51 = vld [vmem:[%s9679_s15 + $0x70] sm:$0xff]  }
  0xbd   : > { %2293 = vst.msk [vmem:[#allocation2 + $0x30] sm:$0xff] %vm2289_vm12, %v2248_v27  ;;  %1520 = vrot.lane.b32.xlu0 %v1491_v21, %s9588_s17  ;;  %v2986_v21 = vsel %vm13819_vm5, %v2983_v31, %v2985_v19 }
  0xbe   : > { %1522 = vrot.lane.b32.xlu1 %v1493_v0, %s9588_s17  ;;  %v10385_v0 = vld [vmem:[%s9679_s15 + $0x70] sm:$0xff]  }
  0xbf   : > { %v2455_v4 = vpop.permute.xlu0 %2454  ;;  %v1496_v31 = vrot.slane %v10385_v0, 1 }
  0xc0   : > { %v2457_v14 = vpop.permute.xlu1 %2456  ;;  %2501 = vst.msk [vmem:[#allocation2 + $0x20] sm:$0xff] %vm2498_vm13, %v2455_v4  ;;  %v2017_v4 = vshll.u32 %v9374_v15, 16 }
  0xc1   : > { %2502 = vst.msk [vmem:[#allocation2 + $0x30] sm:$0xff] %vm2498_vm13, %v2457_v14  ;;  %1729 = vrot.lane.b32.xlu0 %v1700_v37, %s9587_s16  ;;  %v2008_v14 = vshll.u32 %v9373_v11, 16  ;;  %v2014_v37 = vshrl.u32 %v9374_v15, 16  ;;  %v2444_v15 = vrot.slane %v9379_v53, 2 }
  0xc2   : > { %1731 = vrot.lane.b32.xlu1 %v1702_v36, %s9587_s16  ;;  %v2019_v22 = vrot.slane %v2017_v4, 2  ;;  %v10468_v4 = vld [vmem:[%s9679_s15 + $0x80] sm:$0xff]  }
  0xc3   : > { %v2786_v62 = vpop.permute.xlu0 %2785  ;;  %v2010_v34 = vrot.slane %v2008_v14, 2  ;;  %v2016_v28 = vrot.slane %v2014_v37, 1  ;;  %v2991_v2 = vrot.slane %v10468_v4, 3 }
  0xc4   : > { %v2788_v56 = vpop.permute.xlu1 %2787  ;;  %2832 = vst.msk [vmem:[#allocation2 + $0x20] sm:$0xff] %vm2829_vm14, %v2786_v62  ;;  %v1270_v62 = vsel %vm1162_vm2, %v1265_v29, %v1269_v48  ;;  %v2235_v48 = vrot.slane %v9375_v58, 2 }
  0xc5   : > { %2833 = vst.msk [vmem:[#allocation2 + $0x30] sm:$0xff] %vm2829_vm14, %v2788_v56  ;;  %2051 = vrot.lane.b32.xlu0 %v1994_v39, %s9591_s20  ;;  %v10400_v56 = vld [vmem:[%s9679_s15 + $0x78] sm:$0xff]   ;;  %v2011_v42 = vor.u32 %v2010_v34, %v2007_v30  ;;  %v10417_v55 = vor.u32 %v2019_v22, %v2016_v28 }
  0xc6   : > { %2053 = vrot.lane.b32.xlu1 %v2003_v9, %s9591_s20  ;;  %v1494_v9 = vrot.slane %v9369_v25, 1  ;;  %v2236_v29 = vsel %vm2209_vm1, %v2233_v6, %v2235_v48  ;;  %v9383_v6 = vld [vmem:[%s9679_s15 + $0x78] sm:$0xff]  }
  0xc7   : > { %v3002_v46 = vpop.permute.xlu0 %3001  ;;  %v2989_v34 = vrot.slane %v9383_v6, 3 }
  0xc8   : > { %v3004_v23 = vpop.permute.xlu1 %3003  ;;  %3048 = vst.msk [vmem:[#allocation2 + $0x20] sm:$0xff] %vm13816_vm15, %v3002_v46  ;;  %v1497_v57 = vsel %vm1468_vm0, %v1494_v9, %v1496_v31  ;;  %v1495_v35 = vsel %vm1468_vm0, %v1492_v43, %v1494_v9  ;;  %v9381_v43 = vld [vmem:[%s9679_s15 + $0x78] sm:$0xff]   ;;  %v2445_v9 = vsel %vm2209_vm1, %v2442_v7, %v2444_v15 }
  0xc9   : > { %3049 = vst.msk [vmem:[#allocation2 + $0x30] sm:$0xff] %vm13816_vm15, %v3004_v23  ;;  %2261 = vrot.lane.b32.xlu0 %v2232_v40, %s9589_s18  ;;  %v1703_v23 = vrot.slane %v9371_v51, 1  ;;  %v1705_v40 = vrot.slane %v10400_v56, 1  ;;  %v2750_v24 = vshrl.u32 %v9381_v43, 16 }
  0xca   : > { %2263 = vrot.lane.b32.xlu1 %v2234_v13, %s9589_s18 }
  0xcb   : > { %v1299_v18 = vpop.permute.xlu0 %1298  ;;  %v1706_v32 = vsel %vm1468_vm0, %v1703_v23, %v1705_v40  ;;  %v2752_v41 = vrot.slane %v2750_v24, 2 }
  0xcc   : > { %v1301_v38 = vpop.permute.xlu1 %1300  ;;  %1343 = vst.msk [vmem:[#allocation2 + $0x40] sm:$0xff] %vm1338_vm8, %v1299_v18  ;;  %v1704_v18 = vsel %vm1468_vm0, %v1701_v60, %v1703_v23  ;;  %v2753_v60 = vshll.u32 %v9381_v43, 16  ;;  %v9388_v43 = vld [vmem:[%s9679_s15 + $0x80] sm:$0xff]  }
  0xcd   : > { %1344 = vst.msk [vmem:[#allocation2 + $0x50] sm:$0xff] %vm1338_vm8, %v1301_v38  ;;  %2470 = vrot.lane.b32.xlu0 %v2441_v3, %s9592_s21  ;;  %v10421_v38 = vld [vmem:[%s9679_s15 + $0x78] sm:$0xff]   ;;  %v9382_v3 = vld [vmem:[%s9679_s15 + $0x80] sm:$0xff]  }
  0xce   : > { %2472 = vrot.lane.b32.xlu1 %v2443_v12, %s9592_s21  ;;  %v2237_v26 = vrot.slane %v10421_v38, 2 }
  0xcf   : > { %v1509_v20 = vpop.permute.xlu0 %1508  ;;  %v3065_v10 = vld [vmem:[#allocation2 + $0x20] sm:$0xff] }
  0xd0   : > { %v1511_v61 = vpop.permute.xlu1 %1510  ;;  %v3066_v8 = vld [vmem:[#allocation2 + $0x30] sm:$0xff]  ;;  %1553 = vst.msk [vmem:[#allocation2 + $0x40] sm:$0xff] %vm1548_vm9, %v1509_v20  ;;  %9102 = vmatprep.mubr.msk.bf16.mxu0 %vm3106_vm7, %v3065_v10  ;;  %v2012_v20 = vsel %vm13817_vm3, %v10308_v44, %v2011_v42  ;;  %v2238_v11 = vsel %vm2209_vm1, %v2235_v48, %v2237_v26  ;;  %v2755_v44 = vrot.slane %v2753_v60, 3  ;;  %v2026_v48 = vshll.u32 %v9388_v43, 16 }
  0xd1   : > { %1554 = vst.msk [vmem:[#allocation2 + $0x50] sm:$0xff] %vm1548_vm9, %v1511_v61  ;;  %2801 = vrot.lane.b32.xlu0 %v2739_v5, %s9593_s22  ;;  %9103 = vmatmul.mubr.msk.bf16.gmra.mrb[4].mxu0 %vm3106_vm7, %v3066_v8  ;;  %v10440_v61 = vld [vmem:[%s9679_s15 + $0x80] sm:$0xff]   ;;  %v2759_v5 = vshrl.u32 %v9382_v3, 16  ;;  %v2762_v8 = vshll.u32 %v9382_v3, 16 }
  0xd2   : > { %2803 = vrot.lane.b32.xlu1 %v2748_v1, %s9593_s22  ;;  %v2021_v1 = vsel %vm13817_vm3, %v2011_v42, %v10417_v55  ;;  %v2756_v37 = vor.u32 %v2755_v44, %v2752_v41  ;;  %v2990_v42 = vsel %vm13819_vm5, %v2987_v49, %v2989_v34  ;;  %v2023_v49 = vshrl.u32 %v9388_v43, 16 }
  0xd3   : > { %v1718_v36 = vpop.permute.xlu0 %1717  ;;  %v2761_v25 = vrot.slane %v2759_v5, 2 }
  0xd4   : > { %v1720_v27 = vpop.permute.xlu1 %1719  ;;  %1762 = vst.msk [vmem:[#allocation2 + $0x40] sm:$0xff] %vm1757_vm10, %v1718_v36  ;;  %v2757_v28 = vsel %vm13818_vm4, %v10345_v54, %v2756_v37  ;;  %v2992_v54 = vsel %vm13819_vm5, %v2989_v34, %v2991_v2  ;;  %v2025_v5 = vrot.slane %v2023_v49, 1 }
  0xd5   : > { %1763 = vst.msk [vmem:[#allocation2 + $0x50] sm:$0xff] %vm1757_vm10, %v1720_v27  ;;  %3017 = vrot.lane.b32.xlu0 %v2986_v21, %s9594_s23  ;;  %v2764_v27 = vrot.slane %v2762_v8, 3  ;;  %v2028_v8 = vrot.slane %v2026_v48, 2 }
  0xd6   : > { %3019 = vrot.lane.b32.xlu1 %v2988_v47, %s9594_s23  ;;  %v2446_v47 = vrot.slane %v10440_v61, 2 }
  0xd7   : > { %v2040_v13 = vpop.permute.xlu0 %2039  ;;  %v10464_v52 = vor.u32 %v2764_v27, %v2761_v25  ;;  %v9394_v25 = vld [vmem:[%s9679_s15 + $0x90] ss:$0 sps:$4 sm:$0x11]  }
  0xd8   : > { %v2042_v39 = vpop.permute.xlu1 %2041  ;;  %2084 = vst.msk [vmem:[#allocation2 + $0x40] sm:$0xff] %vm2079_vm11, %v2040_v13  ;;  %v2447_v14 = vsel %vm2209_vm1, %v2444_v15, %v2446_v47  ;;  %v9402_v13 = vld [vmem:[%s9679_s15 + $0x78] sm:$0x3f]  }
  0xd9   : > { %2085 = vst.msk [vmem:[#allocation2 + $0x50] sm:$0xff] %vm2079_vm11, %v2042_v39  ;;  %1314 = vrot.lane.b32.xlu0 %v1270_v62, %s9590_s19  ;;  %v9401_v39 = vld [vmem:[%s9679_s15 + $0x70] sm:$0xff]   ;;  %v1283_v62 = vshll.u32 %v9385_v33, 16  ;;  %v2766_v30 = vsel %vm13818_vm4, %v2756_v37, %v10464_v52 }
  0xda   : > { %1316 = vrot.lane.b32.xlu1 %v1278_v59, %s9590_s19  ;;  %1047 = vst.msk [vmem:[#allocation2 + $0xe0] sm:$0xff] %vm1032_vm6, %v9401_v39  ;;  %vm13862_vm6 = vcmask 294144   ;;  %v9395_v39 = vld [vmem:[%s9679_s15 + $0x88] sm:$0xff]  }
  0xdb   : > { %v2250_v12 = vpop.permute.xlu0 %2249  ;;  %v2993_v34 = vrot.slane %v9395_v39, 3 }
  0xdc   : > { %v2252_v46 = vpop.permute.xlu1 %2251  ;;  %2294 = vst.msk [vmem:[#allocation2 + $0x40] sm:$0xff] %vm2289_vm12, %v2250_v12  ;;  %v1287_v12 = vshrl.u32 %v9385_v33, 16 }
  0xdd   : > { %2295 = vst.msk [vmem:[#allocation2 + $0x50] sm:$0xff] %vm2289_vm12, %v2252_v46  ;;  %1524 = vrot.lane.b32.xlu0 %v1495_v35, %s9588_s17  ;;  %v1285_v35 = vrot.slane %v1283_v62, 1  ;;  %v9396_v62 = vld [vmem:[%s9679_s15 + $0x90] ss:$0 sps:$4 sm:$0x11]  }
  0xde   : > { %1526 = vrot.lane.b32.xlu1 %v1497_v57, %s9588_s17  ;;  %v1279_v57 = vshrl.u32 %v10348_v16, 16 }
  0xdf   : > { %v2459_v19 = vpop.permute.xlu0 %2458 }
  0xe0   : > { %v2461_v45 = vpop.permute.xlu1 %2460  ;;  %2503 = vst.msk [vmem:[#allocation2 + $0x40] sm:$0xff] %vm2498_vm13, %v2459_v19  ;;  %v1281_v58 = vor.u32 %v1279_v57, %v10381_v17 }
  0xe1   : > { %2504 = vst.msk [vmem:[#allocation2 + $0x50] sm:$0xff] %vm2498_vm13, %v2461_v45  ;;  %1733 = vrot.lane.b32.xlu0 %v1704_v18, %s9587_s16  ;;  %v1289_v45 = vor.u32 %v1287_v12, %v1285_v35 }
  0xe2   : > { %1735 = vrot.lane.b32.xlu1 %v1706_v32, %s9587_s16  ;;  %v9386_v32 = vld [vmem:[%s9679_s15 + $0x78] sm:$0x7f]   ;;  %v1286_v19 = vsel %vm1162_vm2, %v1281_v58, %v1285_v35 }
  0xe3   : > { %v2790_v10 = vpop.permute.xlu0 %2789  ;;  %v1498_v63 = vrot.slane %v9386_v32, 1 }
  0xe4   : > { %v2792_v50 = vpop.permute.xlu1 %2791  ;;  %2834 = vst.msk [vmem:[#allocation2 + $0x40] sm:$0xff] %vm2829_vm14, %v2790_v10 }
  0xe5   : > { %2835 = vst.msk [vmem:[#allocation2 + $0x50] sm:$0xff] %vm2829_vm14, %v2792_v50  ;;  %2055 = vrot.lane.b32.xlu0 %v2012_v20, %s9591_s20  ;;  %v1499_v24 = vsel %vm1468_vm0, %v1496_v31, %v1498_v63  ;;  %v9393_v20 = vld [vmem:[%s9679_s15 + $0x88] sm:$0xff]   ;;  %v2029_v31 = vor.u32 %v2028_v8, %v2025_v5 }
  0xe6   : > { %2057 = vrot.lane.b32.xlu1 %v2021_v1, %s9591_s20  ;;  %v9387_v1 = vld [vmem:[%s9679_s15 + $0x80] sm:$0x7f]   ;;  %v2768_v41 = vshrl.u32 %v9393_v20, 16  ;;  %v2771_v44 = vshll.u32 %v9393_v20, 16 }
  0xe7   : > { %v3006_v36 = vpop.permute.xlu0 %3005  ;;  %v1707_v60 = vrot.slane %v9387_v1, 1  ;;  %v2030_v56 = vsel %vm13817_vm3, %v10417_v55, %v2029_v31  ;;  %vm1354_vm3 = vcmask 62496  }
  0xe8   : > { %v3008_v21 = vpop.permute.xlu1 %3007  ;;  %3050 = vst.msk [vmem:[#allocation2 + $0x40] sm:$0xff] %vm13816_vm15, %v3006_v36  ;;  %v2770_v36 = vrot.slane %v2768_v41, 2  ;;  %v2773_v33 = vrot.slane %v2771_v44, 3 }
  0xe9   : > { %3051 = vst.msk [vmem:[#allocation2 + $0x50] sm:$0xff] %vm13816_vm15, %v3008_v21  ;;  %2265 = vrot.lane.b32.xlu0 %v2236_v29, %s9589_s18  ;;  %vm1048_vm15 = vcmask 29696   ;;  %v1708_v0 = vsel %vm1468_vm0, %v1705_v40, %v1707_v60  ;;  %v9392_v40 = vld [vmem:[%s9679_s15 + $0x88] sm:$0xff]  }
  0xea   : > { %2267 = vrot.lane.b32.xlu1 %v2238_v11, %s9589_s18  ;;  %1049 = vst.msk [vmem:[#allocation2 + $0xf0] sm:$0x3f] %vm1048_vm15, %v9402_v13  ;;  %v9389_v11 = vld [vmem:[%s9679_s15 + $0x80] sm:$0xff]   ;;  %v2448_v6 = vrot.slane %v9392_v40, 2  ;;  %vm13863_vm15 = vmmov %vm13862_vm6 }
  0xeb   : > { %v1303_v51 = vpop.permute.xlu0 %1302  ;;  %v2239_v21 = vrot.slane %v9389_v11, 2 }
  0xec   : > { %v1305_v59 = vpop.permute.xlu1 %1304  ;;  %1345 = vst.msk [vmem:[#allocation2 + $0x60] sm:$0xff] %vm1338_vm8, %v1303_v51  ;;  %v2449_v38 = vsel %vm2209_vm1, %v2446_v47, %v2448_v6 }
  0xed   : > { %1346 = vst.msk [vmem:[#allocation2 + $0x70] sm:$0xff] %vm1338_vm8, %v1305_v59  ;;  %2474 = vrot.lane.b32.xlu0 %v2445_v9, %s9592_s21  ;;  %v2240_v55 = vsel %vm2209_vm1, %v2237_v26, %v2239_v21  ;;  %v2774_v9 = vor.u32 %v2773_v33, %v2770_v36 }
  0xee   : > { %2476 = vrot.lane.b32.xlu1 %v2447_v14, %s9592_s21  ;;  %v2777_v14 = vshll.u32 %v9394_v25, 16 }
  0xef   : > { %v1513_v23 = vpop.permute.xlu0 %1512  ;;  %v3067_v46 = vld [vmem:[#allocation2 + $0x40] sm:$0xff] }
  0xf0   : > { %v1515_v7 = vpop.permute.xlu1 %1514  ;;  %v3068_v22 = vld [vmem:[#allocation2 + $0x50] sm:$0xff]  ;;  %1555 = vst.msk [vmem:[#allocation2 + $0x60] sm:$0xff] %vm1548_vm9, %v1513_v23  ;;  %9106 = vmatprep.mubr.msk.bf16.mxu0 %vm3106_vm7, %v3067_v46  ;;  %v2779_v51 = vrot.slane %v2777_v14, 3 }
  0xf1   : > { %1556 = vst.msk [vmem:[#allocation2 + $0x70] sm:$0xff] %vm1548_vm9, %v1515_v7  ;;  %2805 = vrot.lane.b32.xlu0 %v2757_v28, %s9593_s22  ;;  %9107 = vmatmul.mubr.msk.bf16.gmra.mrb[8].mxu0 %vm3106_vm7, %v3068_v22  ;;  %v2995_v7 = vrot.slane %v9396_v62, 3  ;;  %v2775_v22 = vsel %vm13818_vm4, %v10464_v52, %v2774_v9  ;;  %v2994_v52 = vsel %vm13819_vm5, %v2991_v2, %v2993_v34 }
  0xf2   : > { %2807 = vrot.lane.b32.xlu1 %v2766_v30, %s9593_s22  ;;  %v2780_v30 = vsel %vm13818_vm4, %v2774_v9, %v2779_v51  ;;  %vm1564_vm4 = vcmask 95296  }
  0xf3   : > { %v1722_v3 = vpop.permute.xlu0 %1721  ;;  %v2996_v23 = vsel %vm13819_vm5, %v2993_v34, %v2995_v7  ;;  %vm1773_vm5 = vcmask 128096  }
  0xf4   : > { %v1724_v16 = vpop.permute.xlu1 %1723  ;;  %1764 = vst.msk [vmem:[#allocation2 + $0x60] sm:$0xff] %vm1757_vm10, %v1722_v3 }
  0xf5   : > { %1765 = vst.msk [vmem:[#allocation2 + $0x70] sm:$0xff] %vm1757_vm10, %v1724_v16  ;;  %3021 = vrot.lane.b32.xlu0 %v2990_v42, %s9594_s23 }
  0xf6   : > { %3023 = vrot.lane.b32.xlu1 %v2992_v54, %s9594_s23 }
  0xf7   : > { %v2044_v17 = vpop.permute.xlu0 %2043 }
  0xf8   : > { %v2046_v18 = vpop.permute.xlu1 %2045  ;;  %2086 = vst.msk [vmem:[#allocation2 + $0x60] sm:$0xff] %vm2079_vm11, %v2044_v17 }
  0xf9   : > { %2087 = vst.msk [vmem:[#allocation2 + $0x70] sm:$0xff] %vm2079_vm11, %v2046_v18  ;;  %1318 = vrot.lane.b32.xlu0 %v1286_v19, %s9590_s19 }
  0xfa   : > { %1320 = vrot.lane.b32.xlu1 %v1289_v45, %s9590_s19  ;;  %s9608_s19 = smov 108  }
  0xfb   : > { %v2254_v50 = vpop.permute.xlu0 %2253 }
  0xfc   : > { %v2256_v53 = vpop.permute.xlu1 %2255  ;;  %2296 = vst.msk [vmem:[#allocation2 + $0x60] sm:$0xff] %vm2289_vm12, %v2254_v50 }
  0xfd   : > { %2297 = vst.msk [vmem:[#allocation2 + $0x70] sm:$0xff] %vm2289_vm12, %v2256_v53  ;;  %1528 = vrot.lane.b32.xlu0 %v1499_v24, %s9588_s17 }
  0xfe   : > { %1530 = vrot.lane.b32.xlu1 %v1498_v63, %s9588_s17  ;;  %s9606_s17 = smov 110  }
  0xff   : > { %v2463_v15 = vpop.permute.xlu0 %2462 }
 0x100   : > { %v2465_v10 = vpop.permute.xlu1 %2464  ;;  %2505 = vst.msk [vmem:[#allocation2 + $0x60] sm:$0xff] %vm2498_vm13, %v2463_v15 }
 0x101   : > { %2506 = vst.msk [vmem:[#allocation2 + $0x70] sm:$0xff] %vm2498_vm13, %v2465_v10  ;;  %1737 = vrot.lane.b32.xlu0 %v1708_v0, %s9587_s16 }
 0x102   : > { %1739 = vrot.lane.b32.xlu1 %v1707_v60, %s9587_s16 }
 0x103   : > { %v2794_v29 = vpop.permute.xlu0 %2793 }
 0x104   : > { %v2796_v27 = vpop.permute.xlu1 %2795  ;;  %2836 = vst.msk [vmem:[#allocation2 + $0x60] sm:$0xff] %vm2829_vm14, %v2794_v29 }
 0x105   : > { %2837 = vst.msk [vmem:[#allocation2 + $0x70] sm:$0xff] %vm2829_vm14, %v2796_v27  ;;  %2059 = vrot.lane.b32.xlu0 %v2030_v56, %s9591_s20 }
 0x106   : > { %2061 = vrot.lane.b32.xlu1 %v2029_v31, %s9591_s20 }
 0x107   : > { %v3010_v59 = vpop.permute.xlu0 %3009 }
 0x108   : > { %v3012_v37 = vpop.permute.xlu1 %3011  ;;  %3052 = vst.msk [vmem:[#allocation2 + $0x60] sm:$0xff] %vm13863_vm15, %v3010_v59  ;;  %vm13864_vm15 = vmmov %vm13862_vm6 }
 0x109   : > { %3053 = vst.msk [vmem:[#allocation2 + $0x70] sm:$0xff] %vm13862_vm6, %v3012_v37  ;;  %2269 = vrot.lane.b32.xlu0 %v2240_v55, %s9589_s18 }
 0x10a   : > { %2271 = vrot.lane.b32.xlu1 %v2239_v21, %s9589_s18  ;;  %s9607_s18 = smov 91  }
 0x10b   : > { %v1307_v26 = vpop.permute.xlu0 %1306 }
 0x10c   : > { %v1309_v13 = vpop.permute.xlu1 %1308  ;;  %1347 = vst.msk [vmem:[#allocation2 + $0x80] sm:$0xff] %vm1338_vm8, %v1307_v26 }
 0x10d   : > { %1348 = vst.msk [vmem:[#allocation2 + $0x90] sm:$0xff] %vm1338_vm8, %v1309_v13  ;;  %2478 = vrot.lane.b32.xlu0 %v2449_v38, %s9592_s21 }
 0x10e   : > { %2480 = vrot.lane.b32.xlu1 %v2448_v6, %s9592_s21  ;;  %s9596_s21 = smov 96  }
 0x10f   : > { %v1517_v57 = vpop.permute.xlu0 %1516  ;;  %v3069_v47 = vld [vmem:[#allocation2 + $0x60] sm:$0xff] }
 0x110   : > { %v1519_v28 = vpop.permute.xlu1 %1518  ;;  %v3070_v61 = vld [vmem:[#allocation2 + $0x70] sm:$0xff]  ;;  %1557 = vst.msk [vmem:[#allocation2 + $0x80] sm:$0xff] %vm1548_vm9, %v1517_v57  ;;  %9110 = vmatprep.mubr.msk.bf16.mxu0 %vm3106_vm7, %v3069_v47 }
 0x111   : > { %1558 = vst.msk [vmem:[#allocation2 + $0x90] sm:$0xff] %vm1548_vm9, %v1519_v28  ;;  %2809 = vrot.lane.b32.xlu0 %v2775_v22, %s9593_s22  ;;  %9111 = vmatmul.mubr.msk.bf16.gmra.mrb[12].mxu0 %vm3106_vm7, %v3070_v61 }
 0x112   : > { %2811 = vrot.lane.b32.xlu1 %v2780_v30, %s9593_s22  ;;  %s9597_s22 = smov 48  }
 0x113   : > { %v1726_v35 = vpop.permute.xlu0 %1725 }
 0x114   : > { %v1728_v46 = vpop.permute.xlu1 %1727  ;;  %1766 = vst.msk [vmem:[#allocation2 + $0x80] sm:$0xff] %vm1757_vm10, %v1726_v35 }
 0x115   : > { %1767 = vst.msk [vmem:[#allocation2 + $0x90] sm:$0xff] %vm1757_vm10, %v1728_v46  ;;  %3025 = vrot.lane.b32.xlu0 %v2994_v52, %s9594_s23 }
 0x116   : > { %3027 = vrot.lane.b32.xlu1 %v2996_v23, %s9594_s23 }
 0x117   : > { %v2048_v54 = vpop.permute.xlu0 %2047 }
 0x118   : > { %v2050_v12 = vpop.permute.xlu1 %2049  ;;  %2088 = vst.msk [vmem:[#allocation2 + $0x80] sm:$0xff] %vm2079_vm11, %v2048_v54  ;;  %v10626_v54 = vld [vmem:[%s13808_s2] ss:$0 sm:$0xff] }
 0x119   : > { %2089 = vst.msk [vmem:[#allocation2 + $0x90] sm:$0xff] %vm2079_vm11, %v2050_v12 }
 0x11b   : > { %v2258_v42 = vpop.permute.xlu0 %2257 }
 0x11c   : > { %v2260_v16 = vpop.permute.xlu1 %2259  ;;  %2298 = vst.msk [vmem:[#allocation2 + $0x80] sm:$0xff] %vm2289_vm12, %v2258_v42 }
 0x11d   : > { %2299 = vst.msk [vmem:[#allocation2 + $0x90] sm:$0xff] %vm2289_vm12, %v2260_v16 }
 0x11f   : > { %v2467_v2 = vpop.permute.xlu0 %2466 }
 0x120   : > { %v2469_v4 = vpop.permute.xlu1 %2468  ;;  %2507 = vst.msk [vmem:[#allocation2 + $0x80] sm:$0xff] %vm2498_vm13, %v2467_v2 }
 0x121   : > { %2508 = vst.msk [vmem:[#allocation2 + $0x90] sm:$0xff] %vm2498_vm13, %v2469_v4 }
 0x123   : > { %v2798_v32 = vpop.permute.xlu0 %2797 }
 0x124   : > { %v2800_v58 = vpop.permute.xlu1 %2799  ;;  %2838 = vst.msk [vmem:[#allocation2 + $0x80] sm:$0xff] %vm2829_vm14, %v2798_v32 }
 0x125   : > { %2839 = vst.msk [vmem:[#allocation2 + $0x90] sm:$0xff] %vm2829_vm14, %v2800_v58 }
 0x127   : > { %v3014_v3 = vpop.permute.xlu0 %3013 }
 0x128   : > { %v3016_v43 = vpop.permute.xlu1 %3015  ;;  %3054 = vst.msk [vmem:[#allocation2 + $0x80] sm:$0xff] %vm13864_vm15, %v3014_v3  ;;  %vm13865_vm15 = vmmov %vm13862_vm6 }
 0x129   : > { %3055 = vst.msk [vmem:[#allocation2 + $0x90] sm:$0xff] %vm13862_vm6, %v3016_v43 }
 0x12b   : > { %v1311_v18 = vpop.permute.xlu0 %1310 }
 0x12c   : > { %v1313_v45 = vpop.permute.xlu1 %1312  ;;  %1349 = vst.msk [vmem:[#allocation2 + $0xa0] sm:$0xff] %vm1338_vm8, %v1311_v18 }
 0x12d   : > { %1350 = vst.msk [vmem:[#allocation2 + $0xb0] sm:$0xff] %vm1338_vm8, %v1313_v45 }
 0x12f   : > { %v1521_v1 = vpop.permute.xlu0 %1520  ;;  %v3071_v49 = vld [vmem:[#allocation2 + $0x80] sm:$0xff] }
 0x130   : > { %v1523_v19 = vpop.permute.xlu1 %1522  ;;  %v3072_v63 = vld [vmem:[#allocation2 + $0x90] sm:$0xff]  ;;  %1559 = vst.msk [vmem:[#allocation2 + $0xa0] sm:$0xff] %vm1548_vm9, %v1521_v1  ;;  %9114 = vmatprep.mubr.msk.bf16.mxu0 %vm3106_vm7, %v3071_v49 }
 0x131   : > { %1560 = vst.msk [vmem:[#allocation2 + $0xb0] sm:$0xff] %vm1548_vm9, %v1523_v19  ;;  %9115 = vmatmul.mubr.msk.bf16.gmra.mrb[16].mxu0 %vm3106_vm7, %v3072_v63 }
 0x133   : > { %v1730_v17 = vpop.permute.xlu0 %1729 }
 0x134   : > { %v1732_v48 = vpop.permute.xlu1 %1731  ;;  %1768 = vst.msk [vmem:[#allocation2 + $0xa0] sm:$0xff] %vm1757_vm10, %v1730_v17 }
 0x135   : > { %1769 = vst.msk [vmem:[#allocation2 + $0xb0] sm:$0xff] %vm1757_vm10, %v1732_v48 }
 0x137   : > { %v2052_v24 = vpop.permute.xlu0 %2051 }
 0x138   : > { %v2054_v53 = vpop.permute.xlu1 %2053  ;;  %2090 = vst.msk [vmem:[#allocation2 + $0xa0] sm:$0xff] %vm2079_vm11, %v2052_v24 }
 0x139   : > { %2091 = vst.msk [vmem:[#allocation2 + $0xb0] sm:$0xff] %vm2079_vm11, %v2054_v53 }
 0x13b   : > { %v2262_v5 = vpop.permute.xlu0 %2261 }
 0x13c   : > { %v2264_v60 = vpop.permute.xlu1 %2263  ;;  %2300 = vst.msk [vmem:[#allocation2 + $0xa0] sm:$0xff] %vm2289_vm12, %v2262_v5 }
 0x13d   : > { %2301 = vst.msk [vmem:[#allocation2 + $0xb0] sm:$0xff] %vm2289_vm12, %v2264_v60 }
 0x13f   : > { %v2471_v50 = vpop.permute.xlu0 %2470 }
 0x140   : > { %v2473_v8 = vpop.permute.xlu1 %2472  ;;  %2509 = vst.msk [vmem:[#allocation2 + $0xa0] sm:$0xff] %vm2498_vm13, %v2471_v50 }
 0x141   : > { %2510 = vst.msk [vmem:[#allocation2 + $0xb0] sm:$0xff] %vm2498_vm13, %v2473_v8 }
 0x143   : > { %v2802_v10 = vpop.permute.xlu0 %2801 }
 0x144   : > { %v2804_v20 = vpop.permute.xlu1 %2803  ;;  %2840 = vst.msk [vmem:[#allocation2 + $0xa0] sm:$0xff] %vm2829_vm14, %v2802_v10 }
 0x145   : > { %2841 = vst.msk [vmem:[#allocation2 + $0xb0] sm:$0xff] %vm2829_vm14, %v2804_v20 }
 0x147   : > { %v3018_v31 = vpop.permute.xlu0 %3017 }
 0x148   : > { %v3020_v0 = vpop.permute.xlu1 %3019  ;;  %3056 = vst.msk [vmem:[#allocation2 + $0xa0] sm:$0xff] %vm13865_vm15, %v3018_v31  ;;  %vm13866_vm15 = vmmov %vm13862_vm6 }
 0x149   : > { %3057 = vst.msk [vmem:[#allocation2 + $0xb0] sm:$0xff] %vm13862_vm6, %v3020_v0 }
 0x14b   : > { %v1315_v15 = vpop.permute.xlu0 %1314 }
 0x14c   : > { %v1317_v11 = vpop.permute.xlu1 %1316  ;;  %1351 = vst.msk [vmem:[#allocation2 + $0xc0] sm:$0xff] %vm1338_vm8, %v1315_v15 }
 0x14d   : > { %1352 = vst.msk [vmem:[#allocation2 + $0xd0] sm:$0xff] %vm1338_vm8, %v1317_v11 }
 0x14f   : > { %v1525_v25 = vpop.permute.xlu0 %1524  ;;  %v3073_v27 = vld [vmem:[#allocation2 + $0xa0] sm:$0xff] }
 0x150   : > { %v1527_v41 = vpop.permute.xlu1 %1526  ;;  %v3074_v44 = vld [vmem:[#allocation2 + $0xb0] sm:$0xff]  ;;  %1561 = vst.msk [vmem:[#allocation2 + $0xc0] sm:$0xff] %vm1548_vm9, %v1525_v25  ;;  %9118 = vmatprep.mubr.msk.bf16.mxu0 %vm3106_vm7, %v3073_v27  ;;  %v13832_v25 = vmov 0  }
 0x151   : > { %1562 = vst.msk [vmem:[#allocation2 + $0xd0] sm:$0xff] %vm1548_vm9, %v1527_v41  ;;  %9119 = vmatmul.mubr.msk.bf16.gmra.mrb[20].mxu0 %vm3106_vm7, %v3074_v44  ;;  %4643 = vmatprep.subr.bf16.mxu1 %v13832_v25 }
 0x152   : > { %7412 = vmatprep.subr.bf16.mxu0 %v13832_v25  ;;  %9252 = vset.pattern.permute.xlu1 %v13832_v25 }
 0x153   : > { %v1734_v21 = vpop.permute.xlu0 %1733  ;;  %9253 = vset.pattern.permute.xlu0 %v13832_v25 }
 0x154   : > { %v1736_v56 = vpop.permute.xlu1 %1735  ;;  %1770 = vst.msk [vmem:[#allocation2 + $0xc0] sm:$0xff] %vm1757_vm10, %v1734_v21 }
 0x155   : > { %1771 = vst.msk [vmem:[#allocation2 + $0xd0] sm:$0xff] %vm1757_vm10, %v1736_v56 }
 0x157   : > { %v2056_v29 = vpop.permute.xlu0 %2055 }
 0x158   : > { %v2058_v40 = vpop.permute.xlu1 %2057  ;;  %2092 = vst.msk [vmem:[#allocation2 + $0xc0] sm:$0xff] %vm2079_vm11, %v2056_v29 }
 0x159   : > { %2093 = vst.msk [vmem:[#allocation2 + $0xd0] sm:$0xff] %vm2079_vm11, %v2058_v40  ;;  %v9403_v40 = vld [vmem:[%s13809_s3] sm:$0xff]  }
 0x15a   : > { %4644 = vmatpush1.bf16.msra.mxu1 %v9403_v40 }
 0x15b   : > { %v2266_v33 = vpop.permute.xlu0 %2265  ;;  %4645 = vmatprep.subr.bf16.mxu1 %v13832_v25 }
 0x15c   : > { %v2268_v36 = vpop.permute.xlu1 %2267  ;;  %2302 = vst.msk [vmem:[#allocation2 + $0xc0] sm:$0xff] %vm2289_vm12, %v2266_v33  ;;  %v9405_v33 = vld [vmem:[%s13809_s3 + $0x10] sm:$0xff]  }
 0x15d   : > { %2303 = vst.msk [vmem:[#allocation2 + $0xd0] sm:$0xff] %vm2289_vm12, %v2268_v36  ;;  %v9404_v36 = vld [vmem:[%s13809_s3 + $0x8] sm:$0xff]  }
 0x15e   : > { %4646 = vmatpush1.bf16.msra.mxu1 %v9404_v36 }
 0x15f   : > { %v2475_v37 = vpop.permute.xlu0 %2474  ;;  %4647 = vmatprep.subr.bf16.mxu1 %v13832_v25 }
 0x160   : > { %v2477_v14 = vpop.permute.xlu1 %2476  ;;  %2511 = vst.msk [vmem:[#allocation2 + $0xc0] sm:$0xff] %vm2498_vm13, %v2475_v37 }
 0x161   : > { %2512 = vst.msk [vmem:[#allocation2 + $0xd0] sm:$0xff] %vm2498_vm13, %v2477_v14 }
 0x162   : > { %4648 = vmatpush1.bf16.msra.mxu1 %v9405_v33 }
 0x163   : > { %v2806_v6 = vpop.permute.xlu0 %2805  ;;  %4649 = vmatprep.subr.bf16.mxu1 %v13832_v25 }
 0x164   : > { %v2808_v55 = vpop.permute.xlu1 %2807  ;;  %2842 = vst.msk [vmem:[#allocation2 + $0xc0] sm:$0xff] %vm2829_vm14, %v2806_v6 }
 0x165   : > { %2843 = vst.msk [vmem:[#allocation2 + $0xd0] sm:$0xff] %vm2829_vm14, %v2808_v55 }
 0x167   : > { %v3022_v9 = vpop.permute.xlu0 %3021 }
 0x168   : > { %v3024_v59 = vpop.permute.xlu1 %3023  ;;  %3058 = vst.msk [vmem:[#allocation2 + $0xc0] sm:$0xff] %vm13866_vm15, %v3022_v9  ;;  %vm13828_vm15 = vcmask 125952  }
 0x169   : > { %3059 = vst.msk [vmem:[#allocation2 + $0xd0] sm:$0xff] %vm13862_vm6, %v3024_v59 }
 0x16a   : > { %343 = vst.msk [vmem:[#allocation4 + $0x80] sm:$0xf] %vm13828_vm15, %v13832_v25  ;;  %344 = vst.msk [vmem:[#allocation4 + $0x84] sm:$0xf] %vm13828_vm15, %v13832_v25 }
 0x16b   : > { %v1319_v39 = vpop.permute.xlu0 %1318  ;;  %345 = vst.msk [vmem:[#allocation4 + $0x88] sm:$0xf] %vm13828_vm15, %v13832_v25  ;;  %346 = vst.msk [vmem:[#allocation4 + $0x8c] sm:$0xf] %vm13828_vm15, %v13832_v25 }
 0x16c   : > { %v1321_v51 = vpop.permute.xlu1 %1320  ;;  %1353 = vst.msk [vmem:[#allocation2 + $0xe0] sm:$0xff] %vm1338_vm8, %v1319_v39  ;;  %vm2514_vm8 = vcmask 226496  }
 0x16d   : > { %1355 = vst.msk [vmem:[#allocation2 + $0xf0] sm:$0x3f] %vm1354_vm3, %v1321_v51  ;;  %vm2095_vm3 = vcmask 160896  }
 0x16e   : > { %347 = vst.msk [vmem:[#allocation4 + $0x90] sm:$0xf] %vm13828_vm15, %v13832_v25  ;;  %335 = vst.msk [vmem:[#allocation4] sm:$0xf] %vm13828_vm15, %v13832_v25 }
 0x16f   : > { %v1529_v38 = vpop.permute.xlu0 %1528  ;;  %v3075_v26 = vld [vmem:[#allocation2 + $0xc0] sm:$0xff]  ;;  %336 = vst.msk [vmem:[#allocation4 + $0x4] sm:$0xf] %vm13828_vm15, %v13832_v25  ;;  %337 = vst.msk [vmem:[#allocation4 + $0x8] sm:$0xf] %vm13828_vm15, %v13832_v25 }
 0x170   : > { %v1531_v62 = vpop.permute.xlu1 %1530  ;;  %v3076_v13 = vld [vmem:[#allocation2 + $0xd0] sm:$0xff]  ;;  %1563 = vst.msk [vmem:[#allocation2 + $0xe0] sm:$0xff] %vm1548_vm9, %v1529_v38  ;;  %9122 = vmatprep.mubr.msk.bf16.mxu0 %vm3106_vm7, %v3075_v26  ;;  %vm3061_vm9 = vcmask 292096  }
 0x171   : > { %1565 = vst.msk [vmem:[#allocation2 + $0xf0] sm:$0x3f] %vm1564_vm4, %v1531_v62  ;;  %9123 = vmatmul.mubr.msk.bf16.gmra.mrb[24].mxu0 %vm3106_vm7, %v3076_v13  ;;  %vm2305_vm4 = vcmask 193696  }
 0x172   : > { %338 = vst.msk [vmem:[#allocation4 + $0xc] sm:$0xf] %vm13828_vm15, %v13832_v25  ;;  %348 = vst.msk [vmem:[#allocation5] sm:$0xf] %vm13828_vm15, %v13832_v25 }
 0x173   : > { %v1738_v34 = vpop.permute.xlu0 %1737  ;;  %349 = vst.msk [vmem:[#allocation5 + $0x4] sm:$0xf] %vm13828_vm15, %v13832_v25  ;;  %350 = vst.msk [vmem:[#allocation5 + $0x8] sm:$0xf] %vm13828_vm15, %v13832_v25 }
 0x174   : > { %v1740_v30 = vpop.permute.xlu1 %1739  ;;  %1772 = vst.msk [vmem:[#allocation2 + $0xe0] sm:$0xff] %vm1757_vm10, %v1738_v34  ;;  %vm13867_vm10 = vmmov %vm13862_vm6 }
 0x175   : > { %1774 = vst.msk [vmem:[#allocation2 + $0xf0] sm:$0x3f] %vm1773_vm5, %v1740_v30  ;;  %vm2845_vm5 = vcmask 259296  }
 0x176   : > { %351 = vst.msk [vmem:[#allocation5 + $0xc] sm:$0xf] %vm13828_vm15, %v13832_v25  ;;  %355 = vst.msk [vmem:[#allocation5 + $0x94] sm:$0xf] %vm13828_vm15, %v13832_v25 }
 0x177   : > { %v2060_v28 = vpop.permute.xlu0 %2059  ;;  %356 = vst.msk [vmem:[#allocation5 + $0x98] sm:$0xf] %vm13828_vm15, %v13832_v25  ;;  %357 = vst.msk [vmem:[#allocation5 + $0x9c] sm:$0xf] %vm13828_vm15, %v13832_v25 }
 0x178   : > { %v2062_v7 = vpop.permute.xlu1 %2061  ;;  %2094 = vst.msk [vmem:[#allocation2 + $0xe0] sm:$0xff] %vm2079_vm11, %v2060_v28  ;;  %vm3336_vm11 = vcmask 130048  }
 0x179   : > { %2096 = vst.msk [vmem:[#allocation2 + $0xf0] sm:$0x3f] %vm2095_vm3, %v2062_v7 }
 0x17a   : > { %358 = vst.msk [vmem:[#allocation5 + $0xa0] sm:$0xf] %vm13828_vm15, %v13832_v25 }
 0x17b   : > { %v2270_v61 = vpop.permute.xlu0 %2269 }
 0x17c   : > { %v2272_v22 = vpop.permute.xlu1 %2271  ;;  %2304 = vst.msk [vmem:[#allocation2 + $0xe0] sm:$0xff] %vm2289_vm12, %v2270_v61  ;;  %vm13868_vm12 = vcmask 1044480  }
 0x17d   : > { %2306 = vst.msk [vmem:[#allocation2 + $0xf0] sm:$0x3f] %vm2305_vm4, %v2272_v22  ;;  %v9406_v22 = vld [vmem:[%s13809_s3 + $0x18] sm:$0xff]   ;;  %vm13872_vm6 = vmmov %vm13868_vm12 }
 0x17e   : > { %4650 = vmatpush1.bf16.msra.mxu1 %v9406_v22  ;;  %vm13873_vm3 = vmmov %vm13872_vm6 }
 0x17f   : > { %v2479_v47 = vpop.permute.xlu0 %2478  ;;  %4651 = vmatprep.subr.bf16.mxu1 %v13832_v25 }
 0x180   : > { %v2481_v57 = vpop.permute.xlu1 %2480  ;;  %2513 = vst.msk [vmem:[#allocation2 + $0xe0] sm:$0xff] %vm2498_vm13, %v2479_v47  ;;  %vm13869_vm13 = vsmask.f32 5376 }
 0x181   : > { %2515 = vst.msk [vmem:[#allocation2 + $0xf0] sm:$0x3f] %vm2514_vm8, %v2481_v57  ;;  %vm13874_vm4 = vmmov %vm13869_vm13 }
 0x182   : > { %vm13875_vm8 = vmmov %vm13874_vm4 }
 0x183   : > { %v2810_v46 = vpop.permute.xlu0 %2809 }
 0x184   : > { %v2812_v23 = vpop.permute.xlu1 %2811  ;;  %2844 = vst.msk [vmem:[#allocation2 + $0xe0] sm:$0xff] %vm2829_vm14, %v2810_v46  ;;  %vm13870_vm14 = vsmask.f32 6400 }
 0x185   : > { %2846 = vst.msk [vmem:[#allocation2 + $0xf0] sm:$0x3f] %vm2845_vm5, %v2812_v23 }
 0x187   : > { %v3026_v35 = vpop.permute.xlu0 %3025  ;;  %v9100_v12 = vpop.f32.mrb[0].mxu0 }
 0x188   : > { %v3028_v52 = vpop.permute.xlu1 %3027  ;;  %3060 = vst.msk [vmem:[#allocation2 + $0xe0] sm:$0xff] %vm13867_vm10, %v3026_v35  ;;  %v3193_v16 = vpop.f32.mrb[1].mxu0  ;;  %v3202_v4 = vadd.f32 %v9100_v12, %v10626_v54  ;;  %vm13878_vm10 = vmmov %vm13873_vm3 }
 0x189   : > { %3062 = vst.msk [vmem:[#allocation2 + $0xf0] sm:$0x3f] %vm3061_vm9, %v3028_v52  ;;  %v9101_v42 = vpop.f32.mrb[2].mxu0  ;;  %v3194_v32 = vadd.f32 %v10626_v54, %v3193_v16  ;;  %v9407_v16 = vld [vmem:[%s13809_s3 + $0x20] sm:$0xff]  }
 0x18a   : > { %v3205_v2 = vadd.f32 %v9101_v42, %v10626_v54  ;;  %v3196_v58 = vpop.f32.mrb[3].mxu0  ;;  %4652 = vmatpush1.bf16.msra.mxu1 %v9407_v16 }
 0x18b   : > { %v3197_v43 = vadd.f32 %v10626_v54, %v3196_v58  ;;  %4653 = vmatprep.subr.bf16.mxu1 %v13832_v25 }
 0x18c   : > { %v3321_v3 = vpack.c.bf16 %v3205_v2, %v3202_v4 }
 0x18d   : > { %v3320_v45 = vpack.c.bf16 %v3197_v43, %v3194_v32 }
 0x18e   : > { %3338 = vst.msk [vmem:[#allocation3 + $0x8] sm:$0xff] %vm3336_vm11, %v3321_v3 }
 0x18f   : > { %3337 = vst.msk [vmem:[#allocation3] sm:$0xff] %vm3336_vm11, %v3320_v45  ;;  %v3077_v19 = vld [vmem:[#allocation2 + $0xe0] sm:$0xff] }
 0x190   : > { %v3078_v18 = vld [vmem:[#allocation2 + $0xf0] sm:$0x3f]  ;;  %9126 = vmatprep.mubr.msk.bf16.mxu0 %vm3106_vm7, %v3077_v19  ;;  %v9408_v19 = vld [vmem:[%s13809_s3 + $0x28] sm:$0xff]  }
 0x191   : > { %9127 = vmatmul.mubr.msk.bf16.gmra.mrb[28].mxu0 %vm3106_vm7, %v3078_v18  ;;  %4654 = vmatpush1.bf16.msra.mxu1 %v9408_v19  ;;  %vm13871_vm7 = vmmov %vm13870_vm14 }
 0x192   : > { %4655 = vmatprep.subr.bf16.mxu1 %v13832_v25  ;;  %vm13876_vm5 = vmmov %vm13871_vm7 }
 0x193   : > { %vm13877_vm9 = vmmov %vm13876_vm5 }
 0x195   : > { %v10637_v63 = vld [vmem:[#allocation3 + $0x8] sm:$0xff] }
 0x196   : > { %v3565_v1 = vld [vmem:[#allocation3] sm:$0xfe]  ;;  %v3594_v49 = vrot.slane %v10637_v63, 1  ;;  %3369 = vst.msk [vmem:[#allocation2 + $0x10] sm:$0xff] %vm3336_vm11, %v10637_v63  ;;  %v3404_v24 = vshll.u32 %v10637_v63, 16 }
 0x197   : > { %v3382_v48 = vld [vmem:[#allocation3] sm:$0xff]  ;;  %v3593_v17 = vrot.slane %v3565_v1, 1  ;;  %v3678_v37 = vld [vmem:[#allocation3 + $0x8] sm:$0xfe] }
 0x198   : > { %v3399_v53 = vshll.u32 %v3382_v48, 16  ;;  %3368 = vst.msk [vmem:[#allocation2] sm:$0xff] %vm3336_vm11, %v3382_v48  ;;  %v3397_v5 = vshrl.u32 %v3382_v48, 16  ;;  %v10648_v20 = vrot.slane %v3404_v24, 1  ;;  %v3988_v39 = vld [vmem:[#allocation3 + $0x8] sm:$0xfc] }
 0x199   : > { %v3595_v60 = vsel %vm1468_vm0, %v3593_v17, %v3594_v49  ;;  %v3706_v30 = vrot.slane %v3678_v37, 1  ;;  %v4016_v12 = vrot.slane %v3988_v39, 2  ;;  %v3791_v18 = vld [vmem:[#allocation3 + $0x8] sm:$0xfe] }
 0x19a   : > { %v3401_v8 = vrot.slane %v3399_v53, 1  ;;  %3620 = vrot.lane.b32.xlu1 %v3595_v60, %s9594_s23 }
 0x19c   : > { %v3402_v50 = vor.u32 %v3401_v8, %v3397_v5 }
 0x19e   : > { %v3407_v10 = vsel %vm1162_vm2, %v3402_v50, %v10648_v20 }
 0x19f   : > { %3507 = vrot.lane.b32.xlu0 %v3407_v10, %s9591_s20  ;;  %v3806_v10 = vshrl.u32 %v3791_v18, 16 }
 0x1a4   : > { %v9104_v0 = vpop.f32.mrb[4].mxu0 }
 0x1a5   : > { %v3209_v31 = vpop.f32.mrb[5].mxu0  ;;  %v3218_v15 = vadd.f32 %v9104_v0, %v10626_v54  ;;  %v3809_v0 = vshll.u32 %v3791_v18, 16 }
 0x1a6   : > { %v9105_v11 = vpop.f32.mrb[6].mxu0  ;;  %v3210_v27 = vadd.f32 %v10626_v54, %v3209_v31  ;;  %v3408_v31 = vshrl.u32 %v10637_v63, 16  ;;  %v9410_v63 = vld [vmem:[%s13809_s3 + $0x38] sm:$0xff]  }
 0x1a7   : > { %v3221_v41 = vadd.f32 %v9105_v11, %v10626_v54  ;;  %v3212_v44 = vpop.f32.mrb[7].mxu0  ;;  %v3811_v40 = vrot.slane %v3809_v0, 2 }
 0x1a8   : > { %v3213_v56 = vadd.f32 %v10626_v54, %v3212_v44 }
 0x1a9   : > { %v3323_v21 = vpack.c.bf16 %v3221_v41, %v3218_v15 }
 0x1aa   : > { %v3322_v29 = vpack.c.bf16 %v3213_v56, %v3210_v27  ;;  %v3410_v56 = vor.u32 %v3408_v31, %v10648_v20 }
 0x1ab   : > { %3340 = vst.msk [vmem:[#allocation3 + $0x18] sm:$0xff] %vm3336_vm11, %v3323_v21  ;;  %v3808_v21 = vrot.slane %v3806_v10, 1 }
 0x1ac   : > { %3339 = vst.msk [vmem:[#allocation3 + $0x10] sm:$0xff] %vm3336_vm11, %v3322_v29 }
 0x1b2   : > { %v10674_v14 = vld [vmem:[#allocation3 + $0x18] sm:$0xff] }
 0x1b3   : > { %v3357_v55 = vld [vmem:[#allocation3 + $0x18] sm:$0xff]  ;;  %v4440_v6 = vrot.slane %v10674_v14, 3  ;;  %v4411_v59 = vld [vmem:[#allocation3 + $0x10] sm:$0xf8]  ;;  %v10678_v51 = vrot.slane %v10674_v14, 2  ;;  %v3709_v7 = vrot.slane %v10674_v14, 1 }
 0x1b4   : > { %v4101_v9 = vld [vmem:[#allocation3 + $0x10] sm:$0xfc]  ;;  %3371 = vst.msk [vmem:[#allocation2 + $0x30] sm:$0xff] %vm3336_vm11, %v3357_v55  ;;  %v4439_v62 = vrot.slane %v4411_v59, 3  ;;  %v10701_v52 = vshrl.u32 %v10674_v14, 16  ;;  %v10704_v35 = vshll.u32 %v10674_v14, 16 }
 0x1b5   : > { %v4129_v13 = vrot.slane %v4101_v9, 2  ;;  %v10681_v38 = vld [vmem:[#allocation3 + $0x10] sm:$0xff] }
 0x1b6   : > { %v4214_v26 = vld [vmem:[#allocation3 + $0x10] sm:$0xfc]  ;;  %v3707_v34 = vrot.slane %v10681_v38, 1  ;;  %v4017_v28 = vrot.slane %v10681_v38, 2  ;;  %3370 = vst.msk [vmem:[#allocation2 + $0x20] sm:$0xff] %vm3336_vm11, %v10681_v38  ;;  %v4441_v57 = vsel %vm13868_vm12, %v4439_v62, %v4440_v6  ;;  %v4239_v32 = vrot.slane %v10701_v52, 2 }
 0x1b7   : > { %v4131_v61 = vsel %vm2209_vm1, %v4129_v13, %v10678_v51  ;;  %v4229_v47 = vshrl.u32 %v4214_v26, 16  ;;  %v4232_v23 = vshll.u32 %v4214_v26, 16  ;;  %4480 = vst.msk [vmem:[#allocation2 + $0x8] sm:$0xff] %vm3336_vm11, %v4441_v57  ;;  %v4242_v43 = vrot.slane %v10704_v35, 3 }
 0x1b8   : > { %4156 = vrot.lane.b32.xlu1 %v4131_v61, %s9596_s21  ;;  %v3708_v46 = vsel %vm1468_vm0, %v3706_v30, %v3707_v34  ;;  %v3710_v42 = vsel %vm1468_vm0, %v3707_v34, %v3709_v7  ;;  %v4018_v4 = vsel %vm2209_vm1, %v4016_v12, %v4017_v28  ;;  %v3412_v3 = vshll.u32 %v10681_v38, 16  ;;  %v9411_v30 = vld [vmem:[%s13809_s3 + $0x40] sm:$0xff]  }
 0x1b9   : > { %3733 = vrot.lane.b32.xlu0 %v3708_v46, %s9597_s22  ;;  %v4231_v2 = vrot.slane %v4229_v47, 2  ;;  %v4234_v58 = vrot.slane %v4232_v23, 3  ;;  %v3814_v45 = vshrl.u32 %v10681_v38, 16  ;;  %v4020_v48 = vsel %vm2209_vm1, %v4017_v28, %v10678_v51 }
 0x1ba   : > { %v3597_v17 = vsel %vm1468_vm0, %v3594_v49, %v3707_v34  ;;  %v3825_v24 = vrot.slane %v10701_v52, 1  ;;  %v10733_v60 = vor.u32 %v4242_v43, %v4239_v32  ;;  %v3819_v8 = vrot.slane %v3412_v3, 2  ;;  %v9409_v49 = vld [vmem:[%s13809_s3 + $0x30] sm:$0xff]  }
 0x1bb   : > { %v4235_v53 = vor.u32 %v4234_v58, %v4231_v2  ;;  %v3816_v5 = vrot.slane %v3814_v45, 1  ;;  %v3828_v50 = vrot.slane %v10704_v35, 2  ;;  %v3414_v11 = vrot.slane %v3412_v3, 1  ;;  %4656 = vmatpush1.bf16.msra.mxu1 %v9409_v49 }
 0x1bc   : > { %3735 = vrot.lane.b32.xlu1 %v3710_v42, %s9597_s22  ;;  %4657 = vmatprep.subr.bf16.mxu1 %v13832_v25  ;;  %v3812_v13 = vor.u32 %v3811_v40, %v3808_v21  ;;  %v3422_v26 = vrot.slane %v10704_v35, 1  ;;  %vm13820_vm12 = vcmask 128000  }
 0x1bd   : > { %4043 = vrot.lane.b32.xlu0 %v4018_v4, %s9598_s26  ;;  %v4244_v15 = vsel %vm13869_vm13, %v4235_v53, %v10733_v60  ;;  %v3820_v41 = vor.u32 %v3819_v8, %v3816_v5  ;;  %v10745_v44 = vor.u32 %v3828_v50, %v3825_v24  ;;  %v3415_v33 = vsel %vm1162_vm2, %v3410_v56, %v3414_v11  ;;  %vm13879_vm13 = vmmov %vm13873_vm3 }
 0x1be   : > { %v4495_v1 = vld [vmem:[#allocation2 + $0x8] sm:$0xff]  ;;  %v3418_v9 = vor.u32 %v3814_v45, %v3414_v11  ;;  %v3426_v31 = vor.u32 %v10701_v52, %v3422_v26 }
 0x1bf   : > { %8719 = vmatprep.mubr.msk.bf16.mxu1 %vm3336_vm11, %v4495_v1  ;;  %v3830_v20 = vsel %vm13870_vm14, %v3820_v41, %v10745_v44  ;;  %4658 = vmatpush1.bf16.msra.mxu1 %v9410_v63  ;;  %v3821_v28 = vsel %vm13871_vm7, %v3812_v13, %v3820_v41  ;;  %vm13880_vm14 = vmmov %vm13873_vm3 }
 0x1c0   : > { %4045 = vrot.lane.b32.xlu1 %v4020_v48, %s9598_s26  ;;  %4659 = vmatprep.subr.bf16.mxu1 %v13832_v25  ;;  %v3423_v22 = vsel %vm1162_vm2, %v3418_v9, %v3422_v26  ;;  %vm13881_vm7 = vmmov %vm13873_vm3 }
 0x1c1   : > { %3622 = vrot.lane.b32.xlu0 %v3597_v17, %s9594_s23 }
 0x1c3   : > { %4660 = vmatpush1.bf16.msra.mxu1 %v9411_v30 }
 0x1c4   : > { %3624 = vrot.lane.b32.xlu1 %v3710_v42, %s9594_s23  ;;  %v9108_v27 = vpop.f32.mrb[8].mxu0 }
 0x1c5   : > { %4353 = vrot.lane.b32.xlu0 %v4244_v15, %s9599_s10  ;;  %v3225_v29 = vpop.f32.mrb[9].mxu0  ;;  %v3234_v37 = vadd.f32 %v9108_v27, %v10626_v54 }
 0x1c6   : > { %v9109_v36 = vpop.f32.mrb[10].mxu0  ;;  %v3226_v39 = vadd.f32 %v10626_v54, %v3225_v29 }
 0x1c7   : > { %v3237_v55 = vadd.f32 %v9109_v36, %v10626_v54  ;;  %v3228_v59 = vpop.f32.mrb[11].mxu0 }
 0x1c8   : > { %3509 = vrot.lane.b32.xlu1 %v3415_v33, %s9591_s20  ;;  %v3229_v62 = vadd.f32 %v10626_v54, %v3228_v59 }
 0x1c9   : > { %3932 = vrot.lane.b32.xlu0 %v3830_v20, %s9600_s14  ;;  %v3325_v38 = vpack.c.bf16 %v3237_v55, %v3234_v37 }
 0x1ca   : > { %v3324_v34 = vpack.c.bf16 %v3229_v62, %v3226_v39 }
 0x1cb   : > { %3342 = vst.msk [vmem:[#allocation3 + $0x28] sm:$0xff] %vm3336_vm11, %v3325_v38 }
 0x1cc   : > { %3930 = vrot.lane.b32.xlu1 %v3821_v28, %s9600_s14  ;;  %3341 = vst.msk [vmem:[#allocation3 + $0x20] sm:$0xff] %vm3336_vm11, %v3324_v34 }
 0x1cd   : > { %3511 = vrot.lane.b32.xlu0 %v3423_v22, %s9591_s20 }
 0x1d2   : > { %v10775_v61 = vld [vmem:[#allocation3 + $0x28] sm:$0xff] }
 0x1d3   : > { %v3359_v57 = vld [vmem:[#allocation3 + $0x28] sm:$0xff]  ;;  %v4413_v47 = vld [vmem:[#allocation3 + $0x20] sm:$0xff]  ;;  %v4134_v23 = vrot.slane %v10775_v61, 2  ;;  %v3713_v16 = vrot.slane %v10775_v61, 1  ;;  %v4444_v32 = vrot.slane %v10775_v61, 3  ;;  %v10794_v45 = vshrl.u32 %v10775_v61, 16 }
 0x1d4   : > { %v3358_v46 = vld [vmem:[#allocation3 + $0x20] sm:$0xff]  ;;  %3373 = vst.msk [vmem:[#allocation2 + $0x50] sm:$0xff] %vm3336_vm11, %v3359_v57  ;;  %v4132_v12 = vrot.slane %v4413_v47, 2  ;;  %v4442_v42 = vrot.slane %v4413_v47, 3  ;;  %v3711_v58 = vrot.slane %v4413_v47, 1  ;;  %v10789_v43 = vshll.u32 %v4413_v47, 16 }
 0x1d5   : > { %3372 = vst.msk [vmem:[#allocation2 + $0x40] sm:$0xff] %vm3336_vm11, %v3358_v46  ;;  %v10791_v3 = vshrl.u32 %v4413_v47, 16  ;;  %v10803_v19 = vshll.u32 %v10775_v61, 16  ;;  %v4257_v48 = vrot.slane %v10794_v45, 2  ;;  %v3843_v5 = vrot.slane %v10794_v45, 1  ;;  %v10909_v57 = vld [vmem:[#allocation4 + $0x80] sm:$0xff]  }
 0x1d6   : > { %v4135_v4 = vsel %vm2209_vm1, %v4132_v12, %v4134_v23  ;;  %v4133_v2 = vsel %vm2209_vm1, %v10678_v51, %v4132_v12  ;;  %v3714_v18 = vsel %vm1468_vm0, %v3711_v58, %v3713_v16  ;;  %v3712_v51 = vsel %vm1468_vm0, %v3709_v7, %v3711_v58  ;;  %v9413_v47 = vld [vmem:[#allocation4 + $0x88] sm:$0xff]   ;;  %v9414_v12 = vld [vmem:[#allocation4 + $0x90] ss:$0 sps:$4 sm:$0x11]  }
 0x1d7   : > { %4160 = vrot.lane.b32.xlu1 %v4135_v4, %s9596_s21  ;;  %4158 = vrot.lane.b32.xlu0 %v4133_v2, %s9596_s21  ;;  %v4443_v1 = vsel %vm13872_vm6, %v4440_v6, %v4442_v42  ;;  %v4445_v14 = vsel %vm13873_vm3, %v4442_v42, %v4444_v32  ;;  %v4248_v6 = vrot.slane %v10791_v3, 2  ;;  %v4251_v7 = vrot.slane %v10789_v43, 3  ;;  %vm13882_vm6 = vmmov %vm13874_vm4 }
 0x1d8   : > { %4481 = vst.msk [vmem:[#allocation2 + $0x18] sm:$0xff] %vm3336_vm11, %v4443_v1  ;;  %4482 = vst.msk [vmem:[#allocation2 + $0x28] sm:$0xff] %vm3336_vm11, %v4445_v14  ;;  %v4260_v17 = vrot.slane %v10803_v19, 3  ;;  %v3430_v53 = vrot.slane %v10789_v43, 1  ;;  %v3834_v24 = vrot.slane %v10791_v3, 1  ;;  %v3837_v10 = vrot.slane %v10789_v43, 2 }
 0x1d9   : > { %v4252_v8 = vor.u32 %v4251_v7, %v4248_v6  ;;  %v3846_v0 = vrot.slane %v10803_v19, 2  ;;  %v3438_v33 = vrot.slane %v10803_v19, 1  ;;  %v7219_v1 = vrot.slane %v9414_v12, 3  ;;  %vm13883_vm3 = vmmov %vm13874_vm4 }
 0x1da   : > { %v10858_v50 = vor.u32 %v4260_v17, %v4257_v48  ;;  %v3431_v41 = vsel %vm1162_vm2, %v3426_v31, %v3430_v53  ;;  %v3838_v56 = vor.u32 %v3837_v10, %v3834_v24  ;;  %v3434_v20 = vor.u32 %v10791_v3, %v3430_v53 }
 0x1db   : > { %3739 = vrot.lane.b32.xlu1 %v3714_v18, %s9597_s22  ;;  %3737 = vrot.lane.b32.xlu0 %v3712_v51, %s9597_s22  ;;  %v10870_v21 = vor.u32 %v3846_v0, %v3843_v5  ;;  %v4253_v55 = vsel %vm13875_vm8, %v10733_v60, %v4252_v8 }
 0x1dc   : > { %v4262_v27 = vsel %vm13874_vm4, %v4252_v8, %v10858_v50  ;;  %v3839_v9 = vsel %vm13877_vm9, %v10745_v44, %v3838_v56  ;;  %v3439_v60 = vsel %vm1162_vm2, %v3434_v20, %v3438_v33  ;;  %vm13884_vm4 = vmmov %vm13876_vm5  ;;  %vm13829_vm9 = vcmask 392448  }
 0x1dd   : > { %v3848_v59 = vsel %vm13876_vm5, %v3838_v56, %v10870_v21  ;;  %vm13885_vm8 = vmmov %vm13884_vm4  ;;  %vm3549_vm5 = vcmask 261248  }
 0x1df   : > { %4049 = vrot.lane.b32.xlu1 %v4135_v4, %s9598_s26  ;;  %4047 = vrot.lane.b32.xlu0 %v4133_v2, %s9598_s26 }
 0x1e3   : > { %3628 = vrot.lane.b32.xlu1 %v3714_v18, %s9594_s23  ;;  %3626 = vrot.lane.b32.xlu0 %v3712_v51, %s9594_s23  ;;  %v13831_v18 = vrot.slane %v10909_v57, 3  ;;  %v7217_v51 = vrot.slane %v9413_v47, 3 }
 0x1e4   : > { %v9112_v49 = vpop.f32.mrb[12].mxu0 }
 0x1e5   : > { %v3241_v11 = vpop.f32.mrb[13].mxu0  ;;  %v3250_v40 = vadd.f32 %v9112_v49, %v10626_v54  ;;  %v7220_v61 = vsel %vm13881_vm7, %v7217_v51, %v7219_v1 }
 0x1e6   : > { %v9113_v15 = vpop.f32.mrb[14].mxu0  ;;  %v3242_v52 = vadd.f32 %v10626_v54, %v3241_v11  ;;  %7252 = vst.msk [vmem:[#allocation2 + $0xf8] sm:$0x3f] %vm13820_vm12, %v7220_v61  ;;  %v3442_v11 = vor.u32 %v10794_v45, %v3438_v33 }
 0x1e7   : > { %v3253_v63 = vadd.f32 %v9113_v15, %v10626_v54  ;;  %v3244_v29 = vpop.f32.mrb[15].mxu0  ;;  %3513 = vrot.lane.b32.xlu1 %v3431_v41, %s9591_s20  ;;  %4357 = vrot.lane.b32.xlu0 %v4262_v27, %s9599_s10 }
 0x1e8   : > { %v3245_v35 = vadd.f32 %v10626_v54, %v3244_v29 }
 0x1e9   : > { %v3327_v36 = vpack.c.bf16 %v3253_v63, %v3250_v40 }
 0x1ea   : > { %v3326_v37 = vpack.c.bf16 %v3245_v35, %v3242_v52 }
 0x1eb   : > { %3344 = vst.msk [vmem:[#allocation3 + $0x38] sm:$0xff] %vm3336_vm11, %v3327_v36  ;;  %4355 = vrot.lane.b32.xlu1 %v4253_v55, %s9599_s10  ;;  %3936 = vrot.lane.b32.xlu0 %v3848_v59, %s9600_s14 }
 0x1ec   : > { %3343 = vst.msk [vmem:[#allocation3 + $0x30] sm:$0xff] %vm3336_vm11, %v3326_v37 }
 0x1ef   : > { %3934 = vrot.lane.b32.xlu1 %v3839_v9, %s9600_s14  ;;  %3515 = vrot.lane.b32.xlu0 %v3439_v60, %s9591_s20 }
 0x1f2   : > { %v10895_v39 = vld [vmem:[#allocation3 + $0x38] sm:$0xff] }
 0x1f3   : > { %v3361_v62 = vld [vmem:[#allocation3 + $0x38] sm:$0xff]  ;;  %v4415_v13 = vld [vmem:[#allocation3 + $0x30] sm:$0xff]  ;;  %v4138_v38 = vrot.slane %v10895_v39, 2  ;;  %v3717_v22 = vrot.slane %v10895_v39, 1  ;;  %v4448_v42 = vrot.slane %v10895_v39, 3  ;;  %v10913_v2 = vshrl.u32 %v10895_v39, 16 }
 0x1f4   : > { %3375 = vst.msk [vmem:[#allocation2 + $0x70] sm:$0xff] %vm3336_vm11, %v3361_v62  ;;  %v4136_v26 = vrot.slane %v4415_v13, 2  ;;  %v3360_v30 = vld [vmem:[#allocation3 + $0x30] sm:$0xff]  ;;  %v3715_v28 = vrot.slane %v4415_v13, 1  ;;  %v4446_v46 = vrot.slane %v4415_v13, 3  ;;  %v3444_v4 = vshll.u32 %v4415_v13, 16 }
 0x1f5   : > { %3374 = vst.msk [vmem:[#allocation2 + $0x60] sm:$0xff] %vm3336_vm11, %v3360_v30  ;;  %v4264_v43 = vshrl.u32 %v4415_v13, 16  ;;  %v10922_v3 = vshll.u32 %v10895_v39, 16  ;;  %v4275_v6 = vrot.slane %v10913_v2, 2  ;;  %v3861_v5 = vrot.slane %v10913_v2, 1 }
 0x1f6   : > { %v4139_v44 = vsel %vm2209_vm1, %v4136_v26, %v4138_v38  ;;  %v4137_v34 = vsel %vm2209_vm1, %v4134_v23, %v4136_v26  ;;  %v3718_v23 = vsel %vm1468_vm0, %v3715_v28, %v3717_v22  ;;  %v3716_v58 = vsel %vm1468_vm0, %v3713_v16, %v3715_v28 }
 0x1f7   : > { %4164 = vrot.lane.b32.xlu1 %v4139_v44, %s9596_s21  ;;  %4162 = vrot.lane.b32.xlu0 %v4137_v34, %s9596_s21  ;;  %v4447_v14 = vsel %vm13878_vm10, %v4444_v32, %v4446_v46  ;;  %v7218_v16 = vsel %vm13879_vm13, %v13831_v18, %v7217_v51  ;;  %v4449_v7 = vsel %vm13880_vm14, %v4446_v46, %v4448_v42  ;;  %v4266_v48 = vrot.slane %v4264_v43, 2  ;;  %vm13886_vm10 = vmmov %vm13881_vm7 }
 0x1f8   : > { %4483 = vst.msk [vmem:[#allocation2 + $0x38] sm:$0xff] %vm3336_vm11, %v4447_v14  ;;  %v4269_v17 = vrot.slane %v3444_v4, 3  ;;  %v4278_v53 = vrot.slane %v10922_v3, 3  ;;  %7251 = vst.msk [vmem:[#allocation2 + $0xe8] sm:$0xff] %vm3336_vm11, %v7218_v16  ;;  %v3446_v32 = vrot.slane %v3444_v4, 1  ;;  %v3852_v24 = vrot.slane %v4264_v43, 1 }
 0x1f9   : > { %4484 = vst.msk [vmem:[#allocation2 + $0x48] sm:$0xff] %vm3336_vm11, %v4449_v7  ;;  %v3855_v0 = vrot.slane %v3444_v4, 2  ;;  %v3864_v49 = vrot.slane %v10922_v3, 2  ;;  %v3454_v20 = vrot.slane %v10922_v3, 1  ;;  %vm13887_vm13 = vmmov %vm13881_vm7  ;;  %vm13827_vm7 = vcmask 523648  }
 0x1fa   : > { %v4270_v8 = vor.u32 %v4269_v17, %v4266_v48  ;;  %v10946_v10 = vor.u32 %v4278_v53, %v4275_v6  ;;  %v3447_v27 = vsel %vm1162_vm2, %v3442_v11, %v3446_v32  ;;  %v3450_v59 = vor.u32 %v4264_v43, %v3446_v32  ;;  %vm13888_vm14 = vmmov %vm13883_vm3 }
 0x1fb   : > { %3743 = vrot.lane.b32.xlu1 %v3718_v23, %s9597_s22  ;;  %3741 = vrot.lane.b32.xlu0 %v3716_v58, %s9597_s22  ;;  %v3856_v40 = vor.u32 %v3855_v0, %v3852_v24  ;;  %v10957_v63 = vor.u32 %v3864_v49, %v3861_v5 }
 0x1fc   : > { %v4280_v56 = vsel %vm13882_vm6, %v4270_v8, %v10946_v10  ;;  %v4271_v37 = vsel %vm13883_vm3, %v10858_v50, %v4270_v8  ;;  %v3455_v60 = vsel %vm1162_vm2, %v3450_v59, %v3454_v20  ;;  %v3458_v8 = vor.u32 %v10913_v2, %v3454_v20  ;;  %vm13889_vm6 = vmmov %vm13883_vm3 }
 0x1fd   : > { %v3866_v55 = vsel %vm13884_vm4, %v3856_v40, %v10957_v63  ;;  %v3857_v9 = vsel %vm13885_vm8, %v10870_v21, %v3856_v40  ;;  %vm13890_vm3 = vmmov %vm13884_vm4  ;;  %vm13822_vm8 = vcmask 654848  }
 0x1fe   : > { %vm13891_vm4 = vmmov %vm13890_vm3 }
 0x1ff   : > { %4053 = vrot.lane.b32.xlu1 %v4139_v44, %s9598_s26  ;;  %4051 = vrot.lane.b32.xlu0 %v4137_v34, %s9598_s26 }
 0x203   : > { %3632 = vrot.lane.b32.xlu1 %v3718_v23, %s9594_s23  ;;  %3630 = vrot.lane.b32.xlu0 %v3716_v58, %s9594_s23 }
 0x204   : > { %v9116_v31 = vpop.f32.mrb[16].mxu0 }
 0x205   : > { %v3257_v15 = vpop.f32.mrb[17].mxu0  ;;  %v3266_v29 = vadd.f32 %v9116_v31, %v10626_v54 }
 0x206   : > { %v9117_v41 = vpop.f32.mrb[18].mxu0  ;;  %v3258_v45 = vadd.f32 %v10626_v54, %v3257_v15 }
 0x207   : > { %v3269_v52 = vadd.f32 %v9117_v41, %v10626_v54  ;;  %v3260_v35 = vpop.f32.mrb[19].mxu0  ;;  %3517 = vrot.lane.b32.xlu1 %v3447_v27, %s9591_s20  ;;  %4361 = vrot.lane.b32.xlu0 %v4280_v56, %s9599_s10 }
 0x208   : > { %v3261_v19 = vadd.f32 %v10626_v54, %v3260_v35 }
 0x209   : > { %v3329_v36 = vpack.c.bf16 %v3269_v52, %v3266_v29 }
 0x20a   : > { %v3328_v33 = vpack.c.bf16 %v3261_v19, %v3258_v45 }
 0x20b   : > { %3346 = vst.msk [vmem:[#allocation3 + $0x48] sm:$0xff] %vm3336_vm11, %v3329_v36  ;;  %4359 = vrot.lane.b32.xlu1 %v4271_v37, %s9599_s10  ;;  %3940 = vrot.lane.b32.xlu0 %v3866_v55, %s9600_s14 }
 0x20c   : > { %3345 = vst.msk [vmem:[#allocation3 + $0x40] sm:$0xff] %vm3336_vm11, %v3328_v33  ;;  %v3621_v62 = vpop.permute.xlu1 %3620 }
 0x20f   : > { %3938 = vrot.lane.b32.xlu1 %v3857_v9, %s9600_s14  ;;  %3519 = vrot.lane.b32.xlu0 %v3455_v60, %s9591_s20 }
 0x211   : > { %v3508_v50 = vpop.permute.xlu0 %3507 }
 0x212   : > { %3550 = vst.msk [vmem:[#allocation2] sm:$0xff] %vm3549_vm5, %v3508_v50  ;;  %v10980_v13 = vld [vmem:[#allocation3 + $0x48] sm:$0xff] }
 0x213   : > { %3663 = vst.msk [vmem:[#allocation2] sm:$0xff] %vm13829_vm9, %v3621_v62  ;;  %v3363_v26 = vld [vmem:[#allocation3 + $0x48] sm:$0xff]  ;;  %v4417_v30 = vld [vmem:[#allocation3 + $0x40] sm:$0xff]  ;;  %v4142_v21 = vrot.slane %v10980_v13, 2  ;;  %v3721_v28 = vrot.slane %v10980_v13, 1  ;;  %v4452_v23 = vrot.slane %v10980_v13, 3 }
 0x214   : > { %v3362_v44 = vld [vmem:[#allocation3 + $0x40] sm:$0xff]  ;;  %3377 = vst.msk [vmem:[#allocation2 + $0x90] sm:$0xff] %vm3336_vm11, %v3363_v26  ;;  %v4140_v34 = vrot.slane %v4417_v30, 2  ;;  %v4450_v47 = vrot.slane %v4417_v30, 3  ;;  %v3719_v4 = vrot.slane %v4417_v30, 1  ;;  %v3460_v58 = vshll.u32 %v4417_v30, 16 }
 0x215   : > { %3376 = vst.msk [vmem:[#allocation2 + $0x80] sm:$0xff] %vm3336_vm11, %v3362_v44  ;;  %v4282_v43 = vshrl.u32 %v4417_v30, 16  ;;  %v10997_v3 = vshrl.u32 %v10980_v13, 16  ;;  %v11006_v1 = vshll.u32 %v10980_v13, 16 }
 0x216   : > { %v4143_v46 = vsel %vm2209_vm1, %v4140_v34, %v4142_v21  ;;  %v4141_v12 = vsel %vm2209_vm1, %v4138_v38, %v4140_v34  ;;  %v3722_v51 = vsel %vm1468_vm0, %v3719_v4, %v3721_v28  ;;  %v3720_v38 = vsel %vm1468_vm0, %v3717_v22, %v3719_v4 }
 0x217   : > { %4168 = vrot.lane.b32.xlu1 %v4143_v46, %s9596_s21  ;;  %4166 = vrot.lane.b32.xlu0 %v4141_v12, %s9596_s21  ;;  %v4451_v14 = vsel %vm13886_vm10, %v4448_v42, %v4450_v47  ;;  %v4453_v6 = vsel %vm13887_vm13, %v4450_v47, %v4452_v23  ;;  %v4284_v22 = vrot.slane %v4282_v43, 2  ;;  %v4287_v16 = vrot.slane %v3460_v58, 3 }
 0x218   : > { %4485 = vst.msk [vmem:[#allocation2 + $0x58] sm:$0xff] %vm3336_vm11, %v4451_v14  ;;  %4486 = vst.msk [vmem:[#allocation2 + $0x68] sm:$0xff] %vm3336_vm11, %v4453_v6  ;;  %v4293_v7 = vrot.slane %v10997_v3, 2  ;;  %v4296_v39 = vrot.slane %v11006_v1, 3  ;;  %v3462_v42 = vrot.slane %v3460_v58, 1  ;;  %v3870_v48 = vrot.slane %v4282_v43, 1 }
 0x219   : > { %v3879_v17 = vrot.slane %v10997_v3, 1  ;;  %v4288_v53 = vor.u32 %v4287_v16, %v4284_v22  ;;  %v3873_v32 = vrot.slane %v3460_v58, 2  ;;  %v3882_v24 = vrot.slane %v11006_v1, 2 }
 0x21a   : > { %v11023_v61 = vor.u32 %v4296_v39, %v4293_v7  ;;  %v3463_v31 = vsel %vm1162_vm2, %v3458_v8, %v3462_v42  ;;  %v3466_v37 = vor.u32 %v4282_v43, %v3462_v42  ;;  %vm13823_vm13 = vcmask 786048  }
 0x21b   : > { %3747 = vrot.lane.b32.xlu1 %v3722_v51, %s9597_s22  ;;  %3745 = vrot.lane.b32.xlu0 %v3720_v38, %s9597_s22  ;;  %v3874_v15 = vor.u32 %v3873_v32, %v3870_v48  ;;  %v11032_v41 = vor.u32 %v3882_v24, %v3879_v17  ;;  %v4289_v36 = vsel %vm13889_vm6, %v10946_v10, %v4288_v53  ;;  %vm13824_vm6 = vcmask 917248  }
 0x21c   : > { %v4298_v11 = vsel %vm13888_vm14, %v4288_v53, %v11023_v61  ;;  %vm13892_vm14 = vmmov %vm13886_vm10 }
 0x21d   : > { %v3884_v33 = vsel %vm13890_vm3, %v3874_v15, %v11032_v41  ;;  %v3875_v10 = vsel %vm13891_vm4, %v10957_v63, %v3874_v15  ;;  %vm13826_vm3 = vcmask 1048448   ;;  %vm13893_vm4 = vsmask.f32 5376 }
 0x21f   : > { %4057 = vrot.lane.b32.xlu1 %v4143_v46, %s9598_s26  ;;  %4055 = vrot.lane.b32.xlu0 %v4141_v12, %s9598_s26 }
 0x223   : > { %3636 = vrot.lane.b32.xlu1 %v3722_v51, %s9594_s23  ;;  %3634 = vrot.lane.b32.xlu0 %v3720_v38, %s9594_s23 }
 0x224   : > { %v9120_v5 = vpop.f32.mrb[20].mxu0 }
 0x225   : > { %v3273_v0 = vpop.f32.mrb[21].mxu0  ;;  %v3282_v27 = vadd.f32 %v9120_v5, %v10626_v54 }
 0x226   : > { %v9121_v49 = vpop.f32.mrb[22].mxu0  ;;  %v3274_v2 = vadd.f32 %v10626_v54, %v3273_v0 }
 0x227   : > { %v3285_v56 = vadd.f32 %v9121_v49, %v10626_v54  ;;  %v3276_v40 = vpop.f32.mrb[23].mxu0  ;;  %3521 = vrot.lane.b32.xlu1 %v3463_v31, %s9591_s20  ;;  %4365 = vrot.lane.b32.xlu0 %v4298_v11, %s9599_s10 }
 0x228   : > { %v3277_v29 = vadd.f32 %v10626_v54, %v3276_v40  ;;  %v3470_v54 = vrot.slane %v11006_v1, 1 }
 0x229   : > { %v3331_v52 = vpack.c.bf16 %v3285_v56, %v3282_v27 }
 0x22a   : > { %v11040_v35 = vpop.permute.xlu1 %4156  ;;  %v3330_v45 = vpack.c.bf16 %v3277_v29, %v3274_v2  ;;  %v3471_v20 = vsel %vm1162_vm2, %v3466_v37, %v3470_v54  ;;  %v3474_v27 = vor.u32 %v10997_v3, %v3470_v54 }
 0x22b   : > { %v3734_v19 = vpop.permute.xlu0 %3733  ;;  %3348 = vst.msk [vmem:[#allocation3 + $0x58] sm:$0xff] %vm3336_vm11, %v3331_v52  ;;  %4363 = vrot.lane.b32.xlu1 %v4289_v36, %s9599_s10  ;;  %3944 = vrot.lane.b32.xlu0 %v3884_v33, %s9600_s14 }
 0x22c   : > { %3776 = vst.msk [vmem:[#allocation2] sm:$0xff] %vm13827_vm7, %v3734_v19 }
 0x22d   : > { %3347 = vst.msk [vmem:[#allocation3 + $0x50] sm:$0xff] %vm3336_vm11, %v3330_v45  ;;  %v11138_v45 = vld [vmem:[%s13808_s2] ss:$0 sm:$0xff] }
 0x22e   : > { %v3736_v55 = vpop.permute.xlu1 %3735 }
 0x22f   : > { %v4044_v59 = vpop.permute.xlu0 %4043  ;;  %3942 = vrot.lane.b32.xlu1 %v3875_v10, %s9600_s14  ;;  %3523 = vrot.lane.b32.xlu0 %v3471_v20, %s9591_s20  ;;  %v4497_v10 = vld [vmem:[#allocation2 + $0x18] sm:$0xff] }
 0x232   : > { %v4046_v9 = vpop.permute.xlu1 %4045  ;;  %v11059_v60 = vld [vmem:[#allocation3 + $0x58] sm:$0xff] }
 0x233   : > { %v3623_v50 = vpop.permute.xlu0 %3622  ;;  %v3365_v62 = vld [vmem:[#allocation3 + $0x58] sm:$0xff]  ;;  %v4146_v30 = vrot.slane %v11059_v60, 2  ;;  %v3725_v47 = vrot.slane %v11059_v60, 1  ;;  %v4456_v51 = vrot.slane %v11059_v60, 3  ;;  %v11079_v22 = vshrl.u32 %v11059_v60, 16 }
 0x234   : > { %v4419_v26 = vld [vmem:[#allocation3 + $0x50] sm:$0xff]  ;;  %3379 = vst.msk [vmem:[#allocation2 + $0xb0] sm:$0xff] %vm3336_vm11, %v3365_v62  ;;  %v11089_v39 = vshll.u32 %v11059_v60, 16 }
 0x235   : > { %v3364_v44 = vld [vmem:[#allocation3 + $0x50] sm:$0xff]  ;;  %v4144_v63 = vrot.slane %v4419_v26, 2  ;;  %v4454_v46 = vrot.slane %v4419_v26, 3  ;;  %v3723_v43 = vrot.slane %v4419_v26, 1  ;;  %v11074_v14 = vshll.u32 %v4419_v26, 16 }
 0x236   : > { %3378 = vst.msk [vmem:[#allocation2 + $0xa0] sm:$0xff] %vm3336_vm11, %v3364_v44  ;;  %v3625_v34 = vpop.permute.xlu1 %3624  ;;  %v11076_v6 = vshrl.u32 %v4419_v26, 16  ;;  %v4311_v53 = vrot.slane %v11079_v22, 2  ;;  %v4314_v32 = vrot.slane %v11089_v39, 3  ;;  %v3897_v8 = vrot.slane %v11079_v22, 1 }
 0x237   : > { %v4354_v12 = vpop.permute.xlu0 %4353  ;;  %v4147_v4 = vsel %vm2209_vm1, %v4144_v63, %v4146_v30  ;;  %v4145_v58 = vsel %vm2209_vm1, %v4142_v21, %v4144_v63  ;;  %v3726_v21 = vsel %vm1468_vm0, %v3723_v43, %v3725_v47  ;;  %v3724_v7 = vsel %vm1468_vm0, %v3721_v28, %v3723_v43 }
 0x238   : > { %4172 = vrot.lane.b32.xlu1 %v4147_v4, %s9596_s21  ;;  %4170 = vrot.lane.b32.xlu0 %v4145_v58, %s9596_s21  ;;  %v4455_v42 = vsel %vm13886_vm10, %v4452_v23, %v4454_v46  ;;  %v4457_v28 = vsel %vm13892_vm14, %v4454_v46, %v4456_v51  ;;  %v4302_v48 = vrot.slane %v11076_v6, 2  ;;  %v4305_v17 = vrot.slane %v11074_v14, 3  ;;  %vm13894_vm10 = vmmov %vm13893_vm4 }
 0x239   : > { %4487 = vst.msk [vmem:[#allocation2 + $0x78] sm:$0xff] %vm3336_vm11, %v4455_v42  ;;  %4488 = vst.msk [vmem:[#allocation2 + $0x88] sm:$0xff] %vm3336_vm11, %v4457_v28  ;;  %v3478_v24 = vrot.slane %v11074_v14, 1  ;;  %v3888_v5 = vrot.slane %v11076_v6, 1  ;;  %v11121_v49 = vor.u32 %v4314_v32, %v4311_v53  ;;  %v3891_v31 = vrot.slane %v11074_v14, 2 }
 0x23a   : > { %v3510_v38 = vpop.permute.xlu1 %3509  ;;  %v4306_v0 = vor.u32 %v4305_v17, %v4302_v48  ;;  %v3900_v11 = vrot.slane %v11089_v39, 2  ;;  %vm13895_vm14 = vsmask.f32 6400  ;;  %v3486_v26 = vrot.slane %v11089_v39, 1 }
 0x23b   : > { %3551 = vst.msk [vmem:[#allocation2 + $0x10] sm:$0xff] %vm3549_vm5, %v3510_v38  ;;  %v3933_v16 = vpop.permute.xlu0 %3932  ;;  %v3479_v2 = vsel %vm1162_vm2, %v3474_v27, %v3478_v24  ;;  %v3892_v52 = vor.u32 %v3891_v31, %v3888_v5  ;;  %v3482_v62 = vor.u32 %v11076_v6, %v3478_v24 }
 0x23c   : > { %3664 = vst.msk [vmem:[#allocation2 + $0x10] sm:$0xff] %vm13829_vm9, %v3623_v50  ;;  %3751 = vrot.lane.b32.xlu1 %v3726_v21, %s9597_s22  ;;  %3749 = vrot.lane.b32.xlu0 %v3724_v7, %s9597_s22  ;;  %v4316_v29 = vsel %vm13893_vm4, %v4306_v0, %v11121_v49  ;;  %vm13896_vm4 = vmmov %vm13895_vm14  ;;  %v3490_v27 = vor.u32 %v11079_v22, %v3486_v26 }
 0x23d   : > { %3777 = vst.msk [vmem:[#allocation2 + $0x10] sm:$0xff] %vm13827_vm7, %v3736_v55 }
 0x23e   : > { %3974 = vst.msk [vmem:[#allocation2 + $0x10] sm:$0xff] %vm13822_vm8, %v3933_v16  ;;  %v3931_v13 = vpop.permute.xlu1 %3930 }
 0x23f   : > { %3973 = vst.msk [vmem:[#allocation2] sm:$0xff] %vm13822_vm8, %v3931_v13  ;;  %v3512_v23 = vpop.permute.xlu0 %3511 }
 0x240   : > { %4087 = vst.msk [vmem:[#allocation2 + $0x10] sm:$0xff] %vm13823_vm13, %v4046_v9  ;;  %4086 = vst.msk [vmem:[#allocation2] sm:$0xff] %vm13823_vm13, %v4044_v59  ;;  %4061 = vrot.lane.b32.xlu1 %v4147_v4, %s9598_s26  ;;  %4059 = vrot.lane.b32.xlu0 %v4145_v58, %s9598_s26  ;;  %v4307_v9 = vsel %vm13894_vm10, %v11023_v61, %v4306_v0  ;;  %v3893_v61 = vsel %vm13896_vm4, %v11032_v41, %v3892_v52  ;;  %vm13897_vm10 = vcmask 1044480   ;;  %vm13899_vm4 = vsmask.f32 5376 }
 0x241   : > { %3552 = vst.msk [vmem:[#allocation2 + $0x20] sm:$0xff] %vm3549_vm5, %v3512_v23 }
 0x242   : > { %4199 = vst.msk [vmem:[#allocation2] sm:$0xff] %vm13824_vm6, %v11040_v35  ;;  %v11133_v35 = vor.u32 %v3900_v11, %v3897_v8 }
 0x243   : > { %3665 = vst.msk [vmem:[#allocation2 + $0x20] sm:$0xff] %vm13829_vm9, %v3625_v34  ;;  %v3487_v34 = vsel %vm1162_vm2, %v3482_v62, %v3486_v26 }
 0x244   : > { %4396 = vst.msk [vmem:[#allocation2] sm:$0xff] %vm13826_vm3, %v4354_v12  ;;  %3640 = vrot.lane.b32.xlu1 %v3726_v21, %s9594_s23  ;;  %3638 = vrot.lane.b32.xlu0 %v3724_v7, %s9594_s23  ;;  %v9124_v15 = vpop.f32.mrb[24].mxu0  ;;  %v3902_v50 = vsel %vm13895_vm14, %v3892_v52, %v11133_v35  ;;  %vm13898_vm14 = vmmov %vm13897_vm10 }
 0x245   : > { %v3289_v56 = vpop.f32.mrb[25].mxu0  ;;  %v3298_v19 = vadd.f32 %v11138_v45, %v9124_v15 }
 0x246   : > { %v9125_v40 = vpop.f32.mrb[26].mxu0  ;;  %v3290_v36 = vadd.f32 %v11138_v45, %v3289_v56 }
 0x247   : > { %v3301_v1 = vadd.f32 %v11138_v45, %v9125_v40  ;;  %v3292_v3 = vpop.f32.mrb[27].mxu0 }
 0x248   : > { %3525 = vrot.lane.b32.xlu1 %v3479_v2, %s9591_s20  ;;  %4369 = vrot.lane.b32.xlu0 %v4316_v29, %s9599_s10  ;;  %v3293_v33 = vadd.f32 %v11138_v45, %v3292_v3 }
 0x249   : > { %v3333_v54 = vpack.c.bf16 %v3301_v1, %v3298_v19  ;;  %v11146_v55 = vpop.permute.xlu1 %4160  ;;  %v4159_v59 = vpop.permute.xlu0 %4158 }
 0x24a   : > { %v3332_v20 = vpack.c.bf16 %v3293_v33, %v3290_v36  ;;  %4200 = vst.msk [vmem:[#allocation2 + $0x10] sm:$0xff] %vm13824_vm6, %v4159_v59 }
 0x24b   : > { %v4494_v37 = vld [vmem:[#allocation2] sm:$0xff]  ;;  %3350 = vst.msk [vmem:[#allocation3 + $0x68] sm:$0xff] %vm3336_vm11, %v3333_v54 }
 0x24c   : > { %4676 = vmatmul.mubr.bf16.vlgmr.msra.gmra.mrb[0].mxu1 %v4494_v37  ;;  %4367 = vrot.lane.b32.xlu1 %v4307_v9, %s9599_s10  ;;  %3349 = vst.msk [vmem:[#allocation3 + $0x60] sm:$0xff] %vm3336_vm11, %v3332_v20 }
 0x24d   : > { %8720 = vmatprep.mubr.msk.bf16.mxu1 %vm3336_vm11, %v4497_v10  ;;  %3948 = vrot.lane.b32.xlu0 %v3902_v50, %s9600_s14  ;;  %v3740_v44 = vpop.permute.xlu1 %3739  ;;  %v3738_v63 = vpop.permute.xlu0 %3737 }
 0x24e   : > { %3778 = vst.msk [vmem:[#allocation2 + $0x20] sm:$0xff] %vm13827_vm7, %v3738_v63 }
 0x250   : > { %3946 = vrot.lane.b32.xlu1 %v3893_v61, %s9600_s14 }
 0x251   : > { %3527 = vrot.lane.b32.xlu0 %v3487_v34, %s9591_s20  ;;  %v4050_v46 = vpop.permute.xlu1 %4049  ;;  %v4048_v12 = vpop.permute.xlu0 %4047  ;;  %v4499_v34 = vld [vmem:[#allocation2 + $0x28] sm:$0xff] }
 0x252   : > { %v11166_v4 = vld [vmem:[#allocation3 + $0x68] sm:$0xff] }
 0x253   : > { %v4421_v58 = vld [vmem:[#allocation3 + $0x60] sm:$0xff]  ;;  %v11169_v43 = vrot.slane %v11166_v4, 2  ;;  %v3367_v14 = vld [vmem:[#allocation3 + $0x68] sm:$0xf]  ;;  %v3729_v39 = vrot.slane %v11166_v4, 1  ;;  %v4460_v42 = vrot.slane %v11166_v4, 3 }
 0x254   : > { %v4148_v38 = vrot.slane %v4421_v58, 2  ;;  %3380 = vst.msk [vmem:[#allocation2 + $0xc0] sm:$0xff] %vm3336_vm11, %v4421_v58  ;;  %v11178_v7 = vrot.slane %v4421_v58, 1  ;;  %v4458_v28 = vrot.slane %v4421_v58, 3  ;;  %v11184_v48 = vshll.u32 %v4421_v58, 16 }
 0x255   : > { %v3629_v6 = vpop.permute.xlu1 %3628  ;;  %v3627_v41 = vpop.permute.xlu0 %3626  ;;  %3381 = vst.msk [vmem:[#allocation2 + $0xd0] sm:$0xf] %vm13828_vm15, %v3367_v14  ;;  %v4327_v17 = vshrl.u32 %v11166_v4, 16  ;;  %v11196_v32 = vshrl.u32 %v4421_v58, 16  ;;  %v4330_v24 = vshll.u32 %v11166_v4, 16 }
 0x256   : > { %v4151_v16 = vsel %vm2209_vm1, %v4148_v38, %v11169_v43  ;;  %v4149_v21 = vsel %vm2209_vm1, %v4146_v30, %v4148_v38  ;;  %v3730_v30 = vsel %vm1468_vm0, %v11178_v7, %v3729_v39  ;;  %v3728_v53 = vsel %vm1468_vm0, %v3725_v47, %v11178_v7  ;;  %v11227_v36 = vld [vmem:[#allocation3 + $0x68] sm:$0x1f] }
 0x257   : > { %4176 = vrot.lane.b32.xlu1 %v4151_v16, %s9596_s21  ;;  %4174 = vrot.lane.b32.xlu0 %v4149_v21, %s9596_s21  ;;  %v4459_v5 = vsel %vm13897_vm10, %v4456_v51, %v4458_v28  ;;  %v4461_v47 = vsel %vm13898_vm14, %v4458_v28, %v4460_v42  ;;  %v4329_v31 = vrot.slane %v4327_v17, 2  ;;  %v3494_v11 = vrot.slane %v11184_v48, 1  ;;  %v11238_v9 = vld [vmem:[#allocation3 + $0x68] sm:$0x1f]  ;;  %vm13900_vm10 = vmmov %vm13899_vm4 }
 0x258   : > { %4489 = vst.msk [vmem:[#allocation2 + $0x98] sm:$0xff] %vm3336_vm11, %v4459_v5  ;;  %4490 = vst.msk [vmem:[#allocation2 + $0xa8] sm:$0xff] %vm3336_vm11, %v4461_v47  ;;  %v4320_v60 = vrot.slane %v11196_v32, 2  ;;  %v4323_v51 = vrot.slane %v11184_v48, 3  ;;  %v4332_v15 = vrot.slane %v4330_v24, 3  ;;  %v3906_v2 = vrot.slane %v11196_v32, 1 }
 0x259   : > { %v3514_v13 = vpop.permute.xlu1 %3513  ;;  %v4358_v23 = vpop.permute.xlu0 %4357  ;;  %v3909_v29 = vrot.slane %v11184_v48, 2  ;;  %v3915_v52 = vrot.slane %v4327_v17, 1  ;;  %v3495_v19 = vsel %vm1162_vm2, %v3490_v27, %v3494_v11  ;;  %v3918_v33 = vrot.slane %v4330_v24, 2  ;;  %v4501_v48 = vld [vmem:[#allocation2 + $0x38] sm:$0xff] }
 0x25a   : > { %3553 = vst.msk [vmem:[#allocation2 + $0x30] sm:$0xff] %vm3549_vm5, %v3514_v13  ;;  %v4324_v1 = vor.u32 %v4323_v51, %v4320_v60  ;;  %v11225_v3 = vor.u32 %v4332_v15, %v4329_v31  ;;  %v3618_v10 = vrot.slane %v11227_v36, 1  ;;  %vm13901_vm14 = vsmask.f32 6400  ;;  %v4505_v36 = vld [vmem:[#allocation2 + $0x58] sm:$0xff] }
 0x25b   : > { %3666 = vst.msk [vmem:[#allocation2 + $0x30] sm:$0xff] %vm13829_vm9, %v3627_v41  ;;  %3755 = vrot.lane.b32.xlu1 %v3730_v30, %s9597_s22  ;;  %3753 = vrot.lane.b32.xlu0 %v3728_v53, %s9597_s22  ;;  %v3910_v20 = vor.u32 %v3909_v29, %v3906_v2  ;;  %v3504_v4 = vshrl.u32 %v11238_v9, 16 }
 0x25c   : > { %3779 = vst.msk [vmem:[#allocation2 + $0x30] sm:$0xff] %vm13827_vm7, %v3740_v44  ;;  %v4325_v26 = vsel %vm13899_vm4, %v11121_v49, %v4324_v1  ;;  %v11245_v44 = vor.u32 %v3918_v33, %v3915_v52  ;;  %vm13902_vm4 = vmmov %vm13901_vm14 }
 0x25d   : > { %v4356_v8 = vpop.permute.xlu1 %4355  ;;  %v3937_v0 = vpop.permute.xlu0 %3936 }
 0x25e   : > { %4397 = vst.msk [vmem:[#allocation2 + $0x10] sm:$0xff] %vm13826_vm3, %v4356_v8  ;;  %v3920_v41 = vsel %vm13901_vm14, %v3910_v20, %v11245_v44 }
 0x25f   : > { %3976 = vst.msk [vmem:[#allocation2 + $0x30] sm:$0xff] %vm13822_vm8, %v3937_v0  ;;  %4065 = vrot.lane.b32.xlu1 %v4151_v16, %s9598_s26  ;;  %4063 = vrot.lane.b32.xlu0 %v4149_v21, %s9598_s26 }
 0x260   : > { %4089 = vst.msk [vmem:[#allocation2 + $0x30] sm:$0xff] %vm13823_vm13, %v4050_v46 }
 0x261   : > { %v3935_v56 = vpop.permute.xlu1 %3934  ;;  %v3516_v40 = vpop.permute.xlu0 %3515 }
 0x262   : > { %3975 = vst.msk [vmem:[#allocation2 + $0x20] sm:$0xff] %vm13822_vm8, %v3935_v56 }
 0x263   : > { %3554 = vst.msk [vmem:[#allocation2 + $0x40] sm:$0xff] %vm3549_vm5, %v3516_v40  ;;  %3529 = vrot.lane.b32.xlu1 %v3495_v19, %s9591_s20  ;;  %3642 = vrot.lane.b32.xlu0 %v3728_v53, %s9594_s23 }
 0x264   : > { %4088 = vst.msk [vmem:[#allocation2 + $0x20] sm:$0xff] %vm13823_vm13, %v4048_v12  ;;  %v9128_v22 = vpop.f32.mrb[28].mxu0  ;;  %v3500_v12 = vshll.u32 %v11238_v9, 16 }
 0x265   : > { %3667 = vst.msk [vmem:[#allocation2 + $0x40] sm:$0xff] %vm13829_vm9, %v3629_v6  ;;  %v3314_v37 = vadd.f32 %v11138_v45, %v9128_v22  ;;  %v3305_v54 = vpop.f32.mrb[29].mxu0  ;;  %v4496_v59 = vld [vmem:[#allocation2 + $0x10] sm:$0xff]  ;;  %v3619_v6 = vsel %vm1468_vm0, %v11178_v7, %v3618_v10  ;;  %v3911_v7 = vsel %vm13902_vm4, %v11133_v35, %v3910_v20  ;;  %vm13905_vm4 = vsmask.f32 5376 }
 0x266   : > { %4201 = vst.msk [vmem:[#allocation2 + $0x20] sm:$0xff] %vm13824_vm6, %v11146_v55  ;;  %v3306_v50 = vadd.f32 %v11138_v45, %v3305_v54  ;;  %v9129_v62 = vpop.f32.mrb[30].mxu0  ;;  %4684 = vmatmul.mubr.bf16.gmra.mrb[4].mxu1 %v4496_v59  ;;  %v4334_v55 = vsel %vm13900_vm10, %v4324_v1, %v11225_v3  ;;  %v3502_v21 = vrot.slane %v3500_v12, 1  ;;  %vm13903_vm10 = vcmask 1044480  }
 0x267   : > { %4398 = vst.msk [vmem:[#allocation2 + $0x20] sm:$0xff] %vm13826_vm3, %v4358_v23  ;;  %v3317_v63 = vadd.f32 %v11138_v45, %v9129_v62  ;;  %v3308_v61 = vpop.f32.mrb[31].mxu0  ;;  %4371 = vrot.lane.b32.xlu1 %v4325_v26, %s9599_s10  ;;  %4373 = vrot.lane.b32.xlu0 %v4334_v55, %s9599_s10  ;;  %vm13904_vm14 = vmmov %vm13903_vm10 }
 0x268   : > { %v3309_v46 = vadd.f32 %v11138_v45, %v3308_v61  ;;  %8721 = vmatprep.mubr.msk.bf16.mxu1 %vm3336_vm11, %v4499_v34  ;;  %v3498_v45 = vor.u32 %v11196_v32, %v3494_v11 }
 0x269   : > { %v3335_v49 = vpack.c.bf16 %v3317_v63, %v3314_v37  ;;  %v11253_v58 = vpop.permute.xlu1 %4164  ;;  %v4163_v38 = vpop.permute.xlu0 %4162 }
 0x26a   : > { %v3334_v14 = vpack.c.bf16 %v3309_v46, %v3306_v50  ;;  %4202 = vst.msk [vmem:[#allocation2 + $0x30] sm:$0xff] %vm13824_vm6, %v4163_v38  ;;  %v3503_v23 = vsel %vm1162_vm2, %v3498_v45, %v3502_v21 }
 0x26b   : > { %3353 = vst.msk [vmem:[#allocation3 + $0x78] sm:$0x3f] %vm13820_vm12, %v3335_v49  ;;  %3644 = vrot.lane.b32.xlu1 %v3619_v6, %s9594_s23  ;;  %3952 = vrot.lane.b32.xlu0 %v3920_v41, %s9600_s14  ;;  %v3506_v49 = vor.u32 %v3504_v4, %v3502_v21  ;;  %vm3676_vm12 = vcmask 388352  }
 0x26c   : > { %3351 = vst.msk [vmem:[#allocation3 + $0x70] sm:$0xff] %vm3336_vm11, %v3334_v14 }
 0x26d   : > { %v3744_v28 = vpop.permute.xlu1 %3743  ;;  %v3742_v13 = vpop.permute.xlu0 %3741 }
 0x26e   : > { %v4498_v16 = vld [vmem:[#allocation2 + $0x20] sm:$0xff]  ;;  %3780 = vst.msk [vmem:[#allocation2 + $0x40] sm:$0xff] %vm13827_vm7, %v3742_v13 }
 0x26f   : > { %4692 = vmatmul.mubr.bf16.gmra.mrb[8].mxu1 %v4498_v16  ;;  %3950 = vrot.lane.b32.xlu1 %v3911_v7, %s9600_s14 }
 0x270   : > { %3531 = vrot.lane.b32.xlu0 %v3503_v23, %s9591_s20  ;;  %8722 = vmatprep.mubr.msk.bf16.mxu1 %vm3336_vm11, %v4501_v48 }
 0x271   : > { %v4054_v17 = vpop.permute.xlu1 %4053  ;;  %v11274_v30 = vpop.permute.xlu0 %4051 }
 0x272   : > { %v4424_v53 = vld [vmem:[#allocation3 + $0x78] sm:$0x7f] }
 0x273   : > { %v11276_v32 = vld [vmem:[#allocation3 + $0x78] sm:$0x3f]  ;;  %v4464_v5 = vrot.slane %v4424_v53, 3  ;;  %v4423_v47 = vld [vmem:[#allocation3 + $0x70] sm:$0xff] }
 0x274   : > { %v4227_v24 = vld [vmem:[#allocation3 + $0x78] sm:$0x7f]  ;;  %v4154_v35 = vrot.slane %v11276_v32, 2  ;;  %v11279_v8 = vld [vmem:[#allocation3 + $0x70] sm:$0x1f]  ;;  %v4462_v0 = vrot.slane %v4423_v47, 3 }
 0x275   : > { %v4152_v31 = vrot.slane %v4423_v47, 2  ;;  %v4336_v11 = vshrl.u32 %v4423_v47, 16  ;;  %v4339_v60 = vshll.u32 %v4423_v47, 16  ;;  %4493 = vst.msk [vmem:[#allocation2 + $0xd8] sm:$0xf] %vm13828_vm15, %v4464_v5  ;;  %v3633_v51 = vpop.permute.xlu1 %3632  ;;  %v3631_v15 = vpop.permute.xlu0 %3630  ;;  %v3731_v27 = vrot.slane %v11279_v8, 1 }
 0x276   : > { %v3804_v56 = vld [vmem:[#allocation3 + $0x70] sm:$0x3f]  ;;  %v4345_v40 = vshrl.u32 %v4227_v24, 16  ;;  %v4348_v2 = vshll.u32 %v4227_v24, 16  ;;  %v4463_v59 = vsel %vm13903_vm10, %v4460_v42, %v4462_v0  ;;  %v4465_v20 = vsel %vm13904_vm14, %v4462_v0, %v4464_v5  ;;  %vm13907_vm14 = vmmov %vm13905_vm4 }
 0x277   : > { %v4155_v29 = vsel %vm2209_vm1, %v4152_v31, %v4154_v35  ;;  %v4153_v52 = vsel %vm2209_vm1, %v11169_v43, %v4152_v31  ;;  %v4338_v19 = vrot.slane %v4336_v11, 2  ;;  %v4341_v1 = vrot.slane %v4339_v60, 3  ;;  %v4001_v33 = vld [vmem:[#allocation3 + $0x70] sm:$0x3f]  ;;  %4491 = vst.msk [vmem:[#allocation2 + $0xb8] sm:$0xff] %vm3336_vm11, %v4463_v59  ;;  %4492 = vst.msk [vmem:[#allocation2 + $0xc8] sm:$0xff] %vm3336_vm11, %v4465_v20 }
 0x278   : > { %4180 = vrot.lane.b32.xlu1 %v4155_v29, %s9596_s21  ;;  %4178 = vrot.lane.b32.xlu0 %v4153_v52, %s9596_s21  ;;  %v3922_v22 = vshrl.u32 %v3804_v56, 16  ;;  %v3925_v37 = vshll.u32 %v3804_v56, 16  ;;  %v3732_v26 = vsel %vm1468_vm0, %v3729_v39, %v3731_v27  ;;  %v4041_v55 = vrot.slane %v4001_v33, 2  ;;  %v11363_v33 = vld [vmem:[#allocation4 + $0x8] sm:$0xff]  }
 0x279   : > { %v4342_v54 = vor.u32 %v4341_v1, %v4338_v19  ;;  %v3518_v50 = vpop.permute.xlu1 %3517  ;;  %v4362_v62 = vpop.permute.xlu0 %4361  ;;  %v4347_v63 = vrot.slane %v4345_v40, 2  ;;  %v4350_v46 = vrot.slane %v4348_v2, 3  ;;  %vm13906_vm10 = vsmask.f32 6400  ;;  %v9416_v40 = vld [vmem:[#allocation4 + $0x8] sm:$0xff]  }
 0x27a   : > { %3555 = vst.msk [vmem:[#allocation2 + $0x50] sm:$0xff] %vm3549_vm5, %v3518_v50  ;;  %v3924_v42 = vrot.slane %v3922_v22, 1  ;;  %v3927_v34 = vrot.slane %v3925_v37, 2  ;;  %v5407_v19 = vshll.u32 %v9416_v40, 16  ;;  %v9417_v1 = vld [vmem:[#allocation4] sm:$0xfe]  }
 0x27b   : > { %v4343_v61 = vsel %vm13905_vm4, %v11225_v3, %v4342_v54  ;;  %3668 = vst.msk [vmem:[#allocation2 + $0x50] sm:$0xff] %vm13829_vm9, %v3631_v15  ;;  %v4042_v3 = vsel %vm2209_vm1, %v11169_v43, %v4041_v55  ;;  %v4351_v14 = vor.u32 %v4350_v46, %v4347_v63  ;;  %vm13825_vm4 = vcmask 125955   ;;  %v9415_v15 = vld [vmem:[#allocation4] sm:$0xff]  }
 0x27c   : > { %4375 = vrot.lane.b32.xlu1 %v4343_v61, %s9599_s10  ;;  %3757 = vrot.lane.b32.xlu0 %v3732_v26, %s9597_s22  ;;  %3781 = vst.msk [vmem:[#allocation2 + $0x50] sm:$0xff] %vm13827_vm7, %v3744_v28  ;;  %v3928_v38 = vor.u32 %v3927_v34, %v3924_v42  ;;  %v5402_v2 = vshll.u32 %v9415_v15, 16  ;;  %v5400_v29 = vshrl.u32 %v9415_v15, 16  ;;  %v5409_v59 = vrot.slane %v5407_v19, 1  ;;  %v4521_v19 = vld [vmem:[#allocation2 + $0xd8] sm:$0xf] }
 0x27d   : > { %v4360_v39 = vpop.permute.xlu1 %4359  ;;  %v3941_v12 = vpop.permute.xlu0 %3940  ;;  %v4352_v45 = vsel %vm13907_vm14, %v4342_v54, %v4351_v14  ;;  %342 = vst.msk [vmem:[#allocation4 + $0x7c] sm:$0x8] %vm13825_vm4, %v13832_v25  ;;  %v5703_v20 = vrot.slane %v9417_v1, 1  ;;  %v5704_v50 = vrot.slane %v11363_v33, 1  ;;  %vm3563_vm14 = vcmask 257152  }
 0x27e   : > { %4399 = vst.msk [vmem:[#allocation2 + $0x30] sm:$0xff] %vm13826_vm3, %v4360_v39  ;;  %v3929_v41 = vsel %vm13906_vm10, %v11245_v44, %v3928_v38  ;;  %v4503_v44 = vld [vmem:[#allocation2 + $0x48] sm:$0xff]  ;;  %vm13821_vm10 = vcmask 124928   ;;  %v5404_v52 = vrot.slane %v5402_v2, 1 }
 0x27f   : > { %3978 = vst.msk [vmem:[#allocation2 + $0x50] sm:$0xff] %vm13822_vm8, %v3941_v12 }
 0x280   : > { %4091 = vst.msk [vmem:[#allocation2 + $0x50] sm:$0xff] %vm13823_vm13, %v4054_v17  ;;  %3533 = vrot.lane.b32.xlu1 %v3506_v49, %s9591_s20  ;;  %4067 = vrot.lane.b32.xlu0 %v4042_v3, %s9598_s26  ;;  %v5405_v54 = vor.u32 %v5404_v52, %v5400_v29  ;;  %v4511_v49 = vld [vmem:[#allocation2 + $0x88] sm:$0xff] }
 0x281   : > { %v3939_v9 = vpop.permute.xlu1 %3938  ;;  %v3520_v6 = vpop.permute.xlu0 %3519  ;;  %340 = vst.msk [vmem:[#allocation4 + $0x10] sm:$0x7] %vm13821_vm10, %v13832_v25  ;;  %352 = vst.msk [vmem:[#allocation5 + $0x10] sm:$0x7] %vm13821_vm10, %v13832_v25  ;;  %vm3789_vm10 = vcmask 519552  }
 0x282   : > { %3977 = vst.msk [vmem:[#allocation2 + $0x40] sm:$0xff] %vm13822_vm8, %v3939_v9  ;;  %v5410_v26 = vsel %vm1162_vm2, %v5405_v54, %v5409_v59 }
 0x283   : > { %3556 = vst.msk [vmem:[#allocation2 + $0x60] sm:$0xff] %vm3549_vm5, %v3520_v6 }
 0x284   : > { %4090 = vst.msk [vmem:[#allocation2 + $0x40] sm:$0xff] %vm13823_vm13, %v11274_v30  ;;  %3954 = vrot.lane.b32.xlu1 %v3929_v41, %s9600_s14  ;;  %4377 = vrot.lane.b32.xlu0 %v4352_v45, %s9599_s10  ;;  %v4513_v41 = vld [vmem:[#allocation2 + $0x98] sm:$0xff] }
 0x285   : > { %3669 = vst.msk [vmem:[#allocation2 + $0x60] sm:$0xff] %vm13829_vm9, %v3633_v51  ;;  %v4500_v43 = vld [vmem:[#allocation2 + $0x30] sm:$0xff]  ;;  %v4509_v51 = vld [vmem:[#allocation2 + $0x78] sm:$0xff] }
 0x286   : > { %4203 = vst.msk [vmem:[#allocation2 + $0x40] sm:$0xff] %vm13824_vm6, %v11253_v58  ;;  %4700 = vmatmul.mubr.bf16.gmra.mrb[12].mxu1 %v4500_v43 }
 0x287   : > { %4400 = vst.msk [vmem:[#allocation2 + $0x40] sm:$0xff] %vm13826_vm3, %v4362_v62  ;;  %8723 = vmatprep.mubr.msk.bf16.mxu1 %vm3336_vm11, %v4503_v44  ;;  %v5411_v62 = vshrl.u32 %v9416_v40, 16 }
 0x288   : > { %3759 = vrot.lane.b32.xlu1 %v3731_v27, %s9597_s22  ;;  %3646 = vrot.lane.b32.xlu0 %v3618_v10, %s9594_s23 }
 0x289   : > { %v4169_v16 = vpop.permute.xlu1 %4168  ;;  %v4167_v21 = vpop.permute.xlu0 %4166  ;;  %v11372_v63 = vor.u32 %v5411_v62, %v5409_v59 }
 0x28a   : > { %4204 = vst.msk [vmem:[#allocation2 + $0x50] sm:$0xff] %vm13824_vm6, %v4167_v21 }
 0x28c   : > { %4069 = vrot.lane.b32.xlu1 %v4041_v55, %s9598_s26  ;;  %3956 = vrot.lane.b32.xlu0 %v3928_v38, %s9600_s14  ;;  %v5705_v55 = vsel %vm1468_vm0, %v5703_v20, %v5704_v50 }
 0x28d   : > { %v3748_v28 = vpop.permute.xlu1 %3747  ;;  %v3746_v13 = vpop.permute.xlu0 %3745 }
 0x28e   : > { %v4502_v58 = vld [vmem:[#allocation2 + $0x40] sm:$0xff]  ;;  %3782 = vst.msk [vmem:[#allocation2 + $0x60] sm:$0xff] %vm13827_vm7, %v3746_v13 }
 0x28f   : > { %4708 = vmatmul.mubr.bf16.gmra.mrb[16].mxu1 %v4502_v58 }
 0x290   : > { %4379 = vrot.lane.b32.xlu1 %v4351_v14, %s9599_s10  ;;  %4182 = vrot.lane.b32.xlu0 %v4154_v35, %s9596_s21  ;;  %v4507_v35 = vld [vmem:[#allocation2 + $0x68] sm:$0xff] }
 0x291   : > { %8724 = vmatprep.mubr.msk.bf16.mxu1 %vm3336_vm11, %v4505_v36  ;;  %v4058_v10 = vpop.permute.xlu1 %4057  ;;  %v4056_v7 = vpop.permute.xlu0 %4055 }
 0x294   : > { %5526 = vrot.lane.b32.xlu0 %v5410_v26, %s9591_s20  ;;  %5734 = vrot.lane.b32.xlu1 %v5705_v55, %s9594_s23 }
 0x295   : > { %v3637_v23 = vpop.permute.xlu1 %3636  ;;  %v3635_v48 = vpop.permute.xlu0 %3634 }
 0x299   : > { %v3522_v17 = vpop.permute.xlu1 %3521  ;;  %v4366_v30 = vpop.permute.xlu0 %4365 }
 0x29a   : > { %3557 = vst.msk [vmem:[#allocation2 + $0x70] sm:$0xff] %vm3549_vm5, %v3522_v17 }
 0x29b   : > { %3670 = vst.msk [vmem:[#allocation2 + $0x70] sm:$0xff] %vm13829_vm9, %v3635_v48 }
 0x29c   : > { %3783 = vst.msk [vmem:[#allocation2 + $0x70] sm:$0xff] %vm13827_vm7, %v3748_v28 }
 0x29d   : > { %v4364_v53 = vpop.permute.xlu1 %4363  ;;  %v3945_v24 = vpop.permute.xlu0 %3944 }
 0x29e   : > { %4401 = vst.msk [vmem:[#allocation2 + $0x50] sm:$0xff] %vm13826_vm3, %v4364_v53 }
 0x29f   : > { %3980 = vst.msk [vmem:[#allocation2 + $0x70] sm:$0xff] %vm13822_vm8, %v3945_v24 }
 0x2a0   : > { %4093 = vst.msk [vmem:[#allocation2 + $0x70] sm:$0xff] %vm13823_vm13, %v4058_v10 }
 0x2a1   : > { %v3943_v32 = vpop.permute.xlu1 %3942  ;;  %v3524_v5 = vpop.permute.xlu0 %3523 }
 0x2a2   : > { %3979 = vst.msk [vmem:[#allocation2 + $0x60] sm:$0xff] %vm13822_vm8, %v3943_v32  ;;  %v4517_v32 = vld [vmem:[#allocation2 + $0xb8] sm:$0xff] }
 0x2a3   : > { %3558 = vst.msk [vmem:[#allocation2 + $0x80] sm:$0xff] %vm3549_vm5, %v3524_v5 }
 0x2a4   : > { %4092 = vst.msk [vmem:[#allocation2 + $0x60] sm:$0xff] %vm13823_vm13, %v4056_v7 }
 0x2a5   : > { %3671 = vst.msk [vmem:[#allocation2 + $0x80] sm:$0xff] %vm13829_vm9, %v3637_v23  ;;  %v4504_v47 = vld [vmem:[#allocation2 + $0x50] sm:$0xff]  ;;  %v4515_v23 = vld [vmem:[#allocation2 + $0xa8] sm:$0xff] }
 0x2a6   : > { %4205 = vst.msk [vmem:[#allocation2 + $0x60] sm:$0xff] %vm13824_vm6, %v4169_v16  ;;  %4716 = vmatmul.mubr.bf16.gmra.mrb[20].mxu1 %v4504_v47 }
 0x2a7   : > { %4402 = vst.msk [vmem:[#allocation2 + $0x60] sm:$0xff] %vm13826_vm3, %v4366_v30  ;;  %8725 = vmatprep.mubr.msk.bf16.mxu1 %vm3336_vm11, %v4507_v35 }
 0x2aa   : > { %v4173_v8 = vpop.permute.xlu1 %4172  ;;  %v4171_v0 = vpop.permute.xlu0 %4170 }
 0x2ab   : > { %4206 = vst.msk [vmem:[#allocation2 + $0x70] sm:$0xff] %vm13824_vm6, %v4171_v0 }
 0x2ae   : > { %v4506_v31 = vld [vmem:[#allocation2 + $0x60] sm:$0xff]  ;;  %v3752_v11 = vpop.permute.xlu1 %3751  ;;  %v3750_v60 = vpop.permute.xlu0 %3749 }
 0x2af   : > { %3784 = vst.msk [vmem:[#allocation2 + $0x80] sm:$0xff] %vm13827_vm7, %v3750_v60  ;;  %4724 = vmatmul.mubr.bf16.gmra.mrb[24].mxu1 %v4506_v31  ;;  %v4519_v31 = vld [vmem:[#allocation2 + $0xc8] sm:$0xff] }
 0x2b0   : > { %8726 = vmatprep.mubr.msk.bf16.mxu1 %vm3336_vm11, %v4509_v51 }
 0x2b2   : > { %v4062_v27 = vpop.permute.xlu1 %4061  ;;  %v4060_v56 = vpop.permute.xlu0 %4059 }
 0x2b6   : > { %v3641_v22 = vpop.permute.xlu1 %3640  ;;  %v3639_v37 = vpop.permute.xlu0 %3638 }
 0x2ba   : > { %v3526_v61 = vpop.permute.xlu1 %3525  ;;  %v4370_v42 = vpop.permute.xlu0 %4369 }
 0x2bb   : > { %3559 = vst.msk [vmem:[#allocation2 + $0x90] sm:$0xff] %vm3549_vm5, %v3526_v61 }
 0x2bc   : > { %3672 = vst.msk [vmem:[#allocation2 + $0x90] sm:$0xff] %vm13829_vm9, %v3639_v37 }
 0x2bd   : > { %3785 = vst.msk [vmem:[#allocation2 + $0x90] sm:$0xff] %vm13827_vm7, %v3752_v11  ;;  %v13830_v11 = vlaneseq }
 0x2be   : > { %v4368_v34 = vpop.permute.xlu1 %4367 }
 0x2bf   : > { %v3949_v46 = vpop.permute.xlu0 %3948  ;;  %4403 = vst.msk [vmem:[#allocation2 + $0x70] sm:$0xff] %vm13826_vm3, %v4368_v34  ;;  %v11413_v15 = vshrl.u32 %v13830_v11, 7 }
 0x2c0   : > { %3982 = vst.msk [vmem:[#allocation2 + $0x90] sm:$0xff] %vm13822_vm8, %v3949_v46 }
 0x2c1   : > { %4095 = vst.msk [vmem:[#allocation2 + $0x90] sm:$0xff] %vm13823_vm13, %v4062_v27  ;;  %v361_v40 = vadd.s32 8, %v11413_v15  ;;  %v362_v55 = vadd.s32 16, %v11413_v15 }
 0x2c2   : > { %v3947_v4 = vpop.permute.xlu1 %3946 }
 0x2c3   : > { %v3528_v39 = vpop.permute.xlu0 %3527  ;;  %3981 = vst.msk [vmem:[#allocation2 + $0x80] sm:$0xff] %vm13822_vm8, %v3947_v4  ;;  %v11421_v37 = vmul.u32.u64.low 3817748708, %v361_v40  ;;  %v11422_v54 = vmul.u32.u64.high 3817748708, %v361_v40, %v11421_v37  ;;  %v11429_v46 = vmul.u32.u64.low 3817748708, %v362_v55  ;;  %v11430_v4 = vmul.u32.u64.high 3817748708, %v362_v55, %v11429_v46 }
 0x2c4   : > { %3560 = vst.msk [vmem:[#allocation2 + $0xa0] sm:$0xff] %vm3549_vm5, %v3528_v39  ;;  %v11433_v39 = vadd.s32 32, %v11413_v15  ;;  %v11497_v46 = vadd.s32 64, %v11413_v15 }
 0x2c5   : > { %4094 = vst.msk [vmem:[#allocation2 + $0x80] sm:$0xff] %vm13823_vm13, %v4060_v56  ;;  %v409_v62 = vshrl.u32 %v11422_v54, 4  ;;  %v11475_v54 = vadd.s32 48, %v11413_v15 }
 0x2c6   : > { %3673 = vst.msk [vmem:[#allocation2 + $0xa0] sm:$0xff] %vm13829_vm9, %v3641_v22  ;;  %v4508_v12 = vld [vmem:[#allocation2 + $0x70] sm:$0xff]  ;;  %v11417_v1 = vmul.u32.u64.low 3817748708, %v11413_v15  ;;  %v11418_v22 = vmul.u32.u64.high 3817748708, %v11413_v15, %v11417_v1 }
 0x2c7   : > { %4207 = vst.msk [vmem:[#allocation2 + $0x80] sm:$0xff] %vm13824_vm6, %v4173_v8  ;;  %4732 = vmatmul.mubr.bf16.gmra.mrb[28].mxu1 %v4508_v12  ;;  %v410_v61 = vmul.u32 18, %v409_v62  ;;  %v11485_v62 = vadd.s32 56, %v11413_v15 }
 0x2c8   : > { %4404 = vst.msk [vmem:[#allocation2 + $0x80] sm:$0xff] %vm13826_vm3, %v4370_v42  ;;  %8727 = vmatprep.mubr.msk.bf16.mxu1 %vm3336_vm11, %v4511_v49  ;;  %v398_v59 = vshrl.u32 %v11418_v22, 4  ;;  %v363_v42 = vadd.s32 24, %v11413_v15 }
 0x2c9   : > { %v4177_v3 = vpop.permute.xlu1 %4176  ;;  %v4175_v38 = vpop.permute.xlu0 %4174  ;;  %v411_v12 = vsub.s32 %v361_v40, %v410_v61 }
 0x2ca   : > { %4208 = vst.msk [vmem:[#allocation2 + $0x90] sm:$0xff] %vm13824_vm6, %v4175_v38  ;;  %v399_v26 = vmul.u32 18, %v398_v59  ;;  %v11439_v38 = vadd.s32 40, %v11413_v15 }
 0x2cc   : > { %v400_v34 = vsub.s32 %v11413_v15, %v399_v26 }
 0x2cd   : > { %v3756_v9 = vpop.permute.xlu1 %3755  ;;  %v3754_v6 = vpop.permute.xlu0 %3753 }
 0x2ce   : > { %3786 = vst.msk [vmem:[#allocation2 + $0xa0] sm:$0xff] %vm13827_vm7, %v3754_v6 }
 0x2cf   : > { %v4510_v14 = vld [vmem:[#allocation2 + $0x80] sm:$0xff] }
 0x2d0   : > { %4740 = vmatmul.mubr.bf16.gmra.mrb[32].mxu1 %v4510_v14  ;;  %v840_v14 = vadd.s32 18, %v400_v34 }
 0x2d1   : > { %8728 = vmatprep.mubr.msk.bf16.mxu1 %vm3336_vm11, %v4513_v41  ;;  %v4066_v45 = vpop.permute.xlu1 %4065  ;;  %v4064_v43 = vpop.permute.xlu0 %4063 }
 0x2d5   : > { %v3530_v44 = vpop.permute.xlu1 %3529  ;;  %v3643_v16 = vpop.permute.xlu0 %3642 }
 0x2d6   : > { %3561 = vst.msk [vmem:[#allocation2 + $0xb0] sm:$0xff] %vm3549_vm5, %v3530_v44  ;;  %v420_v44 = vshrl.u32 %v11430_v4, 4  ;;  %v11500_v4 = vadd.s32 72, %v11413_v15 }
 0x2d7   : > { %3674 = vst.msk [vmem:[#allocation2 + $0xb0] sm:$0xff] %vm13829_vm9, %v3643_v16  ;;  %v11453_v16 = vld [vmem:[%s13810_s4] ss:$0 sm:$0xff] }
 0x2d8   : > { %3787 = vst.msk [vmem:[#allocation2 + $0xb0] sm:$0xff] %vm13827_vm7, %v3756_v9  ;;  %v11442_v9 = vmul.u32.u64.low 3817748708, %v11433_v39  ;;  %v11443_v6 = vmul.u32.u64.high 3817748708, %v11433_v39, %v11442_v9 }
 0x2d9   : > { %v4372_v21 = vpop.permute.xlu1 %4371  ;;  %v4374_v58 = vpop.permute.xlu0 %4373  ;;  %v11518_v9 = vadd.s32 88, %v11413_v15 }
 0x2da   : > { %4405 = vst.msk [vmem:[#allocation2 + $0x90] sm:$0xff] %vm13826_vm3, %v4372_v21 }
 0x2dd   : > { %v3645_v28 = vpop.permute.xlu1 %3644  ;;  %v3953_v13 = vpop.permute.xlu0 %3952 }
 0x2de   : > { %3984 = vst.msk [vmem:[#allocation2 + $0xb0] sm:$0xff] %vm13822_vm8, %v3953_v13  ;;  %v9424_v13 = vld [vmem:[#allocation4 + $0x8] sm:$0xfe]  }
 0x2df   : > { %4097 = vst.msk [vmem:[#allocation2 + $0xb0] sm:$0xff] %vm13823_vm13, %v4066_v45  ;;  %v11446_v41 = vmul.u32.u64.low 3817748708, %v11439_v38  ;;  %v11447_v45 = vmul.u32.u64.high 3817748708, %v11439_v38, %v11446_v41 }
 0x2e1   : > { %v3951_v36 = vpop.permute.xlu1 %3950  ;;  %v4512_v7 = vld [vmem:[#allocation2 + $0x90] sm:$0xff] }
 0x2e2   : > { %v3532_v10 = vpop.permute.xlu0 %3531  ;;  %3983 = vst.msk [vmem:[#allocation2 + $0xa0] sm:$0xff] %vm13822_vm8, %v3951_v36  ;;  %4748 = vmatmul.mubr.bf16.gmra.mrb[36].mxu1 %v4512_v7 }
 0x2e3   : > { %3562 = vst.msk [vmem:[#allocation2 + $0xc0] sm:$0xff] %vm3549_vm5, %v3532_v10  ;;  %8729 = vmatprep.mubr.msk.bf16.mxu1 %vm3336_vm11, %v4515_v23  ;;  %v421_v23 = vmul.u32 18, %v420_v44 }
 0x2e4   : > { %4096 = vst.msk [vmem:[#allocation2 + $0xa0] sm:$0xff] %vm13823_vm13, %v4064_v43  ;;  %v841_v43 = vadd.s32 18, %v411_v12 }
 0x2e5   : > { %3675 = vst.msk [vmem:[#allocation2 + $0xc0] sm:$0xff] %vm13829_vm9, %v3645_v28 }
 0x2e6   : > { %4209 = vst.msk [vmem:[#allocation2 + $0xa0] sm:$0xff] %vm13824_vm6, %v4177_v3  ;;  %v11435_v49 = vmul.u32.u64.low 3817748708, %v363_v42  ;;  %v11436_v3 = vmul.u32.u64.high 3817748708, %v363_v42, %v11435_v49 }
 0x2e7   : > { %4406 = vst.msk [vmem:[#allocation2 + $0xa0] sm:$0xff] %vm13826_vm3, %v4374_v58 }
 0x2e8   : > { %v431_v58 = vshrl.u32 %v11436_v3, 4  ;;  %v11506_v49 = vmul.u32.u64.low 3817748708, %v11475_v54  ;;  %v11507_v3 = vmul.u32.u64.high 3817748708, %v11475_v54, %v11506_v49 }
 0x2e9   : > { %v9466_v49 = vld [vmem:[#allocation4] sm:$0xff]  }
 0x2ea   : > { %v4181_v48 = vpop.permute.xlu1 %4180  ;;  %v4179_v17 = vpop.permute.xlu0 %4178  ;;  %5271 = vst.msk [vmem:[#allocation2] sm:$0xff] %vm3336_vm11, %v9466_v49 }
 0x2eb   : > { %4210 = vst.msk [vmem:[#allocation2 + $0xb0] sm:$0xff] %vm13824_vm6, %v4179_v17  ;;  %v11462_v17 = vld [vmem:[#allocation4 + $0x8] sm:$0xfe]  }
 0x2ee   : > { %v4514_v30 = vld [vmem:[#allocation2 + $0xa0] sm:$0xff]  ;;  %v4376_v53 = vpop.permute.xlu1 %4375  ;;  %v3758_v24 = vpop.permute.xlu0 %3757 }
 0x2ef   : > { %4756 = vmatmul.mubr.bf16.gmra.mrb[40].mxu1 %v4514_v30  ;;  %4407 = vst.msk [vmem:[#allocation2 + $0xb0] sm:$0xff] %vm13826_vm3, %v4376_v53  ;;  %v442_v30 = vshrl.u32 %v11443_v6, 4 }
 0x2f0   : > { %3788 = vst.msk [vmem:[#allocation2 + $0xc0] sm:$0xff] %vm13827_vm7, %v3758_v24  ;;  %8730 = vmatprep.mubr.msk.bf16.mxu1 %vm3336_vm11, %v4517_v32 }
 0x2f1   : > { %v443_v40 = vmul.u32 18, %v442_v30 }
 0x2f2   : > { %v3534_v5 = vpop.permute.xlu1 %3533  ;;  %v4068_v47 = vpop.permute.xlu0 %4067 }
 0x2f3   : > { %3564 = vst.msk [vmem:[#allocation2 + $0xd0] sm:$0xf] %vm3563_vm14, %v3534_v5  ;;  %vm3986_vm14 = vcmask 650752   ;;  %v11466_v5 = vld [vmem:[#allocation4 + $0x8] sm:$0xfc]  }
 0x2f6   : > { %v3955_v35 = vpop.permute.xlu1 %3954  ;;  %v4378_v8 = vpop.permute.xlu0 %4377  ;;  %v4516_v0 = vld [vmem:[#allocation2 + $0xb0] sm:$0xff] }
 0x2f7   : > { %3985 = vst.msk [vmem:[#allocation2 + $0xc0] sm:$0xff] %vm13822_vm8, %v3955_v35  ;;  %4764 = vmatmul.mubr.bf16.gmra.mrb[44].mxu1 %v4516_v0  ;;  %vm4099_vm8 = vcmask 781952   ;;  %v453_v35 = vshrl.u32 %v11447_v45, 4 }
 0x2f8   : > { %4098 = vst.msk [vmem:[#allocation2 + $0xc0] sm:$0xff] %vm13823_vm13, %v4068_v47  ;;  %8731 = vmatprep.mubr.msk.bf16.mxu1 %vm3336_vm11, %v4519_v31  ;;  %vm4212_vm13 = vcmask 913152   ;;  %v432_v47 = vmul.u32 18, %v431_v58  ;;  %v11528_v44 = vmul.u32.u64.low 3817748708, %v11500_v4  ;;  %v11529_v58 = vmul.u32.u64.high 3817748708, %v11500_v4, %v11528_v44 }
 0x2f9   : > { %4211 = vst.msk [vmem:[#allocation2 + $0xc0] sm:$0xff] %vm13824_vm6, %v4181_v48  ;;  %vm4409_vm6 = vcmask 1044352  }
 0x2fa   : > { %4408 = vst.msk [vmem:[#allocation2 + $0xc0] sm:$0xff] %vm13826_vm3, %v4378_v8  ;;  %v3760_v60 = vpop.permute.xlu1 %3759  ;;  %v3647_v51 = vpop.permute.xlu0 %3646  ;;  %v6120_v8 = vshrl.u32 %v9424_v13, 16 }
 0x2fb   : > { %3677 = vst.msk [vmem:[#allocation2 + $0xd0] sm:$0xf] %vm3676_vm12, %v3647_v51  ;;  %vm744_vm12 = vcmp.ne.s32.totalorder %v400_v34, 0  ;;  %v6123_v51 = vshll.u32 %v9424_v13, 16 }
 0x2fc   : > { %3790 = vst.msk [vmem:[#allocation2 + $0xd0] sm:$0xf] %vm3789_vm10, %v3760_v60  ;;  %v422_v60 = vsub.s32 %v362_v55, %v421_v23  ;;  %v11472_v37 = vrot.slane %v6120_v8, 1 }
 0x2fe   : > { %v4070_v27 = vpop.permute.xlu1 %4069  ;;  %v3957_v56 = vpop.permute.xlu0 %3956  ;;  %v842_v61 = vadd.s32 18, %v422_v60 }
 0x2ff   : > { %3987 = vst.msk [vmem:[#allocation2 + $0xd0] sm:$0xf] %vm3986_vm14, %v3957_v56  ;;  %v5911_v56 = vrot.slane %v11462_v17, 1 }
 0x300   : > { %4100 = vst.msk [vmem:[#allocation2 + $0xd0] sm:$0xf] %vm4099_vm8, %v4070_v27  ;;  %vm776_vm8 = vcmp.lt.s32.totalorder %v400_v34, 0 }
 0x301   : > { %v4518_v2 = vld [vmem:[#allocation2 + $0xc0] sm:$0xff]  ;;  %vm808_vm10 = vmand %vm776_vm8, %vm744_vm12 }
 0x302   : > { %v4380_v29 = vpop.permute.xlu1 %4379  ;;  %v4183_v52 = vpop.permute.xlu0 %4182  ;;  %4772 = vmatmul.mubr.bf16.gmra.mrb[48].mxu1 %v4518_v2  ;;  %v11455_v21 = vsel %vm808_vm10, %v840_v14, %v400_v34 }
 0x303   : > { %4213 = vst.msk [vmem:[#allocation2 + $0xd0] sm:$0xf] %vm4212_vm13, %v4183_v52  ;;  %8732 = vmatprep.mubr.msk.bf16.mxu1 %vm3336_vm11, %v4521_v19  ;;  %vm745_vm13 = vcmp.ne.s32.totalorder %v411_v12, 0  ;;  %vm4814_vm12 = vcmp.lt.s32.totalorder %v11455_v21, 12  ;;  %v433_v52 = vsub.s32 %v363_v42, %v432_v47  ;;  %v454_v19 = vmul.u32 18, %v453_v35 }
 0x304   : > { %4410 = vst.msk [vmem:[#allocation2 + $0xd0] sm:$0xf] %vm4409_vm6, %v4380_v29  ;;  %vm777_vm6 = vcmp.lt.s32.totalorder %v411_v12, 0  ;;  %v6439_v29 = vrot.slane %v11466_v5, 2  ;;  %v11491_v42 = vsub.s32 %v11433_v39, %v443_v40  ;;  %v11510_v39 = vadd.s32 80, %v11413_v15 }
 0x305   : > { %vm809_vm14 = vmand %vm777_vm6, %vm745_vm13  ;;  %vm5004_vm13 = vcmask 1042432   ;;  %vm5005_vm6 = vcmask 1046532   ;;  %v11494_v34 = vsub.s32 %v11439_v38, %v454_v19  ;;  %v843_v6 = vadd.s32 18, %v433_v52 }
 0x306   : > { %v11459_v7 = vsel %vm809_vm14, %v841_v43, %v411_v12  ;;  %vm11478_vm10 = vmor %vm5004_vm13, %vm5005_vm6  ;;  %vm746_vm14 = vcmp.ne.s32.totalorder %v422_v60, 0  ;;  %vm779_vm13 = vcmp.lt.s32.totalorder %v433_v52, 0  ;;  %vm748_vm6 = vcmp.ne.s32.totalorder %v11491_v42, 0 }
 0x307   : > { %vm4815_vm8 = vcmp.lt.s32.totalorder %v11459_v7, 12  ;;  %v11514_v38 = vmul.u32.u64.low 3817748708, %v11485_v62  ;;  %v11515_v14 = vmul.u32.u64.high 3817748708, %v11485_v62, %v11514_v38  ;;  %v844_v41 = vadd.s32 18, %v11491_v42 }
 0x308   : > { %v11524_v45 = vmul.u32.u64.low 3817748708, %v11497_v46  ;;  %v11525_v43 = vmul.u32.u64.high 3817748708, %v11497_v46, %v11524_v45  ;;  %vm749_vm3 = vcmp.ne.s32.totalorder %v11494_v34, 0 }
 0x309   : > { %v475_v35 = vshrl.u32 %v11515_v14, 4  ;;  %v5735_v14 = vpop.permute.xlu1 %5734 }
 0x30a   : > { %v486_v44 = vshrl.u32 %v11525_v43, 4 }
 0x30b   : > { %v4520_v20 = vld [vmem:[#allocation2 + $0xd0] sm:$0xf]  ;;  %v476_v38 = vmul.u32 18, %v475_v35  ;;  %v11616_v35 = vadd.s32 112, %v11413_v15 }
 0x30c   : > { %4780 = vmatmul.mubr.bf16.gmra.mrb[52].mxu1 %v4520_v20  ;;  %v11482_v20 = vrot.slane %v6123_v51, 2 }
 0x31f   : > { %v4677_v28 = vpop.f32.mrb[0].mxu1 }
 0x320   : > { %v4678_v36 = vadd.f32 %v11453_v16, %v4677_v28  ;;  %v4679_v10 = vpop.f32.mrb[1].mxu1  ;;  %v11533_v28 = vmul.u32.u64.low 3817748708, %v11510_v39  ;;  %v11534_v13 = vmul.u32.u64.high 3817748708, %v11510_v39, %v11533_v28 }
 0x321   : > { %v4680_v48 = vpop.f32.mrb[2].mxu1  ;;  %v11540_v10 = vmul.u32.u64.low 3817748708, %v11518_v9  ;;  %v11541_v23 = vmul.u32.u64.high 3817748708, %v11518_v9, %v11540_v10  ;;  %v5527_v28 = vpop.permute.xlu0 %5526 }
 0x322   : > { %v4787_v53 = vmax.f32 %v4678_v36, 0.0  ;;  %v4681_v24 = vadd.f32 %v11453_v16, %v4680_v48  ;;  %v4682_v32 = vpop.f32.mrb[3].mxu1  ;;  %v11537_v36 = vadd.s32 96, %v11413_v15  ;;  %v11547_v48 = vadd.s32 104, %v11413_v15  ;;  %v9470_v10 = vld [vmem:[#allocation4 + $0x8] sm:$0xff]   ;;  %5574 = vst.msk [vmem:[#allocation2] sm:$0xff] %vm3549_vm5, %v5527_v28 }
 0x323   : > { %5272 = vst.msk [vmem:[#allocation2 + $0x10] sm:$0xff] %vm3336_vm11, %v9470_v10 }
 0x324   : > { %v4895_v0 = vsel %vm4814_vm12, %v4787_v53, 0.0  ;;  %v4788_v31 = vmax.f32 %v4681_v24, 0.0  ;;  %vm778_vm12 = vcmp.lt.s32.totalorder %v422_v60, 0  ;;  %v464_v53 = vshrl.u32 %v11507_v3, 4 }
 0x325   : > { %v8990_v27 = vpack.c.bf16 %v4895_v0, %v4895_v0  ;;  %vm810_vm7 = vmand %vm778_vm12, %vm746_vm14  ;;  %v11555_v24 = vmul.u32.u64.low 3817748708, %v11537_v36  ;;  %v11556_v32 = vmul.u32.u64.high 3817748708, %v11537_v36, %v11555_v24 }
 0x326   : > { %v4896_v2 = vsel %vm4815_vm8, %v4788_v31, 0.0  ;;  %vm747_vm8 = vcmp.ne.s32.totalorder %v433_v52, 0  ;;  %v11562_v0 = vsel %vm810_vm7, %v842_v61, %v422_v60 }
 0x327   : > { %v5007_v1 = vrot.slane %v8990_v27, 5  ;;  %v8991_v22 = vpack.c.bf16 %v4896_v2, %v4896_v2  ;;  %vm811_vm9 = vmand %vm779_vm13, %vm747_vm8  ;;  %v845_v27 = vadd.s32 18, %v11494_v34  ;;  %vm4816_vm7 = vcmp.lt.s32.totalorder %v11562_v0, 12 }
 0x328   : > { %v11568_v2 = vsel %vm811_vm9, %v843_v6, %v433_v52  ;;  %v530_v52 = vshrl.u32 %v11556_v32, 4  ;;  %v11667_v32 = vadd.s32 120, %v11413_v15 }
 0x329   : > { %v5008_v26 = vrot.slane %v5007_v1, 4  ;;  %5115 = vst.msk [vmem:[#allocation4 + $0x10] sm:$0x8] %vm13825_vm4, %v5007_v1  ;;  %v11488_v55 = vrot.slane %v8991_v22, 5  ;;  %vm780_vm4 = vcmp.lt.s32.totalorder %v11491_v42, 0 }
 0x32a   : > { %v11573_v1 = vmul.u32.u64.low 3817748708, %v11547_v48  ;;  %v11574_v22 = vmul.u32.u64.high 3817748708, %v11547_v48, %v11573_v1  ;;  %vm11586_vm9 = vmand %vm780_vm4, %vm748_vm6  ;;  %vm4817_vm4 = vcmp.lt.s32.totalorder %v11568_v2, 12 }
 0x32b   : > { %v5010_v12 = vsel %vm11478_vm10, %v5008_v26, %v11488_v55 }
 0x32c   : > { %5116 = vst.msk [vmem:[#allocation4 + $0x14] sm:$0xf] %vm13828_vm15, %v5010_v12  ;;  %vm781_vm15 = vcmp.lt.s32.totalorder %v11494_v34, 0  ;;  %v541_v49 = vshrl.u32 %v11574_v22, 4  ;;  %v9475_v22 = vld [vmem:[%s13811_s5 + $0x8] sm:$0xff]  }
 0x32d   : > { %vm11598_vm14 = vmand %vm781_vm15, %vm749_vm3  ;;  %vm13914_vm15 = vcmask 392448   ;;  %vm13915_vm3 = vsmask.f32 6400 }
 0x32e   : > { %5782 = vst.msk [vmem:[#allocation2] sm:$0xff] %vm13914_vm15, %v5735_v14 }
 0x333   : > { %v11549_v30 = vld [vmem:[#allocation4 + $0x10] sm:$0xff]  }
 0x334   : > { %v11558_v47 = vld [vmem:[#allocation4 + $0x10] sm:$0xff]   ;;  %v5912_v8 = vrot.slane %v11549_v30, 1 }
 0x335   : > { %v11564_v31 = vld [vmem:[#allocation4 + $0x10] sm:$0xff]   ;;  %v5415_v40 = vshll.u32 %v11558_v47, 16 }
 0x336   : > { %v9425_v51 = vld [vmem:[#allocation4 + $0x10] sm:$0xff]   ;;  %v5913_v60 = vsel %vm1468_vm0, %v5911_v56, %v5912_v8  ;;  %v6440_v26 = vrot.slane %v11564_v31, 2  ;;  %v465_v56 = vmul.u32 18, %v464_v53  ;;  %v11613_v53 = vsel %vm11586_vm9, %v844_v41, %v11491_v42  ;;  %v9473_v41 = vld [vmem:[%s13811_s5] sm:$0xff]  }
 0x337   : > { %v11570_v19 = vld [vmem:[#allocation4 + $0x10] sm:$0xff]   ;;  %v6128_v61 = vshrl.u32 %v9425_v51, 16  ;;  %v6131_v12 = vshll.u32 %v9425_v51, 16  ;;  %5942 = vrot.lane.b32.xlu0 %v5913_v60, %s9597_s22  ;;  %v11591_v3 = vrot.slane %v5415_v40, 1  ;;  %v6126_v51 = vor.u32 %v11482_v20, %v11472_v37  ;;  %7413 = vmatpush1.bf16.msra.mxu0 %v9473_v41 }
 0x338   : > { %v9489_v43 = vld [vmem:[#allocation4 + $0x10] sm:$0xff]   ;;  %v13835_v20 = vrot.slane %v11570_v19, 1  ;;  %v11631_v42 = vsel %vm11598_vm14, %v845_v27, %v11494_v34  ;;  %v11643_v40 = vsub.s32 %v11485_v62, %v476_v38  ;;  %v497_v34 = vshrl.u32 %v11529_v58, 4  ;;  %7414 = vmatprep.subr.bf16.mxu0 %v13832_v25 }
 0x339   : > { %v6130_v6 = vrot.slane %v6128_v61, 1  ;;  %v6133_v45 = vrot.slane %v6131_v12, 2  ;;  %v5418_v24 = vsel %vm1162_vm2, %v11372_v63, %v11591_v3  ;;  %v6441_v63 = vsel %vm2209_vm1, %v6439_v29, %v6440_v26  ;;  %v4685_v5 = vpop.f32.mrb[4].mxu1  ;;  %5273 = vst.msk [vmem:[#allocation2 + $0x20] sm:$0xff] %vm3336_vm11, %v9489_v43 }
 0x33a   : > { %5528 = vrot.lane.b32.xlu1 %v5418_v24, %s9591_s20  ;;  %v11640_v29 = vsub.s32 %v11475_v54, %v465_v56  ;;  %v508_v27 = vshrl.u32 %v11534_v13, 4  ;;  %v4686_v1 = vadd.f32 %v11453_v16, %v4685_v5  ;;  %v4687_v60 = vpop.f32.mrb[5].mxu1  ;;  %v487_v61 = vmul.u32 18, %v486_v44  ;;  %v9478_v5 = vld [vmem:[%s13811_s5 + $0x10] sm:$0xff]  }
 0x33b   : > { %v11625_v37 = vor.u32 %v6133_v45, %v6130_v6  ;;  %6470 = vrot.lane.b32.xlu0 %v6441_v63, %s9598_s26  ;;  %v519_v12 = vshrl.u32 %v11541_v23, 4  ;;  %v4688_v54 = vpop.f32.mrb[6].mxu1  ;;  %v11655_v58 = vmul.u32.u64.low 3817748708, %v11616_v35  ;;  %v11656_v13 = vmul.u32.u64.high 3817748708, %v11616_v35, %v11655_v58  ;;  %7415 = vmatpush1.bf16.msra.mxu0 %v9475_v22  ;;  %v9481_v22 = vld [vmem:[%s13811_s5 + $0x18] sm:$0xff]  }
 0x33c   : > { %v4789_v17 = vmax.f32 %v4686_v1, 0.0  ;;  %v4689_v56 = vadd.f32 %v11453_v16, %v4688_v54  ;;  %v4690_v38 = vpop.f32.mrb[7].mxu1  ;;  %v5707_v23 = vsel %vm1468_vm0, %v5704_v50, %v13835_v20  ;;  %vm4818_vm12 = vcmp.lt.s32.totalorder %v11613_v53, 12  ;;  %7416 = vmatprep.subr.bf16.mxu0 %v13832_v25 }
 0x33d   : > { %v6135_v62 = vsel %vm13915_vm3, %v6126_v51, %v11625_v37  ;;  %vm4819_vm8 = vcmp.lt.s32.totalorder %v11631_v42, 12  ;;  %v498_v14 = vmul.u32 18, %v497_v34  ;;  %v509_v6 = vmul.u32 18, %v508_v27 }
 0x33e   : > { %6262 = vrot.lane.b32.xlu1 %v6135_v62, %s9600_s14  ;;  %v4897_v33 = vsel %vm4816_vm7, %v4789_v17, 0.0  ;;  %v4790_v45 = vmax.f32 %v4689_v56, 0.0  ;;  %v520_v50 = vmul.u32 18, %v519_v12  ;;  %v531_v44 = vmul.u32 18, %v530_v52 }
 0x33f   : > { %5736 = vrot.lane.b32.xlu0 %v5707_v23, %s9594_s23  ;;  %v8992_v28 = vpack.c.bf16 %v4897_v33, %v4897_v33  ;;  %vm750_vm13 = vcmp.ne.s32.totalorder %v11640_v29, 0  ;;  %vm782_vm6 = vcmp.lt.s32.totalorder %v11640_v29, 0  ;;  %v11680_v10 = vadd.s32 18, %v11640_v29  ;;  %7417 = vmatpush1.bf16.msra.mxu0 %v9478_v5 }
 0x340   : > { %v542_v24 = vmul.u32 18, %v541_v49  ;;  %v4898_v51 = vsel %vm4817_vm4, %v4790_v45, 0.0  ;;  %vm751_vm9 = vcmp.ne.s32.totalorder %v11643_v40, 0  ;;  %vm783_vm7 = vcmp.lt.s32.totalorder %v11643_v40, 0  ;;  %7418 = vmatprep.subr.bf16.mxu0 %v13832_v25 }
 0x341   : > { %v11688_v43 = vsub.s32 %v11497_v46, %v487_v61  ;;  %v11691_v63 = vmul.u32.u64.low 3817748708, %v11667_v32  ;;  %v11692_v41 = vmul.u32.u64.high 3817748708, %v11667_v32, %v11691_v63  ;;  %v5011_v34 = vrot.slane %v11488_v55, 4  ;;  %v7073_v55 = vld [vmem:[#allocation4 + $0x14] sm:$0xf] }
 0x342   : > { %v5012_v27 = vrot.slane %v8992_v28, 5  ;;  %v8993_v1 = vpack.c.bf16 %v4898_v51, %v4898_v51  ;;  %v4693_v60 = vpop.f32.mrb[8].mxu1  ;;  %v11699_v12 = vsub.s32 %v11500_v4, %v498_v14  ;;  %v11703_v61 = vsub.s32 %v11510_v39, %v509_v6  ;;  %v7072_v14 = vld [vmem:[#allocation4 + $0x10] sm:$0x8] }
 0x343   : > { %v4694_v52 = vadd.f32 %v11453_v16, %v4693_v60  ;;  %v4695_v46 = vpop.f32.mrb[9].mxu1  ;;  %v11706_v54 = vsub.s32 %v11518_v9, %v520_v50  ;;  %v11709_v62 = vsub.s32 %v11537_v36, %v531_v44  ;;  %v11714_v56 = vsub.s32 %v11547_v48, %v542_v24  ;;  %v9431_v28 = vld [vmem:[#allocation4 + $0x10] sm:$0xfc]   ;;  %7419 = vmatpush1.bf16.msra.mxu0 %v9481_v22 }
 0x344   : > { %v5013_v49 = vsel %vm11478_vm10, %v5011_v34, %v5012_v27  ;;  %v5014_v58 = vrot.slane %v5012_v27, 4  ;;  %v5015_v4 = vrot.slane %v8993_v1, 5  ;;  %v4696_v17 = vpop.f32.mrb[10].mxu1  ;;  %vm13916_vm14 = vcmask 125952   ;;  %7420 = vmatprep.subr.bf16.mxu0 %v13832_v25  ;;  %v9484_v46 = vld [vmem:[%s13811_s5 + $0x20] sm:$0xff]  }
 0x345   : > { %5117 = vst.msk [vmem:[#allocation4 + $0x18] sm:$0xf] %vm13916_vm14, %v5013_v49  ;;  %v4791_v39 = vmax.f32 %v4694_v52, 0.0  ;;  %v4697_v9 = vadd.f32 %v11453_v16, %v4696_v17  ;;  %v4698_v36 = vpop.f32.mrb[11].mxu1  ;;  %v552_v38 = vshrl.u32 %v11656_v13, 4  ;;  %v11721_v23 = vadd.s32 128, %v11413_v15  ;;  %vm13917_vm4 = vmmov %vm13916_vm14 }
 0x346   : > { %v5016_v48 = vsel %vm11478_vm10, %v5014_v58, %v5015_v4  ;;  %v11729_v6 = vadd.s32 18, %v11643_v40  ;;  %v11732_v33 = vadd.s32 18, %v11688_v43  ;;  %v11735_v45 = vadd.s32 18, %v11699_v12  ;;  %v9427_v17 = vld [vmem:[#allocation4 + $0x10] sm:$0xfc]  }
 0x347   : > { %v8889_v13 = vcombine.low %v7072_v14, %v7073_v55  ;;  %5118 = vst.msk [vmem:[#allocation4 + $0x1c] sm:$0xf] %vm13917_vm4, %v5016_v48  ;;  %v4899_v50 = vsel %vm4818_vm12, %v4791_v39, 0.0  ;;  %v4792_v44 = vmax.f32 %v4697_v9, 0.0  ;;  %v11741_v24 = vadd.s32 18, %v11703_v61  ;;  %vm11773_vm12 = vmand %vm782_vm6, %vm750_vm13  ;;  %7421 = vmatpush1.bf16.msra.mxu0 %v9484_v46 }
 0x348   : > { %v8994_v51 = vpack.c.bf16 %v4899_v50, %v4899_v50  ;;  %v11744_v63 = vadd.s32 18, %v11706_v54  ;;  %v11747_v5 = vadd.s32 18, %v11709_v62  ;;  %v11750_v34 = vadd.s32 18, %v11714_v56  ;;  %7422 = vmatprep.subr.bf16.mxu0 %v13832_v25  ;;  %vm13922_vm13 = vmmov %vm13917_vm4 }
 0x349   : > { %v4900_v27 = vsel %vm4819_vm8, %v4792_v44, 0.0  ;;  %v11755_v1 = vmul.u32 18, %v552_v38  ;;  %v11758_v60 = vmul.u32.u64.low 3817748708, %v11721_v23  ;;  %v11759_v52 = vmul.u32.u64.high 3817748708, %v11721_v23, %v11758_v60  ;;  %vm11785_vm8 = vmand %vm783_vm7, %vm751_vm9 }
 0x34a   : > { %v5017_v55 = vrot.slane %v5015_v4, 4  ;;  %v5018_v49 = vrot.slane %v8994_v51, 5  ;;  %v8995_v58 = vpack.c.bf16 %v4900_v27, %v4900_v27  ;;  %vm752_vm15 = vcmp.ne.s32.totalorder %v11688_v43, 0  ;;  %vm13923_vm9 = vmmov %vm13917_vm4 }
 0x34b   : > { %vm784_vm3 = vcmp.lt.s32.totalorder %v11688_v43, 0  ;;  %v7188_v9 = vrot.slane %v8889_v13, 3  ;;  %v5419_v36 = vshrl.u32 %v11558_v47, 16  ;;  %v6860_v4 = vshrl.u32 %v9431_v28, 16 }
 0x34c   : > { %v6863_v22 = vshll.u32 %v9431_v28, 16  ;;  %v7074_v14 = vld [vmem:[#allocation4 + $0x18] sm:$0xf]  ;;  %v5019_v48 = vsel %vm11478_vm10, %v5017_v55, %v5018_v49  ;;  %v5020_v50 = vrot.slane %v5018_v49, 4  ;;  %v11779_v44 = vrot.slane %v8995_v58, 5 }
 0x34d   : > { %5119 = vst.msk [vmem:[#allocation4 + $0x20] sm:$0xf] %vm13922_vm13, %v5019_v48  ;;  %vm753_vm6 = vcmp.ne.s32.totalorder %v11699_v12, 0  ;;  %vm785_vm14 = vcmp.lt.s32.totalorder %v11699_v12, 0  ;;  %v6647_v27 = vrot.slane %v9427_v17, 2  ;;  %v6862_v55 = vrot.slane %v6860_v4, 2 }
 0x34e   : > { %v7075_v13 = vld [vmem:[#allocation4 + $0x1c] sm:$0xf]  ;;  %v5022_v28 = vsel %vm11478_vm10, %v5020_v50, %v11779_v44  ;;  %v6865_v11 = vrot.slane %v6863_v22, 3  ;;  %v11811_v17 = vsel %vm11773_vm12, %v11680_v10, %v11640_v29  ;;  %v5421_v22 = vor.u32 %v5419_v36, %v11591_v3  ;;  %vm11844_vm12 = vmand %vm784_vm3, %vm752_vm15 }
 0x34f   : > { %v11796_v51 = vld [vmem:[#allocation4 + $0x18] sm:$0xff]   ;;  %v8890_v60 = vcombine.low %v7074_v14, %v7075_v13  ;;  %5120 = vst.msk [vmem:[#allocation4 + $0x24] sm:$0xf] %vm13923_vm9, %v5022_v28  ;;  %v11827_v29 = vsel %vm11785_vm8, %v11729_v6, %v11643_v40  ;;  %vm13924_vm7 = vcmask 1044480   ;;  %vm4820_vm4 = vcmp.lt.s32.totalorder %v11811_v17, 12  ;;  %vm11866_vm15 = vmand %vm785_vm14, %vm753_vm6 }
 0x350   : > { %v11799_v46 = vld [vmem:[#allocation4 + $0x18] sm:$0xff]   ;;  %v13834_v49 = vrot.slane %v11796_v51, 2  ;;  %vm4821_vm8 = vcmp.lt.s32.totalorder %v11827_v29, 12  ;;  %vm13929_vm3 = vsmask.f32 5376  ;;  %vm13933_vm14 = vmmov %vm13924_vm7 }
 0x351   : > { %v11802_v58 = vld [vmem:[#allocation4 + $0x18] sm:$0xff]   ;;  %v11804_v18 = vrot.slane %v8890_v60, 3  ;;  %v5423_v25 = vshll.u32 %v11799_v46, 16  ;;  %vm13932_vm13 = vsmask.f32 6400 }
 0x352   : > { %v9432_v48 = vld [vmem:[#allocation4 + $0x18] sm:$0xff]   ;;  %v6649_v4 = vsel %vm2209_vm1, %v6647_v27, %v13834_v49  ;;  %v5914_v14 = vrot.slane %v11802_v58, 1 }
 0x353   : > { %v6868_v50 = vshrl.u32 %v9432_v48, 16  ;;  %v6871_v13 = vshll.u32 %v9432_v48, 16  ;;  %v11817_v28 = vld [vmem:[#allocation4 + $0x18] sm:$0xff]   ;;  %6678 = vrot.lane.b32.xlu1 %v6649_v4, %s9596_s21  ;;  %v11821_v60 = vrot.slane %v5423_v25, 1  ;;  %v7190_v10 = vsel %vm13924_vm7, %v7188_v9, %v11804_v18 }
 0x354   : > { %v9434_v38 = vld [vmem:[#allocation4 + $0x18] sm:$0xff]   ;;  %v7076_v27 = vld [vmem:[#allocation4 + $0x20] sm:$0xf]  ;;  %7237 = vst.msk [vmem:[#allocation2 + $0x8] sm:$0xff] %vm3336_vm11, %v7190_v10  ;;  %v11836_v25 = vadd.s32 136, %v11413_v15  ;;  %v5915_v4 = vsel %vm1468_vm0, %v5912_v8, %v5914_v14  ;;  %vm754_vm7 = vcmp.ne.s32.totalorder %v11703_v61, 0 }
 0x355   : > { %v6870_v48 = vrot.slane %v6868_v50, 2  ;;  %v6873_v49 = vrot.slane %v6871_v13, 3  ;;  %v11833_v3 = vld [vmem:[#allocation4 + $0x18] sm:$0xff]   ;;  %v5426_v40 = vsel %vm1162_vm2, %v5421_v22, %v11821_v60  ;;  %v6137_v6 = vshrl.u32 %v9434_v38, 16 }
 0x356   : > { %v6140_v36 = vshll.u32 %v9434_v38, 16  ;;  %v7077_v47 = vld [vmem:[#allocation4 + $0x24] sm:$0xf]  ;;  %5530 = vrot.lane.b32.xlu0 %v5426_v40, %s9591_s20  ;;  %v13836_v13 = vrot.slane %v11817_v28, 2  ;;  %v6866_v38 = vor.u32 %v6865_v11, %v6862_v55  ;;  %v13838_v20 = vrot.slane %v11833_v3, 1 }
 0x357   : > { %v11854_v50 = vor.u32 %v6873_v49, %v6870_v48  ;;  %v11858_v22 = vld [vmem:[#allocation4 + $0x20] sm:$0xff]   ;;  %v8891_v10 = vcombine.low %v7076_v27, %v7077_v47  ;;  %5944 = vrot.lane.b32.xlu1 %v5915_v4, %s9597_s22  ;;  %v6139_v39 = vrot.slane %v6137_v6, 1  ;;  %v11887_v6 = vsel %vm11844_vm12, %v11732_v33, %v11688_v43 }
 0x358   : > { %v6142_v40 = vrot.slane %v6140_v36, 2  ;;  %v11870_v8 = vld [vmem:[#allocation4 + $0x20] sm:$0xff]   ;;  %v11873_v49 = vmul.u32.u64.low 3817748708, %v11836_v25  ;;  %v11874_v27 = vmul.u32.u64.high 3817748708, %v11836_v25, %v11873_v49  ;;  %13930 = vst [vmem:[#allocation7_spill] sm:$0xff] %v11887_v6  ;;  %v6443_v4 = vsel %vm2209_vm1, %v6440_v26, %v13836_v13 }
 0x359   : > { %v11877_v11 = vrot.slane %v8891_v10, 3  ;;  %v6875_v55 = vsel %vm13929_vm3, %v6866_v38, %v11854_v50  ;;  %v9439_v36 = vld [vmem:[#allocation4 + $0x20] sm:$0xff]   ;;  %v4701_v47 = vpop.f32.mrb[12].mxu1  ;;  %v13837_v10 = vrot.slane %v11858_v22, 2  ;;  %v5431_v38 = vshll.u32 %v11870_v8, 16 }
 0x35a   : > { %v11881_v48 = vor.u32 %v6142_v40, %v6139_v39  ;;  %7007 = vrot.lane.b32.xlu0 %v6875_v55, %s9599_s10  ;;  %v5427_v39 = vshrl.u32 %v11799_v46, 16  ;;  %v4702_v9 = vadd.f32 %v11453_v16, %v4701_v47  ;;  %v4703_v43 = vpop.f32.mrb[13].mxu1  ;;  %v11904_v40 = vsel %vm11866_vm15, %v11735_v45, %v11699_v12  ;;  %v11913_v47 = vld [vmem:[#allocation4 + $0x20] sm:$0xff]  }
 0x35b   : > { %v7254_v33 = vld [vmem:[#allocation2 + $0x8] sm:$0xff]  ;;  %6472 = vrot.lane.b32.xlu1 %v6443_v4, %s9598_s26  ;;  %13931 = vst [vmem:[#allocation8_spill] sm:$0xff] %v11904_v40  ;;  %v6877_v31 = vshrl.u32 %v9439_v36, 16  ;;  %v6880_v26 = vshll.u32 %v9439_v36, 16  ;;  %v4704_v49 = vpop.f32.mrb[14].mxu1  ;;  %vm4822_vm6 = vcmp.lt.s32.totalorder %v11887_v6, 12  ;;  %v7192_v12 = vsel %vm13933_vm14, %v11804_v18, %v11877_v11 }
 0x35c   : > { %8916 = vmatprep.mubr.msk.bf16.mxu0 %vm3336_vm11, %v7254_v33  ;;  %v6144_v46 = vsel %vm13932_vm13, %v11625_v37, %v11881_v48  ;;  %v11911_v55 = vrot.slane %v5431_v38, 1  ;;  %v9441_v4 = vld [vmem:[#allocation4 + $0x20] sm:$0xff]   ;;  %v4793_v45 = vmax.f32 %v4702_v9, 0.0  ;;  %v4705_v30 = vadd.f32 %v11453_v16, %v4704_v49  ;;  %v4706_v36 = vpop.f32.mrb[15].mxu1  ;;  %7238 = vst.msk [vmem:[#allocation2 + $0x18] sm:$0xff] %vm3336_vm11, %v7192_v12 }
 0x35d   : > { %v6879_v43 = vrot.slane %v6877_v31, 2  ;;  %v6882_v33 = vrot.slane %v6880_v26, 3  ;;  %v13934_v37 = vrot.slane %v11570_v19, 1  ;;  %vm4823_vm9 = vcmp.lt.s32.totalorder %v11904_v40, 12 }
 0x35e   : > { %6264 = vrot.lane.b32.xlu0 %v6144_v46, %s9600_s14  ;;  %v6146_v13 = vshrl.u32 %v9441_v4, 16  ;;  %v6149_v18 = vshll.u32 %v9441_v4, 16  ;;  %v11929_v9 = vsub.s32 %v11616_v35, %v11755_v1  ;;  %v4901_v31 = vsel %vm4820_vm4, %v4793_v45, 0.0  ;;  %v9487_v1 = vld [vmem:[%s13811_s5 + $0x28] sm:$0xff]  }
 0x35f   : > { %v5709_v38 = vsel %vm1468_vm0, %v13934_v37, %v13838_v20  ;;  %v4794_v26 = vmax.f32 %v4705_v30, 0.0  ;;  %v13935_v49 = vshrl.u32 %v11692_v41, 4  ;;  %v11937_v19 = vadd.s32 144, %v11413_v15  ;;  %7423 = vmatpush1.bf16.msra.mxu0 %v9487_v1 }
 0x360   : > { %5738 = vrot.lane.b32.xlu1 %v5709_v38, %s9594_s23  ;;  %v5023_v12 = vrot.slane %v11779_v44, 4  ;;  %v8996_v36 = vpack.c.bf16 %v4901_v31, %v4901_v31  ;;  %v5429_v4 = vor.u32 %v5427_v39, %v11821_v60  ;;  %v13841_v35 = vrot.slane %v11913_v47, 1  ;;  %v11954_v60 = vld [vmem:[#allocation4 + $0x20] sm:$0xff]  }
 0x361   : > { %v564_v46 = vmul.u32 18, %v13935_v49  ;;  %vm786_vm4 = vcmp.lt.s32.totalorder %v11703_v61, 0  ;;  %v4902_v41 = vsel %vm4821_vm8, %v4794_v26, 0.0  ;;  %v13936_v44 = vrot.slane %v11796_v51, 2  ;;  %v9491_v51 = vld [vmem:[%s13811_s5 + $0x30] sm:$0xff]  }
 0x362   : > { %v6148_v39 = vrot.slane %v6146_v13, 1  ;;  %v6151_v30 = vrot.slane %v6149_v18, 2  ;;  %vm755_vm12 = vcmp.ne.s32.totalorder %v11706_v54, 0  ;;  %vm787_vm15 = vcmp.lt.s32.totalorder %v11706_v54, 0  ;;  %v4709_v31 = vpop.f32.mrb[16].mxu1  ;;  %v9501_v13 = vld [vmem:[#allocation4 + $0x18] sm:$0xff]  }
 0x363   : > { %v6651_v45 = vsel %vm2209_vm1, %v13936_v44, %v13837_v10  ;;  %v5024_v37 = vrot.slane %v8996_v36, 5  ;;  %v8997_v38 = vpack.c.bf16 %v4902_v41, %v4902_v41  ;;  %v5434_v26 = vsel %vm1162_vm2, %v5429_v4, %v11911_v55  ;;  %v4711_v44 = vpop.f32.mrb[17].mxu1  ;;  %5274 = vst.msk [vmem:[#allocation2 + $0x30] sm:$0xff] %vm3336_vm11, %v9501_v13 }
 0x364   : > { %6680 = vrot.lane.b32.xlu0 %v6651_v45, %s9596_s21  ;;  %v11961_v49 = vor.u32 %v6882_v33, %v6879_v43  ;;  %v4710_v18 = vadd.f32 %v11453_v16, %v4709_v31  ;;  %5532 = vrot.lane.b32.xlu1 %v5434_v26, %s9591_s20  ;;  %v11969_v36 = vsub.s32 %v11667_v32, %v564_v46  ;;  %v13937_v43 = vmov 0   ;;  %v9511_v33 = vld [vmem:[#allocation4 + $0x20] sm:$0xff]   ;;  %v4712_v20 = vpop.f32.mrb[18].mxu1 }
 0x365   : > { %v11972_v41 = vmul.u32.u64.low 3817748708, %v11937_v19  ;;  %v11973_v45 = vmul.u32.u64.high 3817748708, %v11937_v19, %v11972_v41  ;;  %7424 = vmatprep.subr.bf16.mxu0 %v13937_v43  ;;  %v5025_v4 = vsel %vm11478_vm10, %v5023_v12, %v5024_v37  ;;  %v5026_v1 = vrot.slane %v5024_v37, 4  ;;  %v4714_v26 = vpop.f32.mrb[19].mxu1  ;;  %5275 = vst.msk [vmem:[#allocation2 + $0x40] sm:$0xff] %vm3336_vm11, %v9511_v33 }
 0x366   : > { %v5027_v10 = vrot.slane %v8997_v38, 5  ;;  %v11979_v31 = vadd.s32 152, %v11413_v15  ;;  %vm13938_vm8 = vcmask 125952   ;;  %v4795_v32 = vmax.f32 %v4710_v18, 0.0  ;;  %v11990_v38 = vld [vmem:[#allocation4 + $0x20] sm:$0xff]   ;;  %7425 = vmatpush1.bf16.msra.mxu0 %v9491_v51 }
 0x367   : > { %5121 = vst.msk [vmem:[#allocation4 + $0x28] sm:$0xf] %vm13938_vm8, %v5025_v4  ;;  %v4713_v46 = vadd.f32 %v11453_v16, %v4712_v20  ;;  %v5917_v12 = vsel %vm1468_vm0, %v5914_v14, %v13841_v35  ;;  %v13840_v37 = vrot.slane %v11954_v60, 2  ;;  %v6884_v16 = vsel %vm13929_vm3, %v11854_v50, %v11961_v49  ;;  %v9494_v14 = vld [vmem:[%s13811_s5 + $0x38] sm:$0xff]   ;;  %vm13939_vm13 = vmmov %vm13938_vm8  ;;  %7426 = vmatprep.subr.bf16.mxu0 %v13937_v43 }
 0x368   : > { %v5028_v13 = vsel %vm11478_vm10, %v5026_v1, %v5027_v10  ;;  %5946 = vrot.lane.b32.xlu0 %v5917_v12, %s9597_s22  ;;  %v11999_v20 = vor.u32 %v6151_v30, %v6148_v39  ;;  %v12002_v58 = vadd.s32 18, %v11929_v9  ;;  %v4903_v18 = vsel %vm4822_vm6, %v4795_v32, 0.0  ;;  %7009 = vrot.lane.b32.xlu1 %v6884_v16, %s9599_s10  ;;  %vm12047_vm8 = vmand %vm786_vm4, %vm754_vm7 }
 0x369   : > { %5122 = vst.msk [vmem:[#allocation4 + $0x2c] sm:$0xf] %vm13939_vm13, %v5028_v13  ;;  %v4796_v44 = vmax.f32 %v4713_v46, 0.0  ;;  %v574_v50 = vshrl.u32 %v11759_v52, 4  ;;  %v12013_v39 = vadd.s32 160, %v11413_v15  ;;  %v8998_v30 = vpack.c.bf16 %v4903_v18, %v4903_v18  ;;  %vm12068_vm7 = vmand %vm787_vm15, %vm755_vm12 }
 0x36a   : > { %v12017_v51 = vadd.s32 18, %v11969_v36  ;;  %v12020_v41 = vmul.u32.u64.low 3817748708, %v11979_v31  ;;  %v12021_v33 = vmul.u32.u64.high 3817748708, %v11979_v31, %v12020_v41  ;;  %v13940_v52 = vrot.slane %v11817_v28, 2  ;;  %7427 = vmatpush1.bf16.msra.mxu0 %v9494_v14  ;;  %v9497_v28 = vld [vmem:[%s13811_s5 + $0x40] sm:$0xff]   ;;  %vm13946_vm4 = vmmov %vm13939_vm13 }
 0x36b   : > { %v4904_v4 = vsel %vm4823_vm9, %v4796_v44, 0.0  ;;  %v13839_v32 = vrot.slane %v11990_v38, 1  ;;  %v585_v46 = vshrl.u32 %v11874_v27, 4  ;;  %v5029_v26 = vrot.slane %v5027_v10, 4  ;;  %7428 = vmatprep.subr.bf16.mxu0 %v13937_v43  ;;  %vm13948_vm12 = vmmov %vm13946_vm4 }
 0x36c   : > { %v6445_v1 = vsel %vm2209_vm1, %v13940_v52, %v13840_v37  ;;  %v5030_v12 = vrot.slane %v8998_v30, 5  ;;  %v8999_v13 = vpack.c.bf16 %v4904_v4, %v4904_v4  ;;  %vm13941_vm6 = vsmask.f32 6400 }
 0x36d   : > { %6474 = vrot.lane.b32.xlu0 %v6445_v1, %s9598_s26  ;;  %v6153_v16 = vsel %vm13941_vm6, %v11881_v48, %v11999_v20  ;;  %vm756_vm14 = vcmp.ne.s32.totalorder %v11709_v62, 0  ;;  %vm788_vm9 = vcmp.lt.s32.totalorder %v11709_v62, 0  ;;  %v12051_v48 = vmul.u32 18, %v574_v50 }
 0x36e   : > { %6266 = vrot.lane.b32.xlu1 %v6153_v16, %s9600_s14  ;;  %v596_v10 = vshrl.u32 %v11973_v45, 4  ;;  %v12055_v14 = vmul.u32.u64.low 3817748708, %v12013_v39  ;;  %v12056_v18 = vmul.u32.u64.high 3817748708, %v12013_v39, %v12055_v14  ;;  %v7078_v44 = vld [vmem:[#allocation4 + $0x28] sm:$0xf]  ;;  %v5031_v30 = vsel %vm11478_vm10, %v5029_v26, %v5030_v12  ;;  %7429 = vmatpush1.bf16.msra.mxu0 %v9497_v28 }
 0x36f   : > { %v5032_v41 = vrot.slane %v5030_v12, 4  ;;  %v12062_v4 = vrot.slane %v8999_v13, 5  ;;  %5123 = vst.msk [vmem:[#allocation4 + $0x30] sm:$0xf] %vm13946_vm4, %v5031_v30  ;;  %v13947_v50 = vrot.slane %v11833_v3, 1  ;;  %vm757_vm3 = vcmp.ne.s32.totalorder %v11714_v56, 0 }
 0x370   : > { %vm789_vm13 = vcmp.lt.s32.totalorder %v11714_v56, 0  ;;  %v7079_v1 = vld [vmem:[#allocation4 + $0x2c] sm:$0xf]  ;;  %v12086_v13 = vmul.u32 18, %v585_v46  ;;  %v12091_v14 = vmul.u32 18, %v596_v10  ;;  %v12104_v28 = vsel %vm12047_vm8, %v11741_v24, %v11703_v61  ;;  %vm12140_vm8 = vmand %vm788_vm9, %vm756_vm14 }
 0x371   : > { %v5711_v52 = vsel %vm1468_vm0, %v13947_v50, %v13839_v32  ;;  %v5034_v26 = vsel %vm11478_vm10, %v5032_v41, %v12062_v4  ;;  %v12084_v12 = vld [vmem:[#allocation4 + $0x28] sm:$0xff]   ;;  %v8892_v16 = vcombine.low %v7078_v44, %v7079_v1  ;;  %v5435_v50 = vshrl.u32 %v11870_v8, 16  ;;  %vm12161_vm14 = vmand %vm789_vm13, %vm757_vm3 }
 0x372   : > { %5740 = vrot.lane.b32.xlu0 %v5711_v52, %s9594_s23  ;;  %5124 = vst.msk [vmem:[#allocation4 + $0x34] sm:$0xf] %vm13948_vm12, %v5034_v26  ;;  %v12089_v3 = vld [vmem:[#allocation4 + $0x28] sm:$0xff]   ;;  %v13842_v30 = vrot.slane %v12084_v12, 2  ;;  %v13949_v10 = vrot.slane %v11858_v22, 2  ;;  %v12122_v61 = vsel %vm12068_vm7, %v11744_v63, %v11706_v54  ;;  %vm13951_vm15 = vcmask 1044480  }
 0x373   : > { %v12095_v32 = vld [vmem:[#allocation4 + $0x28] sm:$0xff]   ;;  %v12097_v52 = vrot.slane %v8892_v16, 3  ;;  %v5439_v46 = vshll.u32 %v12089_v3, 16  ;;  %v5437_v37 = vor.u32 %v5435_v50, %v11911_v55  ;;  %13950 = vst [vmem:[#allocation9_spill] sm:$0xff] %v12122_v61  ;;  %vm4824_vm6 = vcmp.lt.s32.totalorder %v12104_v28, 12  ;;  %vm13962_vm13 = vmmov %vm13951_vm15 }
 0x374   : > { %v9446_v41 = vld [vmem:[#allocation4 + $0x28] sm:$0xff]   ;;  %v6653_v44 = vsel %vm2209_vm1, %v13949_v10, %v13842_v30  ;;  %v13845_v8 = vrot.slane %v12095_v32, 1  ;;  %v12131_v55 = vadd.s32 168, %v11413_v15  ;;  %vm4825_vm7 = vcmp.lt.s32.totalorder %v12122_v61, 12 }
 0x375   : > { %v6886_v1 = vshrl.u32 %v9446_v41, 16  ;;  %v6889_v26 = vshll.u32 %v9446_v41, 16  ;;  %v12112_v16 = vld [vmem:[#allocation4 + $0x28] sm:$0xff]   ;;  %6682 = vrot.lane.b32.xlu1 %v6653_v44, %s9596_s21  ;;  %v12116_v35 = vrot.slane %v5439_v46, 1  ;;  %v7194_v22 = vsel %vm13951_vm15, %v11877_v11, %v12097_v52 }
 0x376   : > { %v9448_v24 = vld [vmem:[#allocation4 + $0x28] sm:$0xff]   ;;  %v7080_v27 = vld [vmem:[#allocation4 + $0x30] sm:$0xf]  ;;  %7239 = vst.msk [vmem:[#allocation2 + $0x28] sm:$0xff] %vm3336_vm11, %v7194_v22  ;;  %v13954_v46 = vrot.slane %v11913_v47, 1  ;;  %vm758_vm15 = vcmp.ne.s32.totalorder %v11929_v9, 0 }
 0x377   : > { %v6888_v41 = vrot.slane %v6886_v1, 2  ;;  %v6891_v10 = vrot.slane %v6889_v26, 3  ;;  %v12128_v44 = vld [vmem:[#allocation4 + $0x28] sm:$0xff]   ;;  %v5442_v54 = vsel %vm1162_vm2, %v5437_v37, %v12116_v35  ;;  %v6155_v63 = vshrl.u32 %v9448_v24, 16 }
 0x378   : > { %v6158_v45 = vshll.u32 %v9448_v24, 16  ;;  %5534 = vrot.lane.b32.xlu0 %v5442_v54, %s9591_s20  ;;  %v5919_v1 = vsel %vm1468_vm0, %v13954_v46, %v13845_v8  ;;  %v13844_v26 = vrot.slane %v12112_v16, 2  ;;  %vm13957_vm9 = vsmask.f32 5376 }
 0x379   : > { %v7081_v50 = vld [vmem:[#allocation4 + $0x34] sm:$0xf]  ;;  %v12150_v37 = vor.u32 %v6891_v10, %v6888_v41  ;;  %5948 = vrot.lane.b32.xlu1 %v5919_v1, %s9597_s22  ;;  %v6157_v30 = vrot.slane %v6155_v63, 1  ;;  %v607_v10 = vshrl.u32 %v12021_v33, 4  ;;  %v4717_v1 = vpop.f32.mrb[20].mxu1 }
 0x37a   : > { %v12154_v24 = vld [vmem:[#allocation4 + $0x30] sm:$0xff]   ;;  %v8893_v22 = vcombine.low %v7080_v27, %v7081_v50  ;;  %v6160_v43 = vrot.slane %v6158_v45, 2  ;;  %v12169_v54 = vmul.u32.u64.low 3817748708, %v12131_v55  ;;  %v12170_v46 = vmul.u32.u64.high 3817748708, %v12131_v55, %v12169_v54  ;;  %v4719_v11 = vpop.f32.mrb[21].mxu1 }
 0x37b   : > { %v12165_v41 = vld [vmem:[#allocation4 + $0x30] sm:$0xff]   ;;  %v6893_v63 = vsel %vm13957_vm9, %v11961_v49, %v12150_v37  ;;  %v12184_v50 = vsel %vm12140_vm8, %v11747_v5, %v11709_v62  ;;  %v12198_v62 = vld [vmem:[%s13810_s4] ss:$0 sm:$0xff]  ;;  %v4720_v8 = vpop.f32.mrb[22].mxu1  ;;  %vm13961_vm4 = vsmask.f32 6400 }
 0x37c   : > { %v12173_v27 = vrot.slane %v8893_v22, 3  ;;  %v12178_v45 = vor.u32 %v6160_v43, %v6157_v30  ;;  %13958 = vst [vmem:[#allocation10_spill] sm:$0xff] %v12184_v50  ;;  %v9453_v33 = vld [vmem:[#allocation4 + $0x30] sm:$0xff]   ;;  %7011 = vrot.lane.b32.xlu0 %v6893_v63, %s9599_s10  ;;  %v13959_v22 = vrot.slane %v11954_v60, 2  ;;  %v5447_v30 = vshll.u32 %v12165_v41, 16 }
 0x37d   : > { %v4718_v5 = vadd.f32 %v12198_v62, %v4717_v1  ;;  %v12206_v60 = vsel %vm12161_vm14, %v11750_v34, %v11714_v56  ;;  %v6895_v63 = vshrl.u32 %v9453_v33, 16  ;;  %vm4826_vm3 = vcmp.lt.s32.totalorder %v12184_v50, 12 }
 0x37e   : > { %v6447_v54 = vsel %vm2209_vm1, %v13959_v22, %v13844_v26  ;;  %13960 = vst [vmem:[#allocation11_spill] sm:$0xff] %v12206_v60  ;;  %v6898_v22 = vshll.u32 %v9453_v33, 16  ;;  %v9455_v26 = vld [vmem:[#allocation4 + $0x30] sm:$0xff]   ;;  %v6162_v43 = vsel %vm13961_vm4, %v11999_v20, %v12178_v45  ;;  %v5443_v1 = vshrl.u32 %v12089_v3, 16  ;;  %v4722_v33 = vpop.f32.mrb[23].mxu1 }
 0x37f   : > { %6476 = vrot.lane.b32.xlu1 %v6447_v54, %s9598_s26  ;;  %v12213_v11 = vrot.slane %v5447_v30, 1  ;;  %v12215_v54 = vld [vmem:[#allocation4 + $0x30] sm:$0xff]   ;;  %v7196_v56 = vsel %vm13962_vm13, %v12097_v52, %v12173_v27  ;;  %v4797_v34 = vmax.f32 %v4718_v5, 0.0  ;;  %v4721_v47 = vadd.f32 %v12198_v62, %v4720_v8 }
 0x380   : > { %v6897_v49 = vrot.slane %v6895_v63, 2  ;;  %v6900_v40 = vrot.slane %v6898_v22, 3  ;;  %7240 = vst.msk [vmem:[#allocation2 + $0x38] sm:$0xff] %vm3336_vm11, %v7196_v56  ;;  %6268 = vrot.lane.b32.xlu0 %v6162_v43, %s9600_s14  ;;  %v13963_v20 = vrot.slane %v12128_v44, 1  ;;  %v13964_v3 = vrot.slane %v11990_v38, 1 }
 0x381   : > { %vm4827_vm12 = vcmp.lt.s32.totalorder %v12206_v60, 12  ;;  %v6164_v6 = vshrl.u32 %v9455_v26, 16  ;;  %v6167_v52 = vshll.u32 %v9455_v26, 16  ;;  %v12231_v8 = vsub.s32 %v11721_v23, %v12051_v48  ;;  %v9520_v48 = vld [vmem:[#allocation4 + $0x28] sm:$0xff]  }
 0x382   : > { %v5713_v30 = vsel %vm1468_vm0, %v13964_v3, %v13963_v20  ;;  %v4905_v5 = vsel %vm4824_vm6, %v4797_v34, 0.0  ;;  %v4798_v63 = vmax.f32 %v4721_v47, 0.0  ;;  %v5445_v43 = vor.u32 %v5443_v1, %v12116_v35  ;;  %v12239_v20 = vld [vmem:[#allocation4 + $0x30] sm:$0xff]   ;;  %v4725_v47 = vpop.f32.mrb[24].mxu1  ;;  %5276 = vst.msk [vmem:[#allocation2 + $0x50] sm:$0xff] %vm3336_vm11, %v9520_v48 }
 0x383   : > { %5742 = vrot.lane.b32.xlu1 %v5713_v30, %s9594_s23  ;;  %v608_v22 = vmul.u32 18, %v607_v10  ;;  %v5035_v38 = vrot.slane %v12062_v4, 4  ;;  %v9000_v56 = vpack.c.bf16 %v4905_v5, %v4905_v5  ;;  %v13850_v33 = vrot.slane %v12215_v54, 1 }
 0x384   : > { %vm790_vm8 = vcmp.lt.s32.totalorder %v11929_v9, 0  ;;  %v12245_v23 = vsub.s32 %v11836_v25, %v12086_v13  ;;  %v4906_v35 = vsel %vm4825_vm7, %v4798_v63, 0.0  ;;  %v13965_v26 = vrot.slane %v12154_v24, 2  ;;  %v4727_v63 = vpop.f32.mrb[25].mxu1 }
 0x385   : > { %v13966_v4 = vrot.slane %v12084_v12, 2  ;;  %v5450_v1 = vsel %vm1162_vm2, %v5445_v43, %v12213_v11  ;;  %v6166_v34 = vrot.slane %v6164_v6, 1  ;;  %vm759_vm6 = vcmp.ne.s32.totalorder %v11969_v36, 0  ;;  %v9529_v12 = vld [vmem:[#allocation4 + $0x30] sm:$0xff]   ;;  %v4728_v48 = vpop.f32.mrb[26].mxu1 }
 0x386   : > { %vm791_vm14 = vcmp.lt.s32.totalorder %v11969_v36, 0  ;;  %v5036_v25 = vrot.slane %v9000_v56, 5  ;;  %v9001_v13 = vpack.c.bf16 %v4906_v35, %v4906_v35  ;;  %v12259_v3 = vor.u32 %v6900_v40, %v6897_v49  ;;  %5277 = vst.msk [vmem:[#allocation2 + $0x60] sm:$0xff] %vm3336_vm11, %v9529_v12 }
 0x387   : > { %v6655_v10 = vsel %vm2209_vm1, %v13966_v4, %v13965_v26  ;;  %v6169_v30 = vrot.slane %v6167_v52, 2  ;;  %v4726_v5 = vadd.f32 %v12198_v62, %v4725_v47  ;;  %5536 = vrot.lane.b32.xlu1 %v5450_v1, %s9591_s20  ;;  %v12265_v6 = vadd.s32 18, %v12231_v8 }
 0x388   : > { %6684 = vrot.lane.b32.xlu0 %v6655_v10, %s9596_s21  ;;  %v12269_v43 = vsub.s32 %v11937_v19, %v12091_v14  ;;  %v12272_v56 = vsub.s32 %v11979_v31, %v608_v22  ;;  %v5037_v40 = vsel %vm11478_vm10, %v5035_v38, %v5036_v25  ;;  %v5038_v49 = vrot.slane %v5036_v25, 4  ;;  %v4730_v19 = vpop.f32.mrb[27].mxu1  ;;  %v12286_v38 = vld [vmem:[#allocation4 + $0x30] sm:$0xff]  }
 0x389   : > { %v5039_v52 = vrot.slane %v9001_v13, 5  ;;  %v618_v35 = vshrl.u32 %v12056_v18, 4  ;;  %vm13967_vm7 = vcmask 125952   ;;  %v4799_v26 = vmax.f32 %v4726_v5, 0.0 }
 0x38a   : > { %5125 = vst.msk [vmem:[#allocation4 + $0x38] sm:$0xf] %vm13967_vm7, %v5037_v40  ;;  %v4729_v4 = vadd.f32 %v12198_v62, %v4728_v48  ;;  %v13968_v31 = vrot.slane %v12095_v32, 1  ;;  %v13849_v22 = vrot.slane %v12239_v20, 2  ;;  %v6902_v10 = vsel %vm13957_vm9, %v12150_v37, %v12259_v3  ;;  %vm13969_vm4 = vmmov %vm13967_vm7 }
 0x38b   : > { %v5040_v18 = vsel %vm11478_vm10, %v5038_v49, %v5039_v52  ;;  %v12294_v1 = vor.u32 %v6169_v30, %v6166_v34  ;;  %v12297_v25 = vadd.s32 18, %v12245_v23  ;;  %v4907_v32 = vsel %vm4826_vm3, %v4799_v26, 0.0  ;;  %7013 = vrot.lane.b32.xlu1 %v6902_v10, %s9599_s10 }
 0x38c   : > { %v5921_v14 = vsel %vm1468_vm0, %v13968_v31, %v13850_v33  ;;  %5126 = vst.msk [vmem:[#allocation4 + $0x3c] sm:$0xf] %vm13969_vm4, %v5040_v18  ;;  %v4800_v13 = vmax.f32 %v4729_v4, 0.0  ;;  %v12304_v47 = vadd.s32 176, %v11413_v15  ;;  %v12307_v12 = vadd.s32 184, %v11413_v15  ;;  %vm12339_vm4 = vmand %vm790_vm8, %vm758_vm15 }
 0x38d   : > { %5950 = vrot.lane.b32.xlu0 %v5921_v14, %s9597_s22  ;;  %v9002_v37 = vpack.c.bf16 %v4907_v32, %v4907_v32  ;;  %v12310_v34 = vadd.s32 18, %v12269_v43  ;;  %v12313_v30 = vadd.s32 18, %v12272_v56  ;;  %v12315_v5 = vmul.u32 18, %v618_v35  ;;  %vm12360_vm15 = vmand %vm791_vm14, %vm759_vm6 }
 0x38e   : > { %v4908_v63 = vsel %vm4827_vm12, %v4800_v13, 0.0  ;;  %v13970_v40 = vrot.slane %v12112_v16, 2  ;;  %v13848_v48 = vrot.slane %v12286_v38, 1  ;;  %vm760_vm3 = vcmp.ne.s32.totalorder %v12231_v8, 0 }
 0x38f   : > { %vm792_vm13 = vcmp.lt.s32.totalorder %v12231_v8, 0  ;;  %v629_v26 = vshrl.u32 %v12170_v46, 4  ;;  %v5041_v4 = vrot.slane %v5039_v52, 4  ;;  %v5042_v35 = vrot.slane %v9002_v37, 5 }
 0x390   : > { %v6449_v49 = vsel %vm2209_vm1, %v13970_v40, %v13849_v22  ;;  %v9003_v19 = vpack.c.bf16 %v4908_v63, %v4908_v63  ;;  %vm13971_vm12 = vsmask.f32 6400  ;;  %vm761_vm7 = vcmp.ne.s32.totalorder %v12245_v23, 0 }
 0x391   : > { %6478 = vrot.lane.b32.xlu0 %v6449_v49, %s9598_s26  ;;  %v6171_v31 = vsel %vm13971_vm12, %v12178_v45, %v12294_v1  ;;  %vm793_vm9 = vcmp.lt.s32.totalorder %v12245_v23, 0  ;;  %v12344_v46 = vmul.u32.u64.low 3817748708, %v12304_v47  ;;  %v12345_v52 = vmul.u32.u64.high 3817748708, %v12304_v47, %v12344_v46  ;;  %v7082_v18 = vld [vmem:[#allocation4 + $0x38] sm:$0xf] }
 0x392   : > { %6270 = vrot.lane.b32.xlu1 %v6171_v31, %s9600_s14  ;;  %v12348_v45 = vmul.u32.u64.low 3817748708, %v12307_v12  ;;  %v12349_v14 = vmul.u32.u64.high 3817748708, %v12307_v12, %v12348_v45  ;;  %v5043_v10 = vsel %vm11478_vm10, %v5041_v4, %v5042_v35  ;;  %v5044_v32 = vrot.slane %v5042_v35, 4 }
 0x393   : > { %v12354_v13 = vrot.slane %v9003_v19, 5  ;;  %vm13976_vm8 = vcmask 125952   ;;  %v13977_v63 = vrot.slane %v12128_v44, 1  ;;  %v7083_v49 = vld [vmem:[#allocation4 + $0x3c] sm:$0xf]  ;;  %v12377_v19 = vadd.s32 192, %v11413_v15 }
 0x394   : > { %5127 = vst.msk [vmem:[#allocation4 + $0x40] sm:$0xf] %vm13976_vm8, %v5043_v10  ;;  %v12374_v35 = vld [vmem:[#allocation4 + $0x38] sm:$0xff]   ;;  %v8894_v31 = vcombine.low %v7082_v18, %v7083_v49  ;;  %vm13978_vm6 = vmmov %vm13976_vm8  ;;  %v12382_v44 = vmul.u32 18, %v629_v26  ;;  %v5451_v10 = vshrl.u32 %v12165_v41, 16  ;;  %v12395_v18 = vsel %vm12339_vm4, %v12002_v58, %v11929_v9 }
 0x395   : > { %v5715_v40 = vsel %vm1468_vm0, %v13977_v63, %v13848_v48  ;;  %v5046_v4 = vsel %vm11478_vm10, %v5044_v32, %v12354_v13  ;;  %v12380_v46 = vld [vmem:[#allocation4 + $0x38] sm:$0xff]   ;;  %v13852_v45 = vrot.slane %v12374_v35, 2  ;;  %v13979_v26 = vrot.slane %v12154_v24, 2  ;;  %vm12425_vm4 = vmand %vm792_vm13, %vm760_vm3 }
 0x396   : > { %5744 = vrot.lane.b32.xlu0 %v5715_v40, %s9594_s23  ;;  %5128 = vst.msk [vmem:[#allocation4 + $0x44] sm:$0xf] %vm13978_vm6, %v5046_v4  ;;  %v12386_v63 = vld [vmem:[#allocation4 + $0x38] sm:$0xff]   ;;  %v12388_v40 = vrot.slane %v8894_v31, 3  ;;  %v5455_v48 = vshll.u32 %v12380_v46, 16  ;;  %v5453_v33 = vor.u32 %v5451_v10, %v12213_v11  ;;  %v12413_v9 = vsel %vm12360_vm15, %v12017_v51, %v11969_v36  ;;  %vm12439_vm15 = vmand %vm793_vm9, %vm761_vm7 }
 0x397   : > { %v9460_v32 = vld [vmem:[#allocation4 + $0x38] sm:$0xff]   ;;  %v6657_v49 = vsel %vm2209_vm1, %v13979_v26, %v13852_v45  ;;  %v13856_v41 = vrot.slane %v12386_v63, 1  ;;  %vm13980_vm14 = vcmask 1044480   ;;  %vm4828_vm12 = vcmp.lt.s32.totalorder %v12395_v18, 12 }
 0x398   : > { %v6904_v4 = vshrl.u32 %v9460_v32, 16  ;;  %v6907_v22 = vshll.u32 %v9460_v32, 16  ;;  %v12403_v31 = vld [vmem:[#allocation4 + $0x38] sm:$0xff]   ;;  %6686 = vrot.lane.b32.xlu1 %v6657_v49, %s9596_s21  ;;  %v12407_v60 = vrot.slane %v5455_v48, 1  ;;  %v7198_v24 = vsel %vm13980_vm14, %v12173_v27, %v12388_v40  ;;  %vm13989_vm8 = vmmov %vm13980_vm14 }
 0x399   : > { %v9462_v58 = vld [vmem:[#allocation4 + $0x38] sm:$0xff]   ;;  %v12430_v36 = vadd.s32 200, %v11413_v15  ;;  %7241 = vst.msk [vmem:[#allocation2 + $0x48] sm:$0xff] %vm3336_vm11, %v7198_v24  ;;  %v13985_v10 = vrot.slane %v12215_v54, 1  ;;  %vm4829_vm3 = vcmp.lt.s32.totalorder %v12413_v9, 12  ;;  %v12460_v54 = vsel %vm12425_vm4, %v12265_v6, %v12231_v8 }
 0x39a   : > { %v6906_v32 = vrot.slane %v6904_v4, 2  ;;  %v6909_v26 = vrot.slane %v6907_v22, 3  ;;  %v12419_v49 = vld [vmem:[#allocation4 + $0x38] sm:$0xff]   ;;  %v5458_v51 = vsel %vm1162_vm2, %v5453_v33, %v12407_v60  ;;  %v6173_v27 = vshrl.u32 %v9462_v58, 16 }
 0x39b   : > { %v7084_v16 = vld [vmem:[#allocation4 + $0x40] sm:$0xf]  ;;  %v6176_v22 = vshll.u32 %v9462_v58, 16  ;;  %5538 = vrot.lane.b32.xlu0 %v5458_v51, %s9591_s20  ;;  %v5923_v4 = vsel %vm1468_vm0, %v13985_v10, %v13856_v41  ;;  %v13855_v58 = vrot.slane %v12403_v31, 2  ;;  %vm13986_vm13 = vsmask.f32 5376 }
 0x39c   : > { %v12449_v33 = vor.u32 %v6909_v26, %v6906_v32  ;;  %5952 = vrot.lane.b32.xlu1 %v5923_v4, %s9597_s22  ;;  %v6175_v50 = vrot.slane %v6173_v27, 1  ;;  %v640_v32 = vshrl.u32 %v12345_v52, 4  ;;  %v12481_v8 = vsel %vm12439_vm15, %v12297_v25, %v12245_v23  ;;  %v4733_v52 = vpop.f32.mrb[28].mxu1 }
 0x39d   : > { %v7085_v37 = vld [vmem:[#allocation4 + $0x44] sm:$0xf]  ;;  %v6178_v61 = vrot.slane %v6176_v22, 2  ;;  %v12466_v26 = vmul.u32.u64.low 3817748708, %v12377_v19  ;;  %v12467_v10 = vmul.u32.u64.high 3817748708, %v12377_v19, %v12466_v26  ;;  %v4734_v48 = vadd.f32 %v12198_v62, %v4733_v52  ;;  %v4735_v23 = vpop.f32.mrb[29].mxu1 }
 0x39e   : > { %v12453_v24 = vld [vmem:[#allocation4 + $0x40] sm:$0xff]   ;;  %v8895_v45 = vcombine.low %v7084_v16, %v7085_v37  ;;  %v6911_v27 = vsel %vm13986_vm13, %v12259_v3, %v12449_v33  ;;  %v5716_v3 = vrot.slane %v12419_v49, 1  ;;  %v12496_v26 = vsub.s32 %v12013_v39, %v12315_v5 }
 0x39f   : > { %v12462_v51 = vld [vmem:[#allocation4 + $0x40] sm:$0xff]   ;;  %v12475_v22 = vor.u32 %v6178_v61, %v6175_v50  ;;  %7015 = vrot.lane.b32.xlu0 %v6911_v27, %s9599_s10  ;;  %v6658_v61 = vrot.slane %v12453_v24, 2  ;;  %vm13988_vm7 = vsmask.f32 6400  ;;  %vm4830_vm9 = vcmp.lt.s32.totalorder %v12460_v54, 12 }
 0x3a0   : > { %v12470_v16 = vrot.slane %v8895_v45, 3  ;;  %v9468_v6 = vld [vmem:[#allocation4 + $0x40] sm:$0xff]   ;;  %v13987_v45 = vrot.slane %v12239_v20, 2  ;;  %v5463_v50 = vshll.u32 %v12462_v51, 16  ;;  %v4736_v20 = vpop.f32.mrb[30].mxu1  ;;  %vm4831_vm6 = vcmp.lt.s32.totalorder %v12481_v8, 12 }
 0x3a1   : > { %v6913_v25 = vshrl.u32 %v9468_v6, 16  ;;  %v6916_v37 = vshll.u32 %v9468_v6, 16  ;;  %v9471_v4 = vld [vmem:[#allocation4 + $0x40] sm:$0xff]   ;;  %v6180_v27 = vsel %vm13988_vm7, %v12294_v1, %v12475_v22  ;;  %v4737_v39 = vadd.f32 %v12198_v62, %v4736_v20  ;;  %v4738_v5 = vpop.f32.mrb[31].mxu1 }
 0x3a2   : > { %v6451_v11 = vsel %vm2209_vm1, %v13987_v45, %v13855_v58  ;;  %v5459_v45 = vshrl.u32 %v12380_v46, 16  ;;  %v12503_v52 = vrot.slane %v5463_v50, 1  ;;  %v12505_v23 = vld [vmem:[#allocation4 + $0x40] sm:$0xff]   ;;  %v7200_v6 = vsel %vm13989_vm8, %v12388_v40, %v12470_v16 }
 0x3a3   : > { %6480 = vrot.lane.b32.xlu1 %v6451_v11, %s9598_s26  ;;  %v4801_v11 = vmax.f32 %v4734_v48, 0.0  ;;  %v6915_v58 = vrot.slane %v6913_v25, 2  ;;  %v6918_v41 = vrot.slane %v6916_v37, 3  ;;  %7242 = vst.msk [vmem:[#allocation2 + $0x58] sm:$0xff] %vm3336_vm11, %v7200_v6  ;;  %6272 = vrot.lane.b32.xlu0 %v6180_v27, %s9600_s14  ;;  %v13990_v1 = vrot.slane %v12286_v38, 1 }
 0x3a4   : > { %v6182_v50 = vshrl.u32 %v9471_v4, 16  ;;  %v6185_v40 = vshll.u32 %v9471_v4, 16  ;;  %v12521_v48 = vsub.s32 %v12131_v55, %v12382_v44  ;;  %v4802_v37 = vmax.f32 %v4737_v39, 0.0  ;;  %v9538_v44 = vld [vmem:[#allocation4 + $0x38] sm:$0xff]  }
 0x3a5   : > { %v5717_v46 = vsel %vm1468_vm0, %v13990_v1, %v5716_v3  ;;  %v4909_v25 = vsel %vm4828_vm12, %v4801_v11, 0.0  ;;  %vm762_vm14 = vcmp.ne.s32.totalorder %v12269_v43, 0  ;;  %vm794_vm4 = vcmp.lt.s32.totalorder %v12269_v43, 0  ;;  %5278 = vst.msk [vmem:[#allocation2 + $0x70] sm:$0xff] %vm3336_vm11, %v9538_v44 }
 0x3a6   : > { %v641_v38 = vmul.u32 18, %v640_v32  ;;  %v651_v20 = vshrl.u32 %v12349_v14, 4  ;;  %v5047_v27 = vrot.slane %v12354_v13, 4  ;;  %v9004_v4 = vpack.c.bf16 %v4909_v25, %v4909_v25  ;;  %v12539_v32 = vld [vmem:[#allocation4 + $0x40] sm:$0xff]  }
 0x3a7   : > { %5746 = vrot.lane.b32.xlu1 %v5717_v46, %s9594_s23  ;;  %v5461_v6 = vor.u32 %v5459_v45, %v12407_v60  ;;  %v5924_v55 = vrot.slane %v12505_v23, 1  ;;  %v4910_v11 = vsel %vm4829_vm3, %v4802_v37, 0.0  ;;  %v13991_v39 = vrot.slane %v12374_v35, 2  ;;  %v4741_v45 = vpop.f32.mrb[32].mxu1 }
 0x3a8   : > { %v6184_v14 = vrot.slane %v6182_v50, 1  ;;  %v6187_v1 = vrot.slane %v6185_v40, 2  ;;  %vm763_vm12 = vcmp.ne.s32.totalorder %v12272_v56, 0  ;;  %vm795_vm15 = vcmp.lt.s32.totalorder %v12272_v56, 0  ;;  %v4743_v50 = vpop.f32.mrb[33].mxu1 }
 0x3a9   : > { %v6659_v5 = vsel %vm2209_vm1, %v13991_v39, %v6658_v61  ;;  %v5048_v60 = vrot.slane %v9004_v4, 5  ;;  %v9005_v13 = vpack.c.bf16 %v4910_v11, %v4910_v11  ;;  %v5466_v46 = vsel %vm1162_vm2, %v5461_v6, %v12503_v52  ;;  %v9545_v11 = vld [vmem:[#allocation4 + $0x40] sm:$0xff]  }
 0x3aa   : > { %6688 = vrot.lane.b32.xlu0 %v6659_v5, %s9596_s21  ;;  %v12546_v25 = vor.u32 %v6918_v41, %v6915_v58  ;;  %v4742_v35 = vadd.f32 %v12198_v62, %v4741_v45  ;;  %v652_v40 = vmul.u32 18, %v651_v20  ;;  %v4744_v41 = vpop.f32.mrb[34].mxu1  ;;  %v12558_v58 = vadd.s32 208, %v11413_v15  ;;  %5279 = vst.msk [vmem:[#allocation2 + $0x80] sm:$0xff] %vm3336_vm11, %v9545_v11 }
 0x3ab   : > { %5540 = vrot.lane.b32.xlu1 %v5466_v46, %s9591_s20  ;;  %v12552_v37 = vmul.u32.u64.low 3817748708, %v12430_v36  ;;  %v12553_v4 = vmul.u32.u64.high 3817748708, %v12430_v36, %v12552_v37  ;;  %v5049_v39 = vsel %vm11478_vm10, %v5047_v27, %v5048_v60  ;;  %v5050_v5 = vrot.slane %v5048_v60, 4  ;;  %v4746_v20 = vpop.f32.mrb[35].mxu1  ;;  %v12568_v60 = vld [vmem:[#allocation4 + $0x40] sm:$0xff]  }
 0x3ac   : > { %v5051_v6 = vrot.slane %v9005_v13, 5  ;;  %vm13992_vm3 = vcmask 125952   ;;  %v4803_v44 = vmax.f32 %v4742_v35, 0.0  ;;  %v4745_v45 = vadd.f32 %v12198_v62, %v4744_v41 }
 0x3ad   : > { %5129 = vst.msk [vmem:[#allocation4 + $0x48] sm:$0xf] %vm13992_vm3, %v5049_v39  ;;  %v13993_v46 = vrot.slane %v12386_v63, 1  ;;  %v13859_v27 = vrot.slane %v12539_v32, 2  ;;  %v6920_v35 = vsel %vm13986_vm13, %v12449_v33, %v12546_v25  ;;  %v12577_v37 = vor.u32 %v6187_v1, %v6184_v14  ;;  %vm13994_vm7 = vmmov %vm13992_vm3 }
 0x3ae   : > { %v5052_v13 = vsel %vm11478_vm10, %v5050_v5, %v5051_v6  ;;  %v12580_v63 = vsub.s32 %v12304_v47, %v641_v38  ;;  %v4911_v39 = vsel %vm4830_vm9, %v4803_v44, 0.0  ;;  %v4804_v11 = vmax.f32 %v4745_v45, 0.0  ;;  %v5943_v47 = vpop.permute.xlu0 %5942  ;;  %vm12619_vm13 = vmand %vm794_vm4, %vm762_vm14 }
 0x3af   : > { %v5925_v50 = vsel %vm1468_vm0, %v13993_v46, %v5924_v55  ;;  %5130 = vst.msk [vmem:[#allocation4 + $0x4c] sm:$0xf] %vm13994_vm7, %v5052_v13  ;;  %7017 = vrot.lane.b32.xlu1 %v6920_v35, %s9599_s10  ;;  %vm764_vm8 = vcmp.ne.s32.totalorder %v12496_v26, 0  ;;  %vm796_vm3 = vcmp.lt.s32.totalorder %v12496_v26, 0  ;;  %v12589_v5 = vsub.s32 %v12307_v12, %v652_v40  ;;  %vm827_vm14 = vmand %vm795_vm15, %vm763_vm12 }
 0x3b0   : > { %5954 = vrot.lane.b32.xlu0 %v5925_v50, %s9597_s22  ;;  %v662_v33 = vshrl.u32 %v12467_v10, 4  ;;  %v9006_v14 = vpack.c.bf16 %v4911_v39, %v4911_v39  ;;  %v12593_v38 = vadd.s32 18, %v12496_v26  ;;  %v4912_v44 = vsel %vm4831_vm6, %v4804_v11, 0.0 }
 0x3b1   : > { %v12596_v1 = vmul.u32.u64.low 3817748708, %v12558_v58  ;;  %v12597_v41 = vmul.u32.u64.high 3817748708, %v12558_v58, %v12596_v1  ;;  %vm13995_vm9 = vcmask 523648   ;;  %v13996_v12 = vrot.slane %v12403_v31, 2 }
 0x3b2   : > { %5990 = vst.msk [vmem:[#allocation2] sm:$0xff] %vm13995_vm9, %v5943_v47  ;;  %v13858_v40 = vrot.slane %v12568_v60, 1  ;;  %v12609_v45 = vadd.s32 18, %v12521_v48  ;;  %v5053_v20 = vrot.slane %v5051_v6, 4  ;;  %v5054_v46 = vrot.slane %v9006_v14, 5  ;;  %v5529_v6 = vpop.permute.xlu1 %5528 }
 0x3b3   : > { %v6453_v10 = vsel %vm2209_vm1, %v13996_v12, %v13859_v27  ;;  %v9007_v50 = vpack.c.bf16 %v4912_v44, %v4912_v44  ;;  %vm13997_vm6 = vsmask.f32 6400  ;;  %vm765_vm7 = vcmp.ne.s32.totalorder %v12521_v48, 0  ;;  %5575 = vst.msk [vmem:[#allocation2 + $0x10] sm:$0xff] %vm3549_vm5, %v5529_v6  ;;  %v6471_v12 = vpop.permute.xlu0 %6470 }
 0x3b4   : > { %6482 = vrot.lane.b32.xlu0 %v6453_v10, %s9598_s26  ;;  %v6189_v13 = vsel %vm13997_vm6, %v12475_v22, %v12577_v37  ;;  %vm797_vm9 = vcmp.lt.s32.totalorder %v12521_v48, 0  ;;  %v12627_v35 = vadd.s32 18, %v12580_v63  ;;  %v12630_v22 = vadd.s32 18, %v12589_v5  ;;  %v7086_v14 = vld [vmem:[#allocation4 + $0x48] sm:$0xf] }
 0x3b5   : > { %6274 = vrot.lane.b32.xlu1 %v6189_v13, %s9600_s14  ;;  %v12632_v39 = vmul.u32 18, %v662_v33  ;;  %v673_v11 = vshrl.u32 %v12553_v4, 4  ;;  %v5055_v47 = vsel %vm11478_vm10, %v5053_v20, %v5054_v46  ;;  %v5056_v1 = vrot.slane %v5054_v46, 4 }
 0x3b6   : > { %v12637_v44 = vrot.slane %v9007_v50, 5  ;;  %vm14000_vm4 = vcmask 125952   ;;  %v5719_v4 = vsel %vm1468_vm0, %v5716_v3, %v13858_v40  ;;  %v12654_v33 = vsel %vm12619_vm13, %v12310_v34, %v12269_v43  ;;  %v7087_v10 = vld [vmem:[#allocation4 + $0x4c] sm:$0xf]  ;;  %v6263_v3 = vpop.permute.xlu1 %6262 }
 0x3b7   : > { %5131 = vst.msk [vmem:[#allocation4 + $0x50] sm:$0xf] %vm14000_vm4, %v5055_v47  ;;  %v12660_v46 = vld [vmem:[#allocation4 + $0x48] sm:$0xff]   ;;  %v5467_v50 = vshrl.u32 %v12462_v51, 16  ;;  %v8896_v49 = vcombine.low %v7086_v14, %v7087_v10  ;;  %vm14001_vm12 = vmmov %vm14000_vm4  ;;  %v12668_v43 = vsel %vm827_vm14, %v12313_v30, %v12272_v56  ;;  %v12670_v34 = vmul.u32 18, %v673_v11  ;;  %v5737_v31 = vpop.permute.xlu0 %5736 }
 0x3b8   : > { %v5058_v20 = vsel %vm11478_vm10, %v5056_v1, %v12637_v44  ;;  %5748 = vrot.lane.b32.xlu0 %v5719_v4, %s9594_s23  ;;  %v12664_v13 = vld [vmem:[#allocation4 + $0x48] sm:$0xff]   ;;  %vm14002_vm15 = vcmask 654848   ;;  %v13857_v6 = vrot.slane %v12660_v46, 2  ;;  %vm4832_vm6 = vcmp.lt.s32.totalorder %v12654_v33, 12 }
 0x3b9   : > { %5132 = vst.msk [vmem:[#allocation4 + $0x54] sm:$0xf] %vm14001_vm12, %v5058_v20  ;;  %v12675_v51 = vld [vmem:[#allocation4 + $0x48] sm:$0xff]   ;;  %v684_v47 = vshrl.u32 %v12597_v41, 4  ;;  %v12678_v1 = vrot.slane %v8896_v49, 3  ;;  %vm14003_vm13 = vcmask 786048   ;;  %vm12696_vm12 = vmand %vm796_vm3, %vm764_vm8  ;;  %v5469_v24 = vor.u32 %v5467_v50, %v12503_v52 }
 0x3ba   : > { %6310 = vst.msk [vmem:[#allocation2] sm:$0xff] %vm14002_vm15, %v6263_v3  ;;  %v9479_v14 = vld [vmem:[#allocation4 + $0x48] sm:$0xff]   ;;  %vm14004_vm14 = vcmask 392448   ;;  %v5471_v56 = vshll.u32 %v12664_v13, 16  ;;  %v6661_v30 = vsel %vm2209_vm1, %v6658_v61, %v13857_v6  ;;  %vm4833_vm4 = vcmp.lt.s32.totalorder %v12668_v43, 12  ;;  %vm12719_vm8 = vmand %vm797_vm9, %vm765_vm7 }
 0x3bb   : > { %6518 = vst.msk [vmem:[#allocation2] sm:$0xff] %vm14003_vm13, %v6471_v12  ;;  %v13860_v11 = vrot.slane %v12675_v51, 1  ;;  %v6922_v4 = vshrl.u32 %v9479_v14, 16  ;;  %v6925_v41 = vshll.u32 %v9479_v14, 16  ;;  %v12690_v10 = vld [vmem:[#allocation4 + $0x48] sm:$0xff]   ;;  %6690 = vrot.lane.b32.xlu1 %v6661_v30, %s9596_s21  ;;  %vm766_vm15 = vcmp.ne.s32.totalorder %v12580_v63, 0 }
 0x3bc   : > { %5783 = vst.msk [vmem:[#allocation2 + $0x10] sm:$0xff] %vm14004_vm14, %v5737_v31  ;;  %v12702_v61 = vrot.slane %v5471_v56, 1  ;;  %v9482_v20 = vld [vmem:[#allocation4 + $0x48] sm:$0xff]   ;;  %vm798_vm13 = vcmp.lt.s32.totalorder %v12580_v63, 0  ;;  %vm14007_vm14 = vcmask 1044480   ;;  %v12710_v40 = vmul.u32 18, %v684_v47 }
 0x3bd   : > { %v7202_v49 = vsel %vm14007_vm14, %v12470_v16, %v12678_v1  ;;  %v6924_v31 = vrot.slane %v6922_v4, 2  ;;  %v6927_v14 = vrot.slane %v6925_v41, 3  ;;  %v6191_v50 = vshrl.u32 %v9482_v20, 16  ;;  %v4749_v30 = vpop.f32.mrb[36].mxu1 }
 0x3be   : > { %v7088_v3 = vld [vmem:[#allocation4 + $0x50] sm:$0xf]  ;;  %7243 = vst.msk [vmem:[#allocation2 + $0x68] sm:$0xff] %vm3336_vm11, %v7202_v49  ;;  %v5474_v52 = vsel %vm1162_vm2, %v5469_v24, %v12702_v61  ;;  %v6194_v56 = vshll.u32 %v9482_v20, 16  ;;  %vm767_vm3 = vcmp.ne.s32.totalorder %v12589_v5, 0  ;;  %vm799_vm14 = vcmp.lt.s32.totalorder %v12589_v5, 0 }
 0x3bf   : > { %5542 = vrot.lane.b32.xlu0 %v5474_v52, %s9591_s20  ;;  %v5927_v4 = vsel %vm1468_vm0, %v5924_v55, %v13860_v11  ;;  %v12731_v41 = vor.u32 %v6927_v14, %v6924_v31  ;;  %v12733_v24 = vld [vmem:[#allocation4 + $0x48] sm:$0xff]   ;;  %v12739_v20 = vsel %vm12696_vm12, %v12593_v38, %v12496_v26  ;;  %v4750_v27 = vadd.f32 %v12198_v62, %v4749_v30  ;;  %v4751_v52 = vpop.f32.mrb[37].mxu1 }
 0x3c0   : > { %v7089_v47 = vld [vmem:[#allocation4 + $0x54] sm:$0xf]  ;;  %5956 = vrot.lane.b32.xlu1 %v5927_v4, %s9597_s22  ;;  %v6193_v6 = vrot.slane %v6191_v50, 1  ;;  %v6196_v23 = vrot.slane %v6194_v56, 2  ;;  %v5059_v55 = vrot.slane %v12637_v44, 4  ;;  %v4752_v31 = vpop.f32.mrb[38].mxu1  ;;  %v12753_v26 = vsel %vm12719_vm8, %v12609_v45, %v12521_v48 }
 0x3c1   : > { %v8897_v49 = vcombine.low %v7088_v3, %v7089_v47  ;;  %vm14010_vm7 = vsmask.f32 5376  ;;  %v12747_v11 = vld [vmem:[#allocation4 + $0x50] sm:$0xff]   ;;  %v12759_v12 = vsub.s32 %v12377_v19, %v12632_v39  ;;  %v4805_v3 = vmax.f32 %v4750_v27, 0.0 }
 0x3c2   : > { %v6929_v14 = vsel %vm14010_vm7, %v12546_v25, %v12731_v41  ;;  %v12755_v38 = vld [vmem:[#allocation4 + $0x50] sm:$0xff]   ;;  %v4753_v50 = vadd.f32 %v12198_v62, %v4752_v31  ;;  %v4754_v25 = vpop.f32.mrb[39].mxu1  ;;  %v12764_v56 = vor.u32 %v6196_v23, %v6193_v6  ;;  %v14011_v48 = vrot.slane %v12690_v10, 2 }
 0x3c3   : > { %v12761_v44 = vrot.slane %v8897_v49, 3  ;;  %v9490_v47 = vld [vmem:[#allocation4 + $0x50] sm:$0xff]   ;;  %7019 = vrot.lane.b32.xlu0 %v6929_v14, %s9599_s10  ;;  %v14012_v45 = vrot.slane %v12539_v32, 2  ;;  %v5720_v19 = vrot.slane %v12733_v24, 1  ;;  %v5475_v39 = vshrl.u32 %v12664_v13, 16 }
 0x3c4   : > { %v5479_v27 = vshll.u32 %v12755_v38, 16  ;;  %v12775_v30 = vld [vmem:[#allocation4 + $0x50] sm:$0xff]   ;;  %v4913_v6 = vsel %vm4832_vm6, %v4805_v3, 0.0  ;;  %v4806_v4 = vmax.f32 %v4753_v50, 0.0  ;;  %vm4834_vm9 = vcmp.lt.s32.totalorder %v12739_v20, 12 }
 0x3c5   : > { %v6455_v16 = vsel %vm2209_vm1, %v14012_v45, %v14011_v48  ;;  %vm14013_vm12 = vcmask 1044480   ;;  %v9008_v49 = vpack.c.bf16 %v4913_v6, %v4913_v6  ;;  %vm14014_vm8 = vsmask.f32 6400  ;;  %v9493_v23 = vld [vmem:[#allocation4 + $0x50] sm:$0xff]  }
 0x3c6   : > { %6484 = vrot.lane.b32.xlu1 %v6455_v16, %s9598_s26  ;;  %v7204_v32 = vsel %vm14013_vm12, %v12678_v1, %v12761_v44  ;;  %v6198_v13 = vsel %vm14014_vm8, %v12577_v37, %v12764_v56  ;;  %v6662_v52 = vrot.slane %v12747_v11, 2  ;;  %vm768_vm7 = vcmp.ne.s32.totalorder %v12759_v12, 0 }
 0x3c7   : > { %v12791_v31 = vsub.s32 %v12430_v36, %v12670_v34  ;;  %7244 = vst.msk [vmem:[#allocation2 + $0x78] sm:$0xff] %vm3336_vm11, %v7204_v32  ;;  %v4914_v14 = vsel %vm4833_vm4, %v4806_v4, 0.0  ;;  %vm4835_vm6 = vcmp.lt.s32.totalorder %v12753_v26, 12  ;;  %v12797_v1 = vrot.slane %v5479_v27, 1  ;;  %6276 = vrot.lane.b32.xlu0 %v6198_v13, %s9600_s14  ;;  %vm12809_vm4 = vmand %vm798_vm13, %vm766_vm15  ;;  %v6679_v13 = vpop.permute.xlu1 %6678 }
 0x3c8   : > { %v6931_v3 = vshrl.u32 %v9490_v47, 16  ;;  %v6934_v37 = vshll.u32 %v9490_v47, 16  ;;  %v5060_v50 = vrot.slane %v9008_v49, 5  ;;  %v9009_v25 = vpack.c.bf16 %v4914_v14, %v4914_v14  ;;  %vm12824_vm15 = vmand %vm799_vm14, %vm767_vm3 }
 0x3c9   : > { %v14015_v36 = vrot.slane %v12568_v60, 1  ;;  %v6200_v45 = vshrl.u32 %v9493_v23, 16  ;;  %v5477_v47 = vor.u32 %v5475_v39, %v12702_v61  ;;  %v6203_v6 = vshll.u32 %v9493_v23, 16  ;;  %v4757_v61 = vpop.f32.mrb[40].mxu1 }
 0x3ca   : > { %v6933_v16 = vrot.slane %v6931_v3, 2  ;;  %v6936_v27 = vrot.slane %v6934_v37, 3  ;;  %v5061_v60 = vsel %vm11478_vm10, %v5059_v55, %v5060_v50  ;;  %v5062_v4 = vrot.slane %v5060_v50, 4  ;;  %v12842_v3 = vld [vmem:[#allocation4 + $0x50] sm:$0xff]  }
 0x3cb   : > { %v5721_v34 = vsel %vm1468_vm0, %v14015_v36, %v5720_v19  ;;  %v12817_v32 = vrot.slane %v9009_v25, 5  ;;  %v5928_v49 = vrot.slane %v12775_v30, 1  ;;  %vm14020_vm13 = vcmask 125952   ;;  %v12844_v50 = vld [vmem:[#allocation4 + $0x50] sm:$0xff]   ;;  %v4759_v36 = vpop.f32.mrb[41].mxu1 }
 0x3cc   : > { %5750 = vrot.lane.b32.xlu1 %v5721_v34, %s9594_s23  ;;  %5133 = vst.msk [vmem:[#allocation4 + $0x58] sm:$0xf] %vm14020_vm13, %v5061_v60  ;;  %v14021_v55 = vrot.slane %v12660_v46, 2  ;;  %v5482_v23 = vsel %vm1162_vm2, %v5477_v47, %v12797_v1  ;;  %v12840_v14 = vsel %vm12809_vm4, %v12627_v35, %v12580_v63  ;;  %v6202_v37 = vrot.slane %v6200_v45, 1  ;;  %vm14022_vm3 = vmmov %vm14020_vm13  ;;  %v4760_v63 = vpop.f32.mrb[42].mxu1  ;;  %v9547_v45 = vld [vmem:[#allocation4 + $0x48] sm:$0xff]  }
 0x3cd   : > { %v5064_v46 = vsel %vm11478_vm10, %v5062_v4, %v12817_v32  ;;  %v4758_v25 = vadd.f32 %v12198_v62, %v4757_v61  ;;  %v12851_v34 = vor.u32 %v6936_v27, %v6933_v16  ;;  %v6205_v47 = vrot.slane %v6203_v6, 2  ;;  %v4762_v27 = vpop.f32.mrb[43].mxu1  ;;  %v9548_v4 = vld [vmem:[#allocation4 + $0x50] sm:$0xff]   ;;  %5280 = vst.msk [vmem:[#allocation2 + $0x90] sm:$0xff] %vm3336_vm11, %v9547_v45 }
 0x3ce   : > { %v6663_v39 = vsel %vm2209_vm1, %v14021_v55, %v6662_v52  ;;  %5134 = vst.msk [vmem:[#allocation4 + $0x5c] sm:$0xf] %vm14022_vm3, %v5064_v46  ;;  %v12859_v35 = vsel %vm12824_vm15, %v12630_v22, %v12589_v5  ;;  %vm800_vm14 = vcmp.lt.s32.totalorder %v12759_v12, 0  ;;  %v864_v48 = vadd.s32 18, %v12759_v12 }
 0x3cf   : > { %6692 = vrot.lane.b32.xlu0 %v6663_v39, %s9596_s21  ;;  %v4807_v60 = vmax.f32 %v4758_v25, 0.0  ;;  %v4761_v16 = vadd.f32 %v12198_v62, %v4760_v63  ;;  %vm769_vm12 = vcmp.ne.s32.totalorder %v12791_v31, 0  ;;  %v12867_v6 = vsub.s32 %v12558_v58, %v12710_v40  ;;  %5281 = vst.msk [vmem:[#allocation2 + $0xa0] sm:$0xff] %vm3336_vm11, %v9548_v4  ;;  %v4765_v4 = vpop.f32.mrb[44].mxu1 }
 0x3d0   : > { %5544 = vrot.lane.b32.xlu1 %v5482_v23, %s9591_s20  ;;  %v14023_v5 = vrot.slane %v12675_v51, 1  ;;  %vm4836_vm8 = vcmp.lt.s32.totalorder %v12840_v14, 12  ;;  %v6456_v61 = vrot.slane %v12842_v3, 2  ;;  %v5722_v62 = vrot.slane %v12844_v50, 1 }
 0x3d1   : > { %vm801_vm4 = vcmp.lt.s32.totalorder %v12791_v31, 0  ;;  %v4915_v58 = vsel %vm4834_vm9, %v4807_v60, 0.0  ;;  %v4808_v40 = vmax.f32 %v4761_v16, 0.0  ;;  %vm14024_vm15 = vcmask 917248   ;;  %vm12897_vm9 = vmand %vm800_vm14, %vm768_vm7  ;;  %v5945_v60 = vpop.permute.xlu1 %5944 }
 0x3d2   : > { %v5929_v22 = vsel %vm1468_vm0, %v14023_v5, %v5928_v49  ;;  %6726 = vst.msk [vmem:[#allocation2] sm:$0xff] %vm14024_vm15, %v6679_v13  ;;  %vm14025_vm13 = vsmask.f32 5376  ;;  %vm4837_vm3 = vcmp.lt.s32.totalorder %v12859_v35, 12  ;;  %v12887_v55 = vor.u32 %v6205_v47, %v6202_v37  ;;  %vm12915_vm7 = vmand %vm801_vm4, %vm769_vm12 }
 0x3d3   : > { %5958 = vrot.lane.b32.xlu0 %v5929_v22, %s9597_s22  ;;  %v6938_v51 = vsel %vm14025_vm13, %v12731_v41, %v12851_v34  ;;  %v5065_v39 = vrot.slane %v12817_v32, 4  ;;  %v9010_v23 = vpack.c.bf16 %v4915_v58, %v4915_v58  ;;  %v5483_v46 = vshrl.u32 %v12755_v38, 16  ;;  %v7090_v37 = vld [vmem:[#allocation4 + $0x58] sm:$0xf]  ;;  %v5531_v32 = vpop.permute.xlu0 %5530 }
 0x3d4   : > { %7021 = vrot.lane.b32.xlu1 %v6938_v51, %s9599_s10  ;;  %v865_v41 = vadd.s32 18, %v12791_v31  ;;  %v4916_v36 = vsel %vm4835_vm6, %v4808_v40, 0.0  ;;  %vm770_vm15 = vcmp.ne.s32.totalorder %v12867_v6, 0  ;;  %5576 = vst.msk [vmem:[#allocation2 + $0x20] sm:$0xff] %vm3549_vm5, %v5531_v32  ;;  %v14028_v38 = vrot.slane %v12690_v10, 2 }
 0x3d5   : > { %v5066_v47 = vrot.slane %v9010_v23, 5  ;;  %v9011_v63 = vpack.c.bf16 %v4916_v36, %v4916_v36  ;;  %vm802_vm6 = vcmp.lt.s32.totalorder %v12867_v6, 0  ;;  %v7091_v27 = vld [vmem:[#allocation4 + $0x5c] sm:$0xf]  ;;  %vm14031_vm14 = vcmask 523648   ;;  %v4767_v23 = vpop.f32.mrb[45].mxu1 }
 0x3d6   : > { %v6457_v45 = vsel %vm2209_vm1, %v14028_v38, %v6456_v61  ;;  %5991 = vst.msk [vmem:[#allocation2 + $0x10] sm:$0xff] %vm14031_vm14, %v5945_v60  ;;  %vm14032_vm13 = vsmask.f32 6400  ;;  %v12925_v5 = vld [vmem:[#allocation4 + $0x58] sm:$0xff]   ;;  %v12930_v22 = vsel %vm12897_vm9, %v864_v48, %v12759_v12  ;;  %v8898_v13 = vcombine.low %v7090_v37, %v7091_v27  ;;  %v4768_v48 = vpop.f32.mrb[46].mxu1  ;;  %v6473_v60 = vpop.permute.xlu1 %6472 }
 0x3d7   : > { %6486 = vrot.lane.b32.xlu0 %v6457_v45, %s9598_s26  ;;  %v6207_v10 = vsel %vm14032_vm13, %v12764_v56, %v12887_v55  ;;  %v5067_v58 = vsel %vm11478_vm10, %v5065_v39, %v5066_v47  ;;  %v5068_v40 = vrot.slane %v5066_v47, 4  ;;  %v12934_v51 = vrot.slane %v9011_v63, 5  ;;  %v12937_v36 = vld [vmem:[#allocation4 + $0x58] sm:$0xff]   ;;  %v12943_v56 = vld [vmem:[%s13810_s4] ss:$0 sm:$0xff]  ;;  %v7008_v25 = vpop.permute.xlu0 %7007 }
 0x3d8   : > { %6278 = vrot.lane.b32.xlu1 %v6207_v10, %s9600_s14  ;;  %vm14033_vm12 = vcmask 125952   ;;  %v4766_v12 = vadd.f32 %v12943_v56, %v4765_v4  ;;  %v5723_v39 = vsel %vm1468_vm0, %v5720_v19, %v5722_v62  ;;  %v13861_v37 = vrot.slane %v12925_v5, 2  ;;  %v12952_v32 = vld [vmem:[#allocation4 + $0x58] sm:$0xff]   ;;  %v4770_v19 = vpop.f32.mrb[47].mxu1 }
 0x3d9   : > { %5135 = vst.msk [vmem:[#allocation4 + $0x60] sm:$0xf] %vm14033_vm12, %v5067_v58  ;;  %v9500_v47 = vld [vmem:[#allocation4 + $0x58] sm:$0xff]   ;;  %v12957_v63 = vsel %vm12915_vm7, %v865_v41, %v12791_v31  ;;  %v12959_v38 = vrot.slane %v8898_v13, 3  ;;  %v5070_v45 = vsel %vm11478_vm10, %v5068_v40, %v12934_v51  ;;  %v4769_v24 = vadd.f32 %v12943_v56, %v4768_v48  ;;  %vm14035_vm9 = vmmov %vm14033_vm12 }
 0x3da   : > { %vm14034_vm4 = vcmask 1048448   ;;  %v12966_v27 = vld [vmem:[#allocation4 + $0x58] sm:$0xff]   ;;  %v866_v4 = vadd.s32 18, %v12867_v6  ;;  %5136 = vst.msk [vmem:[#allocation4 + $0x64] sm:$0xf] %vm14035_vm9, %v5070_v45  ;;  %v4809_v31 = vmax.f32 %v4766_v12, 0.0  ;;  %v6665_v41 = vsel %vm2209_vm1, %v6662_v52, %v13861_v37  ;;  %vm12999_vm12 = vmand %vm802_vm6, %vm770_vm15 }
 0x3db   : > { %7055 = vst.msk [vmem:[#allocation2] sm:$0xff] %vm14034_vm4, %v7008_v25  ;;  %5752 = vrot.lane.b32.xlu0 %v5723_v39, %s9594_s23  ;;  %v5487_v16 = vshll.u32 %v12937_v36, 16  ;;  %v5930_v10 = vrot.slane %v12952_v32, 1  ;;  %v9503_v13 = vld [vmem:[#allocation4 + $0x58] sm:$0xff]   ;;  %v4810_v58 = vmax.f32 %v4769_v24, 0.0  ;;  %vm4838_vm7 = vcmp.lt.s32.totalorder %v12930_v22, 12  ;;  %v6265_v11 = vpop.permute.xlu0 %6264  ;;  %vm14043_vm6 = vmmov %vm14035_vm9 }
 0x3dc   : > { %6694 = vrot.lane.b32.xlu1 %v6665_v41, %s9596_s21  ;;  %v6940_v40 = vshrl.u32 %v9500_v47, 16  ;;  %v6943_v23 = vshll.u32 %v9500_v47, 16  ;;  %v6458_v12 = vrot.slane %v12966_v27, 2  ;;  %v4917_v48 = vsel %vm4836_vm8, %v4809_v31, 0.0  ;;  %v5739_v47 = vpop.permute.xlu1 %5738  ;;  %v12993_v31 = vld [vmem:[#allocation4 + $0x58] sm:$0xff]  }
 0x3dd   : > { %v5485_v52 = vor.u32 %v5483_v46, %v12797_v1  ;;  %v12984_v25 = vrot.slane %v5487_v16, 1  ;;  %vm14036_vm14 = vcmask 1044480   ;;  %v9012_v45 = vpack.c.bf16 %v4917_v48, %v4917_v48 }
 0x3de   : > { %v7206_v39 = vsel %vm14036_vm14, %v12761_v44, %v12959_v38  ;;  %v4918_v24 = vsel %vm4837_vm3, %v4810_v58, 0.0  ;;  %vm14037_vm13 = vcmask 654848   ;;  %v6942_v19 = vrot.slane %v6940_v40, 2  ;;  %v9549_v40 = vld [vmem:[#allocation4 + $0x58] sm:$0xff]   ;;  %vm14045_vm14 = vmmov %vm14043_vm6 }
 0x3df   : > { %6311 = vst.msk [vmem:[#allocation2 + $0x10] sm:$0xff] %vm14037_vm13, %v6265_v11  ;;  %v6945_v41 = vrot.slane %v6943_v23, 3  ;;  %vm4839_vm8 = vcmp.lt.s32.totalorder %v12957_v63, 12  ;;  %v9013_v44 = vpack.c.bf16 %v4918_v24, %v4918_v24  ;;  %vm14040_vm3 = vcmask 786048  }
 0x3e0   : > { %7245 = vst.msk [vmem:[#allocation2 + $0x88] sm:$0xff] %vm3336_vm11, %v7206_v39  ;;  %v5490_v46 = vsel %vm1162_vm2, %v5485_v52, %v12984_v25  ;;  %vm14041_vm4 = vcmask 392448   ;;  %v5931_v16 = vsel %vm1468_vm0, %v5928_v49, %v5930_v10  ;;  %v6209_v58 = vshrl.u32 %v9503_v13, 16  ;;  %v7092_v23 = vld [vmem:[#allocation4 + $0x60] sm:$0xf]  ;;  %v7256_v52 = vld [vmem:[#allocation2 + $0x18] sm:$0xff] }
 0x3e1   : > { %6519 = vst.msk [vmem:[#allocation2 + $0x10] sm:$0xff] %vm14040_vm3, %v6473_v60  ;;  %v5071_v48 = vrot.slane %v12934_v51, 4  ;;  %v5072_v11 = vrot.slane %v9012_v45, 5  ;;  %5546 = vrot.lane.b32.xlu0 %v5490_v46, %s9591_s20  ;;  %5960 = vrot.lane.b32.xlu1 %v5931_v16, %s9597_s22  ;;  %v13016_v60 = vor.u32 %v6945_v41, %v6942_v19  ;;  %v6212_v39 = vshll.u32 %v9503_v13, 16  ;;  %v7093_v45 = vld [vmem:[#allocation4 + $0x64] sm:$0xf] }
 0x3e2   : > { %5784 = vst.msk [vmem:[#allocation2 + $0x20] sm:$0xff] %vm14041_vm4, %v5739_v47  ;;  %v13018_v24 = vrot.slane %v9013_v44, 5  ;;  %v6681_v47 = vpop.permute.xlu0 %6680  ;;  %v7253_v30 = vld [vmem:[#allocation2] sm:$0xff]  ;;  %v6211_v37 = vrot.slane %v6209_v58, 1  ;;  %v5724_v49 = vrot.slane %v12993_v31, 1  ;;  %v13024_v51 = vsel %vm12999_vm12, %v866_v4, %v12867_v6  ;;  %v4773_v13 = vpop.f32.mrb[48].mxu1 }
 0x3e3   : > { %5282 = vst.msk [vmem:[#allocation2 + $0xb0] sm:$0xff] %vm3336_vm11, %v9549_v40  ;;  %v5073_v19 = vsel %vm11478_vm10, %v5071_v48, %v5072_v11  ;;  %v5074_v41 = vrot.slane %v5072_v11, 4  ;;  %vm14042_vm15 = vcmask 917248   ;;  %7445 = vmatmul.mubr.bf16.vlgmr.msra.gmra.mrb[32].mxu0 %v7253_v30  ;;  %v5533_v44 = vpop.permute.xlu1 %5532  ;;  %v6459_v1 = vsel %vm2209_vm1, %v6456_v61, %v6458_v12  ;;  %v13035_v4 = vld [vmem:[#allocation4 + $0x60] sm:$0xff]   ;;  %v4775_v58 = vpop.f32.mrb[49].mxu1 }
 0x3e4   : > { %6727 = vst.msk [vmem:[#allocation2 + $0x10] sm:$0xff] %vm14042_vm15, %v6681_v47  ;;  %v6214_v6 = vrot.slane %v6212_v39, 2  ;;  %v8899_v46 = vcombine.low %v7092_v23, %v7093_v45  ;;  %v4774_v16 = vadd.f32 %v12943_v56, %v4773_v13  ;;  %vm14044_vm9 = vsmask.f32 5376  ;;  %8917 = vmatprep.mubr.msk.bf16.mxu0 %vm3336_vm11, %v7256_v52  ;;  %v4776_v48 = vpop.f32.mrb[50].mxu1  ;;  %v13055_v52 = vld [vmem:[#allocation4 + $0x60] sm:$0xff]  }
 0x3e5   : > { %5137 = vst.msk [vmem:[#allocation4 + $0x68] sm:$0xf] %vm14043_vm6, %v5073_v19  ;;  %v6947_v40 = vsel %vm14044_vm9, %v12851_v34, %v13016_v60  ;;  %v5491_v3 = vshrl.u32 %v12937_v36, 16  ;;  %v5076_v61 = vsel %vm11478_vm10, %v5074_v41, %v13018_v24  ;;  %v5077_v23 = vrot.slane %v13018_v24, 4  ;;  %6488 = vrot.lane.b32.xlu1 %v6459_v1, %s9598_s26  ;;  %v13053_v34 = vld [vmem:[#allocation4 + $0x60] sm:$0xff]   ;;  %v4778_v30 = vpop.f32.mrb[51].mxu1 }
 0x3e6   : > { %5577 = vst.msk [vmem:[#allocation2 + $0x30] sm:$0xff] %vm3549_vm5, %v5533_v44  ;;  %7023 = vrot.lane.b32.xlu0 %v6947_v40, %s9599_s10  ;;  %v13051_v11 = vor.u32 %v6214_v6, %v6211_v37  ;;  %v13057_v39 = vrot.slane %v8899_v46, 3  ;;  %v4811_v36 = vmax.f32 %v4774_v16, 0.0  ;;  %v4777_v47 = vadd.f32 %v12943_v56, %v4776_v48  ;;  %v5947_v24 = vpop.permute.xlu0 %5946  ;;  %v9509_v45 = vld [vmem:[#allocation4 + $0x60] sm:$0xff]  }
 0x3e7   : > { %5138 = vst.msk [vmem:[#allocation4 + $0x6c] sm:$0xf] %vm14045_vm14, %v5076_v61  ;;  %vm14046_vm13 = vcmask 523648   ;;  %vm14047_vm12 = vsmask.f32 6400  ;;  %v7010_v19 = vpop.permute.xlu1 %7009  ;;  %v5725_v41 = vsel %vm1468_vm0, %v5722_v62, %v5724_v49  ;;  %v6666_v13 = vrot.slane %v13035_v4, 2  ;;  %vm14054_vm14 = vmmov %vm14043_vm6 }
 0x3e8   : > { %5992 = vst.msk [vmem:[#allocation2 + $0x20] sm:$0xff] %vm14046_vm13, %v5947_v24  ;;  %v6216_v37 = vsel %vm14047_vm12, %v12887_v55, %v13051_v11  ;;  %vm4840_vm3 = vcmp.lt.s32.totalorder %v13024_v51, 12  ;;  %v5495_v44 = vshll.u32 %v13053_v34, 16  ;;  %v4919_v1 = vsel %vm4838_vm7, %v4811_v36, 0.0  ;;  %v9512_v30 = vld [vmem:[#allocation4 + $0x60] sm:$0xff]  }
 0x3e9   : > { %v4812_v6 = vmax.f32 %v4777_v47, 0.0  ;;  %vm14048_vm4 = vcmask 1048448   ;;  %v6949_v55 = vshrl.u32 %v9509_v45, 16  ;;  %v6952_v46 = vshll.u32 %v9509_v45, 16  ;;  %5754 = vrot.lane.b32.xlu1 %v5725_v41, %s9594_s23 }
 0x3ea   : > { %7056 = vst.msk [vmem:[#allocation2 + $0x10] sm:$0xff] %vm14048_vm4, %v7010_v19  ;;  %v9014_v16 = vpack.c.bf16 %v4919_v1, %v4919_v1  ;;  %6280 = vrot.lane.b32.xlu0 %v6216_v37, %s9600_s14  ;;  %v13078_v50 = vrot.slane %v5495_v44, 1  ;;  %v5932_v62 = vrot.slane %v13055_v52, 1  ;;  %vm14049_vm15 = vcmask 1044480   ;;  %v6475_v61 = vpop.permute.xlu0 %6474  ;;  %v13093_v44 = vld [vmem:[#allocation4 + $0x60] sm:$0xff]  }
 0x3eb   : > { %v7208_v58 = vsel %vm14049_vm15, %v12959_v38, %v13057_v39  ;;  %v4920_v40 = vsel %vm4839_vm8, %v4812_v6, 0.0  ;;  %v5493_v48 = vor.u32 %v5491_v3, %v12984_v25  ;;  %v6951_v36 = vrot.slane %v6949_v55, 2  ;;  %v6267_v41 = vpop.permute.xlu1 %6266  ;;  %vm14056_vm12 = vmmov %vm14049_vm15 }
 0x3ec   : > { %v6954_v47 = vrot.slane %v6952_v46, 3  ;;  %7246 = vst.msk [vmem:[#allocation2 + $0x98] sm:$0xff] %vm3336_vm11, %v7208_v58  ;;  %v7094_v24 = vld [vmem:[#allocation4 + $0x68] sm:$0xf]  ;;  %v5078_v45 = vrot.slane %v9014_v16, 5  ;;  %v9015_v37 = vpack.c.bf16 %v4920_v40, %v4920_v40  ;;  %v14050_v19 = vrot.slane %v12925_v5, 2  ;;  %vm14059_vm15 = vmmov %vm14043_vm6 }
 0x3ed   : > { %vm14051_vm7 = vcmask 654848   ;;  %v5498_v25 = vsel %vm1162_vm2, %v5493_v48, %v13078_v50  ;;  %v6218_v1 = vshrl.u32 %v9512_v30, 16  ;;  %v6221_v6 = vshll.u32 %v9512_v30, 16  ;;  %v4781_v58 = vpop.f32.mrb[52].mxu1  ;;  %v13105_v40 = vld [vmem:[#allocation4 + $0x60] sm:$0xff]  }
 0x3ee   : > { %v6667_v38 = vsel %vm2209_vm1, %v14050_v19, %v6666_v13  ;;  %6312 = vst.msk [vmem:[#allocation2 + $0x20] sm:$0xff] %vm14051_vm7, %v6267_v41  ;;  %v13098_v3 = vor.u32 %v6954_v47, %v6951_v36  ;;  %v7095_v55 = vld [vmem:[#allocation4 + $0x6c] sm:$0xf]  ;;  %v5079_v46 = vsel %vm11478_vm10, %v5077_v23, %v5078_v45  ;;  %v5080_v16 = vrot.slane %v5078_v45, 4  ;;  %5548 = vrot.lane.b32.xlu1 %v5498_v25, %s9591_s20  ;;  %v4783_v47 = vpop.f32.mrb[53].mxu1  ;;  %v5741_v30 = vpop.permute.xlu0 %5740 }
 0x3ef   : > { %v5081_v5 = vrot.slane %v9015_v37, 5  ;;  %6696 = vrot.lane.b32.xlu0 %v6667_v38, %s9596_s21  ;;  %vm14052_vm8 = vcmask 786048   ;;  %v8900_v48 = vcombine.low %v7094_v24, %v7095_v55  ;;  %5139 = vst.msk [vmem:[#allocation4 + $0x70] sm:$0xf] %vm14043_vm6, %v5079_v46  ;;  %v4782_v36 = vadd.f32 %v12943_v56, %v4781_v58  ;;  %v7258_v38 = vld [vmem:[#allocation2 + $0x28] sm:$0xff] }
 0x3f0   : > { %6520 = vst.msk [vmem:[#allocation2 + $0x20] sm:$0xff] %vm14052_vm8, %v6475_v61  ;;  %v6220_v19 = vrot.slane %v6218_v1, 1  ;;  %vm14053_vm9 = vcmask 392448   ;;  %v4784_v61 = vpop.f32.mrb[54].mxu1  ;;  %v6460_v41 = vrot.slane %v13093_v44, 2  ;;  %v6223_v25 = vrot.slane %v6221_v6, 2 }
 0x3f1   : > { %v5082_v23 = vsel %vm11478_vm10, %v5080_v16, %v5081_v5  ;;  %v5083_v45 = vrot.slane %v5081_v5, 4  ;;  %5785 = vst.msk [vmem:[#allocation2 + $0x30] sm:$0xff] %vm14053_vm9, %v5741_v30  ;;  %v7255_v37 = vld [vmem:[#allocation2 + $0x10] sm:$0xff]  ;;  %v13113_v24 = vld [vmem:[#allocation4 + $0x68] sm:$0xff]   ;;  %v13115_v55 = vrot.slane %v8900_v48, 3  ;;  %v4813_v56 = vmax.f32 %v4782_v36, 0.0  ;;  %vm14063_vm9 = vmmov %vm14056_vm12 }
 0x3f2   : > { %5140 = vst.msk [vmem:[#allocation4 + $0x74] sm:$0xf] %vm14054_vm14, %v5082_v23  ;;  %v4785_v1 = vpop.f32.mrb[55].mxu1  ;;  %v5933_v46 = vsel %vm1468_vm0, %v5930_v10, %v5932_v62  ;;  %7453 = vmatmul.mubr.bf16.gmra.mrb[36].mxu0 %v7255_v37  ;;  %vm14055_vm13 = vsmask.f32 5376  ;;  %v13126_v6 = vld [vmem:[#allocation4 + $0x68] sm:$0xff]   ;;  %v13130_v5 = vor.u32 %v6223_v25, %v6220_v19  ;;  %v6461_v19 = vsel %vm2209_vm1, %v6458_v12, %v6460_v41  ;;  %v6683_v23 = vpop.permute.xlu1 %6682 }
 0x3f3   : > { %v6956_v16 = vsel %vm14055_vm13, %v13016_v60, %v13098_v3  ;;  %5962 = vrot.lane.b32.xlu0 %v5933_v46, %s9597_s22  ;;  %v5726_v58 = vrot.slane %v13105_v40, 1  ;;  %v6668_v48 = vrot.slane %v13113_v24, 2  ;;  %v4921_v32 = vsel %vm4840_vm3, %v4813_v56, 0.0  ;;  %8918 = vmatprep.mubr.msk.bf16.mxu0 %vm3336_vm11, %v7258_v38  ;;  %v13138_v60 = vld [vmem:[#allocation4 + $0x68] sm:$0xff]   ;;  %v5535_v12 = vpop.permute.xlu0 %5534 }
 0x3f4   : > { %7025 = vrot.lane.b32.xlu1 %v6956_v16, %s9599_s10  ;;  %v5503_v10 = vshll.u32 %v13126_v6, 16  ;;  %v9517_v36 = vld [vmem:[#allocation4 + $0x68] sm:$0xff]   ;;  %v7210_v47 = vsel %vm14056_vm12, %v13057_v39, %v13115_v55  ;;  %v9016_v30 = vpack.c.bf16 %v4921_v32, %v4921_v32  ;;  %vm14057_vm3 = vcmask 917248   ;;  %5578 = vst.msk [vmem:[#allocation2 + $0x40] sm:$0xff] %vm3549_vm5, %v5535_v12 }
 0x3f5   : > { %7247 = vst.msk [vmem:[#allocation2 + $0xa8] sm:$0xff] %vm3336_vm11, %v7210_v47  ;;  %vm14058_vm4 = vsmask.f32 6400  ;;  %v5499_v37 = vshrl.u32 %v13053_v34, 16  ;;  %v6958_v38 = vshrl.u32 %v9517_v36, 16  ;;  %v6961_v39 = vshll.u32 %v9517_v36, 16 }
 0x3f6   : > { %6728 = vst.msk [vmem:[#allocation2 + $0x20] sm:$0xff] %vm14057_vm3, %v6683_v23  ;;  %v6225_v61 = vsel %vm14058_vm4, %v13051_v11, %v13130_v5  ;;  %v7096_v25 = vld [vmem:[#allocation4 + $0x70] sm:$0xf]  ;;  %v5084_v56 = vrot.slane %v9016_v30, 5  ;;  %v13156_v27 = vrot.slane %v5503_v10, 1  ;;  %v5934_v1 = vrot.slane %v13138_v60, 1  ;;  %v5949_v47 = vpop.permute.xlu1 %5948 }
 0x3f7   : > { %6490 = vrot.lane.b32.xlu0 %v6461_v19, %s9598_s26  ;;  %v6960_v46 = vrot.slane %v6958_v38, 2  ;;  %v13159_v16 = vld [vmem:[#allocation4 + $0x68] sm:$0xff]   ;;  %v5727_v10 = vsel %vm1468_vm0, %v5724_v49, %v5726_v58  ;;  %v6963_v30 = vrot.slane %v6961_v39, 3  ;;  %vm14060_vm7 = vcmask 523648   ;;  %v7012_v38 = vpop.permute.xlu0 %7011  ;;  %v13278_v60 = vld [vmem:[#allocation4 + $0x80] sm:$0xff]  }
 0x3f8   : > { %6282 = vrot.lane.b32.xlu1 %v6225_v61, %s9600_s14  ;;  %v9519_v32 = vld [vmem:[#allocation4 + $0x68] sm:$0xff]   ;;  %v5085_v34 = vsel %vm11478_vm10, %v5083_v45, %v5084_v56  ;;  %v5086_v36 = vrot.slane %v5084_v56, 4  ;;  %5993 = vst.msk [vmem:[#allocation2 + $0x30] sm:$0xff] %vm14060_vm7, %v5949_v47  ;;  %v6669_v45 = vsel %vm2209_vm1, %v6666_v13, %v6668_v48  ;;  %vm14061_vm8 = vcmask 124928   ;;  %vm14070_vm7 = vmmov %vm14063_vm9 }
 0x3f9   : > { %v7097_v11 = vld [vmem:[#allocation4 + $0x74] sm:$0xf]  ;;  %5141 = vst.msk [vmem:[#allocation4 + $0x78] sm:$0xf] %vm14059_vm15, %v5085_v34  ;;  %v6227_v23 = vshrl.u32 %v9519_v32, 16  ;;  %v6230_v61 = vshll.u32 %v9519_v32, 16  ;;  %v5501_v31 = vor.u32 %v5499_v37, %v13078_v50  ;;  %v5935_v50 = vsel %vm1468_vm0, %v5932_v62, %v5934_v1 }
 0x3fa   : > { %v8901_v19 = vcombine.low %v7096_v25, %v7097_v11  ;;  %5142 = vst.msk [vmem:[#allocation4 + $0x7c] sm:$0x7] %vm14061_vm8, %v5086_v36  ;;  %v13180_v39 = vld [vmem:[#allocation4 + $0x68] sm:$0xff]   ;;  %v13182_v25 = vld [vmem:[#allocation4 + $0x70] sm:$0xff]   ;;  %vm14062_vm6 = vcmask 1048448   ;;  %v6477_v13 = vpop.permute.xlu1 %6476  ;;  %v13192_v37 = vor.u32 %v6963_v30, %v6960_v46  ;;  %v6462_v32 = vrot.slane %v13159_v16, 2  ;;  %vm14072_vm8 = vmmov %vm14070_vm7 }
 0x3fb   : > { %5756 = vrot.lane.b32.xlu0 %v5727_v10, %s9594_s23  ;;  %7057 = vst.msk [vmem:[#allocation2 + $0x20] sm:$0xff] %vm14062_vm6, %v7012_v38  ;;  %v5506_v4 = vsel %vm1162_vm2, %v5501_v31, %v13156_v27  ;;  %v6229_v56 = vrot.slane %v6227_v23, 1  ;;  %v6232_v12 = vrot.slane %v6230_v61, 2  ;;  %v13195_v11 = vld [vmem:[#allocation4 + $0x70] sm:$0xff]   ;;  %v6269_v10 = vpop.permute.xlu0 %6268  ;;  %v5728_v52 = vrot.slane %v13180_v39, 1  ;;  %v7260_v31 = vld [vmem:[#allocation2 + $0x38] sm:$0xff] }
 0x3fc   : > { %6698 = vrot.lane.b32.xlu1 %v6669_v45, %s9596_s21  ;;  %v7211_v49 = vrot.slane %v8901_v19, 3  ;;  %v9525_v36 = vld [vmem:[#allocation4 + $0x70] sm:$0xff]   ;;  %v5511_v62 = vshll.u32 %v13182_v25, 16  ;;  %vm14064_vm14 = vcmask 654848   ;;  %vm14065_vm13 = vcmask 786048  }
 0x3fd   : > { %6313 = vst.msk [vmem:[#allocation2 + $0x30] sm:$0xff] %vm14064_vm14, %v6269_v10  ;;  %v13205_v47 = vor.u32 %v6232_v12, %v6229_v56  ;;  %v6967_v30 = vshrl.u32 %v9525_v36, 16  ;;  %v9527_v19 = vld [vmem:[#allocation4 + $0x70] sm:$0xff]   ;;  %vm14066_vm12 = vsmask.f32 5376  ;;  %vm14067_vm3 = vcmask 392448  }
 0x3fe   : > { %v7212_v34 = vsel %vm14063_vm9, %v13115_v55, %v7211_v49  ;;  %v5743_v46 = vpop.permute.xlu1 %5742  ;;  %6521 = vst.msk [vmem:[#allocation2 + $0x30] sm:$0xff] %vm14065_vm13, %v6477_v13  ;;  %v6965_v45 = vsel %vm14066_vm12, %v13098_v3, %v13192_v37  ;;  %v6463_v23 = vsel %vm2209_vm1, %v6460_v41, %v6462_v32  ;;  %v6970_v61 = vshll.u32 %v9525_v36, 16  ;;  %vm14075_vm13 = vmmov %vm14066_vm12 }
 0x3ff   : > { %5550 = vrot.lane.b32.xlu0 %v5506_v4, %s9591_s20  ;;  %7248 = vst.msk [vmem:[#allocation2 + $0xb8] sm:$0xff] %vm3336_vm11, %v7212_v34  ;;  %v6670_v38 = vrot.slane %v13195_v11, 2  ;;  %v5507_v4 = vshrl.u32 %v13126_v6, 16  ;;  %v6685_v3 = vpop.permute.xlu0 %6684  ;;  %v13221_v12 = vrot.slane %v5511_v62, 1  ;;  %vm14068_vm4 = vcmask 917248  }
 0x400   : > { %5964 = vrot.lane.b32.xlu1 %v5935_v50, %s9597_s22  ;;  %5786 = vst.msk [vmem:[#allocation2 + $0x40] sm:$0xff] %vm14067_vm3, %v5743_v46  ;;  %v13223_v50 = vld [vmem:[#allocation4 + $0x70] sm:$0xff]   ;;  %vm14069_vm15 = vsmask.f32 6400  ;;  %v5729_v6 = vsel %vm1468_vm0, %v5726_v58, %v5728_v52  ;;  %v6969_v34 = vrot.slane %v6967_v30, 2  ;;  %v6236_v36 = vshrl.u32 %v9527_v19, 16 }
 0x401   : > { %v9506_v55 = vld [vmem:[#allocation4 + $0x78] sm:$0xff]   ;;  %6729 = vst.msk [vmem:[#allocation2 + $0x30] sm:$0xff] %vm14068_vm4, %v6685_v3  ;;  %v6234_v44 = vsel %vm14069_vm15, %v13130_v5, %v13205_v47  ;;  %v6972_v10 = vrot.slane %v6970_v61, 3  ;;  %v6239_v62 = vshll.u32 %v9527_v19, 16  ;;  %v5509_v58 = vor.u32 %v5507_v4, %v13156_v27  ;;  %v13252_v19 = vld [vmem:[#allocation4 + $0x70] sm:$0xff]   ;;  %vm14077_vm4 = vmmov %vm14069_vm15 }
 0x402   : > { %v7213_v13 = vrot.slane %v9506_v55, 3  ;;  %v7257_v56 = vld [vmem:[#allocation2 + $0x20] sm:$0xff]  ;;  %v5537_v41 = vpop.permute.xlu1 %5536  ;;  %v14071_v55 = vrot.slane %v10909_v57, 3  ;;  %vm14073_vm6 = vcmask 523648   ;;  %v6671_v57 = vsel %vm2209_vm1, %v6668_v48, %v6670_v38 }
 0x403   : > { %7027 = vrot.lane.b32.xlu0 %v6965_v45, %s9599_s10  ;;  %7461 = vmatmul.mubr.bf16.gmra.mrb[40].mxu0 %v7257_v56  ;;  %5579 = vst.msk [vmem:[#allocation2 + $0x50] sm:$0xff] %vm3549_vm5, %v5537_v41  ;;  %v5951_v40 = vpop.permute.xlu0 %5950  ;;  %v5936_v30 = vrot.slane %v13223_v50, 1  ;;  %vm14074_vm9 = vcmask 1048448   ;;  %v5514_v45 = vsel %vm1162_vm2, %v5509_v58, %v13221_v12  ;;  %v6238_v27 = vrot.slane %v6236_v36, 1  ;;  %v9550_v41 = vld [vmem:[#allocation4 + $0x60] sm:$0xff]  }
 0x404   : > { %6492 = vrot.lane.b32.xlu1 %v6463_v23, %s9598_s26  ;;  %8919 = vmatprep.mubr.msk.bf16.mxu0 %vm3336_vm11, %v7260_v31  ;;  %v7214_v46 = vsel %vm14070_vm7, %v7211_v49, %v7213_v13  ;;  %v7216_v5 = vsel %vm14072_vm8, %v7213_v13, %v14071_v55  ;;  %5994 = vst.msk [vmem:[#allocation2 + $0x40] sm:$0xff] %vm14073_vm6, %v5951_v40  ;;  %v6241_v61 = vrot.slane %v6239_v62, 2  ;;  %v13261_v31 = vld [vmem:[#allocation4 + $0x70] sm:$0xff]   ;;  %v6464_v3 = vrot.slane %v13252_v19, 2  ;;  %v9553_v40 = vld [vmem:[#allocation4 + $0x78] sm:$0x3f]   ;;  %vm14080_vm8 = vmmov %vm14073_vm6 }
 0x405   : > { %7249 = vst.msk [vmem:[#allocation2 + $0xc8] sm:$0xff] %vm3336_vm11, %v7214_v46  ;;  %7250 = vst.msk [vmem:[#allocation2 + $0xd8] sm:$0xff] %vm3336_vm11, %v7216_v5  ;;  %v13257_v23 = vor.u32 %v6972_v10, %v6969_v34  ;;  %v5937_v4 = vsel %vm1468_vm0, %v5934_v1, %v5936_v30  ;;  %vm14076_vm12 = vcmask 786048   ;;  %v7262_v34 = vld [vmem:[#allocation2 + $0x48] sm:$0xff]  ;;  %v5730_v36 = vrot.slane %v13261_v31, 1  ;;  %v9532_v10 = vld [vmem:[#allocation4 + $0x78] sm:$0xff]  }
 0x406   : > { %v7014_v49 = vpop.permute.xlu1 %7013  ;;  %v13273_v56 = vor.u32 %v6241_v61, %v6238_v27  ;;  %5283 = vst.msk [vmem:[#allocation2 + $0xc0] sm:$0xff] %vm3336_vm11, %v9550_v41  ;;  %v6465_v62 = vsel %vm2209_vm1, %v6462_v32, %v6464_v3  ;;  %v9552_v5 = vld [vmem:[#allocation4 + $0x70] sm:$0xff]   ;;  %v6674_v32 = vrot.slane %v13278_v60, 2  ;;  %v13295_v58 = vld [vmem:[#allocation4 + $0x80] sm:$0x7f]   ;;  %vm14078_vm15 = vcmask 128000   ;;  %vm14081_vm6 = vmmov %vm14074_vm9 }
 0x407   : > { %6284 = vrot.lane.b32.xlu0 %v6234_v44, %s9600_s14  ;;  %7058 = vst.msk [vmem:[#allocation2 + $0x30] sm:$0xff] %vm14074_vm9, %v7014_v49  ;;  %v6479_v24 = vpop.permute.xlu0 %6478  ;;  %v6974_v13 = vsel %vm14075_vm13, %v13192_v37, %v13257_v23  ;;  %v9530_v44 = vld [vmem:[#allocation4 + $0x78] sm:$0xff]   ;;  %vm14079_vm7 = vcmask 917248   ;;  %v5938_v19 = vrot.slane %v9532_v10, 1  ;;  %v5940_v11 = vrot.slane %v13295_v58, 1  ;;  %vm14082_vm9 = vmmov %vm14064_vm14 }
 0x408   : > { %5758 = vrot.lane.b32.xlu1 %v5729_v6, %s9594_s23  ;;  %v9551_v6 = vld [vmem:[#allocation4 + $0x68] sm:$0xff]   ;;  %v6243_v46 = vsel %vm14077_vm4, %v13205_v47, %v13273_v56  ;;  %v6672_v55 = vrot.slane %v9530_v44, 2  ;;  %5285 = vst.msk [vmem:[#allocation2 + $0xe0] sm:$0xff] %vm3336_vm11, %v9552_v5  ;;  %v5731_v47 = vsel %vm1468_vm0, %v5728_v52, %v5730_v36  ;;  %v9537_v27 = vld [vmem:[#allocation4 + $0x78] sm:$0xff]   ;;  %vm14084_vm13 = vmmov %vm14067_vm3 }
 0x409   : > { %5284 = vst.msk [vmem:[#allocation2 + $0xd0] sm:$0xff] %vm3336_vm11, %v9551_v6  ;;  %v6976_v44 = vshrl.u32 %v9537_v27, 16  ;;  %v6979_v41 = vshll.u32 %v9537_v27, 16  ;;  %v5515_v6 = vshrl.u32 %v13182_v25, 16  ;;  %v5941_v50 = vsel %vm1468_vm0, %v5938_v19, %v5940_v11 }
 0x40a   : > { %v6271_v48 = vpop.permute.xlu1 %6270  ;;  %5286 = vst.msk [vmem:[#allocation2 + $0xf0] sm:$0x3f] %vm14078_vm15, %v9553_v40  ;;  %v6673_v49 = vsel %vm2209_vm1, %v6670_v38, %v6672_v55  ;;  %v6675_v39 = vsel %vm2209_vm1, %v6672_v55, %v6674_v32  ;;  %vm14090_vm15 = vmmov %vm14082_vm9 }
 0x40b   : > { %6700 = vrot.lane.b32.xlu0 %v6671_v57, %s9596_s21  ;;  %6314 = vst.msk [vmem:[#allocation2 + $0x40] sm:$0xff] %vm14064_vm14, %v6271_v48  ;;  %v5745_v1 = vpop.permute.xlu0 %5744  ;;  %v13297_v57 = vld [vmem:[#allocation4 + $0x78] sm:$0xff]   ;;  %v6978_v5 = vrot.slane %v6976_v44, 2  ;;  %v6981_v25 = vrot.slane %v6979_v41, 3  ;;  %vm14083_vm14 = vmmov %vm14076_vm12 }
 0x40c   : > { %5552 = vrot.lane.b32.xlu1 %v5514_v45, %s9591_s20  ;;  %6522 = vst.msk [vmem:[#allocation2 + $0x40] sm:$0xff] %vm14076_vm12, %v6479_v24  ;;  %v13309_v45 = vld [vmem:[#allocation4 + $0x78] sm:$0x7f]   ;;  %v6466_v38 = vrot.slane %v13297_v57, 2  ;;  %vm14087_vm12 = vmmov %vm14080_vm8 }
 0x40d   : > { %5787 = vst.msk [vmem:[#allocation2 + $0x50] sm:$0xff] %vm14067_vm3, %v5745_v1  ;;  %v13319_v24 = vld [vmem:[#allocation4 + $0x78] sm:$0x7f]   ;;  %vm14088_vm3 = vmmov %vm14077_vm4 }
 0x40e   : > { %v7259_v37 = vld [vmem:[#allocation2 + $0x30] sm:$0xff]  ;;  %v6687_v16 = vpop.permute.xlu1 %6686  ;;  %v9540_v48 = vld [vmem:[#allocation4 + $0x78] sm:$0xff]   ;;  %v5732_v10 = vrot.slane %v13319_v24, 1  ;;  %vm14089_vm4 = vmmov %vm14081_vm6 }
 0x40f   : > { %5966 = vrot.lane.b32.xlu0 %v5937_v4, %s9597_s22  ;;  %7469 = vmatmul.mubr.bf16.gmra.mrb[44].mxu0 %v7259_v37  ;;  %6730 = vst.msk [vmem:[#allocation2 + $0x40] sm:$0xff] %vm14079_vm7, %v6687_v16  ;;  %v5539_v61 = vpop.permute.xlu0 %5538  ;;  %v5939_v4 = vsel %vm1468_vm0, %v5936_v30, %v5938_v19  ;;  %v13329_v37 = vld [vmem:[#allocation4 + $0x88] sm:$0xff]   ;;  %v6248_v40 = vshll.u32 %v9540_v48, 16 }
 0x410   : > { %7029 = vrot.lane.b32.xlu1 %v6974_v13, %s9599_s10  ;;  %8920 = vmatprep.mubr.msk.bf16.mxu0 %vm3336_vm11, %v7262_v34  ;;  %5580 = vst.msk [vmem:[#allocation2 + $0x60] sm:$0xff] %vm3549_vm5, %v5539_v61  ;;  %v5519_v13 = vshll.u32 %v13309_v45, 16  ;;  %v6467_v34 = vsel %vm2209_vm1, %v6464_v3, %v6466_v38  ;;  %v9543_v19 = vld [vmem:[#allocation4 + $0x88] sm:$0xff]   ;;  %v5733_v27 = vsel %vm1468_vm0, %v5730_v36, %v5732_v10  ;;  %vm14085_vm0 = vmmov %vm14079_vm7 }
 0x411   : > { %v6994_v41 = vshrl.u32 %v9543_v19, 16 }
 0x412   : > { %v5953_v52 = vpop.permute.xlu1 %5952  ;;  %v5521_v55 = vrot.slane %v5519_v13, 1  ;;  %v9544_v13 = vld [vmem:[#allocation4 + $0x80] sm:$0xff]  }
 0x413   : > { %6494 = vrot.lane.b32.xlu0 %v6465_v62, %s9598_s26  ;;  %5995 = vst.msk [vmem:[#allocation2 + $0x50] sm:$0xff] %vm14080_vm8, %v5953_v52  ;;  %v7016_v1 = vpop.permute.xlu0 %7015  ;;  %v6245_v62 = vshrl.u32 %v9540_v48, 16  ;;  %vm14092_vm8 = vmmov %vm14083_vm14 }
 0x414   : > { %6286 = vrot.lane.b32.xlu1 %v6243_v46, %s9600_s14  ;;  %7059 = vst.msk [vmem:[#allocation2 + $0x40] sm:$0xff] %vm14081_vm6, %v7016_v1  ;;  %v9542_v46 = vld [vmem:[#allocation4 + $0x80] sm:$0xff]   ;;  %v6997_v1 = vshll.u32 %v9543_v19, 16 }
 0x415   : > { %v6985_v61 = vshrl.u32 %v9542_v46, 16  ;;  %v6247_v48 = vrot.slane %v6245_v62, 1 }
 0x416   : > { %v6481_v30 = vpop.permute.xlu1 %6480 }
 0x417   : > { %5760 = vrot.lane.b32.xlu0 %v5731_v47, %s9594_s23  ;;  %v6273_v16 = vpop.permute.xlu0 %6272  ;;  %v5517_v47 = vor.u32 %v5515_v6, %v13221_v12  ;;  %v6982_v12 = vor.u32 %v6981_v25, %v6978_v5  ;;  %v6254_v5 = vshrl.u32 %v9544_v13, 16  ;;  %v5523_v25 = vshrl.u32 %v13309_v45, 16 }
 0x418   : > { %6702 = vrot.lane.b32.xlu1 %v6673_v49, %s9596_s21  ;;  %v6676_v49 = vrot.slane %v13329_v37, 2  ;;  %6315 = vst.msk [vmem:[#allocation2 + $0x50] sm:$0xff] %vm14082_vm9, %v6273_v16  ;;  %v6996_v16 = vrot.slane %v6994_v41, 2  ;;  %vm14094_vm9 = vmmov %vm14084_vm13 }
 0x419   : > { %6523 = vst.msk [vmem:[#allocation2 + $0x50] sm:$0xff] %vm14083_vm14, %v6481_v30  ;;  %v5522_v52 = vsel %vm1162_vm2, %v5517_v47, %v5521_v55  ;;  %v9541_v30 = vld [vmem:[#allocation4 + $0x80] sm:$0xff]   ;;  %vm14086_vm2 = vsmask.f32 5376  ;;  %v6999_v47 = vrot.slane %v6997_v1, 3  ;;  %vm14096_vm14 = vmmov %vm14085_vm0 }
 0x41a   : > { %v5747_v3 = vpop.permute.xlu1 %5746  ;;  %v6677_v36 = vsel %vm2209_vm1, %v6674_v32, %v6676_v49  ;;  %v6257_v32 = vshll.u32 %v9544_v13, 16  ;;  %vm14091_vm7 = vmmov %vm14086_vm2 }
 0x41b   : > { %6704 = vrot.lane.b32.xlu0 %v6675_v39, %s9596_s21  ;;  %v6988_v39 = vshll.u32 %v9542_v46, 16  ;;  %5788 = vst.msk [vmem:[#allocation2 + $0x60] sm:$0xff] %vm14084_vm13, %v5747_v3  ;;  %v7261_v31 = vld [vmem:[#allocation2 + $0x40] sm:$0xff]  ;;  %v6983_v46 = vsel %vm14086_vm2, %v13257_v23, %v6982_v12  ;;  %v5525_v23 = vor.u32 %v5523_v25, %v5521_v55  ;;  %v6468_v3 = vrot.slane %v9541_v30, 2  ;;  %vm14093_vm6 = vmmov %vm14086_vm2 }
 0x41c   : > { %5968 = vrot.lane.b32.xlu1 %v5939_v4, %s9597_s22  ;;  %v6250_v4 = vrot.slane %v6248_v40, 2  ;;  %v6689_v44 = vpop.permute.xlu0 %6688  ;;  %7477 = vmatmul.mubr.bf16.gmra.mrb[48].mxu0 %v7261_v31  ;;  %vm14097_vm13 = vmmov %vm14087_vm12 }
 0x41d   : > { %6731 = vst.msk [vmem:[#allocation2 + $0x50] sm:$0xff] %vm14085_vm0, %v6689_v44  ;;  %v6990_v62 = vrot.slane %v6988_v39, 3  ;;  %v6256_v39 = vrot.slane %v6254_v5, 1  ;;  %v6469_v55 = vsel %vm2209_vm1, %v6466_v38, %v6468_v3  ;;  %vm14095_vm1 = vmmov %vm14088_vm3  ;;  %v7268_v5 = vld [vmem:[#allocation2 + $0x78] sm:$0xff] }
 0x41e   : > { %v5541_v6 = vpop.permute.xlu1 %5540  ;;  %v6251_v60 = vor.u32 %v6250_v4, %v6247_v48  ;;  %v7000_v48 = vor.u32 %v6999_v47, %v6996_v16  ;;  %vm14098_vm0 = vmmov %vm14086_vm2 }
 0x41f   : > { %5970 = vrot.lane.b32.xlu0 %v5941_v50, %s9597_s22  ;;  %v7264_v50 = vld [vmem:[#allocation2 + $0x58] sm:$0xff]  ;;  %5581 = vst.msk [vmem:[#allocation2 + $0x70] sm:$0xff] %vm3549_vm5, %v5541_v6  ;;  %vm14099_vm2 = vmmov %vm14089_vm4 }
 0x420   : > { %6496 = vrot.lane.b32.xlu1 %v6467_v34, %s9598_s26  ;;  %v6987_v34 = vrot.slane %v6985_v61, 2  ;;  %8921 = vmatprep.mubr.msk.bf16.mxu0 %vm3336_vm11, %v7264_v50 }
 0x422   : > { %v5955_v40 = vpop.permute.xlu0 %5954  ;;  %v7018_v19 = vpop.permute.xlu1 %7017  ;;  %v6991_v61 = vor.u32 %v6990_v62, %v6987_v34 }
 0x423   : > { %5554 = vrot.lane.b32.xlu0 %v5522_v52, %s9591_s20  ;;  %5996 = vst.msk [vmem:[#allocation2 + $0x60] sm:$0xff] %vm14087_vm12, %v5955_v40  ;;  %v6259_v52 = vrot.slane %v6257_v32, 2  ;;  %vm14100_vm12 = vmmov %vm14090_vm15 }
 0x424   : > { %5762 = vrot.lane.b32.xlu1 %v5733_v27, %s9594_s23  ;;  %v6252_v27 = vsel %vm14088_vm3, %v13273_v56, %v6251_v60  ;;  %7060 = vst.msk [vmem:[#allocation2 + $0x50] sm:$0xff] %vm14089_vm4, %v7018_v19  ;;  %v6992_v56 = vsel %vm14091_vm7, %v6982_v12, %v6991_v61  ;;  %v7001_v31 = vsel %vm14093_vm6, %v6991_v61, %v7000_v48  ;;  %v7266_v12 = vld [vmem:[#allocation2 + $0x68] sm:$0xff]  ;;  %vm14101_vm3 = vmmov %vm14092_vm8 }
 0x425   : > { %v6260_v13 = vor.u32 %v6259_v52, %v6256_v39  ;;  %vm14102_vm4 = vmmov %vm14094_vm9  ;;  %v7270_v19 = vld [vmem:[#allocation2 + $0x88] sm:$0xff] }
 0x426   : > { %v6483_v45 = vpop.permute.xlu0 %6482  ;;  %vm14104_vm7 = vmmov %vm14097_vm13 }
 0x427   : > { %7031 = vrot.lane.b32.xlu0 %v6983_v46, %s9599_s10  ;;  %v6275_v4 = vpop.permute.xlu1 %6274  ;;  %v6261_v38 = vsel %vm14095_vm1, %v6251_v60, %v6260_v13  ;;  %vm14106_vm6 = vmmov %vm14100_vm12 }
 0x428   : > { %6706 = vrot.lane.b32.xlu1 %v6677_v36, %s9596_s21  ;;  %6316 = vst.msk [vmem:[#allocation2 + $0x60] sm:$0xff] %vm14090_vm15, %v6275_v4  ;;  %v9546_v36 = vld [vmem:[#allocation4 + $0x90] ss:$0 sps:$4 sm:$0x11]   ;;  %vm14103_vm15 = vmmov %vm14096_vm14 }
 0x429   : > { %6524 = vst.msk [vmem:[#allocation2 + $0x60] sm:$0xff] %vm14092_vm8, %v6483_v45  ;;  %v7003_v41 = vshll.u32 %v9546_v36, 16  ;;  %vm14105_vm8 = vmmov %vm14099_vm2 }
 0x42a   : > { %v5749_v44 = vpop.permute.xlu0 %5748  ;;  %vm14108_vm1 = vmmov %vm14102_vm4 }
 0x42b   : > { %6288 = vrot.lane.b32.xlu0 %v6252_v27, %s9600_s14  ;;  %5789 = vst.msk [vmem:[#allocation2 + $0x70] sm:$0xff] %vm14094_vm9, %v5749_v44  ;;  %v7263_v57 = vld [vmem:[#allocation2 + $0x50] sm:$0xff]  ;;  %v7005_v50 = vrot.slane %v7003_v41, 3  ;;  %vm14107_vm9 = vmmov %vm14101_vm3 }
 0x42c   : > { %5556 = vrot.lane.b32.xlu1 %v5525_v23, %s9591_s20  ;;  %7485 = vmatmul.mubr.bf16.gmra.mrb[52].mxu0 %v7263_v57 }
 0x42d   : > { %8922 = vmatprep.mubr.msk.bf16.mxu0 %vm3336_vm11, %v7266_v12  ;;  %v6691_v1 = vpop.permute.xlu1 %6690  ;;  %v7006_v62 = vsel %vm14098_vm0, %v7000_v48, %v7005_v50  ;;  %vm14110_vm0 = vmmov %vm14099_vm2  ;;  %v7274_v12 = vld [vmem:[#allocation2 + $0xa8] sm:$0xff] }
 0x42e   : > { %6732 = vst.msk [vmem:[#allocation2 + $0x60] sm:$0xff] %vm14096_vm14, %v6691_v1 }
 0x42f   : > { %6498 = vrot.lane.b32.xlu0 %v6469_v55, %s9598_s26  ;;  %v7272_v55 = vld [vmem:[#allocation2 + $0x98] sm:$0xff] }
 0x430   : > { %7033 = vrot.lane.b32.xlu1 %v6992_v56, %s9599_s10 }
 0x431   : > { %v5543_v6 = vpop.permute.xlu0 %5542 }
 0x432   : > { %5582 = vst.msk [vmem:[#allocation2 + $0x80] sm:$0xff] %vm3549_vm5, %v5543_v6  ;;  %v5957_v30 = vpop.permute.xlu1 %5956 }
 0x433   : > { %7035 = vrot.lane.b32.xlu0 %v7001_v31, %s9599_s10  ;;  %5997 = vst.msk [vmem:[#allocation2 + $0x70] sm:$0xff] %vm14097_vm13, %v5957_v30  ;;  %vm14109_vm13 = vmmov %vm14104_vm7 }
 0x434   : > { %6290 = vrot.lane.b32.xlu1 %v6261_v38, %s9600_s14 }
 0x435   : > { %v7020_v34 = vpop.permute.xlu0 %7019 }
 0x436   : > { %7061 = vst.msk [vmem:[#allocation2 + $0x60] sm:$0xff] %vm14099_vm2, %v7020_v34  ;;  %vm14111_vm2 = vmmov %vm14106_vm6 }
 0x437   : > { %5764 = vrot.lane.b32.xlu0 %v5732_v10, %s9594_s23 }
 0x438   : > { %5972 = vrot.lane.b32.xlu1 %v5940_v11, %s9597_s22  ;;  %v6485_v24 = vpop.permute.xlu1 %6484 }
 0x439   : > { %v6277_v58 = vpop.permute.xlu0 %6276 }
 0x43a   : > { %6317 = vst.msk [vmem:[#allocation2 + $0x70] sm:$0xff] %vm14100_vm12, %v6277_v58  ;;  %vm14112_vm12 = vmmov %vm14108_vm1 }
 0x43b   : > { %6292 = vrot.lane.b32.xlu0 %v6260_v13, %s9600_s14  ;;  %6525 = vst.msk [vmem:[#allocation2 + $0x70] sm:$0xff] %vm14101_vm3, %v6485_v24  ;;  %s9605_s14 = smov 109  }
 0x43c   : > { %6500 = vrot.lane.b32.xlu1 %v6468_v3, %s9598_s26  ;;  %s9603_s26 = smov 126  }
 0x43d   : > { %v7265_v46 = vld [vmem:[#allocation2 + $0x60] sm:$0xff] }
 0x43e   : > { %v5751_v11 = vpop.permute.xlu1 %5750  ;;  %7493 = vmatmul.mubr.bf16.gmra.mrb[56].mxu0 %v7265_v46 }
 0x43f   : > { %6708 = vrot.lane.b32.xlu0 %v6676_v49, %s9596_s21  ;;  %5790 = vst.msk [vmem:[#allocation2 + $0x80] sm:$0xff] %vm14102_vm4, %v5751_v11  ;;  %8923 = vmatprep.mubr.msk.bf16.mxu0 %vm3336_vm11, %v7268_v5  ;;  %vm14113_vm4 = vmmov %vm14096_vm14  ;;  %v7276_v11 = vld [vmem:[#allocation2 + $0xb8] sm:$0xff] }
 0x440   : > { %7037 = vrot.lane.b32.xlu1 %v7006_v62, %s9599_s10  ;;  %s9604_s10 = smov 127  }
 0x441   : > { %v6693_v10 = vpop.permute.xlu0 %6692 }
 0x442   : > { %6733 = vst.msk [vmem:[#allocation2 + $0x70] sm:$0xff] %vm14103_vm15, %v6693_v10  ;;  %v5545_v60 = vpop.permute.xlu1 %5544  ;;  %vm14114_vm15 = vmmov %vm14104_vm7 }
 0x443   : > { %5583 = vst.msk [vmem:[#allocation2 + $0x90] sm:$0xff] %vm3549_vm5, %v5545_v60 }
 0x445   : > { %v5959_v37 = vpop.permute.xlu0 %5958 }
 0x446   : > { %5998 = vst.msk [vmem:[#allocation2 + $0x80] sm:$0xff] %vm14104_vm7, %v5959_v37  ;;  %v7022_v49 = vpop.permute.xlu1 %7021  ;;  %vm14115_vm7 = vmmov %vm14110_vm0 }
 0x447   : > { %7062 = vst.msk [vmem:[#allocation2 + $0x70] sm:$0xff] %vm14105_vm8, %v7022_v49  ;;  %vm14116_vm8 = vmmov %vm14111_vm2 }
 0x449   : > { %v6487_v32 = vpop.permute.xlu0 %6486 }
 0x44a   : > { %v6279_v25 = vpop.permute.xlu1 %6278 }
 0x44b   : > { %6318 = vst.msk [vmem:[#allocation2 + $0x80] sm:$0xff] %vm14106_vm6, %v6279_v25  ;;  %vm14117_vm6 = vmmov %vm14101_vm3  ;;  %v7278_v25 = vld [vmem:[#allocation2 + $0xc8] sm:$0xff] }
 0x44c   : > { %6526 = vst.msk [vmem:[#allocation2 + $0x80] sm:$0xff] %vm14107_vm9, %v6487_v32  ;;  %vm14118_vm9 = vmmov %vm14108_vm1 }
 0x44d   : > { %v5753_v40 = vpop.permute.xlu0 %5752 }
 0x44e   : > { %5791 = vst.msk [vmem:[#allocation2 + $0x90] sm:$0xff] %vm14108_vm1, %v5753_v40  ;;  %v6695_v16 = vpop.permute.xlu1 %6694  ;;  %v7267_v47 = vld [vmem:[#allocation2 + $0x70] sm:$0xff]  ;;  %vm14119_vm1 = vmmov %vm14113_vm4 }
 0x44f   : > { %6734 = vst.msk [vmem:[#allocation2 + $0x80] sm:$0xff] %vm14096_vm14, %v6695_v16  ;;  %7501 = vmatmul.mubr.bf16.gmra.mrb[60].mxu0 %v7267_v47  ;;  %vm14120_vm14 = vmmov %vm14109_vm13 }
 0x450   : > { %8924 = vmatprep.mubr.msk.bf16.mxu0 %vm3336_vm11, %v7270_v19 }
 0x453   : > { %v5547_v23 = vpop.permute.xlu0 %5546  ;;  %v5961_v3 = vpop.permute.xlu1 %5960 }
 0x454   : > { %5584 = vst.msk [vmem:[#allocation2 + $0xa0] sm:$0xff] %vm3549_vm5, %v5547_v23 }
 0x455   : > { %5999 = vst.msk [vmem:[#allocation2 + $0x90] sm:$0xff] %vm14109_vm13, %v5961_v3  ;;  %vm14121_vm13 = vmmov %vm14110_vm0 }
 0x457   : > { %v6489_v61 = vpop.permute.xlu1 %6488 }
 0x458   : > { %v7024_v27 = vpop.permute.xlu0 %7023 }
 0x459   : > { %7063 = vst.msk [vmem:[#allocation2 + $0x80] sm:$0xff] %vm14110_vm0, %v7024_v27  ;;  %vm14122_vm0 = vmmov %vm14111_vm2 }
 0x45b   : > { %v5755_v52 = vpop.permute.xlu1 %5754 }
 0x45c   : > { %v6281_v39 = vpop.permute.xlu0 %6280  ;;  %5792 = vst.msk [vmem:[#allocation2 + $0xa0] sm:$0xff] %vm14112_vm12, %v5755_v52  ;;  %vm14124_vm12 = vmmov %vm14101_vm3 }
 0x45d   : > { %6319 = vst.msk [vmem:[#allocation2 + $0x90] sm:$0xff] %vm14111_vm2, %v6281_v39  ;;  %vm14123_vm2 = vmmov %vm14118_vm9 }
 0x45e   : > { %6527 = vst.msk [vmem:[#allocation2 + $0x90] sm:$0xff] %vm14101_vm3, %v6489_v61  ;;  %vm14125_vm3 = vmmov %vm14119_vm1 }
 0x460   : > { %v7269_v48 = vld [vmem:[#allocation2 + $0x80] sm:$0xff]  ;;  %v5549_v4 = vpop.permute.xlu1 %5548 }
 0x461   : > { %v6697_v45 = vpop.permute.xlu0 %6696  ;;  %7509 = vmatmul.mubr.bf16.gmra.mrb[64].mxu0 %v7269_v48  ;;  %5585 = vst.msk [vmem:[#allocation2 + $0xb0] sm:$0xff] %vm3549_vm5, %v5549_v4 }
 0x462   : > { %6735 = vst.msk [vmem:[#allocation2 + $0x90] sm:$0xff] %vm14113_vm4, %v6697_v45  ;;  %8925 = vmatprep.mubr.msk.bf16.mxu0 %vm3336_vm11, %v7272_v55  ;;  %vm14126_vm4 = vmmov %vm14120_vm14  ;;  %v7280_v55 = vld [vmem:[#allocation2 + $0xd8] sm:$0xff] }
 0x465   : > { %v5963_v56 = vpop.permute.xlu0 %5962 }
 0x466   : > { %v7026_v13 = vpop.permute.xlu1 %7025  ;;  %6000 = vst.msk [vmem:[#allocation2 + $0xa0] sm:$0xff] %vm14114_vm15, %v5963_v56  ;;  %vm14127_vm15 = vmmov %vm14115_vm7 }
 0x467   : > { %7064 = vst.msk [vmem:[#allocation2 + $0x90] sm:$0xff] %vm14115_vm7, %v7026_v13  ;;  %vm14128_vm7 = vmmov %vm14122_vm0 }
 0x469   : > { %v6491_v44 = vpop.permute.xlu0 %6490 }
 0x46a   : > { %v6283_v31 = vpop.permute.xlu1 %6282 }
 0x46b   : > { %6320 = vst.msk [vmem:[#allocation2 + $0xa0] sm:$0xff] %vm14116_vm8, %v6283_v31  ;;  %vm14129_vm8 = vmmov %vm14117_vm6 }
 0x46c   : > { %6528 = vst.msk [vmem:[#allocation2 + $0xa0] sm:$0xff] %vm14117_vm6, %v6491_v44  ;;  %vm14130_vm6 = vmmov %vm14123_vm2  ;;  %v7282_v44 = vld [vmem:[#allocation2 + $0xe8] sm:$0xff] }
 0x46d   : > { %v5757_v36 = vpop.permute.xlu0 %5756 }
 0x46e   : > { %v6699_v57 = vpop.permute.xlu1 %6698  ;;  %v7271_v38 = vld [vmem:[#allocation2 + $0x90] sm:$0xff]  ;;  %5793 = vst.msk [vmem:[#allocation2 + $0xb0] sm:$0xff] %vm14118_vm9, %v5757_v36  ;;  %vm14131_vm9 = vmmov %vm14119_vm1 }
 0x46f   : > { %6736 = vst.msk [vmem:[#allocation2 + $0xa0] sm:$0xff] %vm14119_vm1, %v6699_v57  ;;  %7517 = vmatmul.mubr.bf16.gmra.mrb[68].mxu0 %v7271_v38  ;;  %vm14132_vm1 = vmmov %vm14126_vm4 }
 0x470   : > { %8926 = vmatprep.mubr.msk.bf16.mxu0 %vm3336_vm11, %v7274_v12 }
 0x471   : > { %v5551_v41 = vpop.permute.xlu0 %5550 }
 0x472   : > { %v5965_v1 = vpop.permute.xlu1 %5964  ;;  %5586 = vst.msk [vmem:[#allocation2 + $0xc0] sm:$0xff] %vm3549_vm5, %v5551_v41 }
 0x473   : > { %6001 = vst.msk [vmem:[#allocation2 + $0xb0] sm:$0xff] %vm14120_vm14, %v5965_v1  ;;  %vm14133_vm14 = vmmov %vm14123_vm2  ;;  %v7284_v1 = vld [vmem:[#allocation2 + $0xf8] sm:$0x3f] }
 0x475   : > { %v7028_v6 = vpop.permute.xlu0 %7027 }
 0x476   : > { %v6493_v50 = vpop.permute.xlu1 %6492  ;;  %7065 = vst.msk [vmem:[#allocation2 + $0xa0] sm:$0xff] %vm14121_vm13, %v7028_v6  ;;  %vm14134_vm13 = vmmov %vm14132_vm1 }
 0x479   : > { %v6285_v30 = vpop.permute.xlu0 %6284 }
 0x47a   : > { %v5759_v34 = vpop.permute.xlu1 %5758  ;;  %6321 = vst.msk [vmem:[#allocation2 + $0xb0] sm:$0xff] %vm14122_vm0, %v6285_v30  ;;  %vm14135_vm0 = vmmov %vm14127_vm15  ;;  %v13468_v30 = vld [vmem:[%s13812_s6] ss:$0 sm:$0xff] }
 0x47b   : > { %5794 = vst.msk [vmem:[#allocation2 + $0xc0] sm:$0xff] %vm14123_vm2, %v5759_v34  ;;  %vm5589_vm2 = vcmask 259200  }
 0x47c   : > { %6529 = vst.msk [vmem:[#allocation2 + $0xb0] sm:$0xff] %vm14124_vm12, %v6493_v50  ;;  %vm14136_vm12 = vmmov %vm14128_vm7 }
 0x47d   : > { %v6701_v62 = vpop.permute.xlu0 %6700  ;;  %v7273_v24 = vld [vmem:[#allocation2 + $0xa0] sm:$0xff] }
 0x47e   : > { %v5553_v58 = vpop.permute.xlu1 %5552  ;;  %6737 = vst.msk [vmem:[#allocation2 + $0xb0] sm:$0xff] %vm14125_vm3, %v6701_v62  ;;  %7525 = vmatmul.mubr.bf16.gmra.mrb[72].mxu0 %v7273_v24  ;;  %vm14137_vm3 = vmmov %vm14129_vm8 }
 0x47f   : > { %5587 = vst.msk [vmem:[#allocation2 + $0xd0] sm:$0xff] %vm3549_vm5, %v5553_v58  ;;  %8927 = vmatprep.mubr.msk.bf16.mxu0 %vm3336_vm11, %v7276_v11 }
 0x481   : > { %v5967_v10 = vpop.permute.xlu0 %5966 }
 0x482   : > { %v7030_v46 = vpop.permute.xlu1 %7029  ;;  %6002 = vst.msk [vmem:[#allocation2 + $0xc0] sm:$0xff] %vm14126_vm4, %v5967_v10  ;;  %vm14138_vm4 = vmmov %vm14131_vm9 }
 0x483   : > { %7066 = vst.msk [vmem:[#allocation2 + $0xb0] sm:$0xff] %vm14127_vm15, %v7030_v46  ;;  %vm14140_vm15 = vmmov %vm14128_vm7 }
 0x485   : > { %v6495_v60 = vpop.permute.xlu0 %6494 }
 0x486   : > { %v6287_v5 = vpop.permute.xlu1 %6286 }
 0x487   : > { %6322 = vst.msk [vmem:[#allocation2 + $0xc0] sm:$0xff] %vm14128_vm7, %v6287_v5  ;;  %vm14141_vm7 = vmmov %vm14137_vm3 }
 0x488   : > { %6530 = vst.msk [vmem:[#allocation2 + $0xc0] sm:$0xff] %vm14129_vm8, %v6495_v60  ;;  %vm5797_vm8 = vcmask 390400  }
 0x489   : > { %v5761_v37 = vpop.permute.xlu0 %5760 }
 0x48a   : > { %v6703_v49 = vpop.permute.xlu1 %6702  ;;  %v7275_v32 = vld [vmem:[#allocation2 + $0xb0] sm:$0xff]  ;;  %5795 = vst.msk [vmem:[#allocation2 + $0xd0] sm:$0xff] %vm14130_vm6, %v5761_v37  ;;  %vm14142_vm6 = vmmov %vm14138_vm4 }
 0x48b   : > { %6738 = vst.msk [vmem:[#allocation2 + $0xc0] sm:$0xff] %vm14131_vm9, %v6703_v49  ;;  %7533 = vmatmul.mubr.bf16.gmra.mrb[76].mxu0 %v7275_v32  ;;  %vm6005_vm9 = vcmask 521600  }
 0x48c   : > { %8928 = vmatprep.mubr.msk.bf16.mxu0 %vm3336_vm11, %v7278_v25 }
 0x48d   : > { %v6705_v40 = vpop.permute.xlu0 %6704 }
 0x48e   : > { %v5969_v16 = vpop.permute.xlu1 %5968 }
 0x48f   : > { %6003 = vst.msk [vmem:[#allocation2 + $0xd0] sm:$0xff] %vm14132_vm1, %v5969_v16  ;;  %vm14143_vm1 = vmmov %vm14135_vm0 }
 0x491   : > { %v5971_v47 = vpop.permute.xlu0 %5970 }
 0x492   : > { %v6497_v19 = vpop.permute.xlu1 %6496 }
 0x495   : > { %v5555_v23 = vpop.permute.xlu0 %5554 }
 0x496   : > { %v5763_v3 = vpop.permute.xlu1 %5762  ;;  %5588 = vst.msk [vmem:[#allocation2 + $0xe0] sm:$0xff] %vm3549_vm5, %v5555_v23  ;;  %vm14139_vm5 = vmmov %vm14135_vm0 }
 0x497   : > { %5796 = vst.msk [vmem:[#allocation2 + $0xe0] sm:$0xff] %vm14133_vm14, %v5763_v3  ;;  %vm6325_vm14 = vcmask 652800  }
 0x498   : > { %6004 = vst.msk [vmem:[#allocation2 + $0xe0] sm:$0xff] %vm14134_vm13, %v5971_v47  ;;  %vm6533_vm13 = vcmask 784000  }
 0x499   : > { %v7032_v27 = vpop.permute.xlu0 %7031 }
 0x49a   : > { %v6707_v61 = vpop.permute.xlu1 %6706  ;;  %7067 = vst.msk [vmem:[#allocation2 + $0xc0] sm:$0xff] %vm14135_vm0, %v7032_v27  ;;  %vm6741_vm0 = vcmask 915200  }
 0x49d   : > { %v6289_v39 = vpop.permute.xlu0 %6288 }
 0x49e   : > { %v5557_v52 = vpop.permute.xlu1 %5556  ;;  %6323 = vst.msk [vmem:[#allocation2 + $0xd0] sm:$0xff] %vm14136_vm12, %v6289_v39  ;;  %vm7605_vm12 = vcmp.lt.s32.totalorder %v11455_v21, 14 }
 0x49f   : > { %5590 = vst.msk [vmem:[#allocation2 + $0xf0] sm:$0x3f] %vm5589_vm2, %v5557_v52  ;;  %vm7070_vm2 = vcmask 1046400  }
 0x4a0   : > { %6531 = vst.msk [vmem:[#allocation2 + $0xd0] sm:$0xff] %vm14137_vm3, %v6497_v19  ;;  %vm7606_vm3 = vcmp.lt.s32.totalorder %v11459_v7, 14 }
 0x4a1   : > { %6739 = vst.msk [vmem:[#allocation2 + $0xd0] sm:$0xff] %vm14138_vm4, %v6705_v40  ;;  %v6499_v45 = vpop.permute.xlu0 %6498  ;;  %v7277_v48 = vld [vmem:[#allocation2 + $0xc0] sm:$0xff]  ;;  %vm14144_vm4 = vcmask 125955  }
 0x4a2   : > { %v7034_v4 = vpop.permute.xlu1 %7033  ;;  %7541 = vmatmul.mubr.bf16.gmra.mrb[80].mxu0 %v7277_v48 }
 0x4a3   : > { %7068 = vst.msk [vmem:[#allocation2 + $0xd0] sm:$0xff] %vm14139_vm5, %v7034_v4  ;;  %8929 = vmatprep.mubr.msk.bf16.mxu0 %vm3336_vm11, %v7280_v55  ;;  %vm14145_vm5 = vcmask 125952  }
 0x4a5   : > { %v7036_v56 = vpop.permute.xlu0 %7035 }
 0x4a6   : > { %v6291_v13 = vpop.permute.xlu1 %6290 }
 0x4a7   : > { %6324 = vst.msk [vmem:[#allocation2 + $0xe0] sm:$0xff] %vm14140_vm15, %v6291_v13  ;;  %vm7607_vm15 = vcmp.lt.s32.totalorder %v11562_v0, 14 }
 0x4a8   : > { %6532 = vst.msk [vmem:[#allocation2 + $0xe0] sm:$0xff] %vm14141_vm7, %v6499_v45  ;;  %vm7608_vm7 = vcmp.lt.s32.totalorder %v11568_v2, 14 }
 0x4a9   : > { %6740 = vst.msk [vmem:[#allocation2 + $0xe0] sm:$0xff] %vm14142_vm6, %v6707_v61  ;;  %v5765_v31 = vpop.permute.xlu0 %5764  ;;  %vm14147_vm6 = vmmov %vm14145_vm5 }
 0x4aa   : > { %7069 = vst.msk [vmem:[#allocation2 + $0xe0] sm:$0xff] %vm14143_vm1, %v7036_v56  ;;  %v5973_v36 = vpop.permute.xlu1 %5972  ;;  %v7279_v57 = vld [vmem:[#allocation2 + $0xd0] sm:$0xff]  ;;  %vm7610_vm1 = vcmp.lt.s32.totalorder %v11631_v42, 14 }
 0x4ab   : > { %5798 = vst.msk [vmem:[#allocation2 + $0xf0] sm:$0x3f] %vm5797_vm8, %v5765_v31  ;;  %7549 = vmatmul.mubr.bf16.gmra.mrb[84].mxu0 %v7279_v57  ;;  %vm14146_vm8 = vmmov %vm14145_vm5 }
 0x4ac   : > { %6006 = vst.msk [vmem:[#allocation2 + $0xf0] sm:$0x3f] %vm6005_vm9, %v5973_v36  ;;  %8930 = vmatprep.mubr.msk.bf16.mxu0 %vm3336_vm11, %v7282_v44  ;;  %vm7609_vm9 = vcmp.lt.s32.totalorder %v11613_v53, 14 }
 0x4ad   : > { %v6293_v38 = vpop.permute.xlu0 %6292 }
 0x4ae   : > { %v6501_v12 = vpop.permute.xlu1 %6500  ;;  %6326 = vst.msk [vmem:[#allocation2 + $0xf0] sm:$0x3f] %vm6325_vm14, %v6293_v38  ;;  %vm14148_vm14 = vmmov %vm14145_vm5 }
 0x4af   : > { %6534 = vst.msk [vmem:[#allocation2 + $0xf0] sm:$0x3f] %vm6533_vm13, %v6501_v12  ;;  %vm14149_vm13 = vmmov %vm14145_vm5 }
 0x4b1   : > { %v7281_v41 = vld [vmem:[#allocation2 + $0xe0] sm:$0xff]  ;;  %v6709_v6 = vpop.permute.xlu0 %6708 }
 0x4b2   : > { %v7038_v50 = vpop.permute.xlu1 %7037  ;;  %6742 = vst.msk [vmem:[#allocation2 + $0xf0] sm:$0x3f] %vm6741_vm0, %v6709_v6  ;;  %vm7611_vm0 = vcmp.lt.s32.totalorder %v11811_v17, 14 }
 0x4b3   : > { %7557 = vmatmul.mubr.bf16.gmra.mrb[88].mxu0 %v7281_v41  ;;  %7071 = vst.msk [vmem:[#allocation2 + $0xf0] sm:$0x3f] %vm7070_vm2, %v7038_v50  ;;  %vm7612_vm2 = vcmp.lt.s32.totalorder %v11827_v29, 14 }
 0x4b4   : > { %8931 = vmatprep.mubr.msk.bf16.mxu0 %vm3336_vm11, %v7284_v1 }
 0x4b6   : > { %v7446_v34 = vpop.f32.mrb[32].mxu0 }
 0x4b7   : > { %v7447_v62 = vadd.f32 %v13468_v30, %v7446_v34  ;;  %v7448_v24 = vpop.f32.mrb[33].mxu0 }
 0x4b8   : > { %v7449_v58 = vpop.f32.mrb[34].mxu0 }
 0x4b9   : > { %v7573_v10 = vmax.f32 %v7447_v62, 0.0  ;;  %v7450_v46 = vadd.f32 %v13468_v30, %v7449_v58  ;;  %v7451_v60 = vpop.f32.mrb[35].mxu0 }
 0x4ba   : > { %v7283_v11 = vld [vmem:[#allocation2 + $0xf0] sm:$0x3f] }
 0x4bb   : > { %7565 = vmatmul.mubr.bf16.gmra.mrb[92].mxu0 %v7283_v11  ;;  %v7701_v5 = vsel %vm7605_vm12, %v7573_v10, 0.0  ;;  %v7574_v37 = vmax.f32 %v7450_v46, 0.0  ;;  %vm14150_vm12 = vmmov %vm14145_vm5 }
 0x4bc   : > { %v9017_v49 = vpack.c.bf16 %v7701_v5, %v7701_v5 }
 0x4bd   : > { %v7702_v32 = vsel %vm7606_vm3, %v7574_v37, 0.0  ;;  %vm14151_vm3 = vmmov %vm14145_vm5 }
 0x4be   : > { %v7829_v25 = vrot.slane %v9017_v49, 5  ;;  %v9018_v40 = vpack.c.bf16 %v7702_v32, %v7702_v32 }
 0x4c0   : > { %v7830_v16 = vrot.slane %v7829_v25, 4  ;;  %7957 = vst.msk [vmem:[#allocation5 + $0x10] sm:$0x8] %vm14144_vm4, %v7829_v25  ;;  %v7831_v47 = vrot.slane %v9018_v40, 5 }
 0x4c2   : > { %v7832_v21 = vsel %vm11478_vm10, %v7830_v16, %v7831_v47  ;;  %v7833_v55 = vrot.slane %v7831_v47, 4 }
 0x4c3   : > { %7958 = vst.msk [vmem:[#allocation5 + $0x14] sm:$0xf] %vm14145_vm5, %v7832_v21 }
 0x4c5   : > { %v7454_v19 = vpop.f32.mrb[36].mxu0 }
 0x4c6   : > { %v7455_v23 = vadd.f32 %v13468_v30, %v7454_v19  ;;  %v7456_v3 = vpop.f32.mrb[37].mxu0 }
 0x4c7   : > { %v7457_v7 = vpop.f32.mrb[38].mxu0 }
 0x4c8   : > { %v7575_v27 = vmax.f32 %v7455_v23, 0.0  ;;  %v7458_v61 = vadd.f32 %v13468_v30, %v7457_v7  ;;  %v7459_v39 = vpop.f32.mrb[39].mxu0 }
 0x4ca   : > { %v7703_v52 = vsel %vm7607_vm15, %v7575_v27, 0.0  ;;  %v7576_v45 = vmax.f32 %v7458_v61, 0.0  ;;  %vm14154_vm15 = vmmov %vm14151_vm3 }
 0x4cb   : > { %v9019_v48 = vpack.c.bf16 %v7703_v52, %v7703_v52 }
 0x4cc   : > { %v7704_v4 = vsel %vm7608_vm7, %v7576_v45, 0.0  ;;  %vm14155_vm7 = vmmov %vm14151_vm3 }
 0x4cd   : > { %v7834_v56 = vrot.slane %v9019_v48, 5  ;;  %v9020_v13 = vpack.c.bf16 %v7704_v4, %v7704_v4  ;;  %v14152_v4 = vld [vmem:[#allocation7_spill] sm:$0xff] }
 0x4ce   : > { %vm7613_vm4 = vcmp.lt.s32.totalorder %v14152_v4, 14 }
 0x4cf   : > { %v7835_v44 = vsel %vm11478_vm10, %v7833_v55, %v7834_v56  ;;  %v7836_v31 = vrot.slane %v7834_v56, 4  ;;  %v7837_v36 = vrot.slane %v9020_v13, 5 }
 0x4d0   : > { %7959 = vst.msk [vmem:[#allocation5 + $0x18] sm:$0xf] %vm14146_vm8, %v7835_v44  ;;  %vm7615_vm8 = vcmp.lt.s32.totalorder %v12104_v28, 14 }
 0x4d1   : > { %v7838_v0 = vsel %vm11478_vm10, %v7836_v31, %v7837_v36  ;;  %v7839_v58 = vrot.slane %v7837_v36, 4  ;;  %v14153_v31 = vld [vmem:[#allocation8_spill] sm:$0xff] }
 0x4d2   : > { %7960 = vst.msk [vmem:[#allocation5 + $0x1c] sm:$0xf] %vm14147_vm6, %v7838_v0  ;;  %vm7614_vm5 = vcmp.lt.s32.totalorder %v14153_v31, 14 }
 0x4d6   : > { %v7462_v2 = vpop.f32.mrb[40].mxu0 }
 0x4d7   : > { %v7463_v57 = vadd.f32 %v13468_v30, %v7462_v2  ;;  %v7464_v38 = vpop.f32.mrb[41].mxu0 }
 0x4d8   : > { %v7465_v12 = vpop.f32.mrb[42].mxu0 }
 0x4d9   : > { %v7577_v41 = vmax.f32 %v7463_v57, 0.0  ;;  %v7466_v1 = vadd.f32 %v13468_v30, %v7465_v12  ;;  %v7467_v6 = vpop.f32.mrb[43].mxu0 }
 0x4db   : > { %v7705_v50 = vsel %vm7609_vm9, %v7577_v41, 0.0  ;;  %v7578_v34 = vmax.f32 %v7466_v1, 0.0  ;;  %vm14157_vm9 = vmmov %vm14151_vm3 }
 0x4dc   : > { %v9021_v62 = vpack.c.bf16 %v7705_v50, %v7705_v50 }
 0x4dd   : > { %v7706_v24 = vsel %vm7610_vm1, %v7578_v34, 0.0  ;;  %vm14158_vm1 = vmmov %vm14151_vm3 }
 0x4de   : > { %v7840_v11 = vrot.slane %v9021_v62, 5  ;;  %v9022_v10 = vpack.c.bf16 %v7706_v24, %v7706_v24 }
 0x4e0   : > { %v7841_v46 = vsel %vm11478_vm10, %v7839_v58, %v7840_v11  ;;  %v7842_v60 = vrot.slane %v7840_v11, 4  ;;  %v7843_v5 = vrot.slane %v9022_v10, 5 }
 0x4e1   : > { %7961 = vst.msk [vmem:[#allocation5 + $0x20] sm:$0xf] %vm14148_vm14, %v7841_v46 }
 0x4e2   : > { %v7844_v53 = vsel %vm11478_vm10, %v7842_v60, %v7843_v5  ;;  %v7470_v42 = vpop.f32.mrb[44].mxu0  ;;  %v7845_v3 = vrot.slane %v7843_v5, 4  ;;  %v14156_v5 = vld [vmem:[#allocation9_spill] sm:$0xff] }
 0x4e3   : > { %7962 = vst.msk [vmem:[#allocation5 + $0x24] sm:$0xf] %vm14149_vm13, %v7844_v53  ;;  %v7471_v37 = vadd.f32 %v13468_v30, %v7470_v42  ;;  %v7472_v49 = vpop.f32.mrb[45].mxu0  ;;  %vm7616_vm6 = vcmp.lt.s32.totalorder %v14156_v5, 14 }
 0x4e4   : > { %v7473_v32 = vpop.f32.mrb[46].mxu0 }
 0x4e5   : > { %v7579_v25 = vmax.f32 %v7471_v37, 0.0  ;;  %v7474_v40 = vadd.f32 %v13468_v30, %v7473_v32  ;;  %v7475_v16 = vpop.f32.mrb[47].mxu0 }
 0x4e7   : > { %v7707_v47 = vsel %vm7611_vm0, %v7579_v25, 0.0  ;;  %v7580_v21 = vmax.f32 %v7474_v40, 0.0  ;;  %vm14161_vm0 = vmmov %vm14158_vm1 }
 0x4e8   : > { %v9023_v19 = vpack.c.bf16 %v7707_v47, %v7707_v47 }
 0x4e9   : > { %v7708_v23 = vsel %vm7612_vm2, %v7580_v21, 0.0  ;;  %vm14162_vm2 = vmmov %vm14161_vm0 }
 0x4ea   : > { %v7846_v7 = vrot.slane %v9023_v19, 5  ;;  %v9024_v27 = vpack.c.bf16 %v7708_v23, %v7708_v23 }
 0x4ec   : > { %v7847_v61 = vsel %vm11478_vm10, %v7845_v3, %v7846_v7  ;;  %v7848_v39 = vrot.slane %v7846_v7, 4  ;;  %v7849_v52 = vrot.slane %v9024_v27, 5  ;;  %v14159_v7 = vld [vmem:[#allocation10_spill] sm:$0xff] }
 0x4ed   : > { %7963 = vst.msk [vmem:[#allocation5 + $0x28] sm:$0xf] %vm14150_vm12, %v7847_v61  ;;  %vm7617_vm14 = vcmp.lt.s32.totalorder %v14159_v7, 14  ;;  %vm353_vm12 = vcmask 125953  }
 0x4ee   : > { %v7850_v17 = vsel %vm11478_vm10, %v7848_v39, %v7849_v52  ;;  %v7851_v38 = vrot.slane %v7849_v52, 4 }
 0x4ef   : > { %7964 = vst.msk [vmem:[#allocation5 + $0x2c] sm:$0xf] %vm14151_vm3, %v7850_v17  ;;  %v7478_v29 = vpop.f32.mrb[48].mxu0  ;;  %v14160_v17 = vld [vmem:[#allocation11_spill] sm:$0xff]  ;;  %vm7619_vm3 = vcmp.lt.s32.totalorder %v12395_v18, 14 }
 0x4f0   : > { %v7479_v45 = vadd.f32 %v13468_v30, %v7478_v29  ;;  %v7480_v48 = vpop.f32.mrb[49].mxu0  ;;  %vm7618_vm13 = vcmp.lt.s32.totalorder %v14160_v17, 14  ;;  %v13535_v29 = vld [vmem:[%s13813_s7] sm:$0x1f]  }
 0x4f1   : > { %v7481_v55 = vpop.f32.mrb[50].mxu0  ;;  %9084 = vmatprep.mubr.msk.bf16.mxu1 %vm3336_vm11, %v13535_v29 }
 0x4f2   : > { %v7581_v56 = vmax.f32 %v7479_v45, 0.0  ;;  %v7482_v13 = vadd.f32 %v13468_v30, %v7481_v55  ;;  %v7483_v44 = vpop.f32.mrb[51].mxu0 }
 0x4f4   : > { %v7709_v36 = vsel %vm7613_vm4, %v7581_v56, 0.0  ;;  %v7582_v0 = vmax.f32 %v7482_v13, 0.0  ;;  %vm7620_vm4 = vcmp.lt.s32.totalorder %v12413_v9, 14 }
 0x4f5   : > { %v9025_v2 = vpack.c.bf16 %v7709_v36, %v7709_v36 }
 0x4f6   : > { %v7710_v57 = vsel %vm7614_vm5, %v7582_v0, 0.0  ;;  %vm14164_vm5 = vmmov %vm14161_vm0 }
 0x4f7   : > { %v7852_v12 = vrot.slane %v9025_v2, 5  ;;  %v9026_v41 = vpack.c.bf16 %v7710_v57, %v7710_v57 }
 0x4f9   : > { %v7853_v1 = vsel %vm11478_vm10, %v7851_v38, %v7852_v12  ;;  %v7854_v6 = vrot.slane %v7852_v12, 4  ;;  %v7855_v50 = vrot.slane %v9026_v41, 5 }
 0x4fa   : > { %7965 = vst.msk [vmem:[#allocation5 + $0x30] sm:$0xf] %vm14154_vm15, %v7853_v1  ;;  %v14163_v1 = vmov 0   ;;  %vm14165_vm15 = vmmov %vm14161_vm0 }
 0x4fb   : > { %v7856_v34 = vsel %vm11478_vm10, %v7854_v6, %v7855_v50  ;;  %v7857_v32 = vrot.slane %v7855_v50, 4  ;;  %354 = vst.msk [vmem:[#allocation5 + $0x90] sm:$0xe] %vm353_vm12, %v14163_v1  ;;  %vm7626_vm12 = vcmp.lt.s32.totalorder %v12753_v26, 14 }
 0x4fc   : > { %7966 = vst.msk [vmem:[#allocation5 + $0x34] sm:$0xf] %vm14155_vm7, %v7856_v34  ;;  %vm7621_vm7 = vcmp.lt.s32.totalorder %v12460_v54, 14 }
 0x4ff   : > { %v7486_v62 = vpop.f32.mrb[52].mxu0 }
 0x500   : > { %v7487_v24 = vadd.f32 %v13468_v30, %v7486_v62  ;;  %v7488_v58 = vpop.f32.mrb[53].mxu0  ;;  %v9555_v62 = vld [vmem:[#allocation5] sm:$0xff]  }
 0x501   : > { %v7489_v11 = vpop.f32.mrb[54].mxu0 }
 0x502   : > { %v7583_v10 = vmax.f32 %v7487_v24, 0.0  ;;  %v7490_v46 = vadd.f32 %v13468_v30, %v7489_v11  ;;  %v7491_v60 = vpop.f32.mrb[55].mxu0 }
 0x503   : > { %v8146_v60 = vsel %vm3336_vm11, %v9555_v62, 0 }
 0x504   : > { %v7711_v53 = vsel %vm7615_vm8, %v7583_v10, 0.0  ;;  %v7584_v42 = vmax.f32 %v7490_v46, 0.0  ;;  %vm7622_vm8 = vcmp.lt.s32.totalorder %v12481_v8, 14 }
 0x505   : > { %v9027_v37 = vpack.c.bf16 %v7711_v53, %v7711_v53 }
 0x506   : > { %v7712_v49 = vsel %vm7616_vm6, %v7584_v42, 0.0  ;;  %vm14166_vm6 = vmmov %vm14161_vm0 }
 0x507   : > { %v7858_v25 = vrot.slane %v9027_v37, 5  ;;  %v9028_v40 = vpack.c.bf16 %v7712_v49, %v7712_v49 }
 0x509   : > { %v7859_v16 = vsel %vm11478_vm10, %v7857_v32, %v7858_v25  ;;  %v7860_v47 = vrot.slane %v7858_v25, 4  ;;  %v7861_v21 = vrot.slane %v9028_v40, 5  ;;  %v9557_v25 = vld [vmem:[#allocation5 + $0x8] sm:$0xff]  }
 0x50a   : > { %7967 = vst.msk [vmem:[#allocation5 + $0x38] sm:$0xf] %vm14157_vm9, %v7859_v16  ;;  %vm14167_vm9 = vmmov %vm14161_vm0 }
 0x50b   : > { %v7862_v28 = vsel %vm11478_vm10, %v7860_v47, %v7861_v21  ;;  %v7863_v56 = vrot.slane %v7861_v21, 4 }
 0x50c   : > { %7968 = vst.msk [vmem:[#allocation5 + $0x3c] sm:$0xf] %vm14158_vm1, %v7862_v28  ;;  %vm7623_vm1 = vcmp.lt.s32.totalorder %v12654_v33, 14 }
 0x511   : > { %v7494_v19 = vpop.f32.mrb[56].mxu0 }
 0x512   : > { %v7495_v23 = vadd.f32 %v13468_v30, %v7494_v19  ;;  %v7496_v3 = vpop.f32.mrb[57].mxu0 }
 0x513   : > { %v7497_v27 = vpop.f32.mrb[58].mxu0  ;;  %v8149_v3 = vsel %vm3336_vm11, %v9557_v25, 0 }
 0x514   : > { %v7585_v61 = vmax.f32 %v7495_v23, 0.0  ;;  %v7498_v39 = vadd.f32 %v13468_v30, %v7497_v27  ;;  %v7499_v52 = vpop.f32.mrb[59].mxu0 }
 0x516   : > { %v7713_v45 = vsel %vm7617_vm14, %v7585_v61, 0.0  ;;  %v7586_v48 = vmax.f32 %v7498_v39, 0.0  ;;  %vm7624_vm14 = vcmp.lt.s32.totalorder %v12668_v43, 14 }
 0x517   : > { %v9029_v4 = vpack.c.bf16 %v7713_v45, %v7713_v45 }
 0x518   : > { %v7714_v55 = vsel %vm7618_vm13, %v7586_v48, 0.0  ;;  %vm14168_vm13 = vmmov %vm14161_vm0 }
 0x519   : > { %v7864_v13 = vrot.slane %v9029_v4, 5  ;;  %v9030_v44 = vpack.c.bf16 %v7714_v55, %v7714_v55 }
 0x51b   : > { %v7865_v31 = vsel %vm11478_vm10, %v7863_v56, %v7864_v13  ;;  %v7866_v36 = vrot.slane %v7864_v13, 4  ;;  %v7867_v0 = vrot.slane %v9030_v44, 5 }
 0x51c   : > { %7969 = vst.msk [vmem:[#allocation5 + $0x40] sm:$0xf] %vm14161_vm0, %v7865_v31 }
 0x51d   : > { %v7868_v2 = vsel %vm11478_vm10, %v7866_v36, %v7867_v0  ;;  %v7869_v5 = vrot.slane %v7867_v0, 4 }
 0x51e   : > { %7970 = vst.msk [vmem:[#allocation5 + $0x44] sm:$0xf] %vm14162_vm2, %v7868_v2  ;;  %v8439_v2 = vld [vmem:[#allocation6] sm:$0x1]  ;;  %vm7625_vm2 = vcmp.lt.s32.totalorder %v12739_v20, 14 }
 0x51f   : > { %8442 = vperm.xlu1 %9252, %v8439_v2  }
 0x522   : > { %v7502_v57 = vpop.f32.mrb[60].mxu0 }
 0x523   : > { %v7503_v38 = vadd.f32 %v13468_v30, %v7502_v57  ;;  %v7504_v12 = vpop.f32.mrb[61].mxu0 }
 0x524   : > { %v7505_v41 = vpop.f32.mrb[62].mxu0 }
 0x525   : > { %v7587_v6 = vmax.f32 %v7503_v38, 0.0  ;;  %v7506_v50 = vadd.f32 %v13468_v30, %v7505_v41  ;;  %v7507_v34 = vpop.f32.mrb[63].mxu0  ;;  %v9554_v46 = vld [vmem:[#allocation5 + $0x40] sm:$0xff]   ;;  %v9559_v41 = vld [vmem:[#allocation5 + $0x10] sm:$0xff]  }
 0x526   : > { %9145 = vmatprep.subr.msk.bf16.mxu1 %vm3336_vm11, %v9554_v46 }
 0x527   : > { %v7715_v24 = vsel %vm7619_vm3, %v7587_v6, 0.0  ;;  %v7588_v58 = vmax.f32 %v7506_v50, 0.0  ;;  %9069 = vmatpush3.bf16.xpose.msra.mxu1 %v8146_v60  ;;  %vm14169_vm3 = vmmov %vm14161_vm0 }
 0x528   : > { %v9031_v11 = vpack.c.bf16 %v7715_v24, %v7715_v24 }
 0x529   : > { %v7716_v10 = vsel %vm7620_vm4, %v7588_v58, 0.0  ;;  %vm14170_vm4 = vmmov %vm14161_vm0 }
 0x52a   : > { %v7870_v53 = vrot.slane %v9031_v11, 5  ;;  %v9032_v18 = vpack.c.bf16 %v7716_v10, %v7716_v10  ;;  %v8152_v11 = vsel %vm3336_vm11, %v9559_v41, 0 }
 0x52c   : > { %v7871_v42 = vsel %vm11478_vm10, %v7869_v5, %v7870_v53  ;;  %v7872_v37 = vrot.slane %v7870_v53, 4  ;;  %v7873_v49 = vrot.slane %v9032_v18, 5  ;;  %v9561_v53 = vld [vmem:[#allocation5 + $0x18] sm:$0xff]  }
 0x52d   : > { %7971 = vst.msk [vmem:[#allocation5 + $0x48] sm:$0xf] %vm14164_vm5, %v7871_v42  ;;  %vm7627_vm5 = vcmp.lt.s32.totalorder %v12840_v14, 14 }
 0x52e   : > { %v7874_v9 = vsel %vm11478_vm10, %v7872_v37, %v7873_v49  ;;  %v7875_v52 = vrot.slane %v7873_v49, 4 }
 0x52f   : > { %7972 = vst.msk [vmem:[#allocation5 + $0x4c] sm:$0xf] %vm14165_vm15, %v7874_v9  ;;  %vm7628_vm15 = vcmp.lt.s32.totalorder %v12859_v35, 14 }
 0x534   : > { %v7510_v32 = vpop.f32.mrb[64].mxu0 }
 0x535   : > { %v7511_v40 = vadd.f32 %v13468_v30, %v7510_v32  ;;  %v7512_v16 = vpop.f32.mrb[65].mxu0 }
 0x536   : > { %v7513_v47 = vpop.f32.mrb[66].mxu0  ;;  %v9556_v23 = vld [vmem:[#allocation5 + $0x48] sm:$0xff]  }
 0x537   : > { %v7589_v21 = vmax.f32 %v7511_v40, 0.0  ;;  %v7514_v28 = vadd.f32 %v13468_v30, %v7513_v47  ;;  %v7515_v19 = vpop.f32.mrb[67].mxu0  ;;  %9146 = vmatprep.subr.msk.bf16.mxu1 %vm3336_vm11, %v9556_v23  ;;  %v8155_v40 = vsel %vm3336_vm11, %v9561_v53, 0 }
 0x538   : > { %9071 = vmatpush3.bf16.xpose.msra.mxu1 %v8149_v3 }
 0x539   : > { %v7717_v7 = vsel %vm7621_vm7, %v7589_v21, 0.0  ;;  %v7590_v27 = vmax.f32 %v7514_v28, 0.0  ;;  %vm14171_vm7 = vmmov %vm14161_vm0 }
 0x53a   : > { %v9033_v61 = vpack.c.bf16 %v7717_v7, %v7717_v7 }
 0x53b   : > { %v7718_v39 = vsel %vm7622_vm8, %v7590_v27, 0.0  ;;  %vm14172_vm8 = vmmov %vm14161_vm0 }
 0x53c   : > { %v7876_v17 = vrot.slane %v9033_v61, 5  ;;  %v9034_v54 = vpack.c.bf16 %v7718_v39, %v7718_v39  ;;  %v387_v39 = vadd.s32 216, %v11413_v15 }
 0x53e   : > { %v7877_v45 = vsel %vm11478_vm10, %v7875_v52, %v7876_v17  ;;  %v7878_v48 = vrot.slane %v7876_v17, 4  ;;  %v7879_v4 = vrot.slane %v9034_v54, 5 }
 0x53f   : > { %7973 = vst.msk [vmem:[#allocation5 + $0x50] sm:$0xf] %vm14166_vm6, %v7877_v45  ;;  %vm7629_vm6 = vcmp.lt.s32.totalorder %v12930_v22, 14 }
 0x540   : > { %v7880_v8 = vsel %vm11478_vm10, %v7878_v48, %v7879_v4  ;;  %v7881_v6 = vrot.slane %v7879_v4, 4  ;;  %v9563_v4 = vld [vmem:[#allocation5 + $0x20] sm:$0xff]  }
 0x541   : > { %7974 = vst.msk [vmem:[#allocation5 + $0x54] sm:$0xf] %vm14167_vm9, %v7880_v8  ;;  %v8158_v2 = vsel %vm3336_vm11, %v9563_v4, 0 }
 0x542   : > { %v7518_v55 = vpop.f32.mrb[68].mxu0 }
 0x543   : > { %v7519_v56 = vadd.f32 %v13468_v30, %v7518_v55  ;;  %v7520_v13 = vpop.f32.mrb[69].mxu0 }
 0x544   : > { %v7521_v44 = vpop.f32.mrb[70].mxu0 }
 0x545   : > { %v7591_v31 = vmax.f32 %v7519_v56, 0.0  ;;  %v7522_v36 = vadd.f32 %v13468_v30, %v7521_v44  ;;  %v7523_v0 = vpop.f32.mrb[71].mxu0  ;;  %v13599_v55 = vmul.u32.u64.low 3817748708, %v387_v39  ;;  %v13600_v56 = vmul.u32.u64.high 3817748708, %v387_v39, %v13599_v55 }
 0x546   : > { %v388_v44 = vadd.s32 224, %v11413_v15 }
 0x547   : > { %v7719_v57 = vsel %vm7623_vm1, %v7591_v31, 0.0  ;;  %v7592_v38 = vmax.f32 %v7522_v36, 0.0 }
 0x548   : > { %v9035_v12 = vpack.c.bf16 %v7719_v57, %v7719_v57  ;;  %v9558_v62 = vld [vmem:[#allocation5 + $0x50] sm:$0xff]  }
 0x549   : > { %v7720_v1 = vsel %vm7624_vm14, %v7592_v38, 0.0  ;;  %9147 = vmatprep.subr.msk.bf16.mxu1 %vm3336_vm11, %v9558_v62  ;;  %vm7630_vm14 = vcmp.lt.s32.totalorder %v12957_v63, 14 }
 0x54a   : > { %v7882_v50 = vrot.slane %v9035_v12, 5  ;;  %v9036_v34 = vpack.c.bf16 %v7720_v1, %v7720_v1  ;;  %9073 = vmatpush3.bf16.xpose.msra.mxu1 %v8152_v11  ;;  %v389_v12 = vadd.s32 232, %v11413_v15 }
 0x54b   : > { %v13611_v41 = vmul.u32.u64.low 3817748708, %v388_v44  ;;  %v13612_v1 = vmul.u32.u64.high 3817748708, %v388_v44, %v13611_v41 }
 0x54c   : > { %v7883_v33 = vsel %vm11478_vm10, %v7881_v6, %v7882_v50  ;;  %v7884_v24 = vrot.slane %v7882_v50, 4  ;;  %v7885_v58 = vrot.slane %v9036_v34, 5  ;;  %v695_v50 = vshrl.u32 %v13600_v56, 4 }
 0x54d   : > { %7975 = vst.msk [vmem:[#allocation5 + $0x58] sm:$0xf] %vm14168_vm13, %v7883_v33  ;;  %v13619_v34 = vmul.u32.u64.low 3817748708, %v389_v12  ;;  %v13620_v62 = vmul.u32.u64.high 3817748708, %v389_v12, %v13619_v34  ;;  %v13623_v33 = vadd.s32 240, %v11413_v15  ;;  %v706_v11 = vshrl.u32 %v13612_v1, 4 }
 0x54e   : > { %v7886_v43 = vsel %vm11478_vm10, %v7884_v24, %v7885_v58  ;;  %v7887_v47 = vrot.slane %v7885_v58, 4  ;;  %v9565_v24 = vld [vmem:[#allocation5 + $0x28] sm:$0xff]   ;;  %v696_v58 = vmul.u32 18, %v695_v50 }
 0x54f   : > { %7976 = vst.msk [vmem:[#allocation5 + $0x5c] sm:$0xf] %vm14161_vm0, %v7886_v43  ;;  %v13627_v43 = vadd.s32 248, %v11413_v15  ;;  %vm7631_vm0 = vcmp.lt.s32.totalorder %v13024_v51, 14 }
 0x550   : > { %v697_v53 = vsub.s32 %v387_v39, %v696_v58 }
 0x551   : > { %v7526_v10 = vpop.f32.mrb[72].mxu0 }
 0x552   : > { %v7527_v46 = vadd.f32 %v13468_v30, %v7526_v10  ;;  %v7528_v60 = vpop.f32.mrb[73].mxu0  ;;  %vm771_vm9 = vcmp.ne.s32.totalorder %v697_v53, 0  ;;  %vm803_vm1 = vcmp.lt.s32.totalorder %v697_v53, 0 }
 0x553   : > { %v7529_v5 = vpop.f32.mrb[74].mxu0  ;;  %vm13645_vm13 = vmand %vm803_vm1, %vm771_vm9 }
 0x554   : > { %v7593_v18 = vmax.f32 %v7527_v46, 0.0  ;;  %v7530_v42 = vadd.f32 %v13468_v30, %v7529_v5  ;;  %v7531_v37 = vpop.f32.mrb[75].mxu0  ;;  %v13630_v46 = vmul.u32.u64.low 3817748708, %v13623_v33  ;;  %v13631_v60 = vmul.u32.u64.high 3817748708, %v13623_v33, %v13630_v46 }
 0x555   : > { %v8161_v5 = vsel %vm3336_vm11, %v9565_v24, 0 }
 0x556   : > { %v9560_v49 = vld [vmem:[#allocation5 + $0x58] sm:$0xff]   ;;  %v7721_v9 = vsel %vm7625_vm2, %v7593_v18, 0.0  ;;  %v7594_v32 = vmax.f32 %v7530_v42, 0.0  ;;  %v717_v18 = vshrl.u32 %v13620_v62, 4  ;;  %v707_v42 = vmul.u32 18, %v706_v11 }
 0x557   : > { %v9037_v25 = vpack.c.bf16 %v7721_v9, %v7721_v9  ;;  %9148 = vmatprep.subr.msk.bf16.mxu1 %vm3336_vm11, %v9560_v49  ;;  %v13637_v37 = vmul.u32.u64.low 3817748708, %v13627_v43  ;;  %v13638_v49 = vmul.u32.u64.high 3817748708, %v13627_v43, %v13637_v37 }
 0x558   : > { %v7722_v16 = vsel %vm7626_vm12, %v7594_v32, 0.0  ;;  %9075 = vmatpush3.bf16.xpose.msra.mxu1 %v8155_v40 }
 0x559   : > { %v7888_v20 = vrot.slane %v9037_v25, 5  ;;  %v9038_v21 = vpack.c.bf16 %v7722_v16, %v7722_v16  ;;  %v718_v16 = vmul.u32 18, %v717_v18  ;;  %v739_v39 = vshrl.u32 %v13638_v49, 4 }
 0x55b   : > { %v7889_v28 = vsel %vm11478_vm10, %v7887_v47, %v7888_v20  ;;  %v7890_v19 = vrot.slane %v7888_v20, 4  ;;  %v7891_v23 = vrot.slane %v9038_v21, 5  ;;  %v719_v22 = vsub.s32 %v389_v12, %v718_v16 }
 0x55c   : > { %7977 = vst.msk [vmem:[#allocation5 + $0x60] sm:$0xf] %vm14169_vm3, %v7889_v28  ;;  %v708_v28 = vsub.s32 %v388_v44, %v707_v42 }
 0x55d   : > { %v7892_v26 = vsel %vm11478_vm10, %v7890_v19, %v7891_v23  ;;  %v7893_v14 = vrot.slane %v7891_v23, 4  ;;  %vm773_vm3 = vcmp.ne.s32.totalorder %v719_v22, 0  ;;  %v869_v41 = vadd.s32 18, %v719_v22 }
 0x55e   : > { %v7534_v3 = vpop.f32.mrb[76].mxu0  ;;  %7978 = vst.msk [vmem:[#allocation5 + $0x64] sm:$0xf] %vm14170_vm4, %v7892_v26  ;;  %v867_v26 = vadd.s32 18, %v697_v53  ;;  %vm772_vm2 = vcmp.ne.s32.totalorder %v708_v28, 0  ;;  %vm804_vm12 = vcmp.lt.s32.totalorder %v708_v28, 0 }
 0x55f   : > { %v7535_v7 = vadd.f32 %v13468_v30, %v7534_v3  ;;  %v7536_v27 = vpop.f32.mrb[77].mxu0  ;;  %v728_v3 = vshrl.u32 %v13631_v60, 4 }
 0x560   : > { %v7537_v61 = vpop.f32.mrb[78].mxu0  ;;  %v899_v4 = vsel %vm13645_vm13, %v867_v26, %v697_v53  ;;  %v9567_v53 = vld [vmem:[#allocation5 + $0x30] sm:$0xff]   ;;  %vm14182_vm13 = vmmov %vm14170_vm4 }
 0x561   : > { %v7595_v52 = vmax.f32 %v7535_v7, 0.0  ;;  %v7538_v17 = vadd.f32 %v13468_v30, %v7537_v61  ;;  %v7539_v54 = vpop.f32.mrb[79].mxu0  ;;  %v729_v55 = vmul.u32 18, %v728_v3 }
 0x563   : > { %v7723_v45 = vsel %vm7627_vm5, %v7595_v52, 0.0  ;;  %v7596_v48 = vmax.f32 %v7538_v17, 0.0  ;;  %vm13661_vm5 = vmand %vm804_vm12, %vm772_vm2  ;;  %v730_v1 = vsub.s32 %v13623_v33, %v729_v55  ;;  %v9575_v33 = vld [vmem:[#allocation5 + $0xa0] ss:$0 sps:$4 sm:$0xff]  }
 0x564   : > { %v9039_v8 = vpack.c.bf16 %v7723_v45, %v7723_v45 }
 0x565   : > { %v7724_v13 = vsel %vm7628_vm15, %v7596_v48, 0.0  ;;  %v9562_v0 = vld [vmem:[#allocation5 + $0x60] sm:$0xff]   ;;  %vm805_vm15 = vcmp.lt.s32.totalorder %v719_v22, 0  ;;  %vm774_vm1 = vcmp.ne.s32.totalorder %v730_v1, 0  ;;  %v870_v16 = vadd.s32 18, %v730_v1 }
 0x566   : > { %v7894_v31 = vrot.slane %v9039_v8, 5  ;;  %v9040_v36 = vpack.c.bf16 %v7724_v13, %v7724_v13  ;;  %9149 = vmatprep.subr.msk.bf16.mxu1 %vm3336_vm11, %v9562_v0  ;;  %v868_v8 = vadd.s32 18, %v708_v28 }
 0x567   : > { %9077 = vmatpush3.bf16.xpose.msra.mxu1 %v8158_v2 }
 0x568   : > { %v7895_v57 = vsel %vm11478_vm10, %v7893_v14, %v7894_v31  ;;  %v7896_v35 = vrot.slane %v7894_v31, 4  ;;  %v13606_v38 = vrot.slane %v9040_v36, 5  ;;  %v900_v50 = vsel %vm13661_vm5, %v868_v8, %v708_v28 }
 0x569   : > { %7979 = vst.msk [vmem:[#allocation5 + $0x68] sm:$0xf] %vm14171_vm7, %v7895_v57  ;;  %v740_v57 = vmul.u32 18, %v739_v39  ;;  %vm7632_vm7 = vcmp.lt.s32.totalorder %v899_v4, 14  ;;  %vm13680_vm9 = vcmp.lt.s32.totalorder %v900_v50, 14  ;;  %v9569_v4 = vld [vmem:[#allocation5 + $0x38] sm:$0xff]  }
 0x56a   : > { %v7898_v6 = vsel %vm11478_vm10, %v7896_v35, %v13606_v38  ;;  %v7899_v52 = vrot.slane %v13606_v38, 4 }
 0x56b   : > { %7980 = vst.msk [vmem:[#allocation5 + $0x6c] sm:$0xf] %vm14172_vm8, %v7898_v6  ;;  %vm14177_vm8 = vmmov %vm14170_vm4  ;;  %v741_v24 = vsub.s32 %v13627_v43, %v740_v57 }
 0x56d   : > { %vm807_vm2 = vcmp.lt.s32.totalorder %v741_v24, 0  ;;  %v871_v28 = vadd.s32 18, %v741_v24 }
 0x572   : > { %v9564_v10 = vld [vmem:[#allocation5 + $0x68] sm:$0xff]  }
 0x573   : > { %9150 = vmatprep.subr.msk.bf16.mxu1 %vm3336_vm11, %v9564_v10 }
 0x574   : > { %9079 = vmatpush3.bf16.xpose.msra.mxu1 %v8161_v5 }
 0x575   : > { %v7542_v9 = vpop.f32.mrb[80].mxu0 }
 0x576   : > { %v7543_v32 = vadd.f32 %v13468_v30, %v7542_v9  ;;  %v7544_v25 = vpop.f32.mrb[81].mxu0 }
 0x577   : > { %v7545_v40 = vpop.f32.mrb[82].mxu0 }
 0x578   : > { %v7597_v47 = vmax.f32 %v7543_v32, 0.0  ;;  %v7546_v20 = vadd.f32 %v13468_v30, %v7545_v40  ;;  %v7547_v21 = vpop.f32.mrb[83].mxu0 }
 0x57a   : > { %v7725_v19 = vsel %vm7629_vm6, %v7597_v47, 0.0  ;;  %v7598_v23 = vmax.f32 %v7546_v20, 0.0  ;;  %vm13674_vm6 = vmand %vm805_vm15, %vm773_vm3 }
 0x57b   : > { %v9041_v7 = vpack.c.bf16 %v7725_v19, %v7725_v19  ;;  %v901_v5 = vsel %vm13674_vm6, %v869_v41, %v719_v22  ;;  %vm14183_vm3 = vmmov %vm14170_vm4 }
 0x57c   : > { %v7726_v61 = vsel %vm7630_vm14, %v7598_v23, 0.0  ;;  %vm806_vm14 = vcmp.lt.s32.totalorder %v730_v1, 0  ;;  %vm7634_vm12 = vcmp.lt.s32.totalorder %v901_v5, 14  ;;  %v8164_v23 = vsel %vm3336_vm11, %v9567_v53, 0  ;;  %vm14188_vm15 = vmmov %vm14183_vm3 }
 0x57d   : > { %v7900_v63 = vrot.slane %v9041_v7, 5  ;;  %v9042_v17 = vpack.c.bf16 %v7726_v61, %v7726_v61 }
 0x57e   : > { %v7550_v54 = vpop.f32.mrb[84].mxu0 }
 0x57f   : > { %v7551_v45 = vadd.f32 %v13468_v30, %v7550_v54  ;;  %v7552_v48 = vpop.f32.mrb[85].mxu0  ;;  %v7901_v56 = vsel %vm11478_vm10, %v7899_v52, %v7900_v63  ;;  %v7902_v13 = vrot.slane %v7900_v63, 4  ;;  %v7903_v44 = vrot.slane %v9042_v17, 5 }
 0x580   : > { %v7553_v14 = vpop.f32.mrb[86].mxu0  ;;  %7981 = vst.msk [vmem:[#allocation5 + $0x70] sm:$0xf] %vm14170_vm4, %v7901_v56  ;;  %vm13696_vm4 = vmand %vm806_vm14, %vm774_vm1  ;;  %vm7989_vm1 = vcmask 122880  }
 0x581   : > { %v7599_v31 = vmax.f32 %v7551_v45, 0.0  ;;  %v7554_v36 = vadd.f32 %v13468_v30, %v7553_v14  ;;  %v7555_v0 = vpop.f32.mrb[87].mxu0  ;;  %v7904_v35 = vsel %vm11478_vm10, %v7902_v13, %v7903_v44  ;;  %v7905_v58 = vrot.slane %v7903_v44, 4  ;;  %vm14191_vm14 = vmmov %vm14183_vm3 }
 0x582   : > { %7982 = vst.msk [vmem:[#allocation5 + $0x74] sm:$0xf] %vm14177_vm8, %v7904_v35  ;;  %v902_v61 = vsel %vm13696_vm4, %v870_v16, %v730_v1  ;;  %vm14189_vm8 = vmmov %vm14183_vm3  ;;  %v8167_v0 = vsel %vm3336_vm11, %v9569_v4, 0  ;;  %v9601_v35 = vmov 0.0   ;;  %vm8412_vm4 = vcmask 744448  }
 0x583   : > { %v7727_v38 = vsel %vm7631_vm0, %v7599_v31, 0.0  ;;  %v7600_v12 = vmax.f32 %v7554_v36, 0.0  ;;  %vm775_vm0 = vcmp.ne.s32.totalorder %v741_v24, 0 }
 0x584   : > { %v9043_v6 = vpack.c.bf16 %v7727_v38, %v7727_v38  ;;  %vm13702_vm5 = vmand %vm807_vm2, %vm775_vm0  ;;  %vm8340_vm0 = vcmask 900096   ;;  %vm8358_vm2 = vcmask 891904  }
 0x585   : > { %v7728_v62 = vsel %vm7632_vm7, %v7600_v12, 0.0  ;;  %v903_v52 = vsel %vm13702_vm5, %v871_v28, %v741_v24  ;;  %vm7635_vm7 = vcmp.lt.s32.totalorder %v902_v61, 14  ;;  %vm8430_vm5 = vcmask 736256  }
 0x586   : > { %v7906_v11 = vrot.slane %v9043_v6, 5  ;;  %v9044_v51 = vpack.c.bf16 %v7728_v62, %v7728_v62  ;;  %v7558_v10 = vpop.f32.mrb[88].mxu0  ;;  %vm7636_vm6 = vcmp.lt.s32.totalorder %v903_v52, 14 }
 0x587   : > { %v7559_v46 = vadd.f32 %v13468_v30, %v7558_v10  ;;  %v7560_v60 = vpop.f32.mrb[89].mxu0  ;;  %v9574_v10 = vld [vmem:[#allocation5 + $0x98] sm:$0xff]  }
 0x588   : > { %v7907_v18 = vsel %vm11478_vm10, %v7905_v58, %v7906_v11  ;;  %v7908_v43 = vrot.slane %v7906_v11, 4  ;;  %v7909_v42 = vrot.slane %v9044_v51, 5  ;;  %v7561_v37 = vpop.f32.mrb[90].mxu0  ;;  %v8206_v60 = vsel %vm3336_vm11, %v9575_v33, 0 }
 0x589   : > { %7983 = vst.msk [vmem:[#allocation5 + $0x78] sm:$0xf] %vm14182_vm13, %v7907_v18  ;;  %v7601_v49 = vmax.f32 %v7559_v46, 0.0  ;;  %v7562_v9 = vadd.f32 %v13468_v30, %v7561_v37  ;;  %v7563_v32 = vpop.f32.mrb[91].mxu0  ;;  %v9566_v40 = vld [vmem:[#allocation5 + $0x70] sm:$0xff]   ;;  %vm9602_vm13 = vmmov 0  }
 0x58a   : > { %v7910_v25 = vsel %vm11478_vm10, %v7908_v43, %v7909_v42  ;;  %9151 = vmatprep.subr.msk.bf16.mxu1 %vm3336_vm11, %v9566_v40  ;;  %v7911_v7 = vrot.slane %v7909_v42, 4  ;;  %v8203_v46 = vsel %vm3336_vm11, %v9574_v10, 0 }
 0x58b   : > { %7984 = vst.msk [vmem:[#allocation5 + $0x7c] sm:$0xf] %vm14183_vm3, %v7910_v25  ;;  %v7729_v47 = vsel %vm13680_vm9, %v7601_v49, 0.0  ;;  %v7602_v20 = vmax.f32 %v7562_v9, 0.0  ;;  %9081 = vmatpush3.bf16.xpose.msra.mxu1 %v8164_v23  ;;  %vm14190_vm9 = vmmov %vm14183_vm3  ;;  %vm8394_vm3 = vcmask 752640  }
 0x58c   : > { %v9045_v19 = vpack.c.bf16 %v7729_v47, %v7729_v47 }
 0x58d   : > { %v7730_v3 = vsel %vm7634_vm12, %v7602_v20, 0.0  ;;  %vm8376_vm12 = vcmask 883712  }
 0x58e   : > { %v7912_v27 = vrot.slane %v9045_v19, 5  ;;  %v9046_v22 = vpack.c.bf16 %v7730_v3, %v7730_v3  ;;  %v7566_v39 = vpop.f32.mrb[92].mxu0 }
 0x58f   : > { %v7567_v45 = vadd.f32 %v13468_v30, %v7566_v39  ;;  %v7568_v48 = vpop.f32.mrb[93].mxu0 }
 0x590   : > { %v7913_v63 = vsel %vm11478_vm10, %v7911_v7, %v7912_v27  ;;  %v7914_v17 = vrot.slane %v7912_v27, 4  ;;  %v7915_v54 = vrot.slane %v9046_v22, 5  ;;  %v7569_v8 = vpop.f32.mrb[94].mxu0 }
 0x591   : > { %7985 = vst.msk [vmem:[#allocation5 + $0x80] sm:$0xf] %vm14188_vm15, %v7913_v63  ;;  %v7603_v56 = vmax.f32 %v7567_v45, 0.0  ;;  %v7570_v13 = vadd.f32 %v13468_v30, %v7569_v8  ;;  %v7571_v14 = vpop.f32.mrb[95].mxu0 }
 0x592   : > { %v7916_v55 = vsel %vm11478_vm10, %v7914_v17, %v7915_v54  ;;  %v9568_v44 = vld [vmem:[#allocation5 + $0x78] sm:$0xff]   ;;  %v7917_v38 = vrot.slane %v7915_v54, 4 }
 0x593   : > { %7986 = vst.msk [vmem:[#allocation5 + $0x84] sm:$0xf] %vm14189_vm8, %v7916_v55  ;;  %v7731_v31 = vsel %vm7635_vm7, %v7603_v56, 0.0  ;;  %v7604_v36 = vmax.f32 %v7570_v13, 0.0  ;;  %9152 = vmatprep.subr.msk.bf16.mxu1 %vm3336_vm11, %v9568_v44 }
 0x594   : > { %v9047_v2 = vpack.c.bf16 %v7731_v31, %v7731_v31  ;;  %9083 = vmatpush3.bf16.xpose.msra.mxu1 %v8167_v0 }
 0x595   : > { %v7732_v57 = vsel %vm7636_vm6, %v7604_v36, 0.0  ;;  %9130 = vmatprep.subr.bf16.mxu1 %v9601_v35 }
 0x596   : > { %v7918_v12 = vrot.slane %v9047_v2, 5  ;;  %v9048_v41 = vpack.c.bf16 %v7732_v57, %v7732_v57 }
 0x598   : > { %v7919_v30 = vsel %vm11478_vm10, %v7917_v38, %v7918_v12  ;;  %v7920_v1 = vrot.slane %v7918_v12, 4  ;;  %v7921_v6 = vrot.slane %v9048_v41, 5 }
 0x599   : > { %7987 = vst.msk [vmem:[#allocation5 + $0x88] sm:$0xf] %vm14190_vm9, %v7919_v30 }
 0x59a   : > { %v9571_v50 = vld [vmem:[#allocation5 + $0x80] sm:$0xff]   ;;  %v7922_v34 = vsel %vm11478_vm10, %v7920_v1, %v7921_v6  ;;  %v7923_v62 = vrot.slane %v7921_v6, 4  ;;  %vm8322_vm10 = vcmask 1031168  }
 0x59b   : > { %7988 = vst.msk [vmem:[#allocation5 + $0x8c] sm:$0xf] %vm14191_vm14, %v7922_v34  ;;  %9085 = vmatmul.mubr.msk.bf16.vlgmr.msra.gmra.mrb[56].mxu1 %vm3336_vm11, %v13535_v29  ;;  %v8194_v24 = vsel %vm3336_vm11, %v9571_v50, 0 }
 0x59c   : > { %7990 = vst.msk [vmem:[#allocation5 + $0x90] sm:$0x1] %vm7989_vm1, %v7923_v62  ;;  %9131 = vmatpush3.bf16.xpose.msra.mxu1 %v8194_v24  ;;  %9140 = vmatprep.mubr.msk.bf16.mxu1 %vm9602_vm13, %v9601_v35 }
 0x59d   : > { %9132 = vmatprep.subr.bf16.mxu1 %v9601_v35 }
 0x59e   : > { %v13777_v54 = vpop.permute.xlu1 %8442 }
 0x5a2   : > { %v9572_v58 = vld [vmem:[#allocation5 + $0x88] sm:$0xff]  }
 0x5a3   : > { %v8197_v11 = vsel %vm3336_vm11, %v9572_v58, 0  ;;  %v9573_v59 = vld [vmem:[#allocation5 + $0x90] sm:$0xff]  }
 0x5a4   : > { %9133 = vmatpush3.bf16.xpose.msra.mxu1 %v8197_v11  ;;  %v8200_v51 = vsel %vm3336_vm11, %v9573_v59, 0 }
 0x5a5   : > { %9134 = vmatprep.subr.bf16.mxu1 %v9601_v35 }
 0x5ac   : > { %9135 = vmatpush3.bf16.xpose.msra.mxu1 %v8200_v51 }
 0x5ad   : > { %9136 = vmatprep.subr.bf16.mxu1 %v9601_v35 }
 0x5b4   : > { %9137 = vmatpush3.bf16.xpose.msra.mxu1 %v8203_v46 }
 0x5b5   : > { %9138 = vmatprep.subr.bf16.mxu1 %v9601_v35 }
 0x5bc   : > { %9139 = vmatpush3.bf16.xpose.msra.mxu1 %v8206_v60 }
 0x5c3   : > { %9141 = vmatmul.mubr.msk.bf16.vlgmr.msra.gmra.mrb[60].mxu1 %vm3336_vm11, %v13535_v29  ;;  %vm8304_vm11 = vcmask 1039360  }
 0x66e   : > { %v13735_v5 = vpop.f32.mrb[56].mxu1 }
 0x66f   : > { %v8313_v53 = vrot.slane %v13735_v5, 2  ;;  %v8295_v18 = vrot.slane %v13735_v5, 1  ;;  %v13739_v43 = vpop.f32.mrb[57].mxu1  ;;  %v8349_v49 = vrot.slane %v13735_v5, 4  ;;  %v8331_v29 = vrot.slane %v13735_v5, 3 }
 0x670   : > { %v8246_v42 = vpop.f32.mrb[58].mxu1  ;;  %v8403_v9 = vrot.slane %v13735_v5, 7  ;;  %v8367_v32 = vrot.slane %v13735_v5, 5  ;;  %v8385_v25 = vrot.slane %v13735_v5, 6  ;;  %v8296_v40 = vrot.slane %v13739_v43, 1 }
 0x671   : > { %8316 = vrot.lane.b32.xlu1 %v8313_v53, %s9603_s26  ;;  %8298 = vrot.lane.b32.xlu0 %v8295_v18, %s9604_s10  ;;  %v8248_v37 = vpop.f32.mrb[59].mxu1  ;;  %v8332_v16 = vrot.slane %v13739_v43, 3  ;;  %v8368_v47 = vrot.slane %v13739_v43, 5  ;;  %v8314_v20 = vrot.slane %v13739_v43, 2  ;;  %v8386_v21 = vrot.slane %v13739_v43, 6 }
 0x672   : > { %v8350_v28 = vrot.slane %v13739_v43, 4  ;;  %v8404_v19 = vrot.slane %v13739_v43, 7 }
 0x675   : > { %8352 = vrot.lane.b32.xlu1 %v8349_v49, %s9605_s14  ;;  %8334 = vrot.lane.b32.xlu0 %v8331_v29, %s9606_s17 }
 0x679   : > { %8406 = vrot.lane.b32.xlu1 %v8403_v9, %s9607_s18  ;;  %8370 = vrot.lane.b32.xlu0 %v8367_v32, %s9608_s19 }
 0x67d   : > { %8388 = vrot.lane.b32.xlu0 %v8385_v25, %s9609_s24  ;;  %8300 = vrot.lane.b32.xlu1 %v8296_v40, %s9604_s10 }
 0x681   : > { %8336 = vrot.lane.b32.xlu1 %v8332_v16, %s9606_s17  ;;  %8424 = vrot.lane.b32.xlu0 %v8246_v42, %s9610_s25 }
 0x685   : > { %8372 = vrot.lane.b32.xlu1 %v8368_v47, %s9608_s19  ;;  %8318 = vrot.lane.b32.xlu0 %v8314_v20, %s9603_s26 }
 0x689   : > { %8390 = vrot.lane.b32.xlu1 %v8386_v21, %s9609_s24  ;;  %8354 = vrot.lane.b32.xlu0 %v8350_v28, %s9605_s14 }
 0x68d   : > { %8408 = vrot.lane.b32.xlu0 %v8404_v19, %s9607_s18  ;;  %v9611_v19 = vmov 1966171168  }
 0x696   : > { %v8285_v23 = vpop.f32.mrb[60].mxu1 }
 0x697   : > { %v8315_v26 = vrot.slane %v8285_v23, 2  ;;  %v8297_v3 = vrot.slane %v8285_v23, 1  ;;  %v9142_v7 = vpop.f32.mrb[61].mxu1  ;;  %v8351_v61 = vrot.slane %v8285_v23, 4  ;;  %v8333_v39 = vrot.slane %v8285_v23, 3 }
 0x698   : > { %v8288_v27 = vpop.f32.mrb[62].mxu1  ;;  %v8405_v52 = vrot.slane %v8285_v23, 7  ;;  %v8369_v63 = vrot.slane %v8285_v23, 5  ;;  %v8387_v17 = vrot.slane %v8285_v23, 6 }
 0x699   : > { %8320 = vrot.lane.b32.xlu1 %v8315_v26, %s9603_s26  ;;  %8302 = vrot.lane.b32.xlu0 %v8297_v3, %s9604_s10  ;;  %v9143_v22 = vpop.f32.mrb[63].mxu1 }
 0x69a   : > { %v8447_v22 = vsub.s32 0, %v11413_v15 }
 0x69d   : > { %8356 = vrot.lane.b32.xlu1 %v8351_v61, %s9605_s14  ;;  %8338 = vrot.lane.b32.xlu0 %v8333_v39, %s9606_s17 }
 0x6a1   : > { %8410 = vrot.lane.b32.xlu1 %v8405_v52, %s9607_s18  ;;  %8374 = vrot.lane.b32.xlu0 %v8369_v63, %s9608_s19 }
 0x6a5   : > { %8426 = vrot.lane.b32.xlu1 %v8248_v37, %s9610_s25  ;;  %8392 = vrot.lane.b32.xlu0 %v8387_v17, %s9609_s24 }
 0x6a9   : > { %8428 = vrot.lane.b32.xlu0 %v8288_v27, %s9610_s25 }
 0x6e3   : > { %v8299_v45 = vpop.permute.xlu0 %8298  ;;  %v8317_v48 = vpop.permute.xlu1 %8316 }
 0x6e7   : > { %v8335_v4 = vpop.permute.xlu0 %8334  ;;  %v8353_v8 = vpop.permute.xlu1 %8352 }
 0x6eb   : > { %v8371_v55 = vpop.permute.xlu0 %8370  ;;  %v8407_v56 = vpop.permute.xlu1 %8406 }
 0x6ef   : > { %v8389_v13 = vpop.permute.xlu0 %8388  ;;  %v8301_v44 = vpop.permute.xlu1 %8300 }
 0x6f0   : > { %v8305_v0 = vsel %vm8304_vm11, %v8299_v45, %v8301_v44 }
 0x6f1   : > { %v8310_v38 = vadd.f32 %v8305_v0, %v13735_v5 }
 0x6f3   : > { %v8425_v14 = vpop.permute.xlu0 %8424  ;;  %v8337_v31 = vpop.permute.xlu1 %8336 }
 0x6f4   : > { %v8341_v1 = vsel %vm8340_vm0, %v8335_v4, %v8337_v31 }
 0x6f7   : > { %v8319_v36 = vpop.permute.xlu0 %8318  ;;  %v8373_v2 = vpop.permute.xlu1 %8372 }
 0x6f8   : > { %v8323_v35 = vsel %vm8322_vm10, %v8317_v48, %v8319_v36  ;;  %v8377_v5 = vsel %vm8376_vm12, %v8371_v55, %v8373_v2 }
 0x6f9   : > { %v8328_v12 = vadd.f32 %v8323_v35, %v8310_v38  ;;  %v14192_v38 = vlaneseq }
 0x6fb   : > { %v8355_v57 = vpop.permute.xlu0 %8354  ;;  %v8391_v41 = vpop.permute.xlu1 %8390  ;;  %v8346_v6 = vadd.f32 %v8341_v1, %v8328_v12  ;;  %vm8481_vm15 = vcmp.lt.s32.totalorder %v14192_v38, 288 }
 0x6fc   : > { %v8359_v50 = vsel %vm8358_vm2, %v8353_v8, %v8355_v57  ;;  %v8395_v25 = vsel %vm8394_vm3, %v8389_v13, %v8391_v41 }
 0x6fd   : > { %v8364_v11 = vadd.f32 %v8359_v50, %v8346_v6 }
 0x6ff   : > { %v8409_v30 = vpop.permute.xlu0 %8408  ;;  %v8382_v42 = vadd.f32 %v8377_v5, %v8364_v11 }
 0x700   : > { %v8413_v26 = vsel %vm8412_vm4, %v8407_v56, %v8409_v30  ;;  %v8448_v56 = vrot.slane %v13777_v54, %v8447_v22 }
 0x701   : > { %v8400_v16 = vadd.f32 %v8395_v25, %v8382_v42 }
 0x703   : > { %v8418_v61 = vadd.f32 %v8413_v26, %v8400_v16 }
 0x70b   : > { %v8321_v34 = vpop.permute.xlu1 %8320  ;;  %v8303_v62 = vpop.permute.xlu0 %8302 }
 0x70c   : > { %v8306_v24 = vsel %vm8304_vm11, %v8301_v44, %v8303_v62  ;;  %v8312_v58 = vadd.f32 %v8303_v62, %v8285_v23  ;;  %v8324_v51 = vsel %vm8322_vm10, %v8319_v36, %v8321_v34  ;;  %v8457_v23 = vunpack.c.l.s4 %v9611_v19 }
 0x70d   : > { %v8311_v59 = vadd.f32 %v8306_v24, %v13739_v43 }
 0x70e   : > { %v8330_v10 = vadd.f32 %v8321_v34, %v8312_v58  ;;  %v8458_v48 = vunpack.c.0.s8 %v8457_v23 }
 0x70f   : > { %v8357_v46 = vpop.permute.xlu1 %8356  ;;  %v8329_v33 = vadd.f32 %v8324_v51, %v8311_v59  ;;  %v8339_v60 = vpop.permute.xlu0 %8338 }
 0x710   : > { %v8342_v53 = vsel %vm8340_vm0, %v8337_v31, %v8339_v60  ;;  %v8348_v18 = vadd.f32 %v8339_v60, %v8330_v10  ;;  %v8360_v49 = vsel %vm8358_vm2, %v8355_v57, %v8357_v46 }
 0x711   : > { %v8347_v37 = vadd.f32 %v8342_v53, %v8329_v33 }
 0x712   : > { %v8366_v29 = vadd.f32 %v8357_v46, %v8348_v18 }
 0x713   : > { %v8411_v9 = vpop.permute.xlu1 %8410  ;;  %v8365_v32 = vadd.f32 %v8360_v49, %v8347_v37  ;;  %v8375_v43 = vpop.permute.xlu0 %8374 }
 0x714   : > { %v8378_v40 = vsel %vm8376_vm12, %v8373_v2, %v8375_v43  ;;  %v8384_v47 = vadd.f32 %v8375_v43, %v8366_v29  ;;  %v8414_v52 = vsel %vm8412_vm4, %v8409_v30, %v8411_v9 }
 0x715   : > { %v8383_v20 = vadd.f32 %v8378_v40, %v8365_v32 }
 0x717   : > { %v8427_v21 = vpop.permute.xlu1 %8426  ;;  %v8393_v28 = vpop.permute.xlu0 %8392 }
 0x718   : > { %v8431_v3 = vsel %vm8430_vm5, %v8425_v14, %v8427_v21  ;;  %v8396_v7 = vsel %vm8394_vm3, %v8391_v41, %v8393_v28  ;;  %v8402_v27 = vadd.f32 %v8393_v28, %v8384_v47  ;;  %v8461_v14 = vsub.s32 %v8458_v48, %v11413_v15 }
 0x719   : > { %v8401_v39 = vadd.f32 %v8396_v7, %v8383_v20  ;;  %v8436_v17 = vadd.f32 %v8431_v3, %v8418_v61 }
 0x71a   : > { %v8420_v63 = vadd.f32 %v8411_v9, %v8402_v27 }
 0x71b   : > { %v8419_v45 = vadd.f32 %v8414_v52, %v8401_v39  ;;  %v8429_v4 = vpop.permute.xlu0 %8428  ;;  %v8449_v44 = vadd.f32 %v8448_v56, %v8436_v17 }
 0x71c   : > { %v8432_v8 = vsel %vm8430_vm5, %v8427_v21, %v8429_v4  ;;  %v8438_v55 = vadd.f32 %v8429_v4, %v8420_v63 }
 0x71d   : > { %v8437_v13 = vadd.f32 %v8432_v8, %v8419_v45 }
 0x71e   : > { %v8451_v36 = vadd.f32 %v8448_v56, %v8438_v55 }
 0x71f   : > { %v8450_v31 = vadd.f32 %v8448_v56, %v8437_v13 }
 0x720   : > { %v8469_v57 = vrot.slane %v8451_v36, %v8461_v14 }
 0x721   : > { %v8455_v0 = vcombine.low %v8449_v44, %v8450_v31 }
 0x723   : > { %v8462_v2 = vrot.slane %v8455_v0, %v8461_v14 }
 0x725   : > { %v8470_v35 = vcombine.low %v8462_v2, %v8469_v57 }
 0x727   : > { %v8477_v12 = vrot.slane %v8470_v35, %v8461_v14 }
 0x729   : > { %8483 = vst.msk [vmem:[%s332_s30] sm:$0x7] %vm8481_vm15, %v8477_v12 }
 0x72a PF: > { %s21_s11 = sadd.s32 1, %s9585_s11  }
 0x72b   : > { %p18_p4 = scmp.ge.s32.totalorder %s21_s11, 4  }
 0x72d   :  { %20 = sbr.rel (!%p18_p4) target bundleno = 3 (0x3), region = 86 }

</bundles_post_ra>
